<compile_context>
chip_gen: v7x
topology: tpu7x:2x2x1
jax: 0.10.0
libtpu: 0.0.40
codegen_flags: <defaults>
</compile_context>

<pallas_src>
import functools
import math

import jax
import jax.numpy as jnp
from jax.experimental import pallas as pl
from jax.experimental.pallas import tpu as pltpu

# ----------------------------- model constants ------------------------------
BATCH = 2
DIM = 128              # original: 512
PATCH = 4
STEP = 8               # original: 28
SPATIAL = 8
MEM_SIZE = 16          # original: 128
SPECIAL = 8            # special_num_token
NUM_HEADS = 8
HEAD_DIM = DIM // NUM_HEADS
NUM_CLASSES = 11
T_STEPS = STEP // PATCH
TOKENS_PER_STEP = (SPATIAL // PATCH) * (SPATIAL // PATCH)
KV_LEN = MEM_SIZE + TOKENS_PER_STEP
HIDDEN = 3 * DIM


# ------------------------------ in-kernel math -------------------------------
def _gelu(x):
    # TODO(synk): PyTorch nn.GELU default is the exact erf form; tanh approximation is used
    # here for Mosaic-safe lowering (max abs deviation ~3e-4).
    c = 0.7978845608028654  # sqrt(2/pi)
    return 0.5 * x * (1.0 + jnp.tanh(c * (x + 0.044715 * x * x * x)))


def _ln(x, ln_ref):
    """LayerNorm over the last dim. ln_ref is (2, D): row 0 = gamma, row 1 = beta."""
    mean = jnp.mean(x, axis=-1, keepdims=True)
    xc = x - mean
    var = jnp.mean(xc * xc, axis=-1, keepdims=True)
    inv = jax.lax.rsqrt(var + 1e-5)
    return xc * inv * ln_ref[0:1, :] + ln_ref[1:2, :]


def _mm(x, w_ref, b_ref=None, act=None):
    """act(x @ W + b). W is a bf16 VMEM ref; accumulate in f32 on the MXU."""
    acc = jnp.dot(x.astype(jnp.bfloat16), w_ref[...],
                  preferred_element_type=jnp.float32)
    if b_ref is not None:
        acc = acc + b_ref[...]
    if act == "gelu":
        acc = _gelu(acc)
    elif act == "relu":
        acc = jnp.maximum(acc, 0.0)
    return acc


# ------------------------- small generic matmul kernel ------------------------
def _matmul_kernel(x_ref, w_ref, b_ref, o_ref, *, act):
    acc = jnp.dot(x_ref[...], w_ref[...], preferred_element_type=jnp.float32)
    acc = acc + b_ref[...]
    if act == "relu":
        acc = jnp.maximum(acc, 0.0)
    elif act == "gelu":
        acc = _gelu(acc)
    o_ref[...] = acc.astype(o_ref.dtype)


def linear(x, w, b, act="none"):
    """y = act(x @ w + b); single whole-array pallas_call (used for the patch embed)."""
    lead = x.shape[:-1]
    K = x.shape[-1]
    N = w.shape[-1]
    x2 = x.reshape(-1, K)
    M = x2.shape[0]
    out = pl.pallas_call(
        functools.partial(_matmul_kernel, act=act),
        out_shape=jax.ShapeDtypeStruct((M, N), jnp.float32),
    )(x2, w, b.reshape(1, N))
    return out.reshape(lead + (N,))


# ----------------------- fused per-time-step mega-kernel -----------------------
def _ttm_step_kernel(
        # batched activations (block-indexed per batch item)
        all_ref, mem_ref, q_ref,
        # attention: per-head weight slices (bf16) + biases
        wq, bq, wk, bk, wv, bv, wo, bo,
        # shared MLP + final norm
        mlp_ln, mlp_w1, mlp_b1, mlp_w2, mlp_b2, norm_ln,
        # token add/erase: select head
        tb1_ln, tb1_w1, tb1_b1, tb1_w2, tb1_b2,
        # erase tokens (transposed, lane-dense formulation)
        ln1, tb2_w1t, tb2_w2t, tb2_c, tb2p_w1, tb2p_b1, tb2p_w2, tb2p_b2,
        # add tokens
        ln2, tb3_w1t, tb3_w2t, tb3_c, tb3p_w1, tb3p_b1, tb3p_w2, tb3p_b2,
        # outputs
        newmem_ref, out_ref,
        # scratch
        sel_scr, et_scr):
    allt = all_ref[0]                                 # (L, D) f32
    memv = mem_ref[0]                                 # (M, D) f32
    allt_b = allt.astype(jnp.bfloat16)
    q_b = q_ref[0].astype(jnp.bfloat16)               # (S, D)
    scale = 1.0 / math.sqrt(HEAD_DIM)

    # ---- multi-head attention: unrolled heads, per-head weight slices (no transposes) ----
    attn = jnp.zeros((SPECIAL, DIM), jnp.float32)
    for h in range(NUM_HEADS):
        qh = jnp.dot(q_b, wq[h], preferred_element_type=jnp.float32) + bq[h]      # (S, hd)
        kh = jnp.dot(allt_b, wk[h], preferred_element_type=jnp.float32) + bk[h]   # (L, hd)
        vh = jnp.dot(allt_b, wv[h], preferred_element_type=jnp.float32) + bv[h]   # (L, hd)
        s = jnp.dot(qh, kh.T, preferred_element_type=jnp.float32) * scale         # (S, L)
        s = s - jnp.max(s, axis=-1, keepdims=True)
        p = jnp.exp(s)
        p = p * pl.reciprocal(jnp.sum(p, axis=-1, keepdims=True), approx=True)
        # TODO(synk): attention-weight dropout (p=0.1) skipped (inference semantics).
        oh = jnp.dot(p, vh, preferred_element_type=jnp.float32)                   # (S, hd)
        attn = attn + jnp.dot(oh.astype(jnp.bfloat16), wo[h],
                              preferred_element_type=jnp.float32)                 # (S, D)
    out_tok = attn + bo[...]

    # ---- 3x MLP (shared weights, as in the reference) + final norm ----
    for _ in range(3):
        hid = _mm(_ln(out_tok, mlp_ln), mlp_w1, mlp_b1, act="gelu")               # (S, 3D)
        out_tok = _mm(hid, mlp_w2, mlp_b2, act="gelu")                            # (S, D)
    out_tok = _ln(out_tok, norm_ln)
    out_ref[0] = out_tok

    # ---- token add / erase ----
    # select: (M, 8) logits; softmax over the memory axis (axis 0)
    s1 = _mm(_ln(memv, tb1_ln), tb1_w1, tb1_b1)                                   # (M, 3D)
    sel_logits = _mm(s1, tb1_w2, tb1_b2, act="gelu")                              # (M, 8)
    sel_scr[...] = sel_logits
    cmax = sel_scr[0:1, :]                       # column max built from sublane slices
    for r in range(1, MEM_SIZE):
        cmax = jnp.maximum(cmax, sel_scr[r:r + 1, :])
    e = jnp.exp(sel_logits - cmax)
    csum = jnp.dot(jnp.ones((1, MEM_SIZE), jnp.float32), e,
                   preferred_element_type=jnp.float32)                            # (1, 8)
    sel = e * pl.reciprocal(csum, approx=True)                                    # (M, 8)
    sel_scr[...] = sel

    # erase tokens: transposed-weight form of Sequential(Linear(8,3D),Linear(3D,8),GELU)
    # followed by Sequential(Linear(D,3D),Linear(3D,D),GELU) — keeps D=128 on the lane axis.
    ln1c = _ln(out_tok, ln1)                                                      # (S, D)
    t1 = jnp.dot(tb2_w1t[...], ln1c.astype(jnp.bfloat16),
                 preferred_element_type=jnp.float32)                              # (3D, D)
    et_mid = _gelu(jnp.dot(tb2_w2t[...], t1.astype(jnp.bfloat16),
                           preferred_element_type=jnp.float32) + tb2_c[...])      # (S, D)
    et = _mm(_mm(et_mid, tb2p_w1, tb2p_b1), tb2p_w2, tb2p_b2, act="gelu")         # (S, D)
    et_scr[...] = et

    # add tokens
    ln2c = _ln(out_tok, ln2)
    t2 = jnp.dot(tb3_w1t[...], ln2c.astype(jnp.bfloat16),
                 preferred_element_type=jnp.float32)
    at_mid = _gelu(jnp.dot(tb3_w2t[...], t2.astype(jnp.bfloat16),
                           preferred_element_type=jnp.float32) + tb3_c[...])
    at = _mm(_mm(at_mid, tb3p_w1, tb3p_b1), tb3p_w2, tb3p_b2, act="gelu")         # (S, D)

    # wet = prod_i (1 - sel_i ⊗ et_i)          (8 unrolled rank-1 updates on the VPU)
    # wat = mean_i(1 - sel_i ⊗ at_i) = 1 - (sel @ at)/8   (single MXU matmul)
    wet = jnp.ones((MEM_SIZE, DIM), jnp.float32)
    for i in range(SPECIAL):
        wet = wet * (1.0 - sel_scr[:, i:i + 1] * et_scr[i:i + 1, :])
    wat = jnp.dot(sel.astype(jnp.bfloat16), at.astype(jnp.bfloat16),
                  preferred_element_type=jnp.float32)                             # (M, D)
    newmem_ref[0] = memv * wet + (1.0 - wat * (1.0 / SPECIAL))


def _prep_step_params(p):
    """Reshape / transpose / bf16-cast all per-step weights once, outside the kernel."""
    H, hd, D = NUM_HEADS, HEAD_DIM, DIM
    bf = jnp.bfloat16

    def perhead_w(w):   # (D, D) -> (H, D, hd): column block h -> head h
        return w.reshape(D, H, hd).transpose(1, 0, 2).astype(bf)

    def perhead_b(b):   # (D,) -> (H, 1, hd)
        return b.reshape(H, 1, hd).astype(jnp.float32)

    def rowb(b):        # (N,) -> (1, N)
        return b.reshape(1, -1).astype(jnp.float32)

    def ln(g, b):       # -> (2, D)
        return jnp.stack([g, b], axis=0).astype(jnp.float32)

    def fold_c(w2, b1, b2):   # exact fold: (z@W1+b1)@W2+b2, transposed -> col bias W2ᵀb1+b2
        return (w2.T @ b1 + b2).reshape(SPECIAL, 1).astype(jnp.float32)

    return [
        perhead_w(p["wq"]), perhead_b(p["bq"]),
        perhead_w(p["wk"]), perhead_b(p["bk"]),
        perhead_w(p["wv"]), perhead_b(p["bv"]),
        p["wo"].reshape(H, hd, D).astype(bf), rowb(p["bo"]),
        ln(p["mlp_ln_g"], p["mlp_ln_b"]),
        p["mlp_w1"].astype(bf), rowb(p["mlp_b1"]),
        p["mlp_w2"].astype(bf), rowb(p["mlp_b2"]),
        ln(p["norm_g"], p["norm_b"]),
        ln(p["tb1_ln_g"], p["tb1_ln_b"]),
        p["tb1_w1"].astype(bf), rowb(p["tb1_b1"]),
        p["tb1_w2"].astype(bf), rowb(p["tb1_b2"]),
        ln(p["ln1_g"], p["ln1_b"]),
        p["tb2_w1"].T.astype(bf), p["tb2_w2"].T.astype(bf),
        fold_c(p["tb2_w2"], p["tb2_b1"], p["tb2_b2"]),
        p["tb2p_w1"].astype(bf), rowb(p["tb2p_b1"]),
        p["tb2p_w2"].astype(bf), rowb(p["tb2p_b2"]),
        ln(p["ln2_g"], p["ln2_b"]),
        p["tb3_w1"].T.astype(bf), p["tb3_w2"].T.astype(bf),
        fold_c(p["tb3_w2"], p["tb3_b1"], p["tb3_b2"]),
        p["tb3p_w1"].astype(bf), rowb(p["tb3p_b1"]),
        p["tb3p_w2"].astype(bf), rowb(p["tb3p_b2"]),
    ]


def ttm_step(all_token, mem, q_param, step_weights):
    """One fused time-step: attention + 3x MLP + final LN + token add/erase."""
    B = mem.shape[0]
    batched = [all_token, mem, q_param]

    def bspec(a):
        return pl.BlockSpec((1,) + a.shape[1:], lambda b: (b, 0, 0))

    def wspec(a):
        zeros = (0,) * a.ndim
        return pl.BlockSpec(a.shape, lambda b, _z=zeros: _z)

    in_specs = [bspec(a) for a in batched] + [wspec(a) for a in step_weights]
    out_specs = [pl.BlockSpec((1, MEM_SIZE, DIM), lambda b: (b, 0, 0)),
                 pl.BlockSpec((1, SPECIAL, DIM), lambda b: (b, 0, 0))]

    new_mem, out_tok = pl.pallas_call(
        _ttm_step_kernel,
        out_shape=(jax.ShapeDtypeStruct((B, MEM_SIZE, DIM), jnp.float32),
                   jax.ShapeDtypeStruct((B, SPECIAL, DIM), jnp.float32)),
        grid=(B,),
        in_specs=in_specs,
        out_specs=out_specs,
        scratch_shapes=[pltpu.VMEM((MEM_SIZE, SPECIAL), jnp.float32),
                        pltpu.VMEM((SPECIAL, DIM), jnp.float32)],
        compiler_params=pltpu.CompilerParams(dimension_semantics=("parallel",)),
    )(*batched, *step_weights)
    return new_mem, out_tok


# ------------------------------- fused epilogue --------------------------------
def _epilogue_kernel(outs_ref, mem_ref, noise_ref, lw_ref, lb_ref, cw_ref, cb_ref,
                     ln_ref, logits_ref, mem_out_ref):
    # linear_1 over the T*8 axis with D kept lane-dense: (1, T*8) @ (T*8, D) -> (1, D)
    feat = jnp.dot(lw_ref[...], outs_ref[0], preferred_element_type=jnp.float32) + lb_ref[...]
    feat = jnp.maximum(feat, 0.0)                                                 # ReLU
    logits_ref[0] = jnp.dot(feat, cw_ref[...],
                            preferred_element_type=jnp.float32) + cb_ref[...]     # (1, 11)
    memn = _ln(mem_ref[0], ln_ref)
    mem_out_ref[0] = 0.42 * noise_ref[0] + memn                                   # mem_process_v2


def epilogue(outs2, mem, noise, p):
    B = outs2.shape[0]
    lw = p["lin1_w"].reshape(1, T_STEPS * SPECIAL)
    lb = p["lin1_b"].reshape(1, 1)
    cw = p["cls_w"]
    cb = p["cls_b"].reshape(1, NUM_CLASSES)
    lnp = jnp.stack([p["final_ln_g"], p["final_ln_b"]], axis=0)
    batched = [outs2, mem, noise]
    weights = [lw, lb, cw, cb, lnp]
    in_specs = ([pl.BlockSpec((1,) + a.shape[1:], lambda b: (b, 0, 0)) for a in batched]
                + [pl.BlockSpec(a.shape, lambda b: (0, 0)) for a in weights])
    logits, mem_out = pl.pallas_call(
        _epilogue_kernel,
        out_shape=(jax.ShapeDtypeStruct((B, 1, NUM_CLASSES), jnp.float32),
                   jax.ShapeDtypeStruct((B, MEM_SIZE, DIM), jnp.float32)),
        grid=(B,),
        in_specs=in_specs,
        out_specs=[pl.BlockSpec((1, 1, NUM_CLASSES), lambda b: (b, 0, 0)),
                   pl.BlockSpec((1, MEM_SIZE, DIM), lambda b: (b, 0, 0))],
        compiler_params=pltpu.CompilerParams(dimension_semantics=("parallel",)),
    )(*batched, *weights)
    return logits[:, 0, :], mem_out


# ------------------------------- model blocks ---------------------------------
def pre_process(x, p):
    """Conv3d(1, DIM, kernel=stride=PATCH) + ReLU + flatten(3) + permute(0,2,3,1), as im2col."""
    B = x.shape[0]
    Td, Hp, Wp = STEP // PATCH, SPATIAL // PATCH, SPATIAL // PATCH
    xv = x[:, 0]                                                    # (B, D, H, W)
    patches = xv.reshape(B, Td, PATCH, Hp, PATCH, Wp, PATCH)
    patches = patches.transpose(0, 1, 3, 5, 2, 4, 6)                # (B, Td, Hp, Wp, kd, kh, kw)
    patches = patches.reshape(B * Td * Hp * Wp, PATCH ** 3)
    y = linear(patches, p["conv_w"], p["conv_b"], act="relu")       # (B*T*len, DIM)
    return y.reshape(B, Td, Hp * Wp, DIM)


def ttm_forward(x, p, key, mem=None):
    feat = pre_process(x, p)                                        # (B, T, len, D)
    B, T = feat.shape[0], feat.shape[1]
    if mem is None:
        mem = jnp.zeros((B, MEM_SIZE, DIM), jnp.float32)
    step_weights = _prep_step_params(p)
    outs = []
    for i in range(T):
        step_input = feat[:, i]                                     # (B, len, D)
        all_token = jnp.concatenate([mem, step_input], axis=1)      # (B, MEM+len, D)
        # pos_add: a fresh N(0, 0.02) positional embedding every call (as in the reference)
        pos = 0.02 * jax.random.normal(jax.random.fold_in(key, i),
                                       (1, KV_LEN, DIM), jnp.float32)
        mem, out = ttm_step(all_token + pos, mem, p["q_param"], step_weights)
        outs.append(out)
    outs2 = jnp.stack(outs, axis=1).reshape(B, T * SPECIAL, DIM)    # (B, T*8, D)
    noise = jax.random.normal(jax.random.fold_in(key, 9999),
                              (B, MEM_SIZE, DIM), jnp.float32)
    logits, mem_out = epilogue(outs2, mem, noise, p)                # (B, 11), (B, M, D)
    return logits, mem_out


# ------------------------------- parameters -----------------------------------
def init_params(key):
    ks = iter(jax.random.split(key, 24))

    def dense(fan_in, fan_out):
        w = 0.02 * jax.random.normal(next(ks), (fan_in, fan_out), jnp.float32)
        b = jnp.zeros((fan_out,), jnp.float32)
        return w, b

    def ln():
        return jnp.ones((DIM,), jnp.float32), jnp.zeros((DIM,), jnp.float32)

    p = {}
    p["conv_w"], p["conv_b"] = dense(PATCH ** 3, DIM)
    p["wq"], p["bq"] = dense(DIM, DIM)
    p["wk"], p["bk"] = dense(DIM, DIM)
    p["wv"], p["bv"] = dense(DIM, DIM)
    p["wo"], p["bo"] = dense(DIM, DIM)
    p["q_param"] = jax.random.normal(next(ks), (BATCH, SPECIAL, DIM), jnp.float32)
    p["mlp_ln_g"], p["mlp_ln_b"] = ln()
    p["mlp_w1"], p["mlp_b1"] = dense(DIM, 3 * DIM)
    p["mlp_w2"], p["mlp_b2"] = dense(3 * DIM, DIM)
    p["norm_g"], p["norm_b"] = ln()
    p["tb1_ln_g"], p["tb1_ln_b"] = ln()
    p["tb1_w1"], p["tb1_b1"] = dense(DIM, 3 * DIM)
    p["tb1_w2"], p["tb1_b2"] = dense(3 * DIM, SPECIAL)
    p["ln1_g"], p["ln1_b"] = ln()
    p["ln2_g"], p["ln2_b"] = ln()
    p["tb2_w1"], p["tb2_b1"] = dense(SPECIAL, 3 * DIM)
    p["tb2_w2"], p["tb2_b2"] = dense(3 * DIM, SPECIAL)
    p["tb2p_w1"], p["tb2p_b1"] = dense(DIM, 3 * DIM)
    p["tb2p_w2"], p["tb2p_b2"] = dense(3 * DIM, DIM)
    p["tb3_w1"], p["tb3_b1"] = dense(SPECIAL, 3 * DIM)
    p["tb3_w2"], p["tb3_b2"] = dense(3 * DIM, SPECIAL)
    p["tb3p_w1"], p["tb3p_b1"] = dense(DIM, 3 * DIM)
    p["tb3p_w2"], p["tb3p_b2"] = dense(3 * DIM, DIM)
    p["lin1_w"], p["lin1_b"] = dense(T_STEPS * SPECIAL, 1)
    p["cls_w"], p["cls_b"] = dense(DIM, NUM_CLASSES)
    p["final_ln_g"], p["final_ln_b"] = ln()
    return p


# ---------------------------------- main ---------------------------------------
if __name__ == "__main__":
    key = jax.random.PRNGKey(0)
    pkey, xkey, fkey = jax.random.split(key, 3)
    params = init_params(pkey)
    # layout: NCDHW input volume, matching the PyTorch Conv3d convention.
    x = jax.random.normal(xkey, (BATCH, 1, STEP, SPATIAL, SPATIAL), jnp.float32)

    fwd = jax.jit(ttm_forward)
    logits, mem = fwd(x, params, fkey)
    jax.block_until_ready((logits, mem))

    assert logits.shape == (BATCH, NUM_CLASSES), logits.shape
    assert mem.shape == (BATCH, MEM_SIZE, DIM), mem.shape
    assert bool(jnp.all(jnp.isfinite(logits))) and bool(jnp.all(jnp.isfinite(mem)))
    print("KERNEL_OK")
</pallas_src>

<mosaic_0001>
module attributes {stable_mosaic.version = 11 : i64} {
  func.func @_matmul_kernel(%arg0: memref<16x64xf32, #tpu.memory_space<vmem>>, %arg1: memref<64x128xf32, #tpu.memory_space<vmem>>, %arg2: memref<1x128xf32, #tpu.memory_space<vmem>>, %arg3: memref<16x128xf32, #tpu.memory_space<vmem>>) attributes {dimension_semantics = [], scalar_prefetch = 0 : i64, scratch_operands = 0 : i64, tpu.core_type = #tpu.core_type<tc>} {
    %c0 = arith.constant 0 : index
    %c0_0 = arith.constant 0 : index
    %0 = vector.load %arg0[%c0, %c0_0] : memref<16x64xf32, #tpu.memory_space<vmem>>, vector<16x64xf32>
    %c0_1 = arith.constant 0 : index
    %c0_2 = arith.constant 0 : index
    %1 = vector.load %arg1[%c0_1, %c0_2] : memref<64x128xf32, #tpu.memory_space<vmem>>, vector<64x128xf32>
    %cst = arith.constant dense<0.000000e+00> : vector<16x128xf32>
    %2 = tpu.matmul %0, %1, %cst {dimension_numbers = #tpu.dot_dimension_numbers<[1], [0], [0], [1], [0, 0, 1, 1], [], []>} : vector<16x64xf32>, vector<64x128xf32>, vector<16x128xf32> -> vector<16x128xf32>
    %c0_3 = arith.constant 0 : index
    %c0_4 = arith.constant 0 : index
    %3 = vector.load %arg2[%c0_3, %c0_4] : memref<1x128xf32, #tpu.memory_space<vmem>>, vector<1x128xf32>
    %4 = vector.broadcast %3 : vector<1x128xf32> to vector<16x128xf32>
    %5 = arith.addf %2, %4 : vector<16x128xf32>
    %cst_5 = arith.constant 0.000000e+00 : f32
    %6 = vector.broadcast %cst_5 : f32 to vector<16x128xf32>
    %7 = arith.maximumf %5, %6 : vector<16x128xf32>
    %c0_6 = arith.constant 0 : index
    %c0_7 = arith.constant 0 : index
    %8 = vector.load %arg3[%c0_6, %c0_7] : memref<16x128xf32, #tpu.memory_space<vmem>>, vector<16x128xf32>
    tpu.vector_store %arg3[%c0_6, %c0_7], %7 {strides = array<i32>} : memref<16x128xf32, #tpu.memory_space<vmem>>, vector<16x128xf32>,
    return
  }
}

module attributes {stable_mosaic.version = 11 : i64} {
  func.func @_epilogue_kernel(%arg0: i32, %arg1: memref<1x16x128xf32, #tpu.memory_space<vmem>>, %arg2: memref<1x16x128xf32, #tpu.memory_space<vmem>>, %arg3: memref<1x16x128xf32, #tpu.memory_space<vmem>>, %arg4: memref<1x16xf32, #tpu.memory_space<vmem>>, %arg5: memref<1x1xf32, #tpu.memory_space<vmem>>, %arg6: memref<128x11xf32, #tpu.memory_space<vmem>>, %arg7: memref<1x11xf32, #tpu.memory_space<vmem>>, %arg8: memref<2x128xf32, #tpu.memory_space<vmem>>, %arg9: memref<1x1x11xf32, #tpu.memory_space<vmem>>, %arg10: memref<1x16x128xf32, #tpu.memory_space<vmem>>) attributes {dimension_semantics = [#tpu.dimension_semantics<parallel>], iteration_bounds = array<i64: 2>, scalar_prefetch = 0 : i64, scratch_operands = 0 : i64, tpu.core_type = #tpu.core_type<tc>, window_params = [{transform_indices = @transform_0, window_bounds = array<i64: 1, 16, 128>}, {transform_indices = @transform_1, window_bounds = array<i64: 1, 16, 128>}, {transform_indices = @transform_2, window_bounds = array<i64: 1, 16, 128>}, {pipeline_mode = #tpu.pipeline_mode<synchronous>, transform_indices = @transform_3, window_bounds = array<i64: 1, 16>}, {pipeline_mode = #tpu.pipeline_mode<synchronous>, transform_indices = @transform_4, window_bounds = array<i64: 1, 1>}, {pipeline_mode = #tpu.pipeline_mode<synchronous>, transform_indices = @transform_5, window_bounds = array<i64: 128, 11>}, {pipeline_mode = #tpu.pipeline_mode<synchronous>, transform_indices = @transform_6, window_bounds = array<i64: 1, 11>}, {pipeline_mode = #tpu.pipeline_mode<synchronous>, transform_indices = @transform_7, window_bounds = array<i64: 2, 128>}, {transform_indices = @transform_8, window_bounds = array<i64: 1, 1, 11>}, {transform_indices = @transform_9, window_bounds = array<i64: 1, 16, 128>}]} {
    %c0 = arith.constant 0 : index
    %c0_0 = arith.constant 0 : index
    %0 = vector.load %arg4[%c0, %c0_0] : memref<1x16xf32, #tpu.memory_space<vmem>>, vector<1x16xf32>
    %c0_1 = arith.constant 0 : index
    %c0_2 = arith.constant 0 : index
    %c0_3 = arith.constant 0 : index
    %1 = vector.load %arg1[%c0_1, %c0_2, %c0_3] : memref<1x16x128xf32, #tpu.memory_space<vmem>>, vector<1x16x128xf32>
    %2 = vector.shape_cast %1 : vector<1x16x128xf32> to vector<16x128xf32>
    %cst = arith.constant dense<0.000000e+00> : vector<1x128xf32>
    %3 = tpu.matmul %0, %2, %cst {dimension_numbers = #tpu.dot_dimension_numbers<[1], [0], [0], [1], [0, 0, 1, 1], [], []>} : vector<1x16xf32>, vector<16x128xf32>, vector<1x128xf32> -> vector<1x128xf32>
    %c0_4 = arith.constant 0 : index
    %c0_5 = arith.constant 0 : index
    %4 = vector.load %arg5[%c0_4, %c0_5] : memref<1x1xf32, #tpu.memory_space<vmem>>, vector<1x1xf32>
    %5 = vector.broadcast %4 : vector<1x1xf32> to vector<1x128xf32>
    %6 = arith.addf %3, %5 : vector<1x128xf32>
    %cst_6 = arith.constant 0.000000e+00 : f32
    %7 = vector.broadcast %cst_6 : f32 to vector<1x128xf32>
    %8 = arith.maximumf %6, %7 : vector<1x128xf32>
    %c0_7 = arith.constant 0 : index
    %c0_8 = arith.constant 0 : index
    %9 = vector.load %arg6[%c0_7, %c0_8] : memref<128x11xf32, #tpu.memory_space<vmem>>, vector<128x11xf32>
    %cst_9 = arith.constant dense<0.000000e+00> : vector<1x11xf32>
    %10 = tpu.matmul %8, %9, %cst_9 {dimension_numbers = #tpu.dot_dimension_numbers<[1], [0], [0], [1], [0, 0, 1, 1], [], []>} : vector<1x128xf32>, vector<128x11xf32>, vector<1x11xf32> -> vector<1x11xf32>
    %c0_10 = arith.constant 0 : index
    %c0_11 = arith.constant 0 : index
    %11 = vector.load %arg7[%c0_10, %c0_11] : memref<1x11xf32, #tpu.memory_space<vmem>>, vector<1x11xf32>
    %12 = arith.addf %10, %11 : vector<1x11xf32>
    %c0_12 = arith.constant 0 : index
    %c0_13 = arith.constant 0 : index
    %c0_14 = arith.constant 0 : index
    %13 = vector.load %arg9[%c0_12, %c0_13, %c0_14] : memref<1x1x11xf32, #tpu.memory_space<vmem>>, vector<1x1x11xf32>
    %14 = vector.shape_cast %13 : vector<1x1x11xf32> to vector<1x11xf32>
    %15 = vector.shape_cast %12 : vector<1x11xf32> to vector<1x1x11xf32>
    tpu.vector_store %arg9[%c0_12, %c0_13, %c0_14], %15 {strides = array<i32>} : memref<1x1x11xf32, #tpu.memory_space<vmem>>, vector<1x1x11xf32>,
    %c0_15 = arith.constant 0 : index
    %c0_16 = arith.constant 0 : index
    %c0_17 = arith.constant 0 : index
    %16 = vector.load %arg2[%c0_15, %c0_16, %c0_17] : memref<1x16x128xf32, #tpu.memory_space<vmem>>, vector<1x16x128xf32>
    %17 = vector.shape_cast %16 : vector<1x16x128xf32> to vector<16x128xf32>
    %cst_18 = arith.constant dense<0.000000e+00> : vector<16xf32>
    %18 = vector.multi_reduction <add>, %17, %cst_18 [1] : vector<16x128xf32> to vector<16xf32>
    %19 = vector.shape_cast %18 : vector<16xf32> to vector<16x1xf32>
    %cst_19 = arith.constant 1.280000e+02 : f32
    %20 = vector.broadcast %cst_19 : f32 to vector<16x1xf32>
    %21 = arith.divf %19, %20 : vector<16x1xf32>
    %22 = vector.broadcast %21 : vector<16x1xf32> to vector<16x128xf32>
    %23 = arith.subf %17, %22 : vector<16x128xf32>
    %24 = arith.mulf %23, %23 : vector<16x128xf32>
    %cst_20 = arith.constant dense<0.000000e+00> : vector<16xf32>
    %25 = vector.multi_reduction <add>, %24, %cst_20 [1] : vector<16x128xf32> to vector<16xf32>
    %26 = vector.shape_cast %25 : vector<16xf32> to vector<16x1xf32>
    %cst_21 = arith.constant 1.280000e+02 : f32
    %27 = vector.broadcast %cst_21 : f32 to vector<16x1xf32>
    %28 = arith.divf %26, %27 : vector<16x1xf32>
    %cst_22 = arith.constant 9.99999974E-6 : f32
    %29 = vector.broadcast %cst_22 : f32 to vector<16x1xf32>
    %30 = arith.addf %28, %29 : vector<16x1xf32>
    %31 = math.rsqrt %30 : vector<16x1xf32>
    %32 = vector.broadcast %31 : vector<16x1xf32> to vector<16x128xf32>
    %33 = arith.mulf %23, %32 : vector<16x128xf32>
    %c0_23 = arith.constant 0 : index
    %c0_24 = arith.constant 0 : index
    %34 = vector.load %arg8[%c0_23, %c0_24] : memref<2x128xf32, #tpu.memory_space<vmem>>, vector<1x128xf32>
    %35 = vector.broadcast %34 : vector<1x128xf32> to vector<16x128xf32>
    %36 = arith.mulf %33, %35 : vector<16x128xf32>
    %c1 = arith.constant 1 : index
    %c0_25 = arith.constant 0 : index
    %37 = vector.load %arg8[%c1, %c0_25] : memref<2x128xf32, #tpu.memory_space<vmem>>, vector<1x128xf32>
    %38 = vector.broadcast %37 : vector<1x128xf32> to vector<16x128xf32>
    %39 = arith.addf %36, %38 : vector<16x128xf32>
    %c0_26 = arith.constant 0 : index
    %c0_27 = arith.constant 0 : index
    %c0_28 = arith.constant 0 : index
    %40 = vector.load %arg3[%c0_26, %c0_27, %c0_28] : memref<1x16x128xf32, #tpu.memory_space<vmem>>, vector<1x16x128xf32>
    %41 = vector.shape_cast %40 : vector<1x16x128xf32> to vector<16x128xf32>
    %cst_29 = arith.constant 4.200000e-01 : f32
    %42 = vector.broadcast %cst_29 : f32 to vector<16x128xf32>
    %43 = arith.mulf %42, %41 : vector<16x128xf32>
    %44 = arith.addf %43, %39 : vector<16x128xf32>
    %c0_30 = arith.constant 0 : index
    %c0_31 = arith.constant 0 : index
    %c0_32 = arith.constant 0 : index
    %45 = vector.load %arg10[%c0_30, %c0_31, %c0_32] : memref<1x16x128xf32, #tpu.memory_space<vmem>>, vector<1x16x128xf32>
    %46 = vector.shape_cast %45 : vector<1x16x128xf32> to vector<16x128xf32>
    %47 = vector.shape_cast %44 : vector<16x128xf32> to vector<1x16x128xf32>
    tpu.vector_store %arg10[%c0_30, %c0_31, %c0_32], %47 {strides = array<i32>} : memref<1x16x128xf32, #tpu.memory_space<vmem>>, vector<1x16x128xf32>,
    return
  }
  func.func @transform_0(%arg0: i32) -> (i32, i32, i32) {
    %c0_i32 = arith.constant 0 : i32
    %c0_i32_0 = arith.constant 0 : i32
    %c0_i32_1 = arith.constant 0 : i32
    return %arg0, %c0_i32, %c0_i32_0 : i32, i32, i32
  }
  func.func @transform_1(%arg0: i32) -> (i32, i32, i32) {
    %c0_i32 = arith.constant 0 : i32
    %c0_i32_0 = arith.constant 0 : i32
    %c0_i32_1 = arith.constant 0 : i32
    return %arg0, %c0_i32, %c0_i32_0 : i32, i32, i32
  }
  func.func @transform_2(%arg0: i32) -> (i32, i32, i32) {
    %c0_i32 = arith.constant 0 : i32
    %c0_i32_0 = arith.constant 0 : i32
    %c0_i32_1 = arith.constant 0 : i32
    return %arg0, %c0_i32, %c0_i32_0 : i32, i32, i32
  }
  func.func @transform_3(%arg0: i32) -> (i32, i32) {
    %c0_i32 = arith.constant 0 : i32
    %c0_i32_0 = arith.constant 0 : i32
    %c0_i32_1 = arith.constant 0 : i32
    return %c0_i32, %c0_i32_0 : i32, i32
  }
  func.func @transform_4(%arg0: i32) -> (i32, i32) {
    %c0_i32 = arith.constant 0 : i32
    %c0_i32_0 = arith.constant 0 : i32
    %c0_i32_1 = arith.constant 0 : i32
    return %c0_i32, %c0_i32_0 : i32, i32
  }
  func.func @transform_5(%arg0: i32) -> (i32, i32) {
    %c0_i32 = arith.constant 0 : i32
    %c0_i32_0 = arith.constant 0 : i32
    %c0_i32_1 = arith.constant 0 : i32
    return %c0_i32, %c0_i32_0 : i32, i32
  }
  func.func @transform_6(%arg0: i32) -> (i32, i32) {
    %c0_i32 = arith.constant 0 : i32
    %c0_i32_0 = arith.constant 0 : i32
    %c0_i32_1 = arith.constant 0 : i32
    return %c0_i32, %c0_i32_0 : i32, i32
  }
  func.func @transform_7(%arg0: i32) -> (i32, i32) {
    %c0_i32 = arith.constant 0 : i32
    %c0_i32_0 = arith.constant 0 : i32
    %c0_i32_1 = arith.constant 0 : i32
    return %c0_i32, %c0_i32_0 : i32, i32
  }
  func.func @transform_8(%arg0: i32) -> (i32, i32, i32) {
    %c0_i32 = arith.constant 0 : i32
    %c0_i32_0 = arith.constant 0 : i32
    %c0_i32_1 = arith.constant 0 : i32
    return %arg0, %c0_i32, %c0_i32_0 : i32, i32, i32
  }
  func.func @transform_9(%arg0: i32) -> (i32, i32, i32) {
    %c0_i32 = arith.constant 0 : i32
    %c0_i32_0 = arith.constant 0 : i32
    %c0_i32_1 = arith.constant 0 : i32
    return %arg0, %c0_i32, %c0_i32_0 : i32, i32, i32
  }
}

module attributes {stable_mosaic.version = 11 : i64} {
  func.func @_ttm_step_kernel(%arg0: i32, %arg1: memref<1x20x128xf32, #tpu.memory_space<vmem>>, %arg2: memref<1x16x128xf32, #tpu.memory_space<vmem>>, %arg3: memref<1x8x128xf32, #tpu.memory_space<vmem>>, %arg4: memref<8x128x16xbf16, #tpu.memory_space<vmem>>, %arg5: memref<8x1x16xf32, #tpu.memory_space<vmem>>, %arg6: memref<8x128x16xbf16, #tpu.memory_space<vmem>>, %arg7: memref<8x1x16xf32, #tpu.memory_space<vmem>>, %arg8: memref<8x128x16xbf16, #tpu.memory_space<vmem>>, %arg9: memref<8x1x16xf32, #tpu.memory_space<vmem>>, %arg10: memref<8x16x128xbf16, #tpu.memory_space<vmem>>, %arg11: memref<1x128xf32, #tpu.memory_space<vmem>>, %arg12: memref<2x128xf32, #tpu.memory_space<vmem>>, %arg13: memref<128x384xbf16, #tpu.memory_space<vmem>>, %arg14: memref<1x384xf32, #tpu.memory_space<vmem>>, %arg15: memref<384x128xbf16, #tpu.memory_space<vmem>>, %arg16: memref<1x128xf32, #tpu.memory_space<vmem>>, %arg17: memref<2x128xf32, #tpu.memory_space<vmem>>, %arg18: memref<2x128xf32, #tpu.memory_space<vmem>>, %arg19: memref<128x384xbf16, #tpu.memory_space<vmem>>, %arg20: memref<1x384xf32, #tpu.memory_space<vmem>>, %arg21: memref<384x8xbf16, #tpu.memory_space<vmem>>, %arg22: memref<1x8xf32, #tpu.memory_space<vmem>>, %arg23: memref<2x128xf32, #tpu.memory_space<vmem>>, %arg24: memref<384x8xbf16, #tpu.memory_space<vmem>>, %arg25: memref<8x384xbf16, #tpu.memory_space<vmem>>, %arg26: memref<8x1xf32, #tpu.memory_space<vmem>>, %arg27: memref<128x384xbf16, #tpu.memory_space<vmem>>, %arg28: memref<1x384xf32, #tpu.memory_space<vmem>>, %arg29: memref<384x128xbf16, #tpu.memory_space<vmem>>, %arg30: memref<1x128xf32, #tpu.memory_space<vmem>>, %arg31: memref<2x128xf32, #tpu.memory_space<vmem>>, %arg32: memref<384x8xbf16, #tpu.memory_space<vmem>>, %arg33: memref<8x384xbf16, #tpu.memory_space<vmem>>, %arg34: memref<8x1xf32, #tpu.memory_space<vmem>>, %arg35: memref<128x384xbf16, #tpu.memory_space<vmem>>, %arg36: memref<1x384xf32, #tpu.memory_space<vmem>>, %arg37: memref<384x128xbf16, #tpu.memory_space<vmem>>, %arg38: memref<1x128xf32, #tpu.memory_space<vmem>>, %arg39: memref<1x16x128xf32, #tpu.memory_space<vmem>>, %arg40: memref<1x8x128xf32, #tpu.memory_space<vmem>>, %arg41: memref<16x8xf32, #tpu.memory_space<vmem>>, %arg42: memref<8x128xf32, #tpu.memory_space<vmem>>) attributes {dimension_semantics = [#tpu.dimension_semantics<parallel>], iteration_bounds = array<i64: 2>, scalar_prefetch = 0 : i64, scratch_operands = 2 : i64, tpu.core_type = #tpu.core_type<tc>, window_params = [{transform_indices = @transform_0, window_bounds = array<i64: 1, 20, 128>}, {transform_indices = @transform_1, window_bounds = array<i64: 1, 16, 128>}, {transform_indices = @transform_2, window_bounds = array<i64: 1, 8, 128>}, {pipeline_mode = #tpu.pipeline_mode<synchronous>, transform_indices = @transform_3, window_bounds = array<i64: 8, 128, 16>}, {pipeline_mode = #tpu.pipeline_mode<synchronous>, transform_indices = @transform_4, window_bounds = array<i64: 8, 1, 16>}, {pipeline_mode = #tpu.pipeline_mode<synchronous>, transform_indices = @transform_5, window_bounds = array<i64: 8, 128, 16>}, {pipeline_mode = #tpu.pipeline_mode<synchronous>, transform_indices = @transform_6, window_bounds = array<i64: 8, 1, 16>}, {pipeline_mode = #tpu.pipeline_mode<synchronous>, transform_indices = @transform_7, window_bounds = array<i64: 8, 128, 16>}, {pipeline_mode = #tpu.pipeline_mode<synchronous>, transform_indices = @transform_8, window_bounds = array<i64: 8, 1, 16>}, {pipeline_mode = #tpu.pipeline_mode<synchronous>, transform_indices = @transform_9, window_bounds = array<i64: 8, 16, 128>}, {pipeline_mode = #tpu.pipeline_mode<synchronous>, transform_indices = @transform_10, window_bounds = array<i64: 1, 128>}, {pipeline_mode = #tpu.pipeline_mode<synchronous>, transform_indices = @transform_11, window_bounds = array<i64: 2, 128>}, {pipeline_mode = #tpu.pipeline_mode<synchronous>, transform_indices = @transform_12, window_bounds = array<i64: 128, 384>}, {pipeline_mode = #tpu.pipeline_mode<synchronous>, transform_indices = @transform_13, window_bounds = array<i64: 1, 384>}, {pipeline_mode = #tpu.pipeline_mode<synchronous>, transform_indices = @transform_14, window_bounds = array<i64: 384, 128>}, {pipeline_mode = #tpu.pipeline_mode<synchronous>, transform_indices = @transform_15, window_bounds = array<i64: 1, 128>}, {pipeline_mode = #tpu.pipeline_mode<synchronous>, transform_indices = @transform_16, window_bounds = array<i64: 2, 128>}, {pipeline_mode = #tpu.pipeline_mode<synchronous>, transform_indices = @transform_17, window_bounds = array<i64: 2, 128>}, {pipeline_mode = #tpu.pipeline_mode<synchronous>, transform_indices = @transform_18, window_bounds = array<i64: 128, 384>}, {pipeline_mode = #tpu.pipeline_mode<synchronous>, transform_indices = @transform_19, window_bounds = array<i64: 1, 384>}, {pipeline_mode = #tpu.pipeline_mode<synchronous>, transform_indices = @transform_20, window_bounds = array<i64: 384, 8>}, {pipeline_mode = #tpu.pipeline_mode<synchronous>, transform_indices = @transform_21, window_bounds = array<i64: 1, 8>}, {pipeline_mode = #tpu.pipeline_mode<synchronous>, transform_indices = @transform_22, window_bounds = array<i64: 2, 128>}, {pipeline_mode = #tpu.pipeline_mode<synchronous>, transform_indices = @transform_23, window_bounds = array<i64: 384, 8>}, {pipeline_mode = #tpu.pipeline_mode<synchronous>, transform_indices = @transform_24, window_bounds = array<i64: 8, 384>}, {pipeline_mode = #tpu.pipeline_mode<synchronous>, transform_indices = @transform_25, window_bounds = array<i64: 8, 1>}, {pipeline_mode = #tpu.pipeline_mode<synchronous>, transform_indices = @transform_26, window_bounds = array<i64: 128, 384>}, {pipeline_mode = #tpu.pipeline_mode<synchronous>, transform_indices = @transform_27, window_bounds = array<i64: 1, 384>}, {pipeline_mode = #tpu.pipeline_mode<synchronous>, transform_indices = @transform_28, window_bounds = array<i64: 384, 128>}, {pipeline_mode = #tpu.pipeline_mode<synchronous>, transform_indices = @transform_29, window_bounds = array<i64: 1, 128>}, {pipeline_mode = #tpu.pipeline_mode<synchronous>, transform_indices = @transform_30, window_bounds = array<i64: 2, 128>}, {pipeline_mode = #tpu.pipeline_mode<synchronous>, transform_indices = @transform_31, window_bounds = array<i64: 384, 8>}, {pipeline_mode = #tpu.pipeline_mode<synchronous>, transform_indices = @transform_32, window_bounds = array<i64: 8, 384>}, {pipeline_mode = #tpu.pipeline_mode<synchronous>, transform_indices = @transform_33, window_bounds = array<i64: 8, 1>}, {pipeline_mode = #tpu.pipeline_mode<synchronous>, transform_indices = @transform_34, window_bounds = array<i64: 128, 384>}, {pipeline_mode = #tpu.pipeline_mode<synchronous>, transform_indices = @transform_35, window_bounds = array<i64: 1, 384>}, {pipeline_mode = #tpu.pipeline_mode<synchronous>, transform_indices = @transform_36, window_bounds = array<i64: 384, 128>}, {pipeline_mode = #tpu.pipeline_mode<synchronous>, transform_indices = @transform_37, window_bounds = array<i64: 1, 128>}, {transform_indices = @transform_38, window_bounds = array<i64: 1, 16, 128>}, {transform_indices = @transform_39, window_bounds = array<i64: 1, 8, 128>}]} {
    %c0 = arith.constant 0 : index
    %c0_0 = arith.constant 0 : index
    %c0_1 = arith.constant 0 : index
    %0 = vector.load %arg1[%c0, %c0_0, %c0_1] : memref<1x20x128xf32, #tpu.memory_space<vmem>>, vector<1x20x128xf32>
    %1 = vector.shape_cast %0 : vector<1x20x128xf32> to vector<20x128xf32>
    %c0_2 = arith.constant 0 : index
    %c0_3 = arith.constant 0 : index
    %c0_4 = arith.constant 0 : index
    %2 = vector.load %arg2[%c0_2, %c0_3, %c0_4] : memref<1x16x128xf32, #tpu.memory_space<vmem>>, vector<1x16x128xf32>
    %3 = vector.shape_cast %2 : vector<1x16x128xf32> to vector<16x128xf32>
    %4 = arith.truncf %1 : vector<20x128xf32> to vector<20x128xbf16>
    %c0_5 = arith.constant 0 : index
    %c0_6 = arith.constant 0 : index
    %c0_7 = arith.constant 0 : index
    %5 = vector.load %arg3[%c0_5, %c0_6, %c0_7] : memref<1x8x128xf32, #tpu.memory_space<vmem>>, vector<1x8x128xf32>
    %6 = vector.shape_cast %5 : vector<1x8x128xf32> to vector<8x128xf32>
    %7 = arith.truncf %6 : vector<8x128xf32> to vector<8x128xbf16>
    %cst = arith.constant 0.000000e+00 : f32
    %8 = vector.broadcast %cst : f32 to vector<8x128xf32>
    %c0_8 = arith.constant 0 : index
    %c0_9 = arith.constant 0 : index
    %c0_10 = arith.constant 0 : index
    %9 = vector.load %arg4[%c0_8, %c0_9, %c0_10] : memref<8x128x16xbf16, #tpu.memory_space<vmem>>, vector<1x128x16xbf16>
    %10 = vector.shape_cast %9 : vector<1x128x16xbf16> to vector<128x16xbf16>
    %cst_11 = arith.constant dense<0.000000e+00> : vector<8x16xf32>
    %11 = tpu.matmul %7, %10, %cst_11 {dimension_numbers = #tpu.dot_dimension_numbers<[1], [0], [0], [1], [0, 0, 1, 1], [], []>} : vector<8x128xbf16>, vector<128x16xbf16>, vector<8x16xf32> -> vector<8x16xf32>
    %c0_12 = arith.constant 0 : index
    %c0_13 = arith.constant 0 : index
    %c0_14 = arith.constant 0 : index
    %12 = vector.load %arg5[%c0_12, %c0_13, %c0_14] : memref<8x1x16xf32, #tpu.memory_space<vmem>>, vector<1x1x16xf32>
    %13 = vector.shape_cast %12 : vector<1x1x16xf32> to vector<1x16xf32>
    %14 = vector.broadcast %13 : vector<1x16xf32> to vector<8x16xf32>
    %15 = arith.addf %11, %14 : vector<8x16xf32>
    %c0_15 = arith.constant 0 : index
    %c0_16 = arith.constant 0 : index
    %c0_17 = arith.constant 0 : index
    %16 = vector.load %arg6[%c0_15, %c0_16, %c0_17] : memref<8x128x16xbf16, #tpu.memory_space<vmem>>, vector<1x128x16xbf16>
    %17 = vector.shape_cast %16 : vector<1x128x16xbf16> to vector<128x16xbf16>
    %cst_18 = arith.constant dense<0.000000e+00> : vector<20x16xf32>
    %18 = tpu.matmul %4, %17, %cst_18 {dimension_numbers = #tpu.dot_dimension_numbers<[1], [0], [0], [1], [0, 0, 1, 1], [], []>} : vector<20x128xbf16>, vector<128x16xbf16>, vector<20x16xf32> -> vector<20x16xf32>
    %c0_19 = arith.constant 0 : index
    %c0_20 = arith.constant 0 : index
    %c0_21 = arith.constant 0 : index
    %19 = vector.load %arg7[%c0_19, %c0_20, %c0_21] : memref<8x1x16xf32, #tpu.memory_space<vmem>>, vector<1x1x16xf32>
    %20 = vector.shape_cast %19 : vector<1x1x16xf32> to vector<1x16xf32>
    %21 = vector.broadcast %20 : vector<1x16xf32> to vector<20x16xf32>
    %22 = arith.addf %18, %21 : vector<20x16xf32>
    %c0_22 = arith.constant 0 : index
    %c0_23 = arith.constant 0 : index
    %c0_24 = arith.constant 0 : index
    %23 = vector.load %arg8[%c0_22, %c0_23, %c0_24] : memref<8x128x16xbf16, #tpu.memory_space<vmem>>, vector<1x128x16xbf16>
    %24 = vector.shape_cast %23 : vector<1x128x16xbf16> to vector<128x16xbf16>
    %cst_25 = arith.constant dense<0.000000e+00> : vector<20x16xf32>
    %25 = tpu.matmul %4, %24, %cst_25 {dimension_numbers = #tpu.dot_dimension_numbers<[1], [0], [0], [1], [0, 0, 1, 1], [], []>} : vector<20x128xbf16>, vector<128x16xbf16>, vector<20x16xf32> -> vector<20x16xf32>
    %c0_26 = arith.constant 0 : index
    %c0_27 = arith.constant 0 : index
    %c0_28 = arith.constant 0 : index
    %26 = vector.load %arg9[%c0_26, %c0_27, %c0_28] : memref<8x1x16xf32, #tpu.memory_space<vmem>>, vector<1x1x16xf32>
    %27 = vector.shape_cast %26 : vector<1x1x16xf32> to vector<1x16xf32>
    %28 = vector.broadcast %27 : vector<1x16xf32> to vector<20x16xf32>
    %29 = arith.addf %25, %28 : vector<20x16xf32>
    %30 = tpu.transpose %22, [1, 0] : vector<20x16xf32> -> vector<16x20xf32>
    %cst_29 = arith.constant dense<0.000000e+00> : vector<8x20xf32>
    %31 = tpu.matmul %15, %30, %cst_29 {dimension_numbers = #tpu.dot_dimension_numbers<[1], [0], [0], [1], [0, 0, 1, 1], [], []>} : vector<8x16xf32>, vector<16x20xf32>, vector<8x20xf32> -> vector<8x20xf32>
    %cst_30 = arith.constant 2.500000e-01 : f32
    %32 = vector.broadcast %cst_30 : f32 to vector<8x20xf32>
    %33 = arith.mulf %31, %32 : vector<8x20xf32>
    %cst_31 = arith.constant dense<0xFF800000> : vector<8xf32>
    %34 = vector.multi_reduction <maximumf>, %33, %cst_31 [1] : vector<8x20xf32> to vector<8xf32>
    %35 = vector.shape_cast %34 : vector<8xf32> to vector<8x1xf32>
    %36 = vector.broadcast %35 : vector<8x1xf32> to vector<8x20xf32>
    %37 = arith.subf %33, %36 : vector<8x20xf32>
    %38 = math.exp %37 : vector<8x20xf32>
    %cst_32 = arith.constant dense<0.000000e+00> : vector<8xf32>
    %39 = vector.multi_reduction <add>, %38, %cst_32 [1] : vector<8x20xf32> to vector<8xf32>
    %40 = vector.shape_cast %39 : vector<8xf32> to vector<8x1xf32>
    %41 = tpu.reciprocal %40 {approx = true} : vector<8x1xf32> -> vector<8x1xf32>
    %42 = vector.broadcast %41 : vector<8x1xf32> to vector<8x20xf32>
    %43 = arith.mulf %38, %42 : vector<8x20xf32>
    %cst_33 = arith.constant dense<0.000000e+00> : vector<8x16xf32>
    %44 = tpu.matmul %43, %29, %cst_33 {dimension_numbers = #tpu.dot_dimension_numbers<[1], [0], [0], [1], [0, 0, 1, 1], [], []>} : vector<8x20xf32>, vector<20x16xf32>, vector<8x16xf32> -> vector<8x16xf32>
    %45 = arith.truncf %44 : vector<8x16xf32> to vector<8x16xbf16>
    %c0_34 = arith.constant 0 : index
    %c0_35 = arith.constant 0 : index
    %c0_36 = arith.constant 0 : index
    %46 = vector.load %arg10[%c0_34, %c0_35, %c0_36] : memref<8x16x128xbf16, #tpu.memory_space<vmem>>, vector<1x16x128xbf16>
    %47 = vector.shape_cast %46 : vector<1x16x128xbf16> to vector<16x128xbf16>
    %cst_37 = arith.constant dense<0.000000e+00> : vector<8x128xf32>
    %48 = tpu.matmul %45, %47, %cst_37 {dimension_numbers = #tpu.dot_dimension_numbers<[1], [0], [0], [1], [0, 0, 1, 1], [], []>} : vector<8x16xbf16>, vector<16x128xbf16>, vector<8x128xf32> -> vector<8x128xf32>
    %49 = arith.addf %8, %48 : vector<8x128xf32>
    %c1 = arith.constant 1 : index
    %c0_38 = arith.constant 0 : index
    %c0_39 = arith.constant 0 : index
    %50 = vector.load %arg4[%c1, %c0_38, %c0_39] : memref<8x128x16xbf16, #tpu.memory_space<vmem>>, vector<1x128x16xbf16>
    %51 = vector.shape_cast %50 : vector<1x128x16xbf16> to vector<128x16xbf16>
    %cst_40 = arith.constant dense<0.000000e+00> : vector<8x16xf32>
    %52 = tpu.matmul %7, %51, %cst_40 {dimension_numbers = #tpu.dot_dimension_numbers<[1], [0], [0], [1], [0, 0, 1, 1], [], []>} : vector<8x128xbf16>, vector<128x16xbf16>, vector<8x16xf32> -> vector<8x16xf32>
    %c1_41 = arith.constant 1 : index
    %c0_42 = arith.constant 0 : index
    %c0_43 = arith.constant 0 : index
    %53 = vector.load %arg5[%c1_41, %c0_42, %c0_43] : memref<8x1x16xf32, #tpu.memory_space<vmem>>, vector<1x1x16xf32>
    %54 = vector.shape_cast %53 : vector<1x1x16xf32> to vector<1x16xf32>
    %55 = vector.broadcast %54 : vector<1x16xf32> to vector<8x16xf32>
    %56 = arith.addf %52, %55 : vector<8x16xf32>
    %c1_44 = arith.constant 1 : index
    %c0_45 = arith.constant 0 : index
    %c0_46 = arith.constant 0 : index
    %57 = vector.load %arg6[%c1_44, %c0_45, %c0_46] : memref<8x128x16xbf16, #tpu.memory_space<vmem>>, vector<1x128x16xbf16>
    %58 = vector.shape_cast %57 : vector<1x128x16xbf16> to vector<128x16xbf16>
    %cst_47 = arith.constant dense<0.000000e+00> : vector<20x16xf32>
    %59 = tpu.matmul %4, %58, %cst_47 {dimension_numbers = #tpu.dot_dimension_numbers<[1], [0], [0], [1], [0, 0, 1, 1], [], []>} : vector<20x128xbf16>, vector<128x16xbf16>, vector<20x16xf32> -> vector<20x16xf32>
    %c1_48 = arith.constant 1 : index
    %c0_49 = arith.constant 0 : index
    %c0_50 = arith.constant 0 : index
    %60 = vector.load %arg7[%c1_48, %c0_49, %c0_50] : memref<8x1x16xf32, #tpu.memory_space<vmem>>, vector<1x1x16xf32>
    %61 = vector.shape_cast %60 : vector<1x1x16xf32> to vector<1x16xf32>
    %62 = vector.broadcast %61 : vector<1x16xf32> to vector<20x16xf32>
    %63 = arith.addf %59, %62 : vector<20x16xf32>
    %c1_51 = arith.constant 1 : index
    %c0_52 = arith.constant 0 : index
    %c0_53 = arith.constant 0 : index
    %64 = vector.load %arg8[%c1_51, %c0_52, %c0_53] : memref<8x128x16xbf16, #tpu.memory_space<vmem>>, vector<1x128x16xbf16>
    %65 = vector.shape_cast %64 : vector<1x128x16xbf16> to vector<128x16xbf16>
    %cst_54 = arith.constant dense<0.000000e+00> : vector<20x16xf32>
    %66 = tpu.matmul %4, %65, %cst_54 {dimension_numbers = #tpu.dot_dimension_numbers<[1], [0], [0], [1], [0, 0, 1, 1], [], []>} : vector<20x128xbf16>, vector<128x16xbf16>, vector<20x16xf32> -> vector<20x16xf32>
    %c1_55 = arith.constant 1 : index
    %c0_56 = arith.constant 0 : index
    %c0_57 = arith.constant 0 : index
    %67 = vector.load %arg9[%c1_55, %c0_56, %c0_57] : memref<8x1x16xf32, #tpu.memory_space<vmem>>, vector<1x1x16xf32>
    %68 = vector.shape_cast %67 : vector<1x1x16xf32> to vector<1x16xf32>
    %69 = vector.broadcast %68 : vector<1x16xf32> to vector<20x16xf32>
    %70 = arith.addf %66, %69 : vector<20x16xf32>
    %71 = tpu.transpose %63, [1, 0] : vector<20x16xf32> -> vector<16x20xf32>
    %cst_58 = arith.constant dense<0.000000e+00> : vector<8x20xf32>
    %72 = tpu.matmul %56, %71, %cst_58 {dimension_numbers = #tpu.dot_dimension_numbers<[1], [0], [0], [1], [0, 0, 1, 1], [], []>} : vector<8x16xf32>, vector<16x20xf32>, vector<8x20xf32> -> vector<8x20xf32>
    %cst_59 = arith.constant 2.500000e-01 : f32
    %73 = vector.broadcast %cst_59 : f32 to vector<8x20xf32>
    %74 = arith.mulf %72, %73 : vector<8x20xf32>
    %cst_60 = arith.constant dense<0xFF800000> : vector<8xf32>
    %75 = vector.multi_reduction <maximumf>, %74, %cst_60 [1] : vector<8x20xf32> to vector<8xf32>
    %76 = vector.shape_cast %75 : vector<8xf32> to vector<8x1xf32>
    %77 = vector.broadcast %76 : vector<8x1xf32> to vector<8x20xf32>
    %78 = arith.subf %74, %77 : vector<8x20xf32>
    %79 = math.exp %78 : vector<8x20xf32>
    %cst_61 = arith.constant dense<0.000000e+00> : vector<8xf32>
    %80 = vector.multi_reduction <add>, %79, %cst_61 [1] : vector<8x20xf32> to vector<8xf32>
    %81 = vector.shape_cast %80 : vector<8xf32> to vector<8x1xf32>
    %82 = tpu.reciprocal %81 {approx = true} : vector<8x1xf32> -> vector<8x1xf32>
    %83 = vector.broadcast %82 : vector<8x1xf32> to vector<8x20xf32>
    %84 = arith.mulf %79, %83 : vector<8x20xf32>
    %cst_62 = arith.constant dense<0.000000e+00> : vector<8x16xf32>
    %85 = tpu.matmul %84, %70, %cst_62 {dimension_numbers = #tpu.dot_dimension_numbers<[1], [0], [0], [1], [0, 0, 1, 1], [], []>} : vector<8x20xf32>, vector<20x16xf32>, vector<8x16xf32> -> vector<8x16xf32>
    %86 = arith.truncf %85 : vector<8x16xf32> to vector<8x16xbf16>
    %c1_63 = arith.constant 1 : index
    %c0_64 = arith.constant 0 : index
    %c0_65 = arith.constant 0 : index
    %87 = vector.load %arg10[%c1_63, %c0_64, %c0_65] : memref<8x16x128xbf16, #tpu.memory_space<vmem>>, vector<1x16x128xbf16>
    %88 = vector.shape_cast %87 : vector<1x16x128xbf16> to vector<16x128xbf16>
    %cst_66 = arith.constant dense<0.000000e+00> : vector<8x128xf32>
    %89 = tpu.matmul %86, %88, %cst_66 {dimension_numbers = #tpu.dot_dimension_numbers<[1], [0], [0], [1], [0, 0, 1, 1], [], []>} : vector<8x16xbf16>, vector<16x128xbf16>, vector<8x128xf32> -> vector<8x128xf32>
    %90 = arith.addf %49, %89 : vector<8x128xf32>
    %c2 = arith.constant 2 : index
    %c0_67 = arith.constant 0 : index
    %c0_68 = arith.constant 0 : index
    %91 = vector.load %arg4[%c2, %c0_67, %c0_68] : memref<8x128x16xbf16, #tpu.memory_space<vmem>>, vector<1x128x16xbf16>
    %92 = vector.shape_cast %91 : vector<1x128x16xbf16> to vector<128x16xbf16>
    %cst_69 = arith.constant dense<0.000000e+00> : vector<8x16xf32>
    %93 = tpu.matmul %7, %92, %cst_69 {dimension_numbers = #tpu.dot_dimension_numbers<[1], [0], [0], [1], [0, 0, 1, 1], [], []>} : vector<8x128xbf16>, vector<128x16xbf16>, vector<8x16xf32> -> vector<8x16xf32>
    %c2_70 = arith.constant 2 : index
    %c0_71 = arith.constant 0 : index
    %c0_72 = arith.constant 0 : index
    %94 = vector.load %arg5[%c2_70, %c0_71, %c0_72] : memref<8x1x16xf32, #tpu.memory_space<vmem>>, vector<1x1x16xf32>
    %95 = vector.shape_cast %94 : vector<1x1x16xf32> to vector<1x16xf32>
    %96 = vector.broadcast %95 : vector<1x16xf32> to vector<8x16xf32>
    %97 = arith.addf %93, %96 : vector<8x16xf32>
    %c2_73 = arith.constant 2 : index
    %c0_74 = arith.constant 0 : index
    %c0_75 = arith.constant 0 : index
    %98 = vector.load %arg6[%c2_73, %c0_74, %c0_75] : memref<8x128x16xbf16, #tpu.memory_space<vmem>>, vector<1x128x16xbf16>
    %99 = vector.shape_cast %98 : vector<1x128x16xbf16> to vector<128x16xbf16>
    %cst_76 = arith.constant dense<0.000000e+00> : vector<20x16xf32>
    %100 = tpu.matmul %4, %99, %cst_76 {dimension_numbers = #tpu.dot_dimension_numbers<[1], [0], [0], [1], [0, 0, 1, 1], [], []>} : vector<20x128xbf16>, vector<128x16xbf16>, vector<20x16xf32> -> vector<20x16xf32>
    %c2_77 = arith.constant 2 : index
    %c0_78 = arith.constant 0 : index
    %c0_79 = arith.constant 0 : index
    %101 = vector.load %arg7[%c2_77, %c0_78, %c0_79] : memref<8x1x16xf32, #tpu.memory_space<vmem>>, vector<1x1x16xf32>
    %102 = vector.shape_cast %101 : vector<1x1x16xf32> to vector<1x16xf32>
    %103 = vector.broadcast %102 : vector<1x16xf32> to vector<20x16xf32>
    %104 = arith.addf %100, %103 : vector<20x16xf32>
    %c2_80 = arith.constant 2 : index
    %c0_81 = arith.constant 0 : index
    %c0_82 = arith.constant 0 : index
    %105 = vector.load %arg8[%c2_80, %c0_81, %c0_82] : memref<8x128x16xbf16, #tpu.memory_space<vmem>>, vector<1x128x16xbf16>
    %106 = vector.shape_cast %105 : vector<1x128x16xbf16> to vector<128x16xbf16>
    %cst_83 = arith.constant dense<0.000000e+00> : vector<20x16xf32>
    %107 = tpu.matmul %4, %106, %cst_83 {dimension_numbers = #tpu.dot_dimension_numbers<[1], [0], [0], [1], [0, 0, 1, 1], [], []>} : vector<20x128xbf16>, vector<128x16xbf16>, vector<20x16xf32> -> vector<20x16xf32>
    %c2_84 = arith.constant 2 : index
    %c0_85 = arith.constant 0 : index
    %c0_86 = arith.constant 0 : index
    %108 = vector.load %arg9[%c2_84, %c0_85, %c0_86] : memref<8x1x16xf32, #tpu.memory_space<vmem>>, vector<1x1x16xf32>
    %109 = vector.shape_cast %108 : vector<1x1x16xf32> to vector<1x16xf32>
    %110 = vector.broadcast %109 : vector<1x16xf32> to vector<20x16xf32>
    %111 = arith.addf %107, %110 : vector<20x16xf32>
    %112 = tpu.transpose %104, [1, 0] : vector<20x16xf32> -> vector<16x20xf32>
    %cst_87 = arith.constant dense<0.000000e+00> : vector<8x20xf32>
    %113 = tpu.matmul %97, %112, %cst_87 {dimension_numbers = #tpu.dot_dimension_numbers<[1], [0], [0], [1], [0, 0, 1, 1], [], []>} : vector<8x16xf32>, vector<16x20xf32>, vector<8x20xf32> -> vector<8x20xf32>
    %cst_88 = arith.constant 2.500000e-01 : f32
    %114 = vector.broadcast %cst_88 : f32 to vector<8x20xf32>
    %115 = arith.mulf %113, %114 : vector<8x20xf32>
    %cst_89 = arith.constant dense<0xFF800000> : vector<8xf32>
    %116 = vector.multi_reduction <maximumf>, %115, %cst_89 [1] : vector<8x20xf32> to vector<8xf32>
    %117 = vector.shape_cast %116 : vector<8xf32> to vector<8x1xf32>
    %118 = vector.broadcast %117 : vector<8x1xf32> to vector<8x20xf32>
    %119 = arith.subf %115, %118 : vector<8x20xf32>
    %120 = math.exp %119 : vector<8x20xf32>
    %cst_90 = arith.constant dense<0.000000e+00> : vector<8xf32>
    %121 = vector.multi_reduction <add>, %120, %cst_90 [1] : vector<8x20xf32> to vector<8xf32>
    %122 = vector.shape_cast %121 : vector<8xf32> to vector<8x1xf32>
    %123 = tpu.reciprocal %122 {approx = true} : vector<8x1xf32> -> vector<8x1xf32>
    %124 = vector.broadcast %123 : vector<8x1xf32> to vector<8x20xf32>
    %125 = arith.mulf %120, %124 : vector<8x20xf32>
    %cst_91 = arith.constant dense<0.000000e+00> : vector<8x16xf32>
    %126 = tpu.matmul %125, %111, %cst_91 {dimension_numbers = #tpu.dot_dimension_numbers<[1], [0], [0], [1], [0, 0, 1, 1], [], []>} : vector<8x20xf32>, vector<20x16xf32>, vector<8x16xf32> -> vector<8x16xf32>
    %127 = arith.truncf %126 : vector<8x16xf32> to vector<8x16xbf16>
    %c2_92 = arith.constant 2 : index
    %c0_93 = arith.constant 0 : index
    %c0_94 = arith.constant 0 : index
    %128 = vector.load %arg10[%c2_92, %c0_93, %c0_94] : memref<8x16x128xbf16, #tpu.memory_space<vmem>>, vector<1x16x128xbf16>
    %129 = vector.shape_cast %128 : vector<1x16x128xbf16> to vector<16x128xbf16>
    %cst_95 = arith.constant dense<0.000000e+00> : vector<8x128xf32>
    %130 = tpu.matmul %127, %129, %cst_95 {dimension_numbers = #tpu.dot_dimension_numbers<[1], [0], [0], [1], [0, 0, 1, 1], [], []>} : vector<8x16xbf16>, vector<16x128xbf16>, vector<8x128xf32> -> vector<8x128xf32>
    %131 = arith.addf %90, %130 : vector<8x128xf32>
    %c3 = arith.constant 3 : index
    %c0_96 = arith.constant 0 : index
    %c0_97 = arith.constant 0 : index
    %132 = vector.load %arg4[%c3, %c0_96, %c0_97] : memref<8x128x16xbf16, #tpu.memory_space<vmem>>, vector<1x128x16xbf16>
    %133 = vector.shape_cast %132 : vector<1x128x16xbf16> to vector<128x16xbf16>
    %cst_98 = arith.constant dense<0.000000e+00> : vector<8x16xf32>
    %134 = tpu.matmul %7, %133, %cst_98 {dimension_numbers = #tpu.dot_dimension_numbers<[1], [0], [0], [1], [0, 0, 1, 1], [], []>} : vector<8x128xbf16>, vector<128x16xbf16>, vector<8x16xf32> -> vector<8x16xf32>
    %c3_99 = arith.constant 3 : index
    %c0_100 = arith.constant 0 : index
    %c0_101 = arith.constant 0 : index
    %135 = vector.load %arg5[%c3_99, %c0_100, %c0_101] : memref<8x1x16xf32, #tpu.memory_space<vmem>>, vector<1x1x16xf32>
    %136 = vector.shape_cast %135 : vector<1x1x16xf32> to vector<1x16xf32>
    %137 = vector.broadcast %136 : vector<1x16xf32> to vector<8x16xf32>
    %138 = arith.addf %134, %137 : vector<8x16xf32>
    %c3_102 = arith.constant 3 : index
    %c0_103 = arith.constant 0 : index
    %c0_104 = arith.constant 0 : index
    %139 = vector.load %arg6[%c3_102, %c0_103, %c0_104] : memref<8x128x16xbf16, #tpu.memory_space<vmem>>, vector<1x128x16xbf16>
    %140 = vector.shape_cast %139 : vector<1x128x16xbf16> to vector<128x16xbf16>
    %cst_105 = arith.constant dense<0.000000e+00> : vector<20x16xf32>
    %141 = tpu.matmul %4, %140, %cst_105 {dimension_numbers = #tpu.dot_dimension_numbers<[1], [0], [0], [1], [0, 0, 1, 1], [], []>} : vector<20x128xbf16>, vector<128x16xbf16>, vector<20x16xf32> -> vector<20x16xf32>
    %c3_106 = arith.constant 3 : index
    %c0_107 = arith.constant 0 : index
    %c0_108 = arith.constant 0 : index
    %142 = vector.load %arg7[%c3_106, %c0_107, %c0_108] : memref<8x1x16xf32, #tpu.memory_space<vmem>>, vector<1x1x16xf32>
    %143 = vector.shape_cast %142 : vector<1x1x16xf32> to vector<1x16xf32>
    %144 = vector.broadcast %143 : vector<1x16xf32> to vector<20x16xf32>
    %145 = arith.addf %141, %144 : vector<20x16xf32>
    %c3_109 = arith.constant 3 : index
    %c0_110 = arith.constant 0 : index
    %c0_111 = arith.constant 0 : index
    %146 = vector.load %arg8[%c3_109, %c0_110, %c0_111] : memref<8x128x16xbf16, #tpu.memory_space<vmem>>, vector<1x128x16xbf16>
    %147 = vector.shape_cast %146 : vector<1x128x16xbf16> to vector<128x16xbf16>
    %cst_112 = arith.constant dense<0.000000e+00> : vector<20x16xf32>
    %148 = tpu.matmul %4, %147, %cst_112 {dimension_numbers = #tpu.dot_dimension_numbers<[1], [0], [0], [1], [0, 0, 1, 1], [], []>} : vector<20x128xbf16>, vector<128x16xbf16>, vector<20x16xf32> -> vector<20x16xf32>
    %c3_113 = arith.constant 3 : index
    %c0_114 = arith.constant 0 : index
    %c0_115 = arith.constant 0 : index
    %149 = vector.load %arg9[%c3_113, %c0_114, %c0_115] : memref<8x1x16xf32, #tpu.memory_space<vmem>>, vector<1x1x16xf32>
    %150 = vector.shape_cast %149 : vector<1x1x16xf32> to vector<1x16xf32>
    %151 = vector.broadcast %150 : vector<1x16xf32> to vector<20x16xf32>
    %152 = arith.addf %148, %151 : vector<20x16xf32>
    %153 = tpu.transpose %145, [1, 0] : vector<20x16xf32> -> vector<16x20xf32>
    %cst_116 = arith.constant dense<0.000000e+00> : vector<8x20xf32>
    %154 = tpu.matmul %138, %153, %cst_116 {dimension_numbers = #tpu.dot_dimension_numbers<[1], [0], [0], [1], [0, 0, 1, 1], [], []>} : vector<8x16xf32>, vector<16x20xf32>, vector<8x20xf32> -> vector<8x20xf32>
    %cst_117 = arith.constant 2.500000e-01 : f32
    %155 = vector.broadcast %cst_117 : f32 to vector<8x20xf32>
    %156 = arith.mulf %154, %155 : vector<8x20xf32>
    %cst_118 = arith.constant dense<0xFF800000> : vector<8xf32>
    %157 = vector.multi_reduction <maximumf>, %156, %cst_118 [1] : vector<8x20xf32> to vector<8xf32>
    %158 = vector.shape_cast %157 : vector<8xf32> to vector<8x1xf32>
    %159 = vector.broadcast %158 : vector<8x1xf32> to vector<8x20xf32>
    %160 = arith.subf %156, %159 : vector<8x20xf32>
    %161 = math.exp %160 : vector<8x20xf32>
    %cst_119 = arith.constant dense<0.000000e+00> : vector<8xf32>
    %162 = vector.multi_reduction <add>, %161, %cst_119 [1] : vector<8x20xf32> to vector<8xf32>
    %163 = vector.shape_cast %162 : vector<8xf32> to vector<8x1xf32>
    %164 = tpu.reciprocal %163 {approx = true} : vector<8x1xf32> -> vector<8x1xf32>
    %165 = vector.broadcast %164 : vector<8x1xf32> to vector<8x20xf32>
    %166 = arith.mulf %161, %165 : vector<8x20xf32>
    %cst_120 = arith.constant dense<0.000000e+00> : vector<8x16xf32>
    %167 = tpu.matmul %166, %152, %cst_120 {dimension_numbers = #tpu.dot_dimension_numbers<[1], [0], [0], [1], [0, 0, 1, 1], [], []>} : vector<8x20xf32>, vector<20x16xf32>, vector<8x16xf32> -> vector<8x16xf32>
    %168 = arith.truncf %167 : vector<8x16xf32> to vector<8x16xbf16>
    %c3_121 = arith.constant 3 : index
    %c0_122 = arith.constant 0 : index
    %c0_123 = arith.constant 0 : index
    %169 = vector.load %arg10[%c3_121, %c0_122, %c0_123] : memref<8x16x128xbf16, #tpu.memory_space<vmem>>, vector<1x16x128xbf16>
    %170 = vector.shape_cast %169 : vector<1x16x128xbf16> to vector<16x128xbf16>
    %cst_124 = arith.constant dense<0.000000e+00> : vector<8x128xf32>
    %171 = tpu.matmul %168, %170, %cst_124 {dimension_numbers = #tpu.dot_dimension_numbers<[1], [0], [0], [1], [0, 0, 1, 1], [], []>} : vector<8x16xbf16>, vector<16x128xbf16>, vector<8x128xf32> -> vector<8x128xf32>
    %172 = arith.addf %131, %171 : vector<8x128xf32>
    %c4 = arith.constant 4 : index
    %c0_125 = arith.constant 0 : index
    %c0_126 = arith.constant 0 : index
    %173 = vector.load %arg4[%c4, %c0_125, %c0_126] : memref<8x128x16xbf16, #tpu.memory_space<vmem>>, vector<1x128x16xbf16>
    %174 = vector.shape_cast %173 : vector<1x128x16xbf16> to vector<128x16xbf16>
    %cst_127 = arith.constant dense<0.000000e+00> : vector<8x16xf32>
    %175 = tpu.matmul %7, %174, %cst_127 {dimension_numbers = #tpu.dot_dimension_numbers<[1], [0], [0], [1], [0, 0, 1, 1], [], []>} : vector<8x128xbf16>, vector<128x16xbf16>, vector<8x16xf32> -> vector<8x16xf32>
    %c4_128 = arith.constant 4 : index
    %c0_129 = arith.constant 0 : index
    %c0_130 = arith.constant 0 : index
    %176 = vector.load %arg5[%c4_128, %c0_129, %c0_130] : memref<8x1x16xf32, #tpu.memory_space<vmem>>, vector<1x1x16xf32>
    %177 = vector.shape_cast %176 : vector<1x1x16xf32> to vector<1x16xf32>
    %178 = vector.broadcast %177 : vector<1x16xf32> to vector<8x16xf32>
    %179 = arith.addf %175, %178 : vector<8x16xf32>
    %c4_131 = arith.constant 4 : index
    %c0_132 = arith.constant 0 : index
    %c0_133 = arith.constant 0 : index
    %180 = vector.load %arg6[%c4_131, %c0_132, %c0_133] : memref<8x128x16xbf16, #tpu.memory_space<vmem>>, vector<1x128x16xbf16>
    %181 = vector.shape_cast %180 : vector<1x128x16xbf16> to vector<128x16xbf16>
    %cst_134 = arith.constant dense<0.000000e+00> : vector<20x16xf32>
    %182 = tpu.matmul %4, %181, %cst_134 {dimension_numbers = #tpu.dot_dimension_numbers<[1], [0], [0], [1], [0, 0, 1, 1], [], []>} : vector<20x128xbf16>, vector<128x16xbf16>, vector<20x16xf32> -> vector<20x16xf32>
    %c4_135 = arith.constant 4 : index
    %c0_136 = arith.constant 0 : index
    %c0_137 = arith.constant 0 : index
    %183 = vector.load %arg7[%c4_135, %c0_136, %c0_137] : memref<8x1x16xf32, #tpu.memory_space<vmem>>, vector<1x1x16xf32>
    %184 = vector.shape_cast %183 : vector<1x1x16xf32> to vector<1x16xf32>
    %185 = vector.broadcast %184 : vector<1x16xf32> to vector<20x16xf32>
    %186 = arith.addf %182, %185 : vector<20x16xf32>
    %c4_138 = arith.constant 4 : index
    %c0_139 = arith.constant 0 : index
    %c0_140 = arith.constant 0 : index
    %187 = vector.load %arg8[%c4_138, %c0_139, %c0_140] : memref<8x128x16xbf16, #tpu.memory_space<vmem>>, vector<1x128x16xbf16>
    %188 = vector.shape_cast %187 : vector<1x128x16xbf16> to vector<128x16xbf16>
    %cst_141 = arith.constant dense<0.000000e+00> : vector<20x16xf32>
    %189 = tpu.matmul %4, %188, %cst_141 {dimension_numbers = #tpu.dot_dimension_numbers<[1], [0], [0], [1], [0, 0, 1, 1], [], []>} : vector<20x128xbf16>, vector<128x16xbf16>, vector<20x16xf32> -> vector<20x16xf32>
    %c4_142 = arith.constant 4 : index
    %c0_143 = arith.constant 0 : index
    %c0_144 = arith.constant 0 : index
    %190 = vector.load %arg9[%c4_142, %c0_143, %c0_144] : memref<8x1x16xf32, #tpu.memory_space<vmem>>, vector<1x1x16xf32>
    %191 = vector.shape_cast %190 : vector<1x1x16xf32> to vector<1x16xf32>
    %192 = vector.broadcast %191 : vector<1x16xf32> to vector<20x16xf32>
    %193 = arith.addf %189, %192 : vector<20x16xf32>
    %194 = tpu.transpose %186, [1, 0] : vector<20x16xf32> -> vector<16x20xf32>
    %cst_145 = arith.constant dense<0.000000e+00> : vector<8x20xf32>
    %195 = tpu.matmul %179, %194, %cst_145 {dimension_numbers = #tpu.dot_dimension_numbers<[1], [0], [0], [1], [0, 0, 1, 1], [], []>} : vector<8x16xf32>, vector<16x20xf32>, vector<8x20xf32> -> vector<8x20xf32>
    %cst_146 = arith.constant 2.500000e-01 : f32
    %196 = vector.broadcast %cst_146 : f32 to vector<8x20xf32>
    %197 = arith.mulf %195, %196 : vector<8x20xf32>
    %cst_147 = arith.constant dense<0xFF800000> : vector<8xf32>
    %198 = vector.multi_reduction <maximumf>, %197, %cst_147 [1] : vector<8x20xf32> to vector<8xf32>
    %199 = vector.shape_cast %198 : vector<8xf32> to vector<8x1xf32>
    %200 = vector.broadcast %199 : vector<8x1xf32> to vector<8x20xf32>
    %201 = arith.subf %197, %200 : vector<8x20xf32>
    %202 = math.exp %201 : vector<8x20xf32>
    %cst_148 = arith.constant dense<0.000000e+00> : vector<8xf32>
    %203 = vector.multi_reduction <add>, %202, %cst_148 [1] : vector<8x20xf32> to vector<8xf32>
    %204 = vector.shape_cast %203 : vector<8xf32> to vector<8x1xf32>
    %205 = tpu.reciprocal %204 {approx = true} : vector<8x1xf32> -> vector<8x1xf32>
    %206 = vector.broadcast %205 : vector<8x1xf32> to vector<8x20xf32>
    %207 = arith.mulf %202, %206 : vector<8x20xf32>
    %cst_149 = arith.constant dense<0.000000e+00> : vector<8x16xf32>
    %208 = tpu.matmul %207, %193, %cst_149 {dimension_numbers = #tpu.dot_dimension_numbers<[1], [0], [0], [1], [0, 0, 1, 1], [], []>} : vector<8x20xf32>, vector<20x16xf32>, vector<8x16xf32> -> vector<8x16xf32>
    %209 = arith.truncf %208 : vector<8x16xf32> to vector<8x16xbf16>
    %c4_150 = arith.constant 4 : index
    %c0_151 = arith.constant 0 : index
    %c0_152 = arith.constant 0 : index
    %210 = vector.load %arg10[%c4_150, %c0_151, %c0_152] : memref<8x16x128xbf16, #tpu.memory_space<vmem>>, vector<1x16x128xbf16>
    %211 = vector.shape_cast %210 : vector<1x16x128xbf16> to vector<16x128xbf16>
    %cst_153 = arith.constant dense<0.000000e+00> : vector<8x128xf32>
    %212 = tpu.matmul %209, %211, %cst_153 {dimension_numbers = #tpu.dot_dimension_numbers<[1], [0], [0], [1], [0, 0, 1, 1], [], []>} : vector<8x16xbf16>, vector<16x128xbf16>, vector<8x128xf32> -> vector<8x128xf32>
    %213 = arith.addf %172, %212 : vector<8x128xf32>
    %c5 = arith.constant 5 : index
    %c0_154 = arith.constant 0 : index
    %c0_155 = arith.constant 0 : index
    %214 = vector.load %arg4[%c5, %c0_154, %c0_155] : memref<8x128x16xbf16, #tpu.memory_space<vmem>>, vector<1x128x16xbf16>
    %215 = vector.shape_cast %214 : vector<1x128x16xbf16> to vector<128x16xbf16>
    %cst_156 = arith.constant dense<0.000000e+00> : vector<8x16xf32>
    %216 = tpu.matmul %7, %215, %cst_156 {dimension_numbers = #tpu.dot_dimension_numbers<[1], [0], [0], [1], [0, 0, 1, 1], [], []>} : vector<8x128xbf16>, vector<128x16xbf16>, vector<8x16xf32> -> vector<8x16xf32>
    %c5_157 = arith.constant 5 : index
    %c0_158 = arith.constant 0 : index
    %c0_159 = arith.constant 0 : index
    %217 = vector.load %arg5[%c5_157, %c0_158, %c0_159] : memref<8x1x16xf32, #tpu.memory_space<vmem>>, vector<1x1x16xf32>
    %218 = vector.shape_cast %217 : vector<1x1x16xf32> to vector<1x16xf32>
    %219 = vector.broadcast %218 : vector<1x16xf32> to vector<8x16xf32>
    %220 = arith.addf %216, %219 : vector<8x16xf32>
    %c5_160 = arith.constant 5 : index
    %c0_161 = arith.constant 0 : index
    %c0_162 = arith.constant 0 : index
    %221 = vector.load %arg6[%c5_160, %c0_161, %c0_162] : memref<8x128x16xbf16, #tpu.memory_space<vmem>>, vector<1x128x16xbf16>
    %222 = vector.shape_cast %221 : vector<1x128x16xbf16> to vector<128x16xbf16>
    %cst_163 = arith.constant dense<0.000000e+00> : vector<20x16xf32>
    %223 = tpu.matmul %4, %222, %cst_163 {dimension_numbers = #tpu.dot_dimension_numbers<[1], [0], [0], [1], [0, 0, 1, 1], [], []>} : vector<20x128xbf16>, vector<128x16xbf16>, vector<20x16xf32> -> vector<20x16xf32>
    %c5_164 = arith.constant 5 : index
    %c0_165 = arith.constant 0 : index
    %c0_166 = arith.constant 0 : index
    %224 = vector.load %arg7[%c5_164, %c0_165, %c0_166] : memref<8x1x16xf32, #tpu.memory_space<vmem>>, vector<1x1x16xf32>
    %225 = vector.shape_cast %224 : vector<1x1x16xf32> to vector<1x16xf32>
    %226 = vector.broadcast %225 : vector<1x16xf32> to vector<20x16xf32>
    %227 = arith.addf %223, %226 : vector<20x16xf32>
    %c5_167 = arith.constant 5 : index
    %c0_168 = arith.constant 0 : index
    %c0_169 = arith.constant 0 : index
    %228 = vector.load %arg8[%c5_167, %c0_168, %c0_169] : memref<8x128x16xbf16, #tpu.memory_space<vmem>>, vector<1x128x16xbf16>
    %229 = vector.shape_cast %228 : vector<1x128x16xbf16> to vector<128x16xbf16>
    %cst_170 = arith.constant dense<0.000000e+00> : vector<20x16xf32>
    %230 = tpu.matmul %4, %229, %cst_170 {dimension_numbers = #tpu.dot_dimension_numbers<[1], [0], [0], [1], [0, 0, 1, 1], [], []>} : vector<20x128xbf16>, vector<128x16xbf16>, vector<20x16xf32> -> vector<20x16xf32>
    %c5_171 = arith.constant 5 : index
    %c0_172 = arith.constant 0 : index
    %c0_173 = arith.constant 0 : index
    %231 = vector.load %arg9[%c5_171, %c0_172, %c0_173] : memref<8x1x16xf32, #tpu.memory_space<vmem>>, vector<1x1x16xf32>
    %232 = vector.shape_cast %231 : vector<1x1x16xf32> to vector<1x16xf32>
    %233 = vector.broadcast %232 : vector<1x16xf32> to vector<20x16xf32>
    %234 = arith.addf %230, %233 : vector<20x16xf32>
    %235 = tpu.transpose %227, [1, 0] : vector<20x16xf32> -> vector<16x20xf32>
    %cst_174 = arith.constant dense<0.000000e+00> : vector<8x20xf32>
    %236 = tpu.matmul %220, %235, %cst_174 {dimension_numbers = #tpu.dot_dimension_numbers<[1], [0], [0], [1], [0, 0, 1, 1], [], []>} : vector<8x16xf32>, vector<16x20xf32>, vector<8x20xf32> -> vector<8x20xf32>
    %cst_175 = arith.constant 2.500000e-01 : f32
    %237 = vector.broadcast %cst_175 : f32 to vector<8x20xf32>
    %238 = arith.mulf %236, %237 : vector<8x20xf32>
    %cst_176 = arith.constant dense<0xFF800000> : vector<8xf32>
    %239 = vector.multi_reduction <maximumf>, %238, %cst_176 [1] : vector<8x20xf32> to vector<8xf32>
    %240 = vector.shape_cast %239 : vector<8xf32> to vector<8x1xf32>
    %241 = vector.broadcast %240 : vector<8x1xf32> to vector<8x20xf32>
    %242 = arith.subf %238, %241 : vector<8x20xf32>
    %243 = math.exp %242 : vector<8x20xf32>
    %cst_177 = arith.constant dense<0.000000e+00> : vector<8xf32>
    %244 = vector.multi_reduction <add>, %243, %cst_177 [1] : vector<8x20xf32> to vector<8xf32>
    %245 = vector.shape_cast %244 : vector<8xf32> to vector<8x1xf32>
    %246 = tpu.reciprocal %245 {approx = true} : vector<8x1xf32> -> vector<8x1xf32>
    %247 = vector.broadcast %246 : vector<8x1xf32> to vector<8x20xf32>
    %248 = arith.mulf %243, %247 : vector<8x20xf32>
    %cst_178 = arith.constant dense<0.000000e+00> : vector<8x16xf32>
    %249 = tpu.matmul %248, %234, %cst_178 {dimension_numbers = #tpu.dot_dimension_numbers<[1], [0], [0], [1], [0, 0, 1, 1], [], []>} : vector<8x20xf32>, vector<20x16xf32>, vector<8x16xf32> -> vector<8x16xf32>
    %250 = arith.truncf %249 : vector<8x16xf32> to vector<8x16xbf16>
    %c5_179 = arith.constant 5 : index
    %c0_180 = arith.constant 0 : index
    %c0_181 = arith.constant 0 : index
    %251 = vector.load %arg10[%c5_179, %c0_180, %c0_181] : memref<8x16x128xbf16, #tpu.memory_space<vmem>>, vector<1x16x128xbf16>
    %252 = vector.shape_cast %251 : vector<1x16x128xbf16> to vector<16x128xbf16>
    %cst_182 = arith.constant dense<0.000000e+00> : vector<8x128xf32>
    %253 = tpu.matmul %250, %252, %cst_182 {dimension_numbers = #tpu.dot_dimension_numbers<[1], [0], [0], [1], [0, 0, 1, 1], [], []>} : vector<8x16xbf16>, vector<16x128xbf16>, vector<8x128xf32> -> vector<8x128xf32>
    %254 = arith.addf %213, %253 : vector<8x128xf32>
    %c6 = arith.constant 6 : index
    %c0_183 = arith.constant 0 : index
    %c0_184 = arith.constant 0 : index
    %255 = vector.load %arg4[%c6, %c0_183, %c0_184] : memref<8x128x16xbf16, #tpu.memory_space<vmem>>, vector<1x128x16xbf16>
    %256 = vector.shape_cast %255 : vector<1x128x16xbf16> to vector<128x16xbf16>
    %cst_185 = arith.constant dense<0.000000e+00> : vector<8x16xf32>
    %257 = tpu.matmul %7, %256, %cst_185 {dimension_numbers = #tpu.dot_dimension_numbers<[1], [0], [0], [1], [0, 0, 1, 1], [], []>} : vector<8x128xbf16>, vector<128x16xbf16>, vector<8x16xf32> -> vector<8x16xf32>
    %c6_186 = arith.constant 6 : index
    %c0_187 = arith.constant 0 : index
    %c0_188 = arith.constant 0 : index
    %258 = vector.load %arg5[%c6_186, %c0_187, %c0_188] : memref<8x1x16xf32, #tpu.memory_space<vmem>>, vector<1x1x16xf32>
    %259 = vector.shape_cast %258 : vector<1x1x16xf32> to vector<1x16xf32>
    %260 = vector.broadcast %259 : vector<1x16xf32> to vector<8x16xf32>
    %261 = arith.addf %257, %260 : vector<8x16xf32>
    %c6_189 = arith.constant 6 : index
    %c0_190 = arith.constant 0 : index
    %c0_191 = arith.constant 0 : index
    %262 = vector.load %arg6[%c6_189, %c0_190, %c0_191] : memref<8x128x16xbf16, #tpu.memory_space<vmem>>, vector<1x128x16xbf16>
    %263 = vector.shape_cast %262 : vector<1x128x16xbf16> to vector<128x16xbf16>
    %cst_192 = arith.constant dense<0.000000e+00> : vector<20x16xf32>
    %264 = tpu.matmul %4, %263, %cst_192 {dimension_numbers = #tpu.dot_dimension_numbers<[1], [0], [0], [1], [0, 0, 1, 1], [], []>} : vector<20x128xbf16>, vector<128x16xbf16>, vector<20x16xf32> -> vector<20x16xf32>
    %c6_193 = arith.constant 6 : index
    %c0_194 = arith.constant 0 : index
    %c0_195 = arith.constant 0 : index
    %265 = vector.load %arg7[%c6_193, %c0_194, %c0_195] : memref<8x1x16xf32, #tpu.memory_space<vmem>>, vector<1x1x16xf32>
    %266 = vector.shape_cast %265 : vector<1x1x16xf32> to vector<1x16xf32>
    %267 = vector.broadcast %266 : vector<1x16xf32> to vector<20x16xf32>
    %268 = arith.addf %264, %267 : vector<20x16xf32>
    %c6_196 = arith.constant 6 : index
    %c0_197 = arith.constant 0 : index
    %c0_198 = arith.constant 0 : index
    %269 = vector.load %arg8[%c6_196, %c0_197, %c0_198] : memref<8x128x16xbf16, #tpu.memory_space<vmem>>, vector<1x128x16xbf16>
    %270 = vector.shape_cast %269 : vector<1x128x16xbf16> to vector<128x16xbf16>
    %cst_199 = arith.constant dense<0.000000e+00> : vector<20x16xf32>
    %271 = tpu.matmul %4, %270, %cst_199 {dimension_numbers = #tpu.dot_dimension_numbers<[1], [0], [0], [1], [0, 0, 1, 1], [], []>} : vector<20x128xbf16>, vector<128x16xbf16>, vector<20x16xf32> -> vector<20x16xf32>
    %c6_200 = arith.constant 6 : index
    %c0_201 = arith.constant 0 : index
    %c0_202 = arith.constant 0 : index
    %272 = vector.load %arg9[%c6_200, %c0_201, %c0_202] : memref<8x1x16xf32, #tpu.memory_space<vmem>>, vector<1x1x16xf32>
    %273 = vector.shape_cast %272 : vector<1x1x16xf32> to vector<1x16xf32>
    %274 = vector.broadcast %273 : vector<1x16xf32> to vector<20x16xf32>
    %275 = arith.addf %271, %274 : vector<20x16xf32>
    %276 = tpu.transpose %268, [1, 0] : vector<20x16xf32> -> vector<16x20xf32>
    %cst_203 = arith.constant dense<0.000000e+00> : vector<8x20xf32>
    %277 = tpu.matmul %261, %276, %cst_203 {dimension_numbers = #tpu.dot_dimension_numbers<[1], [0], [0], [1], [0, 0, 1, 1], [], []>} : vector<8x16xf32>, vector<16x20xf32>, vector<8x20xf32> -> vector<8x20xf32>
    %cst_204 = arith.constant 2.500000e-01 : f32
    %278 = vector.broadcast %cst_204 : f32 to vector<8x20xf32>
    %279 = arith.mulf %277, %278 : vector<8x20xf32>
    %cst_205 = arith.constant dense<0xFF800000> : vector<8xf32>
    %280 = vector.multi_reduction <maximumf>, %279, %cst_205 [1] : vector<8x20xf32> to vector<8xf32>
    %281 = vector.shape_cast %280 : vector<8xf32> to vector<8x1xf32>
    %282 = vector.broadcast %281 : vector<8x1xf32> to vector<8x20xf32>
    %283 = arith.subf %279, %282 : vector<8x20xf32>
    %284 = math.exp %283 : vector<8x20xf32>
    %cst_206 = arith.constant dense<0.000000e+00> : vector<8xf32>
    %285 = vector.multi_reduction <add>, %284, %cst_206 [1] : vector<8x20xf32> to vector<8xf32>
    %286 = vector.shape_cast %285 : vector<8xf32> to vector<8x1xf32>
    %287 = tpu.reciprocal %286 {approx = true} : vector<8x1xf32> -> vector<8x1xf32>
    %288 = vector.broadcast %287 : vector<8x1xf32> to vector<8x20xf32>
    %289 = arith.mulf %284, %288 : vector<8x20xf32>
    %cst_207 = arith.constant dense<0.000000e+00> : vector<8x16xf32>
    %290 = tpu.matmul %289, %275, %cst_207 {dimension_numbers = #tpu.dot_dimension_numbers<[1], [0], [0], [1], [0, 0, 1, 1], [], []>} : vector<8x20xf32>, vector<20x16xf32>, vector<8x16xf32> -> vector<8x16xf32>
    %291 = arith.truncf %290 : vector<8x16xf32> to vector<8x16xbf16>
    %c6_208 = arith.constant 6 : index
    %c0_209 = arith.constant 0 : index
    %c0_210 = arith.constant 0 : index
    %292 = vector.load %arg10[%c6_208, %c0_209, %c0_210] : memref<8x16x128xbf16, #tpu.memory_space<vmem>>, vector<1x16x128xbf16>
    %293 = vector.shape_cast %292 : vector<1x16x128xbf16> to vector<16x128xbf16>
    %cst_211 = arith.constant dense<0.000000e+00> : vector<8x128xf32>
    %294 = tpu.matmul %291, %293, %cst_211 {dimension_numbers = #tpu.dot_dimension_numbers<[1], [0], [0], [1], [0, 0, 1, 1], [], []>} : vector<8x16xbf16>, vector<16x128xbf16>, vector<8x128xf32> -> vector<8x128xf32>
    %295 = arith.addf %254, %294 : vector<8x128xf32>
    %c7 = arith.constant 7 : index
    %c0_212 = arith.constant 0 : index
    %c0_213 = arith.constant 0 : index
    %296 = vector.load %arg4[%c7, %c0_212, %c0_213] : memref<8x128x16xbf16, #tpu.memory_space<vmem>>, vector<1x128x16xbf16>
    %297 = vector.shape_cast %296 : vector<1x128x16xbf16> to vector<128x16xbf16>
    %cst_214 = arith.constant dense<0.000000e+00> : vector<8x16xf32>
    %298 = tpu.matmul %7, %297, %cst_214 {dimension_numbers = #tpu.dot_dimension_numbers<[1], [0], [0], [1], [0, 0, 1, 1], [], []>} : vector<8x128xbf16>, vector<128x16xbf16>, vector<8x16xf32> -> vector<8x16xf32>
    %c7_215 = arith.constant 7 : index
    %c0_216 = arith.constant 0 : index
    %c0_217 = arith.constant 0 : index
    %299 = vector.load %arg5[%c7_215, %c0_216, %c0_217] : memref<8x1x16xf32, #tpu.memory_space<vmem>>, vector<1x1x16xf32>
    %300 = vector.shape_cast %299 : vector<1x1x16xf32> to vector<1x16xf32>
    %301 = vector.broadcast %300 : vector<1x16xf32> to vector<8x16xf32>
    %302 = arith.addf %298, %301 : vector<8x16xf32>
    %c7_218 = arith.constant 7 : index
    %c0_219 = arith.constant 0 : index
    %c0_220 = arith.constant 0 : index
    %303 = vector.load %arg6[%c7_218, %c0_219, %c0_220] : memref<8x128x16xbf16, #tpu.memory_space<vmem>>, vector<1x128x16xbf16>
    %304 = vector.shape_cast %303 : vector<1x128x16xbf16> to vector<128x16xbf16>
    %cst_221 = arith.constant dense<0.000000e+00> : vector<20x16xf32>
    %305 = tpu.matmul %4, %304, %cst_221 {dimension_numbers = #tpu.dot_dimension_numbers<[1], [0], [0], [1], [0, 0, 1, 1], [], []>} : vector<20x128xbf16>, vector<128x16xbf16>, vector<20x16xf32> -> vector<20x16xf32>
    %c7_222 = arith.constant 7 : index
    %c0_223 = arith.constant 0 : index
    %c0_224 = arith.constant 0 : index
    %306 = vector.load %arg7[%c7_222, %c0_223, %c0_224] : memref<8x1x16xf32, #tpu.memory_space<vmem>>, vector<1x1x16xf32>
    %307 = vector.shape_cast %306 : vector<1x1x16xf32> to vector<1x16xf32>
    %308 = vector.broadcast %307 : vector<1x16xf32> to vector<20x16xf32>
    %309 = arith.addf %305, %308 : vector<20x16xf32>
    %c7_225 = arith.constant 7 : index
    %c0_226 = arith.constant 0 : index
    %c0_227 = arith.constant 0 : index
    %310 = vector.load %arg8[%c7_225, %c0_226, %c0_227] : memref<8x128x16xbf16, #tpu.memory_space<vmem>>, vector<1x128x16xbf16>
    %311 = vector.shape_cast %310 : vector<1x128x16xbf16> to vector<128x16xbf16>
    %cst_228 = arith.constant dense<0.000000e+00> : vector<20x16xf32>
    %312 = tpu.matmul %4, %311, %cst_228 {dimension_numbers = #tpu.dot_dimension_numbers<[1], [0], [0], [1], [0, 0, 1, 1], [], []>} : vector<20x128xbf16>, vector<128x16xbf16>, vector<20x16xf32> -> vector<20x16xf32>
    %c7_229 = arith.constant 7 : index
    %c0_230 = arith.constant 0 : index
    %c0_231 = arith.constant 0 : index
    %313 = vector.load %arg9[%c7_229, %c0_230, %c0_231] : memref<8x1x16xf32, #tpu.memory_space<vmem>>, vector<1x1x16xf32>
    %314 = vector.shape_cast %313 : vector<1x1x16xf32> to vector<1x16xf32>
    %315 = vector.broadcast %314 : vector<1x16xf32> to vector<20x16xf32>
    %316 = arith.addf %312, %315 : vector<20x16xf32>
    %317 = tpu.transpose %309, [1, 0] : vector<20x16xf32> -> vector<16x20xf32>
    %cst_232 = arith.constant dense<0.000000e+00> : vector<8x20xf32>
    %318 = tpu.matmul %302, %317, %cst_232 {dimension_numbers = #tpu.dot_dimension_numbers<[1], [0], [0], [1], [0, 0, 1, 1], [], []>} : vector<8x16xf32>, vector<16x20xf32>, vector<8x20xf32> -> vector<8x20xf32>
    %cst_233 = arith.constant 2.500000e-01 : f32
    %319 = vector.broadcast %cst_233 : f32 to vector<8x20xf32>
    %320 = arith.mulf %318, %319 : vector<8x20xf32>
    %cst_234 = arith.constant dense<0xFF800000> : vector<8xf32>
    %321 = vector.multi_reduction <maximumf>, %320, %cst_234 [1] : vector<8x20xf32> to vector<8xf32>
    %322 = vector.shape_cast %321 : vector<8xf32> to vector<8x1xf32>
    %323 = vector.broadcast %322 : vector<8x1xf32> to vector<8x20xf32>
    %324 = arith.subf %320, %323 : vector<8x20xf32>
    %325 = math.exp %324 : vector<8x20xf32>
    %cst_235 = arith.constant dense<0.000000e+00> : vector<8xf32>
    %326 = vector.multi_reduction <add>, %325, %cst_235 [1] : vector<8x20xf32> to vector<8xf32>
    %327 = vector.shape_cast %326 : vector<8xf32> to vector<8x1xf32>
    %328 = tpu.reciprocal %327 {approx = true} : vector<8x1xf32> -> vector<8x1xf32>
    %329 = vector.broadcast %328 : vector<8x1xf32> to vector<8x20xf32>
    %330 = arith.mulf %325, %329 : vector<8x20xf32>
    %cst_236 = arith.constant dense<0.000000e+00> : vector<8x16xf32>
    %331 = tpu.matmul %330, %316, %cst_236 {dimension_numbers = #tpu.dot_dimension_numbers<[1], [0], [0], [1], [0, 0, 1, 1], [], []>} : vector<8x20xf32>, vector<20x16xf32>, vector<8x16xf32> -> vector<8x16xf32>
    %332 = arith.truncf %331 : vector<8x16xf32> to vector<8x16xbf16>
    %c7_237 = arith.constant 7 : index
    %c0_238 = arith.constant 0 : index
    %c0_239 = arith.constant 0 : index
    %333 = vector.load %arg10[%c7_237, %c0_238, %c0_239] : memref<8x16x128xbf16, #tpu.memory_space<vmem>>, vector<1x16x128xbf16>
    %334 = vector.shape_cast %333 : vector<1x16x128xbf16> to vector<16x128xbf16>
    %cst_240 = arith.constant dense<0.000000e+00> : vector<8x128xf32>
    %335 = tpu.matmul %332, %334, %cst_240 {dimension_numbers = #tpu.dot_dimension_numbers<[1], [0], [0], [1], [0, 0, 1, 1], [], []>} : vector<8x16xbf16>, vector<16x128xbf16>, vector<8x128xf32> -> vector<8x128xf32>
    %336 = arith.addf %295, %335 : vector<8x128xf32>
    %c0_241 = arith.constant 0 : index
    %c0_242 = arith.constant 0 : index
    %337 = vector.load %arg11[%c0_241, %c0_242] : memref<1x128xf32, #tpu.memory_space<vmem>>, vector<1x128xf32>
    %338 = vector.broadcast %337 : vector<1x128xf32> to vector<8x128xf32>
    %339 = arith.addf %336, %338 : vector<8x128xf32>
    %cst_243 = arith.constant dense<0.000000e+00> : vector<8xf32>
    %340 = vector.multi_reduction <add>, %339, %cst_243 [1] : vector<8x128xf32> to vector<8xf32>
    %341 = vector.shape_cast %340 : vector<8xf32> to vector<8x1xf32>
    %cst_244 = arith.constant 1.280000e+02 : f32
    %342 = vector.broadcast %cst_244 : f32 to vector<8x1xf32>
    %343 = arith.divf %341, %342 : vector<8x1xf32>
    %344 = vector.broadcast %343 : vector<8x1xf32> to vector<8x128xf32>
    %345 = arith.subf %339, %344 : vector<8x128xf32>
    %346 = arith.mulf %345, %345 : vector<8x128xf32>
    %cst_245 = arith.constant dense<0.000000e+00> : vector<8xf32>
    %347 = vector.multi_reduction <add>, %346, %cst_245 [1] : vector<8x128xf32> to vector<8xf32>
    %348 = vector.shape_cast %347 : vector<8xf32> to vector<8x1xf32>
    %cst_246 = arith.constant 1.280000e+02 : f32
    %349 = vector.broadcast %cst_246 : f32 to vector<8x1xf32>
    %350 = arith.divf %348, %349 : vector<8x1xf32>
    %cst_247 = arith.constant 9.99999974E-6 : f32
    %351 = vector.broadcast %cst_247 : f32 to vector<8x1xf32>
    %352 = arith.addf %350, %351 : vector<8x1xf32>
    %353 = math.rsqrt %352 : vector<8x1xf32>
    %354 = vector.broadcast %353 : vector<8x1xf32> to vector<8x128xf32>
    %355 = arith.mulf %345, %354 : vector<8x128xf32>
    %c0_248 = arith.constant 0 : index
    %c0_249 = arith.constant 0 : index
    %356 = vector.load %arg12[%c0_248, %c0_249] : memref<2x128xf32, #tpu.memory_space<vmem>>, vector<1x128xf32>
    %357 = vector.broadcast %356 : vector<1x128xf32> to vector<8x128xf32>
    %358 = arith.mulf %355, %357 : vector<8x128xf32>
    %c1_250 = arith.constant 1 : index
    %c0_251 = arith.constant 0 : index
    %359 = vector.load %arg12[%c1_250, %c0_251] : memref<2x128xf32, #tpu.memory_space<vmem>>, vector<1x128xf32>
    %360 = vector.broadcast %359 : vector<1x128xf32> to vector<8x128xf32>
    %361 = arith.addf %358, %360 : vector<8x128xf32>
    %362 = arith.truncf %361 : vector<8x128xf32> to vector<8x128xbf16>
    %c0_252 = arith.constant 0 : index
    %c0_253 = arith.constant 0 : index
    %363 = vector.load %arg13[%c0_252, %c0_253] : memref<128x384xbf16, #tpu.memory_space<vmem>>, vector<128x384xbf16>
    %cst_254 = arith.constant dense<0.000000e+00> : vector<8x384xf32>
    %364 = tpu.matmul %362, %363, %cst_254 {dimension_numbers = #tpu.dot_dimension_numbers<[1], [0], [0], [1], [0, 0, 1, 1], [], []>} : vector<8x128xbf16>, vector<128x384xbf16>, vector<8x384xf32> -> vector<8x384xf32>
    %c0_255 = arith.constant 0 : index
    %c0_256 = arith.constant 0 : index
    %365 = vector.load %arg14[%c0_255, %c0_256] : memref<1x384xf32, #tpu.memory_space<vmem>>, vector<1x384xf32>
    %366 = vector.broadcast %365 : vector<1x384xf32> to vector<8x384xf32>
    %367 = arith.addf %364, %366 : vector<8x384xf32>
    %cst_257 = arith.constant 5.000000e-01 : f32
    %368 = vector.broadcast %cst_257 : f32 to vector<8x384xf32>
    %369 = arith.mulf %368, %367 : vector<8x384xf32>
    %cst_258 = arith.constant 4.471500e-02 : f32
    %370 = vector.broadcast %cst_258 : f32 to vector<8x384xf32>
    %371 = arith.mulf %370, %367 : vector<8x384xf32>
    %372 = arith.mulf %371, %367 : vector<8x384xf32>
    %373 = arith.mulf %372, %367 : vector<8x384xf32>
    %374 = arith.addf %367, %373 : vector<8x384xf32>
    %cst_259 = arith.constant 0.797884583 : f32
    %375 = vector.broadcast %cst_259 : f32 to vector<8x384xf32>
    %376 = arith.mulf %375, %374 : vector<8x384xf32>
    %377 = math.tanh %376 : vector<8x384xf32>
    %cst_260 = arith.constant 1.000000e+00 : f32
    %378 = vector.broadcast %cst_260 : f32 to vector<8x384xf32>
    %379 = arith.addf %378, %377 : vector<8x384xf32>
    %380 = arith.mulf %369, %379 : vector<8x384xf32>
    %381 = arith.truncf %380 : vector<8x384xf32> to vector<8x384xbf16>
    %c0_261 = arith.constant 0 : index
    %c0_262 = arith.constant 0 : index
    %382 = vector.load %arg15[%c0_261, %c0_262] : memref<384x128xbf16, #tpu.memory_space<vmem>>, vector<384x128xbf16>
    %cst_263 = arith.constant dense<0.000000e+00> : vector<8x128xf32>
    %383 = tpu.matmul %381, %382, %cst_263 {dimension_numbers = #tpu.dot_dimension_numbers<[1], [0], [0], [1], [0, 0, 1, 1], [], []>} : vector<8x384xbf16>, vector<384x128xbf16>, vector<8x128xf32> -> vector<8x128xf32>
    %c0_264 = arith.constant 0 : index
    %c0_265 = arith.constant 0 : index
    %384 = vector.load %arg16[%c0_264, %c0_265] : memref<1x128xf32, #tpu.memory_space<vmem>>, vector<1x128xf32>
    %385 = vector.broadcast %384 : vector<1x128xf32> to vector<8x128xf32>
    %386 = arith.addf %383, %385 : vector<8x128xf32>
    %cst_266 = arith.constant 5.000000e-01 : f32
    %387 = vector.broadcast %cst_266 : f32 to vector<8x128xf32>
    %388 = arith.mulf %387, %386 : vector<8x128xf32>
    %cst_267 = arith.constant 4.471500e-02 : f32
    %389 = vector.broadcast %cst_267 : f32 to vector<8x128xf32>
    %390 = arith.mulf %389, %386 : vector<8x128xf32>
    %391 = arith.mulf %390, %386 : vector<8x128xf32>
    %392 = arith.mulf %391, %386 : vector<8x128xf32>
    %393 = arith.addf %386, %392 : vector<8x128xf32>
    %cst_268 = arith.constant 0.797884583 : f32
    %394 = vector.broadcast %cst_268 : f32 to vector<8x128xf32>
    %395 = arith.mulf %394, %393 : vector<8x128xf32>
    %396 = math.tanh %395 : vector<8x128xf32>
    %cst_269 = arith.constant 1.000000e+00 : f32
    %397 = vector.broadcast %cst_269 : f32 to vector<8x128xf32>
    %398 = arith.addf %397, %396 : vector<8x128xf32>
    %399 = arith.mulf %388, %398 : vector<8x128xf32>
    %cst_270 = arith.constant dense<0.000000e+00> : vector<8xf32>
    %400 = vector.multi_reduction <add>, %399, %cst_270 [1] : vector<8x128xf32> to vector<8xf32>
    %401 = vector.shape_cast %400 : vector<8xf32> to vector<8x1xf32>
    %cst_271 = arith.constant 1.280000e+02 : f32
    %402 = vector.broadcast %cst_271 : f32 to vector<8x1xf32>
    %403 = arith.divf %401, %402 : vector<8x1xf32>
    %404 = vector.broadcast %403 : vector<8x1xf32> to vector<8x128xf32>
    %405 = arith.subf %399, %404 : vector<8x128xf32>
    %406 = arith.mulf %405, %405 : vector<8x128xf32>
    %cst_272 = arith.constant dense<0.000000e+00> : vector<8xf32>
    %407 = vector.multi_reduction <add>, %406, %cst_272 [1] : vector<8x128xf32> to vector<8xf32>
    %408 = vector.shape_cast %407 : vector<8xf32> to vector<8x1xf32>
    %cst_273 = arith.constant 1.280000e+02 : f32
    %409 = vector.broadcast %cst_273 : f32 to vector<8x1xf32>
    %410 = arith.divf %408, %409 : vector<8x1xf32>
    %cst_274 = arith.constant 9.99999974E-6 : f32
    %411 = vector.broadcast %cst_274 : f32 to vector<8x1xf32>
    %412 = arith.addf %410, %411 : vector<8x1xf32>
    %413 = math.rsqrt %412 : vector<8x1xf32>
    %414 = vector.broadcast %413 : vector<8x1xf32> to vector<8x128xf32>
    %415 = arith.mulf %405, %414 : vector<8x128xf32>
    %c0_275 = arith.constant 0 : index
    %c0_276 = arith.constant 0 : index
    %416 = vector.load %arg12[%c0_275, %c0_276] : memref<2x128xf32, #tpu.memory_space<vmem>>, vector<1x128xf32>
    %417 = vector.broadcast %416 : vector<1x128xf32> to vector<8x128xf32>
    %418 = arith.mulf %415, %417 : vector<8x128xf32>
    %c1_277 = arith.constant 1 : index
    %c0_278 = arith.constant 0 : index
    %419 = vector.load %arg12[%c1_277, %c0_278] : memref<2x128xf32, #tpu.memory_space<vmem>>, vector<1x128xf32>
    %420 = vector.broadcast %419 : vector<1x128xf32> to vector<8x128xf32>
    %421 = arith.addf %418, %420 : vector<8x128xf32>
    %422 = arith.truncf %421 : vector<8x128xf32> to vector<8x128xbf16>
    %c0_279 = arith.constant 0 : index
    %c0_280 = arith.constant 0 : index
    %423 = vector.load %arg13[%c0_279, %c0_280] : memref<128x384xbf16, #tpu.memory_space<vmem>>, vector<128x384xbf16>
    %cst_281 = arith.constant dense<0.000000e+00> : vector<8x384xf32>
    %424 = tpu.matmul %422, %423, %cst_281 {dimension_numbers = #tpu.dot_dimension_numbers<[1], [0], [0], [1], [0, 0, 1, 1], [], []>} : vector<8x128xbf16>, vector<128x384xbf16>, vector<8x384xf32> -> vector<8x384xf32>
    %c0_282 = arith.constant 0 : index
    %c0_283 = arith.constant 0 : index
    %425 = vector.load %arg14[%c0_282, %c0_283] : memref<1x384xf32, #tpu.memory_space<vmem>>, vector<1x384xf32>
    %426 = vector.broadcast %425 : vector<1x384xf32> to vector<8x384xf32>
    %427 = arith.addf %424, %426 : vector<8x384xf32>
    %cst_284 = arith.constant 5.000000e-01 : f32
    %428 = vector.broadcast %cst_284 : f32 to vector<8x384xf32>
    %429 = arith.mulf %428, %427 : vector<8x384xf32>
    %cst_285 = arith.constant 4.471500e-02 : f32
    %430 = vector.broadcast %cst_285 : f32 to vector<8x384xf32>
    %431 = arith.mulf %430, %427 : vector<8x384xf32>
    %432 = arith.mulf %431, %427 : vector<8x384xf32>
    %433 = arith.mulf %432, %427 : vector<8x384xf32>
    %434 = arith.addf %427, %433 : vector<8x384xf32>
    %cst_286 = arith.constant 0.797884583 : f32
    %435 = vector.broadcast %cst_286 : f32 to vector<8x384xf32>
    %436 = arith.mulf %435, %434 : vector<8x384xf32>
    %437 = math.tanh %436 : vector<8x384xf32>
    %cst_287 = arith.constant 1.000000e+00 : f32
    %438 = vector.broadcast %cst_287 : f32 to vector<8x384xf32>
    %439 = arith.addf %438, %437 : vector<8x384xf32>
    %440 = arith.mulf %429, %439 : vector<8x384xf32>
    %441 = arith.truncf %440 : vector<8x384xf32> to vector<8x384xbf16>
    %c0_288 = arith.constant 0 : index
    %c0_289 = arith.constant 0 : index
    %442 = vector.load %arg15[%c0_288, %c0_289] : memref<384x128xbf16, #tpu.memory_space<vmem>>, vector<384x128xbf16>
    %cst_290 = arith.constant dense<0.000000e+00> : vector<8x128xf32>
    %443 = tpu.matmul %441, %442, %cst_290 {dimension_numbers = #tpu.dot_dimension_numbers<[1], [0], [0], [1], [0, 0, 1, 1], [], []>} : vector<8x384xbf16>, vector<384x128xbf16>, vector<8x128xf32> -> vector<8x128xf32>
    %c0_291 = arith.constant 0 : index
    %c0_292 = arith.constant 0 : index
    %444 = vector.load %arg16[%c0_291, %c0_292] : memref<1x128xf32, #tpu.memory_space<vmem>>, vector<1x128xf32>
    %445 = vector.broadcast %444 : vector<1x128xf32> to vector<8x128xf32>
    %446 = arith.addf %443, %445 : vector<8x128xf32>
    %cst_293 = arith.constant 5.000000e-01 : f32
    %447 = vector.broadcast %cst_293 : f32 to vector<8x128xf32>
    %448 = arith.mulf %447, %446 : vector<8x128xf32>
    %cst_294 = arith.constant 4.471500e-02 : f32
    %449 = vector.broadcast %cst_294 : f32 to vector<8x128xf32>
    %450 = arith.mulf %449, %446 : vector<8x128xf32>
    %451 = arith.mulf %450, %446 : vector<8x128xf32>
    %452 = arith.mulf %451, %446 : vector<8x128xf32>
    %453 = arith.addf %446, %452 : vector<8x128xf32>
    %cst_295 = arith.constant 0.797884583 : f32
    %454 = vector.broadcast %cst_295 : f32 to vector<8x128xf32>
    %455 = arith.mulf %454, %453 : vector<8x128xf32>
    %456 = math.tanh %455 : vector<8x128xf32>
    %cst_296 = arith.constant 1.000000e+00 : f32
    %457 = vector.broadcast %cst_296 : f32 to vector<8x128xf32>
    %458 = arith.addf %457, %456 : vector<8x128xf32>
    %459 = arith.mulf %448, %458 : vector<8x128xf32>
    %cst_297 = arith.constant dense<0.000000e+00> : vector<8xf32>
    %460 = vector.multi_reduction <add>, %459, %cst_297 [1] : vector<8x128xf32> to vector<8xf32>
    %461 = vector.shape_cast %460 : vector<8xf32> to vector<8x1xf32>
    %cst_298 = arith.constant 1.280000e+02 : f32
    %462 = vector.broadcast %cst_298 : f32 to vector<8x1xf32>
    %463 = arith.divf %461, %462 : vector<8x1xf32>
    %464 = vector.broadcast %463 : vector<8x1xf32> to vector<8x128xf32>
    %465 = arith.subf %459, %464 : vector<8x128xf32>
    %466 = arith.mulf %465, %465 : vector<8x128xf32>
    %cst_299 = arith.constant dense<0.000000e+00> : vector<8xf32>
    %467 = vector.multi_reduction <add>, %466, %cst_299 [1] : vector<8x128xf32> to vector<8xf32>
    %468 = vector.shape_cast %467 : vector<8xf32> to vector<8x1xf32>
    %cst_300 = arith.constant 1.280000e+02 : f32
    %469 = vector.broadcast %cst_300 : f32 to vector<8x1xf32>
    %470 = arith.divf %468, %469 : vector<8x1xf32>
    %cst_301 = arith.constant 9.99999974E-6 : f32
    %471 = vector.broadcast %cst_301 : f32 to vector<8x1xf32>
    %472 = arith.addf %470, %471 : vector<8x1xf32>
    %473 = math.rsqrt %472 : vector<8x1xf32>
    %474 = vector.broadcast %473 : vector<8x1xf32> to vector<8x128xf32>
    %475 = arith.mulf %465, %474 : vector<8x128xf32>
    %c0_302 = arith.constant 0 : index
    %c0_303 = arith.constant 0 : index
    %476 = vector.load %arg12[%c0_302, %c0_303] : memref<2x128xf32, #tpu.memory_space<vmem>>, vector<1x128xf32>
    %477 = vector.broadcast %476 : vector<1x128xf32> to vector<8x128xf32>
    %478 = arith.mulf %475, %477 : vector<8x128xf32>
    %c1_304 = arith.constant 1 : index
    %c0_305 = arith.constant 0 : index
    %479 = vector.load %arg12[%c1_304, %c0_305] : memref<2x128xf32, #tpu.memory_space<vmem>>, vector<1x128xf32>
    %480 = vector.broadcast %479 : vector<1x128xf32> to vector<8x128xf32>
    %481 = arith.addf %478, %480 : vector<8x128xf32>
    %482 = arith.truncf %481 : vector<8x128xf32> to vector<8x128xbf16>
    %c0_306 = arith.constant 0 : index
    %c0_307 = arith.constant 0 : index
    %483 = vector.load %arg13[%c0_306, %c0_307] : memref<128x384xbf16, #tpu.memory_space<vmem>>, vector<128x384xbf16>
    %cst_308 = arith.constant dense<0.000000e+00> : vector<8x384xf32>
    %484 = tpu.matmul %482, %483, %cst_308 {dimension_numbers = #tpu.dot_dimension_numbers<[1], [0], [0], [1], [0, 0, 1, 1], [], []>} : vector<8x128xbf16>, vector<128x384xbf16>, vector<8x384xf32> -> vector<8x384xf32>
    %c0_309 = arith.constant 0 : index
    %c0_310 = arith.constant 0 : index
    %485 = vector.load %arg14[%c0_309, %c0_310] : memref<1x384xf32, #tpu.memory_space<vmem>>, vector<1x384xf32>
    %486 = vector.broadcast %485 : vector<1x384xf32> to vector<8x384xf32>
    %487 = arith.addf %484, %486 : vector<8x384xf32>
    %cst_311 = arith.constant 5.000000e-01 : f32
    %488 = vector.broadcast %cst_311 : f32 to vector<8x384xf32>
    %489 = arith.mulf %488, %487 : vector<8x384xf32>
    %cst_312 = arith.constant 4.471500e-02 : f32
    %490 = vector.broadcast %cst_312 : f32 to vector<8x384xf32>
    %491 = arith.mulf %490, %487 : vector<8x384xf32>
    %492 = arith.mulf %491, %487 : vector<8x384xf32>
    %493 = arith.mulf %492, %487 : vector<8x384xf32>
    %494 = arith.addf %487, %493 : vector<8x384xf32>
    %cst_313 = arith.constant 0.797884583 : f32
    %495 = vector.broadcast %cst_313 : f32 to vector<8x384xf32>
    %496 = arith.mulf %495, %494 : vector<8x384xf32>
    %497 = math.tanh %496 : vector<8x384xf32>
    %cst_314 = arith.constant 1.000000e+00 : f32
    %498 = vector.broadcast %cst_314 : f32 to vector<8x384xf32>
    %499 = arith.addf %498, %497 : vector<8x384xf32>
    %500 = arith.mulf %489, %499 : vector<8x384xf32>
    %501 = arith.truncf %500 : vector<8x384xf32> to vector<8x384xbf16>
    %c0_315 = arith.constant 0 : index
    %c0_316 = arith.constant 0 : index
    %502 = vector.load %arg15[%c0_315, %c0_316] : memref<384x128xbf16, #tpu.memory_space<vmem>>, vector<384x128xbf16>
    %cst_317 = arith.constant dense<0.000000e+00> : vector<8x128xf32>
    %503 = tpu.matmul %501, %502, %cst_317 {dimension_numbers = #tpu.dot_dimension_numbers<[1], [0], [0], [1], [0, 0, 1, 1], [], []>} : vector<8x384xbf16>, vector<384x128xbf16>, vector<8x128xf32> -> vector<8x128xf32>
    %c0_318 = arith.constant 0 : index
    %c0_319 = arith.constant 0 : index
    %504 = vector.load %arg16[%c0_318, %c0_319] : memref<1x128xf32, #tpu.memory_space<vmem>>, vector<1x128xf32>
    %505 = vector.broadcast %504 : vector<1x128xf32> to vector<8x128xf32>
    %506 = arith.addf %503, %505 : vector<8x128xf32>
    %cst_320 = arith.constant 5.000000e-01 : f32
    %507 = vector.broadcast %cst_320 : f32 to vector<8x128xf32>
    %508 = arith.mulf %507, %506 : vector<8x128xf32>
    %cst_321 = arith.constant 4.471500e-02 : f32
    %509 = vector.broadcast %cst_321 : f32 to vector<8x128xf32>
    %510 = arith.mulf %509, %506 : vector<8x128xf32>
    %511 = arith.mulf %510, %506 : vector<8x128xf32>
    %512 = arith.mulf %511, %506 : vector<8x128xf32>
    %513 = arith.addf %506, %512 : vector<8x128xf32>
    %cst_322 = arith.constant 0.797884583 : f32
    %514 = vector.broadcast %cst_322 : f32 to vector<8x128xf32>
    %515 = arith.mulf %514, %513 : vector<8x128xf32>
    %516 = math.tanh %515 : vector<8x128xf32>
    %cst_323 = arith.constant 1.000000e+00 : f32
    %517 = vector.broadcast %cst_323 : f32 to vector<8x128xf32>
    %518 = arith.addf %517, %516 : vector<8x128xf32>
    %519 = arith.mulf %508, %518 : vector<8x128xf32>
    %cst_324 = arith.constant dense<0.000000e+00> : vector<8xf32>
    %520 = vector.multi_reduction <add>, %519, %cst_324 [1] : vector<8x128xf32> to vector<8xf32>
    %521 = vector.shape_cast %520 : vector<8xf32> to vector<8x1xf32>
    %cst_325 = arith.constant 1.280000e+02 : f32
    %522 = vector.broadcast %cst_325 : f32 to vector<8x1xf32>
    %523 = arith.divf %521, %522 : vector<8x1xf32>
    %524 = vector.broadcast %523 : vector<8x1xf32> to vector<8x128xf32>
    %525 = arith.subf %519, %524 : vector<8x128xf32>
    %526 = arith.mulf %525, %525 : vector<8x128xf32>
    %cst_326 = arith.constant dense<0.000000e+00> : vector<8xf32>
    %527 = vector.multi_reduction <add>, %526, %cst_326 [1] : vector<8x128xf32> to vector<8xf32>
    %528 = vector.shape_cast %527 : vector<8xf32> to vector<8x1xf32>
    %cst_327 = arith.constant 1.280000e+02 : f32
    %529 = vector.broadcast %cst_327 : f32 to vector<8x1xf32>
    %530 = arith.divf %528, %529 : vector<8x1xf32>
    %cst_328 = arith.constant 9.99999974E-6 : f32
    %531 = vector.broadcast %cst_328 : f32 to vector<8x1xf32>
    %532 = arith.addf %530, %531 : vector<8x1xf32>
    %533 = math.rsqrt %532 : vector<8x1xf32>
    %534 = vector.broadcast %533 : vector<8x1xf32> to vector<8x128xf32>
    %535 = arith.mulf %525, %534 : vector<8x128xf32>
    %c0_329 = arith.constant 0 : index
    %c0_330 = arith.constant 0 : index
    %536 = vector.load %arg17[%c0_329, %c0_330] : memref<2x128xf32, #tpu.memory_space<vmem>>, vector<1x128xf32>
    %537 = vector.broadcast %536 : vector<1x128xf32> to vector<8x128xf32>
    %538 = arith.mulf %535, %537 : vector<8x128xf32>
    %c1_331 = arith.constant 1 : index
    %c0_332 = arith.constant 0 : index
    %539 = vector.load %arg17[%c1_331, %c0_332] : memref<2x128xf32, #tpu.memory_space<vmem>>, vector<1x128xf32>
    %540 = vector.broadcast %539 : vector<1x128xf32> to vector<8x128xf32>
    %541 = arith.addf %538, %540 : vector<8x128xf32>
    %c0_333 = arith.constant 0 : index
    %c0_334 = arith.constant 0 : index
    %c0_335 = arith.constant 0 : index
    %542 = vector.load %arg40[%c0_333, %c0_334, %c0_335] : memref<1x8x128xf32, #tpu.memory_space<vmem>>, vector<1x8x128xf32>
    %543 = vector.shape_cast %542 : vector<1x8x128xf32> to vector<8x128xf32>
    %544 = vector.shape_cast %541 : vector<8x128xf32> to vector<1x8x128xf32>
    tpu.vector_store %arg40[%c0_333, %c0_334, %c0_335], %544 {strides = array<i32>} : memref<1x8x128xf32, #tpu.memory_space<vmem>>, vector<1x8x128xf32>,
    %cst_336 = arith.constant dense<0.000000e+00> : vector<16xf32>
    %545 = vector.multi_reduction <add>, %3, %cst_336 [1] : vector<16x128xf32> to vector<16xf32>
    %546 = vector.shape_cast %545 : vector<16xf32> to vector<16x1xf32>
    %cst_337 = arith.constant 1.280000e+02 : f32
    %547 = vector.broadcast %cst_337 : f32 to vector<16x1xf32>
    %548 = arith.divf %546, %547 : vector<16x1xf32>
    %549 = vector.broadcast %548 : vector<16x1xf32> to vector<16x128xf32>
    %550 = arith.subf %3, %549 : vector<16x128xf32>
    %551 = arith.mulf %550, %550 : vector<16x128xf32>
    %cst_338 = arith.constant dense<0.000000e+00> : vector<16xf32>
    %552 = vector.multi_reduction <add>, %551, %cst_338 [1] : vector<16x128xf32> to vector<16xf32>
    %553 = vector.shape_cast %552 : vector<16xf32> to vector<16x1xf32>
    %cst_339 = arith.constant 1.280000e+02 : f32
    %554 = vector.broadcast %cst_339 : f32 to vector<16x1xf32>
    %555 = arith.divf %553, %554 : vector<16x1xf32>
    %cst_340 = arith.constant 9.99999974E-6 : f32
    %556 = vector.broadcast %cst_340 : f32 to vector<16x1xf32>
    %557 = arith.addf %555, %556 : vector<16x1xf32>
    %558 = math.rsqrt %557 : vector<16x1xf32>
    %559 = vector.broadcast %558 : vector<16x1xf32> to vector<16x128xf32>
    %560 = arith.mulf %550, %559 : vector<16x128xf32>
    %c0_341 = arith.constant 0 : index
    %c0_342 = arith.constant 0 : index
    %561 = vector.load %arg18[%c0_341, %c0_342] : memref<2x128xf32, #tpu.memory_space<vmem>>, vector<1x128xf32>
    %562 = vector.broadcast %561 : vector<1x128xf32> to vector<16x128xf32>
    %563 = arith.mulf %560, %562 : vector<16x128xf32>
    %c1_343 = arith.constant 1 : index
    %c0_344 = arith.constant 0 : index
    %564 = vector.load %arg18[%c1_343, %c0_344] : memref<2x128xf32, #tpu.memory_space<vmem>>, vector<1x128xf32>
    %565 = vector.broadcast %564 : vector<1x128xf32> to vector<16x128xf32>
    %566 = arith.addf %563, %565 : vector<16x128xf32>
    %567 = arith.truncf %566 : vector<16x128xf32> to vector<16x128xbf16>
    %c0_345 = arith.constant 0 : index
    %c0_346 = arith.constant 0 : index
    %568 = vector.load %arg19[%c0_345, %c0_346] : memref<128x384xbf16, #tpu.memory_space<vmem>>, vector<128x384xbf16>
    %cst_347 = arith.constant dense<0.000000e+00> : vector<16x384xf32>
    %569 = tpu.matmul %567, %568, %cst_347 {dimension_numbers = #tpu.dot_dimension_numbers<[1], [0], [0], [1], [0, 0, 1, 1], [], []>} : vector<16x128xbf16>, vector<128x384xbf16>, vector<16x384xf32> -> vector<16x384xf32>
    %c0_348 = arith.constant 0 : index
    %c0_349 = arith.constant 0 : index
    %570 = vector.load %arg20[%c0_348, %c0_349] : memref<1x384xf32, #tpu.memory_space<vmem>>, vector<1x384xf32>
    %571 = vector.broadcast %570 : vector<1x384xf32> to vector<16x384xf32>
    %572 = arith.addf %569, %571 : vector<16x384xf32>
    %573 = arith.truncf %572 : vector<16x384xf32> to vector<16x384xbf16>
    %c0_350 = arith.constant 0 : index
    %c0_351 = arith.constant 0 : index
    %574 = vector.load %arg21[%c0_350, %c0_351] : memref<384x8xbf16, #tpu.memory_space<vmem>>, vector<384x8xbf16>
    %cst_352 = arith.constant dense<0.000000e+00> : vector<16x8xf32>
    %575 = tpu.matmul %573, %574, %cst_352 {dimension_numbers = #tpu.dot_dimension_numbers<[1], [0], [0], [1], [0, 0, 1, 1], [], []>} : vector<16x384xbf16>, vector<384x8xbf16>, vector<16x8xf32> -> vector<16x8xf32>
    %c0_353 = arith.constant 0 : index
    %c0_354 = arith.constant 0 : index
    %576 = vector.load %arg22[%c0_353, %c0_354] : memref<1x8xf32, #tpu.memory_space<vmem>>, vector<1x8xf32>
    %577 = vector.broadcast %576 : vector<1x8xf32> to vector<16x8xf32>
    %578 = arith.addf %575, %577 : vector<16x8xf32>
    %cst_355 = arith.constant 5.000000e-01 : f32
    %579 = vector.broadcast %cst_355 : f32 to vector<16x8xf32>
    %580 = arith.mulf %579, %578 : vector<16x8xf32>
    %cst_356 = arith.constant 4.471500e-02 : f32
    %581 = vector.broadcast %cst_356 : f32 to vector<16x8xf32>
    %582 = arith.mulf %581, %578 : vector<16x8xf32>
    %583 = arith.mulf %582, %578 : vector<16x8xf32>
    %584 = arith.mulf %583, %578 : vector<16x8xf32>
    %585 = arith.addf %578, %584 : vector<16x8xf32>
    %cst_357 = arith.constant 0.797884583 : f32
    %586 = vector.broadcast %cst_357 : f32 to vector<16x8xf32>
    %587 = arith.mulf %586, %585 : vector<16x8xf32>
    %588 = math.tanh %587 : vector<16x8xf32>
    %cst_358 = arith.constant 1.000000e+00 : f32
    %589 = vector.broadcast %cst_358 : f32 to vector<16x8xf32>
    %590 = arith.addf %589, %588 : vector<16x8xf32>
    %591 = arith.mulf %580, %590 : vector<16x8xf32>
    %c0_359 = arith.constant 0 : index
    %c0_360 = arith.constant 0 : index
    %592 = vector.load %arg41[%c0_359, %c0_360] : memref<16x8xf32, #tpu.memory_space<vmem>>, vector<16x8xf32>
    tpu.vector_store %arg41[%c0_359, %c0_360], %591 {strides = array<i32>} : memref<16x8xf32, #tpu.memory_space<vmem>>, vector<16x8xf32>,
    %c0_361 = arith.constant 0 : index
    %c0_362 = arith.constant 0 : index
    %593 = vector.load %arg41[%c0_361, %c0_362] : memref<16x8xf32, #tpu.memory_space<vmem>>, vector<1x8xf32>
    %c1_363 = arith.constant 1 : index
    %c0_364 = arith.constant 0 : index
    %594 = vector.load %arg41[%c1_363, %c0_364] : memref<16x8xf32, #tpu.memory_space<vmem>>, vector<1x8xf32>
    %595 = arith.maximumf %593, %594 : vector<1x8xf32>
    %c2_365 = arith.constant 2 : index
    %c0_366 = arith.constant 0 : index
    %596 = vector.load %arg41[%c2_365, %c0_366] : memref<16x8xf32, #tpu.memory_space<vmem>>, vector<1x8xf32>
    %597 = arith.maximumf %595, %596 : vector<1x8xf32>
    %c3_367 = arith.constant 3 : index
    %c0_368 = arith.constant 0 : index
    %598 = vector.load %arg41[%c3_367, %c0_368] : memref<16x8xf32, #tpu.memory_space<vmem>>, vector<1x8xf32>
    %599 = arith.maximumf %597, %598 : vector<1x8xf32>
    %c4_369 = arith.constant 4 : index
    %c0_370 = arith.constant 0 : index
    %600 = vector.load %arg41[%c4_369, %c0_370] : memref<16x8xf32, #tpu.memory_space<vmem>>, vector<1x8xf32>
    %601 = arith.maximumf %599, %600 : vector<1x8xf32>
    %c5_371 = arith.constant 5 : index
    %c0_372 = arith.constant 0 : index
    %602 = vector.load %arg41[%c5_371, %c0_372] : memref<16x8xf32, #tpu.memory_space<vmem>>, vector<1x8xf32>
    %603 = arith.maximumf %601, %602 : vector<1x8xf32>
    %c6_373 = arith.constant 6 : index
    %c0_374 = arith.constant 0 : index
    %604 = vector.load %arg41[%c6_373, %c0_374] : memref<16x8xf32, #tpu.memory_space<vmem>>, vector<1x8xf32>
    %605 = arith.maximumf %603, %604 : vector<1x8xf32>
    %c7_375 = arith.constant 7 : index
    %c0_376 = arith.constant 0 : index
    %606 = vector.load %arg41[%c7_375, %c0_376] : memref<16x8xf32, #tpu.memory_space<vmem>>, vector<1x8xf32>
    %607 = arith.maximumf %605, %606 : vector<1x8xf32>
    %c8 = arith.constant 8 : index
    %c0_377 = arith.constant 0 : index
    %608 = vector.load %arg41[%c8, %c0_377] : memref<16x8xf32, #tpu.memory_space<vmem>>, vector<1x8xf32>
    %609 = arith.maximumf %607, %608 : vector<1x8xf32>
    %c9 = arith.constant 9 : index
    %c0_378 = arith.constant 0 : index
    %610 = vector.load %arg41[%c9, %c0_378] : memref<16x8xf32, #tpu.memory_space<vmem>>, vector<1x8xf32>
    %611 = arith.maximumf %609, %610 : vector<1x8xf32>
    %c10 = arith.constant 10 : index
    %c0_379 = arith.constant 0 : index
    %612 = vector.load %arg41[%c10, %c0_379] : memref<16x8xf32, #tpu.memory_space<vmem>>, vector<1x8xf32>
    %613 = arith.maximumf %611, %612 : vector<1x8xf32>
    %c11 = arith.constant 11 : index
    %c0_380 = arith.constant 0 : index
    %614 = vector.load %arg41[%c11, %c0_380] : memref<16x8xf32, #tpu.memory_space<vmem>>, vector<1x8xf32>
    %615 = arith.maximumf %613, %614 : vector<1x8xf32>
    %c12 = arith.constant 12 : index
    %c0_381 = arith.constant 0 : index
    %616 = vector.load %arg41[%c12, %c0_381] : memref<16x8xf32, #tpu.memory_space<vmem>>, vector<1x8xf32>
    %617 = arith.maximumf %615, %616 : vector<1x8xf32>
    %c13 = arith.constant 13 : index
    %c0_382 = arith.constant 0 : index
    %618 = vector.load %arg41[%c13, %c0_382] : memref<16x8xf32, #tpu.memory_space<vmem>>, vector<1x8xf32>
    %619 = arith.maximumf %617, %618 : vector<1x8xf32>
    %c14 = arith.constant 14 : index
    %c0_383 = arith.constant 0 : index
    %620 = vector.load %arg41[%c14, %c0_383] : memref<16x8xf32, #tpu.memory_space<vmem>>, vector<1x8xf32>
    %621 = arith.maximumf %619, %620 : vector<1x8xf32>
    %c15 = arith.constant 15 : index
    %c0_384 = arith.constant 0 : index
    %622 = vector.load %arg41[%c15, %c0_384] : memref<16x8xf32, #tpu.memory_space<vmem>>, vector<1x8xf32>
    %623 = arith.maximumf %621, %622 : vector<1x8xf32>
    %624 = vector.broadcast %623 : vector<1x8xf32> to vector<16x8xf32>
    %625 = arith.subf %591, %624 : vector<16x8xf32>
    %626 = math.exp %625 : vector<16x8xf32>
    %cst_385 = arith.constant 1.000000e+00 : f32
    %627 = vector.broadcast %cst_385 : f32 to vector<1x16xf32>
    %cst_386 = arith.constant dense<0.000000e+00> : vector<1x8xf32>
    %628 = tpu.matmul %627, %626, %cst_386 {dimension_numbers = #tpu.dot_dimension_numbers<[1], [0], [0], [1], [0, 0, 1, 1], [], []>} : vector<1x16xf32>, vector<16x8xf32>, vector<1x8xf32> -> vector<1x8xf32>
    %629 = tpu.reciprocal %628 {approx = true} : vector<1x8xf32> -> vector<1x8xf32>
    %630 = vector.broadcast %629 : vector<1x8xf32> to vector<16x8xf32>
    %631 = arith.mulf %626, %630 : vector<16x8xf32>
    %c0_387 = arith.constant 0 : index
    %c0_388 = arith.constant 0 : index
    %632 = vector.load %arg41[%c0_387, %c0_388] : memref<16x8xf32, #tpu.memory_space<vmem>>, vector<16x8xf32>
    tpu.vector_store %arg41[%c0_387, %c0_388], %631 {strides = array<i32>} : memref<16x8xf32, #tpu.memory_space<vmem>>, vector<16x8xf32>,
    %cst_389 = arith.constant dense<0.000000e+00> : vector<8xf32>
    %633 = vector.multi_reduction <add>, %541, %cst_389 [1] : vector<8x128xf32> to vector<8xf32>
    %634 = vector.shape_cast %633 : vector<8xf32> to vector<8x1xf32>
    %cst_390 = arith.constant 1.280000e+02 : f32
    %635 = vector.broadcast %cst_390 : f32 to vector<8x1xf32>
    %636 = arith.divf %634, %635 : vector<8x1xf32>
    %637 = vector.broadcast %636 : vector<8x1xf32> to vector<8x128xf32>
    %638 = arith.subf %541, %637 : vector<8x128xf32>
    %639 = arith.mulf %638, %638 : vector<8x128xf32>
    %cst_391 = arith.constant dense<0.000000e+00> : vector<8xf32>
    %640 = vector.multi_reduction <add>, %639, %cst_391 [1] : vector<8x128xf32> to vector<8xf32>
    %641 = vector.shape_cast %640 : vector<8xf32> to vector<8x1xf32>
    %cst_392 = arith.constant 1.280000e+02 : f32
    %642 = vector.broadcast %cst_392 : f32 to vector<8x1xf32>
    %643 = arith.divf %641, %642 : vector<8x1xf32>
    %cst_393 = arith.constant 9.99999974E-6 : f32
    %644 = vector.broadcast %cst_393 : f32 to vector<8x1xf32>
    %645 = arith.addf %643, %644 : vector<8x1xf32>
    %646 = math.rsqrt %645 : vector<8x1xf32>
    %647 = vector.broadcast %646 : vector<8x1xf32> to vector<8x128xf32>
    %648 = arith.mulf %638, %647 : vector<8x128xf32>
    %c0_394 = arith.constant 0 : index
    %c0_395 = arith.constant 0 : index
    %649 = vector.load %arg23[%c0_394, %c0_395] : memref<2x128xf32, #tpu.memory_space<vmem>>, vector<1x128xf32>
    %650 = vector.broadcast %649 : vector<1x128xf32> to vector<8x128xf32>
    %651 = arith.mulf %648, %650 : vector<8x128xf32>
    %c1_396 = arith.constant 1 : index
    %c0_397 = arith.constant 0 : index
    %652 = vector.load %arg23[%c1_396, %c0_397] : memref<2x128xf32, #tpu.memory_space<vmem>>, vector<1x128xf32>
    %653 = vector.broadcast %652 : vector<1x128xf32> to vector<8x128xf32>
    %654 = arith.addf %651, %653 : vector<8x128xf32>
    %c0_398 = arith.constant 0 : index
    %c0_399 = arith.constant 0 : index
    %655 = vector.load %arg24[%c0_398, %c0_399] : memref<384x8xbf16, #tpu.memory_space<vmem>>, vector<384x8xbf16>
    %656 = arith.truncf %654 : vector<8x128xf32> to vector<8x128xbf16>
    %cst_400 = arith.constant dense<0.000000e+00> : vector<384x128xf32>
    %657 = tpu.matmul %655, %656, %cst_400 {dimension_numbers = #tpu.dot_dimension_numbers<[1], [0], [0], [1], [0, 0, 1, 1], [], []>} : vector<384x8xbf16>, vector<8x128xbf16>, vector<384x128xf32> -> vector<384x128xf32>
    %c0_401 = arith.constant 0 : index
    %c0_402 = arith.constant 0 : index
    %658 = vector.load %arg25[%c0_401, %c0_402] : memref<8x384xbf16, #tpu.memory_space<vmem>>, vector<8x384xbf16>
    %659 = arith.truncf %657 : vector<384x128xf32> to vector<384x128xbf16>
    %cst_403 = arith.constant dense<0.000000e+00> : vector<8x128xf32>
    %660 = tpu.matmul %658, %659, %cst_403 {dimension_numbers = #tpu.dot_dimension_numbers<[1], [0], [0], [1], [0, 0, 1, 1], [], []>} : vector<8x384xbf16>, vector<384x128xbf16>, vector<8x128xf32> -> vector<8x128xf32>
    %c0_404 = arith.constant 0 : index
    %c0_405 = arith.constant 0 : index
    %661 = vector.load %arg26[%c0_404, %c0_405] : memref<8x1xf32, #tpu.memory_space<vmem>>, vector<8x1xf32>
    %662 = vector.broadcast %661 : vector<8x1xf32> to vector<8x128xf32>
    %663 = arith.addf %660, %662 : vector<8x128xf32>
    %cst_406 = arith.constant 5.000000e-01 : f32
    %664 = vector.broadcast %cst_406 : f32 to vector<8x128xf32>
    %665 = arith.mulf %664, %663 : vector<8x128xf32>
    %cst_407 = arith.constant 4.471500e-02 : f32
    %666 = vector.broadcast %cst_407 : f32 to vector<8x128xf32>
    %667 = arith.mulf %666, %663 : vector<8x128xf32>
    %668 = arith.mulf %667, %663 : vector<8x128xf32>
    %669 = arith.mulf %668, %663 : vector<8x128xf32>
    %670 = arith.addf %663, %669 : vector<8x128xf32>
    %cst_408 = arith.constant 0.797884583 : f32
    %671 = vector.broadcast %cst_408 : f32 to vector<8x128xf32>
    %672 = arith.mulf %671, %670 : vector<8x128xf32>
    %673 = math.tanh %672 : vector<8x128xf32>
    %cst_409 = arith.constant 1.000000e+00 : f32
    %674 = vector.broadcast %cst_409 : f32 to vector<8x128xf32>
    %675 = arith.addf %674, %673 : vector<8x128xf32>
    %676 = arith.mulf %665, %675 : vector<8x128xf32>
    %677 = arith.truncf %676 : vector<8x128xf32> to vector<8x128xbf16>
    %c0_410 = arith.constant 0 : index
    %c0_411 = arith.constant 0 : index
    %678 = vector.load %arg27[%c0_410, %c0_411] : memref<128x384xbf16, #tpu.memory_space<vmem>>, vector<128x384xbf16>
    %cst_412 = arith.constant dense<0.000000e+00> : vector<8x384xf32>
    %679 = tpu.matmul %677, %678, %cst_412 {dimension_numbers = #tpu.dot_dimension_numbers<[1], [0], [0], [1], [0, 0, 1, 1], [], []>} : vector<8x128xbf16>, vector<128x384xbf16>, vector<8x384xf32> -> vector<8x384xf32>
    %c0_413 = arith.constant 0 : index
    %c0_414 = arith.constant 0 : index
    %680 = vector.load %arg28[%c0_413, %c0_414] : memref<1x384xf32, #tpu.memory_space<vmem>>, vector<1x384xf32>
    %681 = vector.broadcast %680 : vector<1x384xf32> to vector<8x384xf32>
    %682 = arith.addf %679, %681 : vector<8x384xf32>
    %683 = arith.truncf %682 : vector<8x384xf32> to vector<8x384xbf16>
    %c0_415 = arith.constant 0 : index
    %c0_416 = arith.constant 0 : index
    %684 = vector.load %arg29[%c0_415, %c0_416] : memref<384x128xbf16, #tpu.memory_space<vmem>>, vector<384x128xbf16>
    %cst_417 = arith.constant dense<0.000000e+00> : vector<8x128xf32>
    %685 = tpu.matmul %683, %684, %cst_417 {dimension_numbers = #tpu.dot_dimension_numbers<[1], [0], [0], [1], [0, 0, 1, 1], [], []>} : vector<8x384xbf16>, vector<384x128xbf16>, vector<8x128xf32> -> vector<8x128xf32>
    %c0_418 = arith.constant 0 : index
    %c0_419 = arith.constant 0 : index
    %686 = vector.load %arg30[%c0_418, %c0_419] : memref<1x128xf32, #tpu.memory_space<vmem>>, vector<1x128xf32>
    %687 = vector.broadcast %686 : vector<1x128xf32> to vector<8x128xf32>
    %688 = arith.addf %685, %687 : vector<8x128xf32>
    %cst_420 = arith.constant 5.000000e-01 : f32
    %689 = vector.broadcast %cst_420 : f32 to vector<8x128xf32>
    %690 = arith.mulf %689, %688 : vector<8x128xf32>
    %cst_421 = arith.constant 4.471500e-02 : f32
    %691 = vector.broadcast %cst_421 : f32 to vector<8x128xf32>
    %692 = arith.mulf %691, %688 : vector<8x128xf32>
    %693 = arith.mulf %692, %688 : vector<8x128xf32>
    %694 = arith.mulf %693, %688 : vector<8x128xf32>
    %695 = arith.addf %688, %694 : vector<8x128xf32>
    %cst_422 = arith.constant 0.797884583 : f32
    %696 = vector.broadcast %cst_422 : f32 to vector<8x128xf32>
    %697 = arith.mulf %696, %695 : vector<8x128xf32>
    %698 = math.tanh %697 : vector<8x128xf32>
    %cst_423 = arith.constant 1.000000e+00 : f32
    %699 = vector.broadcast %cst_423 : f32 to vector<8x128xf32>
    %700 = arith.addf %699, %698 : vector<8x128xf32>
    %701 = arith.mulf %690, %700 : vector<8x128xf32>
    %c0_424 = arith.constant 0 : index
    %c0_425 = arith.constant 0 : index
    %702 = vector.load %arg42[%c0_424, %c0_425] : memref<8x128xf32, #tpu.memory_space<vmem>>, vector<8x128xf32>
    tpu.vector_store %arg42[%c0_424, %c0_425], %701 {strides = array<i32>} : memref<8x128xf32, #tpu.memory_space<vmem>>, vector<8x128xf32>,
    %cst_426 = arith.constant dense<0.000000e+00> : vector<8xf32>
    %703 = vector.multi_reduction <add>, %541, %cst_426 [1] : vector<8x128xf32> to vector<8xf32>
    %704 = vector.shape_cast %703 : vector<8xf32> to vector<8x1xf32>
    %cst_427 = arith.constant 1.280000e+02 : f32
    %705 = vector.broadcast %cst_427 : f32 to vector<8x1xf32>
    %706 = arith.divf %704, %705 : vector<8x1xf32>
    %707 = vector.broadcast %706 : vector<8x1xf32> to vector<8x128xf32>
    %708 = arith.subf %541, %707 : vector<8x128xf32>
    %709 = arith.mulf %708, %708 : vector<8x128xf32>
    %cst_428 = arith.constant dense<0.000000e+00> : vector<8xf32>
    %710 = vector.multi_reduction <add>, %709, %cst_428 [1] : vector<8x128xf32> to vector<8xf32>
    %711 = vector.shape_cast %710 : vector<8xf32> to vector<8x1xf32>
    %cst_429 = arith.constant 1.280000e+02 : f32
    %712 = vector.broadcast %cst_429 : f32 to vector<8x1xf32>
    %713 = arith.divf %711, %712 : vector<8x1xf32>
    %cst_430 = arith.constant 9.99999974E-6 : f32
    %714 = vector.broadcast %cst_430 : f32 to vector<8x1xf32>
    %715 = arith.addf %713, %714 : vector<8x1xf32>
    %716 = math.rsqrt %715 : vector<8x1xf32>
    %717 = vector.broadcast %716 : vector<8x1xf32> to vector<8x128xf32>
    %718 = arith.mulf %708, %717 : vector<8x128xf32>
    %c0_431 = arith.constant 0 : index
    %c0_432 = arith.constant 0 : index
    %719 = vector.load %arg31[%c0_431, %c0_432] : memref<2x128xf32, #tpu.memory_space<vmem>>, vector<1x128xf32>
    %720 = vector.broadcast %719 : vector<1x128xf32> to vector<8x128xf32>
    %721 = arith.mulf %718, %720 : vector<8x128xf32>
    %c1_433 = arith.constant 1 : index
    %c0_434 = arith.constant 0 : index
    %722 = vector.load %arg31[%c1_433, %c0_434] : memref<2x128xf32, #tpu.memory_space<vmem>>, vector<1x128xf32>
    %723 = vector.broadcast %722 : vector<1x128xf32> to vector<8x128xf32>
    %724 = arith.addf %721, %723 : vector<8x128xf32>
    %c0_435 = arith.constant 0 : index
    %c0_436 = arith.constant 0 : index
    %725 = vector.load %arg32[%c0_435, %c0_436] : memref<384x8xbf16, #tpu.memory_space<vmem>>, vector<384x8xbf16>
    %726 = arith.truncf %724 : vector<8x128xf32> to vector<8x128xbf16>
    %cst_437 = arith.constant dense<0.000000e+00> : vector<384x128xf32>
    %727 = tpu.matmul %725, %726, %cst_437 {dimension_numbers = #tpu.dot_dimension_numbers<[1], [0], [0], [1], [0, 0, 1, 1], [], []>} : vector<384x8xbf16>, vector<8x128xbf16>, vector<384x128xf32> -> vector<384x128xf32>
    %c0_438 = arith.constant 0 : index
    %c0_439 = arith.constant 0 : index
    %728 = vector.load %arg33[%c0_438, %c0_439] : memref<8x384xbf16, #tpu.memory_space<vmem>>, vector<8x384xbf16>
    %729 = arith.truncf %727 : vector<384x128xf32> to vector<384x128xbf16>
    %cst_440 = arith.constant dense<0.000000e+00> : vector<8x128xf32>
    %730 = tpu.matmul %728, %729, %cst_440 {dimension_numbers = #tpu.dot_dimension_numbers<[1], [0], [0], [1], [0, 0, 1, 1], [], []>} : vector<8x384xbf16>, vector<384x128xbf16>, vector<8x128xf32> -> vector<8x128xf32>
    %c0_441 = arith.constant 0 : index
    %c0_442 = arith.constant 0 : index
    %731 = vector.load %arg34[%c0_441, %c0_442] : memref<8x1xf32, #tpu.memory_space<vmem>>, vector<8x1xf32>
    %732 = vector.broadcast %731 : vector<8x1xf32> to vector<8x128xf32>
    %733 = arith.addf %730, %732 : vector<8x128xf32>
    %cst_443 = arith.constant 5.000000e-01 : f32
    %734 = vector.broadcast %cst_443 : f32 to vector<8x128xf32>
    %735 = arith.mulf %734, %733 : vector<8x128xf32>
    %cst_444 = arith.constant 4.471500e-02 : f32
    %736 = vector.broadcast %cst_444 : f32 to vector<8x128xf32>
    %737 = arith.mulf %736, %733 : vector<8x128xf32>
    %738 = arith.mulf %737, %733 : vector<8x128xf32>
    %739 = arith.mulf %738, %733 : vector<8x128xf32>
    %740 = arith.addf %733, %739 : vector<8x128xf32>
    %cst_445 = arith.constant 0.797884583 : f32
    %741 = vector.broadcast %cst_445 : f32 to vector<8x128xf32>
    %742 = arith.mulf %741, %740 : vector<8x128xf32>
    %743 = math.tanh %742 : vector<8x128xf32>
    %cst_446 = arith.constant 1.000000e+00 : f32
    %744 = vector.broadcast %cst_446 : f32 to vector<8x128xf32>
    %745 = arith.addf %744, %743 : vector<8x128xf32>
    %746 = arith.mulf %735, %745 : vector<8x128xf32>
    %747 = arith.truncf %746 : vector<8x128xf32> to vector<8x128xbf16>
    %c0_447 = arith.constant 0 : index
    %c0_448 = arith.constant 0 : index
    %748 = vector.load %arg35[%c0_447, %c0_448] : memref<128x384xbf16, #tpu.memory_space<vmem>>, vector<128x384xbf16>
    %cst_449 = arith.constant dense<0.000000e+00> : vector<8x384xf32>
    %749 = tpu.matmul %747, %748, %cst_449 {dimension_numbers = #tpu.dot_dimension_numbers<[1], [0], [0], [1], [0, 0, 1, 1], [], []>} : vector<8x128xbf16>, vector<128x384xbf16>, vector<8x384xf32> -> vector<8x384xf32>
    %c0_450 = arith.constant 0 : index
    %c0_451 = arith.constant 0 : index
    %750 = vector.load %arg36[%c0_450, %c0_451] : memref<1x384xf32, #tpu.memory_space<vmem>>, vector<1x384xf32>
    %751 = vector.broadcast %750 : vector<1x384xf32> to vector<8x384xf32>
    %752 = arith.addf %749, %751 : vector<8x384xf32>
    %753 = arith.truncf %752 : vector<8x384xf32> to vector<8x384xbf16>
    %c0_452 = arith.constant 0 : index
    %c0_453 = arith.constant 0 : index
    %754 = vector.load %arg37[%c0_452, %c0_453] : memref<384x128xbf16, #tpu.memory_space<vmem>>, vector<384x128xbf16>
    %cst_454 = arith.constant dense<0.000000e+00> : vector<8x128xf32>
    %755 = tpu.matmul %753, %754, %cst_454 {dimension_numbers = #tpu.dot_dimension_numbers<[1], [0], [0], [1], [0, 0, 1, 1], [], []>} : vector<8x384xbf16>, vector<384x128xbf16>, vector<8x128xf32> -> vector<8x128xf32>
    %c0_455 = arith.constant 0 : index
    %c0_456 = arith.constant 0 : index
    %756 = vector.load %arg38[%c0_455, %c0_456] : memref<1x128xf32, #tpu.memory_space<vmem>>, vector<1x128xf32>
    %757 = vector.broadcast %756 : vector<1x128xf32> to vector<8x128xf32>
    %758 = arith.addf %755, %757 : vector<8x128xf32>
    %cst_457 = arith.constant 5.000000e-01 : f32
    %759 = vector.broadcast %cst_457 : f32 to vector<8x128xf32>
    %760 = arith.mulf %759, %758 : vector<8x128xf32>
    %cst_458 = arith.constant 4.471500e-02 : f32
    %761 = vector.broadcast %cst_458 : f32 to vector<8x128xf32>
    %762 = arith.mulf %761, %758 : vector<8x128xf32>
    %763 = arith.mulf %762, %758 : vector<8x128xf32>
    %764 = arith.mulf %763, %758 : vector<8x128xf32>
    %765 = arith.addf %758, %764 : vector<8x128xf32>
    %cst_459 = arith.constant 0.797884583 : f32
    %766 = vector.broadcast %cst_459 : f32 to vector<8x128xf32>
    %767 = arith.mulf %766, %765 : vector<8x128xf32>
    %768 = math.tanh %767 : vector<8x128xf32>
    %cst_460 = arith.constant 1.000000e+00 : f32
    %769 = vector.broadcast %cst_460 : f32 to vector<8x128xf32>
    %770 = arith.addf %769, %768 : vector<8x128xf32>
    %771 = arith.mulf %760, %770 : vector<8x128xf32>
    %cst_461 = arith.constant 1.000000e+00 : f32
    %772 = vector.broadcast %cst_461 : f32 to vector<16x128xf32>
    %c0_462 = arith.constant 0 : index
    %c0_463 = arith.constant 0 : index
    %773 = vector.load %arg41[%c0_462, %c0_463] : memref<16x8xf32, #tpu.memory_space<vmem>>, vector<16x1xf32>
    %c0_464 = arith.constant 0 : index
    %c0_465 = arith.constant 0 : index
    %774 = vector.load %arg42[%c0_464, %c0_465] : memref<8x128xf32, #tpu.memory_space<vmem>>, vector<1x128xf32>
    %775 = vector.broadcast %773 : vector<16x1xf32> to vector<16x128xf32>
    %776 = vector.broadcast %774 : vector<1x128xf32> to vector<16x128xf32>
    %777 = arith.mulf %775, %776 : vector<16x128xf32>
    %cst_466 = arith.constant 1.000000e+00 : f32
    %778 = vector.broadcast %cst_466 : f32 to vector<16x128xf32>
    %779 = arith.subf %778, %777 : vector<16x128xf32>
    %780 = arith.mulf %772, %779 : vector<16x128xf32>
    %c0_467 = arith.constant 0 : index
    %c1_468 = arith.constant 1 : index
    %781 = vector.load %arg41[%c0_467, %c1_468] : memref<16x8xf32, #tpu.memory_space<vmem>>, vector<16x1xf32>
    %c1_469 = arith.constant 1 : index
    %c0_470 = arith.constant 0 : index
    %782 = vector.load %arg42[%c1_469, %c0_470] : memref<8x128xf32, #tpu.memory_space<vmem>>, vector<1x128xf32>
    %783 = vector.broadcast %781 : vector<16x1xf32> to vector<16x128xf32>
    %784 = vector.broadcast %782 : vector<1x128xf32> to vector<16x128xf32>
    %785 = arith.mulf %783, %784 : vector<16x128xf32>
    %cst_471 = arith.constant 1.000000e+00 : f32
    %786 = vector.broadcast %cst_471 : f32 to vector<16x128xf32>
    %787 = arith.subf %786, %785 : vector<16x128xf32>
    %788 = arith.mulf %780, %787 : vector<16x128xf32>
    %c0_472 = arith.constant 0 : index
    %c2_473 = arith.constant 2 : index
    %789 = vector.load %arg41[%c0_472, %c2_473] : memref<16x8xf32, #tpu.memory_space<vmem>>, vector<16x1xf32>
    %c2_474 = arith.constant 2 : index
    %c0_475 = arith.constant 0 : index
    %790 = vector.load %arg42[%c2_474, %c0_475] : memref<8x128xf32, #tpu.memory_space<vmem>>, vector<1x128xf32>
    %791 = vector.broadcast %789 : vector<16x1xf32> to vector<16x128xf32>
    %792 = vector.broadcast %790 : vector<1x128xf32> to vector<16x128xf32>
    %793 = arith.mulf %791, %792 : vector<16x128xf32>
    %cst_476 = arith.constant 1.000000e+00 : f32
    %794 = vector.broadcast %cst_476 : f32 to vector<16x128xf32>
    %795 = arith.subf %794, %793 : vector<16x128xf32>
    %796 = arith.mulf %788, %795 : vector<16x128xf32>
    %c0_477 = arith.constant 0 : index
    %c3_478 = arith.constant 3 : index
    %797 = vector.load %arg41[%c0_477, %c3_478] : memref<16x8xf32, #tpu.memory_space<vmem>>, vector<16x1xf32>
    %c3_479 = arith.constant 3 : index
    %c0_480 = arith.constant 0 : index
    %798 = vector.load %arg42[%c3_479, %c0_480] : memref<8x128xf32, #tpu.memory_space<vmem>>, vector<1x128xf32>
    %799 = vector.broadcast %797 : vector<16x1xf32> to vector<16x128xf32>
    %800 = vector.broadcast %798 : vector<1x128xf32> to vector<16x128xf32>
    %801 = arith.mulf %799, %800 : vector<16x128xf32>
    %cst_481 = arith.constant 1.000000e+00 : f32
    %802 = vector.broadcast %cst_481 : f32 to vector<16x128xf32>
    %803 = arith.subf %802, %801 : vector<16x128xf32>
    %804 = arith.mulf %796, %803 : vector<16x128xf32>
    %c0_482 = arith.constant 0 : index
    %c4_483 = arith.constant 4 : index
    %805 = vector.load %arg41[%c0_482, %c4_483] : memref<16x8xf32, #tpu.memory_space<vmem>>, vector<16x1xf32>
    %c4_484 = arith.constant 4 : index
    %c0_485 = arith.constant 0 : index
    %806 = vector.load %arg42[%c4_484, %c0_485] : memref<8x128xf32, #tpu.memory_space<vmem>>, vector<1x128xf32>
    %807 = vector.broadcast %805 : vector<16x1xf32> to vector<16x128xf32>
    %808 = vector.broadcast %806 : vector<1x128xf32> to vector<16x128xf32>
    %809 = arith.mulf %807, %808 : vector<16x128xf32>
    %cst_486 = arith.constant 1.000000e+00 : f32
    %810 = vector.broadcast %cst_486 : f32 to vector<16x128xf32>
    %811 = arith.subf %810, %809 : vector<16x128xf32>
    %812 = arith.mulf %804, %811 : vector<16x128xf32>
    %c0_487 = arith.constant 0 : index
    %c5_488 = arith.constant 5 : index
    %813 = vector.load %arg41[%c0_487, %c5_488] : memref<16x8xf32, #tpu.memory_space<vmem>>, vector<16x1xf32>
    %c5_489 = arith.constant 5 : index
    %c0_490 = arith.constant 0 : index
    %814 = vector.load %arg42[%c5_489, %c0_490] : memref<8x128xf32, #tpu.memory_space<vmem>>, vector<1x128xf32>
    %815 = vector.broadcast %813 : vector<16x1xf32> to vector<16x128xf32>
    %816 = vector.broadcast %814 : vector<1x128xf32> to vector<16x128xf32>
    %817 = arith.mulf %815, %816 : vector<16x128xf32>
    %cst_491 = arith.constant 1.000000e+00 : f32
    %818 = vector.broadcast %cst_491 : f32 to vector<16x128xf32>
    %819 = arith.subf %818, %817 : vector<16x128xf32>
    %820 = arith.mulf %812, %819 : vector<16x128xf32>
    %c0_492 = arith.constant 0 : index
    %c6_493 = arith.constant 6 : index
    %821 = vector.load %arg41[%c0_492, %c6_493] : memref<16x8xf32, #tpu.memory_space<vmem>>, vector<16x1xf32>
    %c6_494 = arith.constant 6 : index
    %c0_495 = arith.constant 0 : index
    %822 = vector.load %arg42[%c6_494, %c0_495] : memref<8x128xf32, #tpu.memory_space<vmem>>, vector<1x128xf32>
    %823 = vector.broadcast %821 : vector<16x1xf32> to vector<16x128xf32>
    %824 = vector.broadcast %822 : vector<1x128xf32> to vector<16x128xf32>
    %825 = arith.mulf %823, %824 : vector<16x128xf32>
    %cst_496 = arith.constant 1.000000e+00 : f32
    %826 = vector.broadcast %cst_496 : f32 to vector<16x128xf32>
    %827 = arith.subf %826, %825 : vector<16x128xf32>
    %828 = arith.mulf %820, %827 : vector<16x128xf32>
    %c0_497 = arith.constant 0 : index
    %c7_498 = arith.constant 7 : index
    %829 = vector.load %arg41[%c0_497, %c7_498] : memref<16x8xf32, #tpu.memory_space<vmem>>, vector<16x1xf32>
    %c7_499 = arith.constant 7 : index
    %c0_500 = arith.constant 0 : index
    %830 = vector.load %arg42[%c7_499, %c0_500] : memref<8x128xf32, #tpu.memory_space<vmem>>, vector<1x128xf32>
    %831 = vector.broadcast %829 : vector<16x1xf32> to vector<16x128xf32>
    %832 = vector.broadcast %830 : vector<1x128xf32> to vector<16x128xf32>
    %833 = arith.mulf %831, %832 : vector<16x128xf32>
    %cst_501 = arith.constant 1.000000e+00 : f32
    %834 = vector.broadcast %cst_501 : f32 to vector<16x128xf32>
    %835 = arith.subf %834, %833 : vector<16x128xf32>
    %836 = arith.mulf %828, %835 : vector<16x128xf32>
    %837 = arith.truncf %631 : vector<16x8xf32> to vector<16x8xbf16>
    %838 = arith.truncf %771 : vector<8x128xf32> to vector<8x128xbf16>
    %cst_502 = arith.constant dense<0.000000e+00> : vector<16x128xf32>
    %839 = tpu.matmul %837, %838, %cst_502 {dimension_numbers = #tpu.dot_dimension_numbers<[1], [0], [0], [1], [0, 0, 1, 1], [], []>} : vector<16x8xbf16>, vector<8x128xbf16>, vector<16x128xf32> -> vector<16x128xf32>
    %840 = arith.mulf %3, %836 : vector<16x128xf32>
    %cst_503 = arith.constant 1.250000e-01 : f32
    %841 = vector.broadcast %cst_503 : f32 to vector<16x128xf32>
    %842 = arith.mulf %839, %841 : vector<16x128xf32>
    %cst_504 = arith.constant 1.000000e+00 : f32
    %843 = vector.broadcast %cst_504 : f32 to vector<16x128xf32>
    %844 = arith.subf %843, %842 : vector<16x128xf32>
    %845 = arith.addf %840, %844 : vector<16x128xf32>
    %c0_505 = arith.constant 0 : index
    %c0_506 = arith.constant 0 : index
    %c0_507 = arith.constant 0 : index
    %846 = vector.load %arg39[%c0_505, %c0_506, %c0_507] : memref<1x16x128xf32, #tpu.memory_space<vmem>>, vector<1x16x128xf32>
    %847 = vector.shape_cast %846 : vector<1x16x128xf32> to vector<16x128xf32>
    %848 = vector.shape_cast %845 : vector<16x128xf32> to vector<1x16x128xf32>
    tpu.vector_store %arg39[%c0_505, %c0_506, %c0_507], %848 {strides = array<i32>} : memref<1x16x128xf32, #tpu.memory_space<vmem>>, vector<1x16x128xf32>,
    return
  }
  func.func @transform_0(%arg0: i32) -> (i32, i32, i32) {
    %c0_i32 = arith.constant 0 : i32
    %c0_i32_0 = arith.constant 0 : i32
    %c0_i32_1 = arith.constant 0 : i32
    return %arg0, %c0_i32, %c0_i32_0 : i32, i32, i32
  }
  func.func @transform_1(%arg0: i32) -> (i32, i32, i32) {
    %c0_i32 = arith.constant 0 : i32
    %c0_i32_0 = arith.constant 0 : i32
    %c0_i32_1 = arith.constant 0 : i32
    return %arg0, %c0_i32, %c0_i32_0 : i32, i32, i32
  }
  func.func @transform_2(%arg0: i32) -> (i32, i32, i32) {
    %c0_i32 = arith.constant 0 : i32
    %c0_i32_0 = arith.constant 0 : i32
    %c0_i32_1 = arith.constant 0 : i32
    return %arg0, %c0_i32, %c0_i32_0 : i32, i32, i32
  }
  func.func @transform_3(%arg0: i32) -> (i32, i32, i32) {
    %c0_i32 = arith.constant 0 : i32
    %c0_i32_0 = arith.constant 0 : i32
    %c0_i32_1 = arith.constant 0 : i32
    %c0_i32_2 = arith.constant 0 : i32
    return %c0_i32, %c0_i32_0, %c0_i32_1 : i32, i32, i32
  }
  func.func @transform_4(%arg0: i32) -> (i32, i32, i32) {
    %c0_i32 = arith.constant 0 : i32
    %c0_i32_0 = arith.constant 0 : i32
    %c0_i32_1 = arith.constant 0 : i32
    %c0_i32_2 = arith.constant 0 : i32
    return %c0_i32, %c0_i32_0, %c0_i32_1 : i32, i32, i32
  }
  func.func @transform_5(%arg0: i32) -> (i32, i32, i32) {
    %c0_i32 = arith.constant 0 : i32
    %c0_i32_0 = arith.constant 0 : i32
    %c0_i32_1 = arith.constant 0 : i32
    %c0_i32_2 = arith.constant 0 : i32
    return %c0_i32, %c0_i32_0, %c0_i32_1 : i32, i32, i32
  }
  func.func @transform_6(%arg0: i32) -> (i32, i32, i32) {
    %c0_i32 = arith.constant 0 : i32
    %c0_i32_0 = arith.constant 0 : i32
    %c0_i32_1 = arith.constant 0 : i32
    %c0_i32_2 = arith.constant 0 : i32
    return %c0_i32, %c0_i32_0, %c0_i32_1 : i32, i32, i32
  }
  func.func @transform_7(%arg0: i32) -> (i32, i32, i32) {
    %c0_i32 = arith.constant 0 : i32
    %c0_i32_0 = arith.constant 0 : i32
    %c0_i32_1 = arith.constant 0 : i32
    %c0_i32_2 = arith.constant 0 : i32
    return %c0_i32, %c0_i32_0, %c0_i32_1 : i32, i32, i32
  }
  func.func @transform_8(%arg0: i32) -> (i32, i32, i32) {
    %c0_i32 = arith.constant 0 : i32
    %c0_i32_0 = arith.constant 0 : i32
    %c0_i32_1 = arith.constant 0 : i32
    %c0_i32_2 = arith.constant 0 : i32
    return %c0_i32, %c0_i32_0, %c0_i32_1 : i32, i32, i32
  }
  func.func @transform_9(%arg0: i32) -> (i32, i32, i32) {
    %c0_i32 = arith.constant 0 : i32
    %c0_i32_0 = arith.constant 0 : i32
    %c0_i32_1 = arith.constant 0 : i32
    %c0_i32_2 = arith.constant 0 : i32
    return %c0_i32, %c0_i32_0, %c0_i32_1 : i32, i32, i32
  }
  func.func @transform_10(%arg0: i32) -> (i32, i32) {
    %c0_i32 = arith.constant 0 : i32
    %c0_i32_0 = arith.constant 0 : i32
    %c0_i32_1 = arith.constant 0 : i32
    return %c0_i32, %c0_i32_0 : i32, i32
  }
  func.func @transform_11(%arg0: i32) -> (i32, i32) {
    %c0_i32 = arith.constant 0 : i32
    %c0_i32_0 = arith.constant 0 : i32
    %c0_i32_1 = arith.constant 0 : i32
    return %c0_i32, %c0_i32_0 : i32, i32
  }
  func.func @transform_12(%arg0: i32) -> (i32, i32) {
    %c0_i32 = arith.constant 0 : i32
    %c0_i32_0 = arith.constant 0 : i32
    %c0_i32_1 = arith.constant 0 : i32
    return %c0_i32, %c0_i32_0 : i32, i32
  }
  func.func @transform_13(%arg0: i32) -> (i32, i32) {
    %c0_i32 = arith.constant 0 : i32
    %c0_i32_0 = arith.constant 0 : i32
    %c0_i32_1 = arith.constant 0 : i32
    return %c0_i32, %c0_i32_0 : i32, i32
  }
  func.func @transform_14(%arg0: i32) -> (i32, i32) {
    %c0_i32 = arith.constant 0 : i32
    %c0_i32_0 = arith.constant 0 : i32
    %c0_i32_1 = arith.constant 0 : i32
    return %c0_i32, %c0_i32_0 : i32, i32
  }
  func.func @transform_15(%arg0: i32) -> (i32, i32) {
    %c0_i32 = arith.constant 0 : i32
    %c0_i32_0 = arith.constant 0 : i32
    %c0_i32_1 = arith.constant 0 : i32
    return %c0_i32, %c0_i32_0 : i32, i32
  }
  func.func @transform_16(%arg0: i32) -> (i32, i32) {
    %c0_i32 = arith.constant 0 : i32
    %c0_i32_0 = arith.constant 0 : i32
    %c0_i32_1 = arith.constant 0 : i32
    return %c0_i32, %c0_i32_0 : i32, i32
  }
  func.func @transform_17(%arg0: i32) -> (i32, i32) {
    %c0_i32 = arith.constant 0 : i32
    %c0_i32_0 = arith.constant 0 : i32
    %c0_i32_1 = arith.constant 0 : i32
    return %c0_i32, %c0_i32_0 : i32, i32
  }
  func.func @transform_18(%arg0: i32) -> (i32, i32) {
    %c0_i32 = arith.constant 0 : i32
    %c0_i32_0 = arith.constant 0 : i32
    %c0_i32_1 = arith.constant 0 : i32
    return %c0_i32, %c0_i32_0 : i32, i32
  }
  func.func @transform_19(%arg0: i32) -> (i32, i32) {
    %c0_i32 = arith.constant 0 : i32
    %c0_i32_0 = arith.constant 0 : i32
    %c0_i32_1 = arith.constant 0 : i32
    return %c0_i32, %c0_i32_0 : i32, i32
  }
  func.func @transform_20(%arg0: i32) -> (i32, i32) {
    %c0_i32 = arith.constant 0 : i32
    %c0_i32_0 = arith.constant 0 : i32
    %c0_i32_1 = arith.constant 0 : i32
    return %c0_i32, %c0_i32_0 : i32, i32
  }
  func.func @transform_21(%arg0: i32) -> (i32, i32) {
    %c0_i32 = arith.constant 0 : i32
    %c0_i32_0 = arith.constant 0 : i32
    %c0_i32_1 = arith.constant 0 : i32
    return %c0_i32, %c0_i32_0 : i32, i32
  }
  func.func @transform_22(%arg0: i32) -> (i32, i32) {
    %c0_i32 = arith.constant 0 : i32
    %c0_i32_0 = arith.constant 0 : i32
    %c0_i32_1 = arith.constant 0 : i32
    return %c0_i32, %c0_i32_0 : i32, i32
  }
  func.func @transform_23(%arg0: i32) -> (i32, i32) {
    %c0_i32 = arith.constant 0 : i32
    %c0_i32_0 = arith.constant 0 : i32
    %c0_i32_1 = arith.constant 0 : i32
    return %c0_i32, %c0_i32_0 : i32, i32
  }
  func.func @transform_24(%arg0: i32) -> (i32, i32) {
    %c0_i32 = arith.constant 0 : i32
    %c0_i32_0 = arith.constant 0 : i32
    %c0_i32_1 = arith.constant 0 : i32
    return %c0_i32, %c0_i32_0 : i32, i32
  }
  func.func @transform_25(%arg0: i32) -> (i32, i32) {
    %c0_i32 = arith.constant 0 : i32
    %c0_i32_0 = arith.constant 0 : i32
    %c0_i32_1 = arith.constant 0 : i32
    return %c0_i32, %c0_i32_0 : i32, i32
  }
  func.func @transform_26(%arg0: i32) -> (i32, i32) {
    %c0_i32 = arith.constant 0 : i32
    %c0_i32_0 = arith.constant 0 : i32
    %c0_i32_1 = arith.constant 0 : i32
    return %c0_i32, %c0_i32_0 : i32, i32
  }
  func.func @transform_27(%arg0: i32) -> (i32, i32) {
    %c0_i32 = arith.constant 0 : i32
    %c0_i32_0 = arith.constant 0 : i32
    %c0_i32_1 = arith.constant 0 : i32
    return %c0_i32, %c0_i32_0 : i32, i32
  }
  func.func @transform_28(%arg0: i32) -> (i32, i32) {
    %c0_i32 = arith.constant 0 : i32
    %c0_i32_0 = arith.constant 0 : i32
    %c0_i32_1 = arith.constant 0 : i32
    return %c0_i32, %c0_i32_0 : i32, i32
  }
  func.func @transform_29(%arg0: i32) -> (i32, i32) {
    %c0_i32 = arith.constant 0 : i32
    %c0_i32_0 = arith.constant 0 : i32
    %c0_i32_1 = arith.constant 0 : i32
    return %c0_i32, %c0_i32_0 : i32, i32
  }
  func.func @transform_30(%arg0: i32) -> (i32, i32) {
    %c0_i32 = arith.constant 0 : i32
    %c0_i32_0 = arith.constant 0 : i32
    %c0_i32_1 = arith.constant 0 : i32
    return %c0_i32, %c0_i32_0 : i32, i32
  }
  func.func @transform_31(%arg0: i32) -> (i32, i32) {
    %c0_i32 = arith.constant 0 : i32
    %c0_i32_0 = arith.constant 0 : i32
    %c0_i32_1 = arith.constant 0 : i32
    return %c0_i32, %c0_i32_0 : i32, i32
  }
  func.func @transform_32(%arg0: i32) -> (i32, i32) {
    %c0_i32 = arith.constant 0 : i32
    %c0_i32_0 = arith.constant 0 : i32
    %c0_i32_1 = arith.constant 0 : i32
    return %c0_i32, %c0_i32_0 : i32, i32
  }
  func.func @transform_33(%arg0: i32) -> (i32, i32) {
    %c0_i32 = arith.constant 0 : i32
    %c0_i32_0 = arith.constant 0 : i32
    %c0_i32_1 = arith.constant 0 : i32
    return %c0_i32, %c0_i32_0 : i32, i32
  }
  func.func @transform_34(%arg0: i32) -> (i32, i32) {
    %c0_i32 = arith.constant 0 : i32
    %c0_i32_0 = arith.constant 0 : i32
    %c0_i32_1 = arith.constant 0 : i32
    return %c0_i32, %c0_i32_0 : i32, i32
  }
  func.func @transform_35(%arg0: i32) -> (i32, i32) {
    %c0_i32 = arith.constant 0 : i32
    %c0_i32_0 = arith.constant 0 : i32
    %c0_i32_1 = arith.constant 0 : i32
    return %c0_i32, %c0_i32_0 : i32, i32
  }
  func.func @transform_36(%arg0: i32) -> (i32, i32) {
    %c0_i32 = arith.constant 0 : i32
    %c0_i32_0 = arith.constant 0 : i32
    %c0_i32_1 = arith.constant 0 : i32
    return %c0_i32, %c0_i32_0 : i32, i32
  }
  func.func @transform_37(%arg0: i32) -> (i32, i32) {
    %c0_i32 = arith.constant 0 : i32
    %c0_i32_0 = arith.constant 0 : i32
    %c0_i32_1 = arith.constant 0 : i32
    return %c0_i32, %c0_i32_0 : i32, i32
  }
  func.func @transform_38(%arg0: i32) -> (i32, i32, i32) {
    %c0_i32 = arith.constant 0 : i32
    %c0_i32_0 = arith.constant 0 : i32
    %c0_i32_1 = arith.constant 0 : i32
    return %arg0, %c0_i32, %c0_i32_0 : i32, i32, i32
  }
  func.func @transform_39(%arg0: i32) -> (i32, i32, i32) {
    %c0_i32 = arith.constant 0 : i32
    %c0_i32_0 = arith.constant 0 : i32
    %c0_i32_1 = arith.constant 0 : i32
    return %arg0, %c0_i32, %c0_i32_0 : i32, i32, i32
  }
}

</mosaic_0001>

<bundles_post_ra>
// kernel: squeeze.16
= control target key start
LH: loop header
LB: loop body
LE: loop exit
PB: predicated region body
PF: predicated region fallthrough
CT: control target
= control target key end

     0   :  { %vm3_vm0 = vcmask 31744   ;;  %s1305_s12 = smov 124   ;;  %s1828_s0 = inlined_call_operand.vmem [shape: f32[2,1,8,8,8], index: 0, kind: input, shape index: {}]   ;;  %s1829_s1 = inlined_call_operand.vmem [shape: f32[2,2,4,2,4,2,4], index: 1, kind: output, shape index: {}]  }
   0x1   :  { %v1163_v0 = vld [vmem:[%s1828_s0 + $0x10] sm:$0xff]   ;;  %v111_v1 = vld [vmem:[%s1828_s0] sm:$0xff]   ;;  %v1164_v2 = vld [vmem:[%s1828_s0 + $0x18] sm:$0xff]  }
   0x2   :  { %130 = vrot.lane.b32.xlu1 %v1163_v0, %s1305_s12  ;;  %112 = vrot.lane.b32.xlu0 %v111_v1, %s1305_s12  ;;  %v1162_v3 = vld [vmem:[%s1828_s0 + $0x8] sm:$0xff]   ;;  %17 = vst.msk [vmem:[#allocation0 + $0x80] ss:$8 sm:$0xf] %vm3_vm0, %v1163_v0   ;;  %v1165_v5 = vld [vmem:[%s1828_s0 + $0x20] sm:$0xff]  }
   0x3   :  { %v1166_v4 = vld [vmem:[%s1828_s0 + $0x28] sm:$0xff]   ;;  %19 = vst.msk [vmem:[#allocation0 + $0x80] ss:$8 sm:$0xf0] %vm3_vm0, %v1163_v0   ;;  %v1168_v6 = vld [vmem:[%s1828_s0 + $0x38] sm:$0xff]   ;;  %v1167_v7 = vld [vmem:[%s1828_s0 + $0x30] sm:$0xff]  }
   0x4   :  { %4 = vst.msk [vmem:[#allocation0] ss:$8 sm:$0xf] %vm3_vm0, %v111_v1   ;;  %5 = vst.msk [vmem:[#allocation0] ss:$8 sm:$0xf0] %vm3_vm0, %v111_v1  }
   0x5   :  { %24 = vst.msk [vmem:[#allocation0 + $0xc0] ss:$8 sm:$0xf] %vm3_vm0, %v1164_v2   ;;  %26 = vst.msk [vmem:[#allocation0 + $0xc0] ss:$8 sm:$0xf0] %vm3_vm0, %v1164_v2  }
   0x6   :  { %10 = vst.msk [vmem:[#allocation0 + $0x40] ss:$8 sm:$0xf] %vm3_vm0, %v1162_v3   ;;  %12 = vst.msk [vmem:[#allocation0 + $0x40] ss:$8 sm:$0xf0] %vm3_vm0, %v1162_v3   ;;  %139 = vrot.lane.b32.xlu1 %v1164_v2, %s1305_s12  ;;  %121 = vrot.lane.b32.xlu0 %v1162_v3, %s1305_s12 }
   0x7   :  { %38 = vst.msk [vmem:[#allocation0 + $0x140] ss:$8 sm:$0xf] %vm3_vm0, %v1166_v4   ;;  %40 = vst.msk [vmem:[#allocation0 + $0x140] ss:$8 sm:$0xf0] %vm3_vm0, %v1166_v4  }
   0x8   :  { %v1170_v8 = vld [vmem:[%s1828_s0 + $0x48] sm:$0xff]   ;;  %v1169_v9 = vld [vmem:[%s1828_s0 + $0x40] sm:$0xff]   ;;  %v1172_v10 = vld [vmem:[%s1828_s0 + $0x58] sm:$0xff]   ;;  %31 = vst.msk [vmem:[#allocation0 + $0x100] ss:$8 sm:$0xf] %vm3_vm0, %v1165_v5  }
   0x9   :  { %33 = vst.msk [vmem:[#allocation0 + $0x100] ss:$8 sm:$0xf0] %vm3_vm0, %v1165_v5   ;;  %52 = vst.msk [vmem:[#allocation0 + $0x1c0] ss:$8 sm:$0xf] %vm3_vm0, %v1168_v6  }
   0xa   :  { %54 = vst.msk [vmem:[#allocation0 + $0x1c0] ss:$8 sm:$0xf0] %vm3_vm0, %v1168_v6   ;;  %45 = vst.msk [vmem:[#allocation0 + $0x180] ss:$8 sm:$0xf] %vm3_vm0, %v1167_v7   ;;  %157 = vrot.lane.b32.xlu1 %v1166_v4, %s1305_s12  ;;  %148 = vrot.lane.b32.xlu0 %v1165_v5, %s1305_s12 }
   0xb   :  { %47 = vst.msk [vmem:[#allocation0 + $0x180] ss:$8 sm:$0xf0] %vm3_vm0, %v1167_v7   ;;  %v1171_v11 = vld [vmem:[%s1828_s0 + $0x50] sm:$0xff]   ;;  %v1174_v12 = vld [vmem:[%s1828_s0 + $0x68] sm:$0xff]   ;;  %v1173_v13 = vld [vmem:[%s1828_s0 + $0x60] sm:$0xff]  }
   0xc   :  { %66 = vst.msk [vmem:[#allocation0 + $0x240] ss:$8 sm:$0xf] %vm3_vm0, %v1170_v8   ;;  %68 = vst.msk [vmem:[#allocation0 + $0x240] ss:$8 sm:$0xf0] %vm3_vm0, %v1170_v8  }
   0xd   :  { %59 = vst.msk [vmem:[#allocation0 + $0x200] ss:$8 sm:$0xf] %vm3_vm0, %v1169_v9   ;;  %61 = vst.msk [vmem:[#allocation0 + $0x200] ss:$8 sm:$0xf0] %vm3_vm0, %v1169_v9  }
   0xe   :  { %80 = vst.msk [vmem:[#allocation0 + $0x2c0] ss:$8 sm:$0xf] %vm3_vm0, %v1172_v10   ;;  %82 = vst.msk [vmem:[#allocation0 + $0x2c0] ss:$8 sm:$0xf0] %vm3_vm0, %v1172_v10   ;;  %175 = vrot.lane.b32.xlu1 %v1168_v6, %s1305_s12  ;;  %166 = vrot.lane.b32.xlu0 %v1167_v7, %s1305_s12 }
   0xf   :  { %v1176_v14 = vld [vmem:[%s1828_s0 + $0x78] sm:$0xff]   ;;  %v1175_v15 = vld [vmem:[%s1828_s0 + $0x70] sm:$0xff]   ;;  %73 = vst.msk [vmem:[#allocation0 + $0x280] ss:$8 sm:$0xf] %vm3_vm0, %v1171_v11  }
  0x10   :  { %75 = vst.msk [vmem:[#allocation0 + $0x280] ss:$8 sm:$0xf0] %vm3_vm0, %v1171_v11   ;;  %94 = vst.msk [vmem:[#allocation0 + $0x340] ss:$8 sm:$0xf] %vm3_vm0, %v1174_v12  }
  0x11   :  { %96 = vst.msk [vmem:[#allocation0 + $0x340] ss:$8 sm:$0xf0] %vm3_vm0, %v1174_v12   ;;  %87 = vst.msk [vmem:[#allocation0 + $0x300] ss:$8 sm:$0xf] %vm3_vm0, %v1173_v13  }
  0x12   :  { %89 = vst.msk [vmem:[#allocation0 + $0x300] ss:$8 sm:$0xf0] %vm3_vm0, %v1173_v13   ;;  %108 = vst.msk [vmem:[#allocation0 + $0x3c0] ss:$8 sm:$0xf] %vm3_vm0, %v1176_v14   ;;  %193 = vrot.lane.b32.xlu1 %v1170_v8, %s1305_s12  ;;  %184 = vrot.lane.b32.xlu0 %v1169_v9, %s1305_s12 }
  0x13   :  { %110 = vst.msk [vmem:[#allocation0 + $0x3c0] ss:$8 sm:$0xf0] %vm3_vm0, %v1176_v14   ;;  %101 = vst.msk [vmem:[#allocation0 + $0x380] ss:$8 sm:$0xf] %vm3_vm0, %v1175_v15  }
  0x14   :  { %103 = vst.msk [vmem:[#allocation0 + $0x380] ss:$8 sm:$0xf0] %vm3_vm0, %v1175_v15  }
  0x16   :  { %211 = vrot.lane.b32.xlu1 %v1172_v10, %s1305_s12  ;;  %202 = vrot.lane.b32.xlu0 %v1171_v11, %s1305_s12 }
  0x1a   :  { %229 = vrot.lane.b32.xlu1 %v1174_v12, %s1305_s12  ;;  %220 = vrot.lane.b32.xlu0 %v1173_v13, %s1305_s12 }
  0x1e   :  { %247 = vrot.lane.b32.xlu1 %v1176_v14, %s1305_s12  ;;  %238 = vrot.lane.b32.xlu0 %v1175_v15, %s1305_s12 }
  0x74   :  { %v131_v16 = vpop.permute.xlu1 %130   ;;  %v113_v17 = vpop.permute.xlu0 %112  }
  0x75   :  { %134 = vst.msk [vmem:[#allocation0 + $0x81] ss:$8 sm:$0xf] %vm3_vm0, %v131_v16   ;;  %136 = vst.msk [vmem:[#allocation0 + $0x81] ss:$8 sm:$0xf0] %vm3_vm0, %v131_v16  }
  0x76   :  { %116 = vst.msk [vmem:[#allocation0 + $0x1] ss:$8 sm:$0xf] %vm3_vm0, %v113_v17   ;;  %118 = vst.msk [vmem:[#allocation0 + $0x1] ss:$8 sm:$0xf0] %vm3_vm0, %v113_v17  }
  0x78   :  { %v140_v18 = vpop.permute.xlu1 %139   ;;  %v122_v19 = vpop.permute.xlu0 %121  }
  0x79   :  { %143 = vst.msk [vmem:[#allocation0 + $0xc1] ss:$8 sm:$0xf] %vm3_vm0, %v140_v18   ;;  %145 = vst.msk [vmem:[#allocation0 + $0xc1] ss:$8 sm:$0xf0] %vm3_vm0, %v140_v18  }
  0x7a   :  { %125 = vst.msk [vmem:[#allocation0 + $0x41] ss:$8 sm:$0xf] %vm3_vm0, %v122_v19   ;;  %127 = vst.msk [vmem:[#allocation0 + $0x41] ss:$8 sm:$0xf0] %vm3_vm0, %v122_v19  }
  0x7c   :  { %v350_v20 = vld [vmem:[#allocation0 + $0x80] sm:$0x3]  ;;  %v356_v21 = vld [vmem:[#allocation0 + $0x88] sm:$0x3]  ;;  %v362_v22 = vld [vmem:[#allocation0 + $0x90] sm:$0x3]  ;;  %v158_v23 = vpop.permute.xlu1 %157   ;;  %v149_v24 = vpop.permute.xlu0 %148  }
  0x7d   :  { %1192 = vst [vmem:[%s1829_s1 + $0x20] sm:$0x3] %v350_v20  ;;  %1193 = vst [vmem:[%s1829_s1 + $0x22] sm:$0x3] %v356_v21  ;;  %v368_v25 = vld [vmem:[#allocation0 + $0x98] sm:$0x3] }
  0x7e   :  { %1194 = vst [vmem:[%s1829_s1 + $0x24] sm:$0x3] %v362_v22  ;;  %v374_v26 = vld [vmem:[#allocation0 + $0xa0] sm:$0x3]  ;;  %v380_v27 = vld [vmem:[#allocation0 + $0xa8] sm:$0x3] }
  0x7f   :  { %161 = vst.msk [vmem:[#allocation0 + $0x141] ss:$8 sm:$0xf] %vm3_vm0, %v158_v23   ;;  %163 = vst.msk [vmem:[#allocation0 + $0x141] ss:$8 sm:$0xf0] %vm3_vm0, %v158_v23  }
  0x80   :  { %152 = vst.msk [vmem:[#allocation0 + $0x101] ss:$8 sm:$0xf] %vm3_vm0, %v149_v24   ;;  %154 = vst.msk [vmem:[#allocation0 + $0x101] ss:$8 sm:$0xf0] %vm3_vm0, %v149_v24   ;;  %v176_v37 = vpop.permute.xlu1 %175   ;;  %v167_v38 = vpop.permute.xlu0 %166  }
  0x81   :  { %1195 = vst [vmem:[%s1829_s1 + $0x26] sm:$0x3] %v368_v25  ;;  %1196 = vst [vmem:[%s1829_s1 + $0x28] sm:$0x3] %v374_v26  ;;  %v386_v28 = vld [vmem:[#allocation0 + $0xb0] sm:$0x3] }
  0x82   :  { %1197 = vst [vmem:[%s1829_s1 + $0x2a] sm:$0x3] %v380_v27  ;;  %v392_v29 = vld [vmem:[#allocation0 + $0xb8] sm:$0x3]  ;;  %v257_v30 = vld [vmem:[#allocation0] sm:$0x3] }
  0x83   :  { %1198 = vst [vmem:[%s1829_s1 + $0x2c] sm:$0x3] %v386_v28  ;;  %1199 = vst [vmem:[%s1829_s1 + $0x2e] sm:$0x3] %v392_v29  ;;  %v261_v31 = vld [vmem:[#allocation0 + $0x8] sm:$0x3] }
  0x84   :  { %259 = vst [vmem:[%s1829_s1] sm:$0x3] %v257_v30  ;;  %v266_v32 = vld [vmem:[#allocation0 + $0x10] sm:$0x3]  ;;  %v272_v33 = vld [vmem:[#allocation0 + $0x18] sm:$0x3]  ;;  %v194_v51 = vpop.permute.xlu1 %193   ;;  %v185_v52 = vpop.permute.xlu0 %184  }
  0x85   :  { %1177 = vst [vmem:[%s1829_s1 + $0x2] sm:$0x3] %v261_v31  ;;  %1178 = vst [vmem:[%s1829_s1 + $0x4] sm:$0x3] %v266_v32  ;;  %v278_v34 = vld [vmem:[#allocation0 + $0x20] sm:$0x3] }
  0x86   :  { %1179 = vst [vmem:[%s1829_s1 + $0x6] sm:$0x3] %v272_v33  ;;  %v284_v35 = vld [vmem:[#allocation0 + $0x28] sm:$0x3]  ;;  %v290_v36 = vld [vmem:[#allocation0 + $0x30] sm:$0x3] }
  0x87   :  { %1180 = vst [vmem:[%s1829_s1 + $0x8] sm:$0x3] %v278_v34  ;;  %1181 = vst [vmem:[%s1829_s1 + $0xa] sm:$0x3] %v284_v35  ;;  %v296_v39 = vld [vmem:[#allocation0 + $0x38] sm:$0x3] }
  0x88   :  { %1182 = vst [vmem:[%s1829_s1 + $0xc] sm:$0x3] %v290_v36  ;;  %v398_v40 = vld [vmem:[#allocation0 + $0xc0] sm:$0x3]  ;;  %v404_v41 = vld [vmem:[#allocation0 + $0xc8] sm:$0x3]  ;;  %v212_v1 = vpop.permute.xlu1 %211   ;;  %v203_v2 = vpop.permute.xlu0 %202  }
  0x89   :  { %179 = vst.msk [vmem:[#allocation0 + $0x1c1] ss:$8 sm:$0xf] %vm3_vm0, %v176_v37   ;;  %181 = vst.msk [vmem:[#allocation0 + $0x1c1] ss:$8 sm:$0xf0] %vm3_vm0, %v176_v37  }
  0x8a   :  { %170 = vst.msk [vmem:[#allocation0 + $0x181] ss:$8 sm:$0xf] %vm3_vm0, %v167_v38   ;;  %172 = vst.msk [vmem:[#allocation0 + $0x181] ss:$8 sm:$0xf0] %vm3_vm0, %v167_v38  }
  0x8b   :  { %1183 = vst [vmem:[%s1829_s1 + $0xe] sm:$0x3] %v296_v39  ;;  %1200 = vst [vmem:[%s1829_s1 + $0x30] sm:$0x3] %v398_v40  ;;  %v410_v42 = vld [vmem:[#allocation0 + $0xd0] sm:$0x3] }
  0x8c   :  { %1201 = vst [vmem:[%s1829_s1 + $0x32] sm:$0x3] %v404_v41  ;;  %v416_v43 = vld [vmem:[#allocation0 + $0xd8] sm:$0x3]  ;;  %v422_v44 = vld [vmem:[#allocation0 + $0xe0] sm:$0x3]  ;;  %v230_v15 = vpop.permute.xlu1 %229   ;;  %v221_v16 = vpop.permute.xlu0 %220  }
  0x8d   :  { %1202 = vst [vmem:[%s1829_s1 + $0x34] sm:$0x3] %v410_v42  ;;  %1203 = vst [vmem:[%s1829_s1 + $0x36] sm:$0x3] %v416_v43  ;;  %v428_v45 = vld [vmem:[#allocation0 + $0xe8] sm:$0x3] }
  0x8e   :  { %1204 = vst [vmem:[%s1829_s1 + $0x38] sm:$0x3] %v422_v44  ;;  %v434_v46 = vld [vmem:[#allocation0 + $0xf0] sm:$0x3]  ;;  %v440_v47 = vld [vmem:[#allocation0 + $0xf8] sm:$0x3] }
  0x8f   :  { %1205 = vst [vmem:[%s1829_s1 + $0x3a] sm:$0x3] %v428_v45  ;;  %1206 = vst [vmem:[%s1829_s1 + $0x3c] sm:$0x3] %v434_v46  ;;  %v302_v48 = vld [vmem:[#allocation0 + $0x40] sm:$0x3] }
  0x90   :  { %1207 = vst [vmem:[%s1829_s1 + $0x3e] sm:$0x3] %v440_v47  ;;  %v308_v49 = vld [vmem:[#allocation0 + $0x48] sm:$0x3]  ;;  %v314_v50 = vld [vmem:[#allocation0 + $0x50] sm:$0x3]  ;;  %v248_v29 = vpop.permute.xlu1 %247   ;;  %v239_v30 = vpop.permute.xlu0 %238  }
  0x91   :  { %1184 = vst [vmem:[%s1829_s1 + $0x10] sm:$0x3] %v302_v48  ;;  %1185 = vst [vmem:[%s1829_s1 + $0x12] sm:$0x3] %v308_v49  ;;  %v320_v53 = vld [vmem:[#allocation0 + $0x58] sm:$0x3] }
  0x92   :  { %1186 = vst [vmem:[%s1829_s1 + $0x14] sm:$0x3] %v314_v50  ;;  %v326_v54 = vld [vmem:[#allocation0 + $0x60] sm:$0x3]  ;;  %v332_v55 = vld [vmem:[#allocation0 + $0x68] sm:$0x3] }
  0x93   :  { %197 = vst.msk [vmem:[#allocation0 + $0x241] ss:$8 sm:$0xf] %vm3_vm0, %v194_v51   ;;  %199 = vst.msk [vmem:[#allocation0 + $0x241] ss:$8 sm:$0xf0] %vm3_vm0, %v194_v51  }
  0x94   :  { %188 = vst.msk [vmem:[#allocation0 + $0x201] ss:$8 sm:$0xf] %vm3_vm0, %v185_v52   ;;  %190 = vst.msk [vmem:[#allocation0 + $0x201] ss:$8 sm:$0xf0] %vm3_vm0, %v185_v52  }
  0x95   :  { %1187 = vst [vmem:[%s1829_s1 + $0x16] sm:$0x3] %v320_v53  ;;  %1188 = vst [vmem:[%s1829_s1 + $0x18] sm:$0x3] %v326_v54  ;;  %v338_v56 = vld [vmem:[#allocation0 + $0x70] sm:$0x3] }
  0x96   :  { %1189 = vst [vmem:[%s1829_s1 + $0x1a] sm:$0x3] %v332_v55  ;;  %v344_v57 = vld [vmem:[#allocation0 + $0x78] sm:$0x3]  ;;  %v494_v58 = vld [vmem:[#allocation0 + $0x140] sm:$0x3] }
  0x97   :  { %1190 = vst [vmem:[%s1829_s1 + $0x1c] sm:$0x3] %v338_v56  ;;  %1191 = vst [vmem:[%s1829_s1 + $0x1e] sm:$0x3] %v344_v57  ;;  %v500_v59 = vld [vmem:[#allocation0 + $0x148] sm:$0x3] }
  0x98   :  { %1216 = vst [vmem:[%s1829_s1 + $0x50] sm:$0x3] %v494_v58  ;;  %v506_v60 = vld [vmem:[#allocation0 + $0x150] sm:$0x3]  ;;  %v512_v61 = vld [vmem:[#allocation0 + $0x158] sm:$0x3] }
  0x99   :  { %1217 = vst [vmem:[%s1829_s1 + $0x52] sm:$0x3] %v500_v59  ;;  %1218 = vst [vmem:[%s1829_s1 + $0x54] sm:$0x3] %v506_v60  ;;  %v518_v62 = vld [vmem:[#allocation0 + $0x160] sm:$0x3] }
  0x9a   :  { %1219 = vst [vmem:[%s1829_s1 + $0x56] sm:$0x3] %v512_v61  ;;  %v524_v63 = vld [vmem:[#allocation0 + $0x168] sm:$0x3]  ;;  %v530_v0 = vld [vmem:[#allocation0 + $0x170] sm:$0x3] }
  0x9b   :  { %1220 = vst [vmem:[%s1829_s1 + $0x58] sm:$0x3] %v518_v62  ;;  %1221 = vst [vmem:[%s1829_s1 + $0x5a] sm:$0x3] %v524_v63  ;;  %v536_v3 = vld [vmem:[#allocation0 + $0x178] sm:$0x3] }
  0x9c   :  { %1222 = vst [vmem:[%s1829_s1 + $0x5c] sm:$0x3] %v530_v0  ;;  %v446_v4 = vld [vmem:[#allocation0 + $0x100] sm:$0x3]  ;;  %v452_v5 = vld [vmem:[#allocation0 + $0x108] sm:$0x3] }
  0x9d   :  { %215 = vst.msk [vmem:[#allocation0 + $0x2c1] ss:$8 sm:$0xf] %vm3_vm0, %v212_v1   ;;  %217 = vst.msk [vmem:[#allocation0 + $0x2c1] ss:$8 sm:$0xf0] %vm3_vm0, %v212_v1  }
  0x9e   :  { %206 = vst.msk [vmem:[#allocation0 + $0x281] ss:$8 sm:$0xf] %vm3_vm0, %v203_v2   ;;  %208 = vst.msk [vmem:[#allocation0 + $0x281] ss:$8 sm:$0xf0] %vm3_vm0, %v203_v2  }
  0x9f   :  { %1223 = vst [vmem:[%s1829_s1 + $0x5e] sm:$0x3] %v536_v3  ;;  %1208 = vst [vmem:[%s1829_s1 + $0x40] sm:$0x3] %v446_v4  ;;  %v458_v6 = vld [vmem:[#allocation0 + $0x110] sm:$0x3] }
  0xa0   :  { %1209 = vst [vmem:[%s1829_s1 + $0x42] sm:$0x3] %v452_v5  ;;  %v464_v7 = vld [vmem:[#allocation0 + $0x118] sm:$0x3]  ;;  %v470_v8 = vld [vmem:[#allocation0 + $0x120] sm:$0x3] }
  0xa1   :  { %1210 = vst [vmem:[%s1829_s1 + $0x44] sm:$0x3] %v458_v6  ;;  %1211 = vst [vmem:[%s1829_s1 + $0x46] sm:$0x3] %v464_v7  ;;  %v476_v9 = vld [vmem:[#allocation0 + $0x128] sm:$0x3] }
  0xa2   :  { %1212 = vst [vmem:[%s1829_s1 + $0x48] sm:$0x3] %v470_v8  ;;  %v482_v10 = vld [vmem:[#allocation0 + $0x130] sm:$0x3]  ;;  %v488_v11 = vld [vmem:[#allocation0 + $0x138] sm:$0x3] }
  0xa3   :  { %1213 = vst [vmem:[%s1829_s1 + $0x4a] sm:$0x3] %v476_v9  ;;  %1214 = vst [vmem:[%s1829_s1 + $0x4c] sm:$0x3] %v482_v10  ;;  %v590_v12 = vld [vmem:[#allocation0 + $0x1c0] sm:$0x3] }
  0xa4   :  { %1215 = vst [vmem:[%s1829_s1 + $0x4e] sm:$0x3] %v488_v11  ;;  %v596_v13 = vld [vmem:[#allocation0 + $0x1c8] sm:$0x3]  ;;  %v602_v14 = vld [vmem:[#allocation0 + $0x1d0] sm:$0x3] }
  0xa5   :  { %1232 = vst [vmem:[%s1829_s1 + $0x70] sm:$0x3] %v590_v12  ;;  %1233 = vst [vmem:[%s1829_s1 + $0x72] sm:$0x3] %v596_v13  ;;  %v608_v17 = vld [vmem:[#allocation0 + $0x1d8] sm:$0x3] }
  0xa6   :  { %1234 = vst [vmem:[%s1829_s1 + $0x74] sm:$0x3] %v602_v14  ;;  %v614_v18 = vld [vmem:[#allocation0 + $0x1e0] sm:$0x3]  ;;  %v620_v19 = vld [vmem:[#allocation0 + $0x1e8] sm:$0x3] }
  0xa7   :  { %233 = vst.msk [vmem:[#allocation0 + $0x341] ss:$8 sm:$0xf] %vm3_vm0, %v230_v15   ;;  %235 = vst.msk [vmem:[#allocation0 + $0x341] ss:$8 sm:$0xf0] %vm3_vm0, %v230_v15  }
  0xa8   :  { %224 = vst.msk [vmem:[#allocation0 + $0x301] ss:$8 sm:$0xf] %vm3_vm0, %v221_v16   ;;  %226 = vst.msk [vmem:[#allocation0 + $0x301] ss:$8 sm:$0xf0] %vm3_vm0, %v221_v16  }
  0xa9   :  { %1235 = vst [vmem:[%s1829_s1 + $0x76] sm:$0x3] %v608_v17  ;;  %1236 = vst [vmem:[%s1829_s1 + $0x78] sm:$0x3] %v614_v18  ;;  %v626_v20 = vld [vmem:[#allocation0 + $0x1f0] sm:$0x3] }
  0xaa   :  { %1237 = vst [vmem:[%s1829_s1 + $0x7a] sm:$0x3] %v620_v19  ;;  %v632_v21 = vld [vmem:[#allocation0 + $0x1f8] sm:$0x3]  ;;  %v542_v22 = vld [vmem:[#allocation0 + $0x180] sm:$0x3] }
  0xab   :  { %1238 = vst [vmem:[%s1829_s1 + $0x7c] sm:$0x3] %v626_v20  ;;  %1239 = vst [vmem:[%s1829_s1 + $0x7e] sm:$0x3] %v632_v21  ;;  %v548_v23 = vld [vmem:[#allocation0 + $0x188] sm:$0x3] }
  0xac   :  { %1224 = vst [vmem:[%s1829_s1 + $0x60] sm:$0x3] %v542_v22  ;;  %v554_v24 = vld [vmem:[#allocation0 + $0x190] sm:$0x3]  ;;  %v560_v25 = vld [vmem:[#allocation0 + $0x198] sm:$0x3] }
  0xad   :  { %1225 = vst [vmem:[%s1829_s1 + $0x62] sm:$0x3] %v548_v23  ;;  %1226 = vst [vmem:[%s1829_s1 + $0x64] sm:$0x3] %v554_v24  ;;  %v566_v26 = vld [vmem:[#allocation0 + $0x1a0] sm:$0x3] }
  0xae   :  { %1227 = vst [vmem:[%s1829_s1 + $0x66] sm:$0x3] %v560_v25  ;;  %v572_v27 = vld [vmem:[#allocation0 + $0x1a8] sm:$0x3]  ;;  %v578_v28 = vld [vmem:[#allocation0 + $0x1b0] sm:$0x3] }
  0xaf   :  { %1228 = vst [vmem:[%s1829_s1 + $0x68] sm:$0x3] %v566_v26  ;;  %1229 = vst [vmem:[%s1829_s1 + $0x6a] sm:$0x3] %v572_v27  ;;  %v584_v31 = vld [vmem:[#allocation0 + $0x1b8] sm:$0x3] }
  0xb0   :  { %1230 = vst [vmem:[%s1829_s1 + $0x6c] sm:$0x3] %v578_v28  ;;  %v686_v32 = vld [vmem:[#allocation0 + $0x240] sm:$0x3]  ;;  %v692_v33 = vld [vmem:[#allocation0 + $0x248] sm:$0x3] }
  0xb1   :  { %251 = vst.msk [vmem:[#allocation0 + $0x3c1] ss:$8 sm:$0xf] %vm3_vm0, %v248_v29   ;;  %253 = vst.msk [vmem:[#allocation0 + $0x3c1] ss:$8 sm:$0xf0] %vm3_vm0, %v248_v29  }
  0xb2   :  { %242 = vst.msk [vmem:[#allocation0 + $0x381] ss:$8 sm:$0xf] %vm3_vm0, %v239_v30   ;;  %244 = vst.msk [vmem:[#allocation0 + $0x381] ss:$8 sm:$0xf0] %vm3_vm0, %v239_v30  }
  0xb3   :  { %1231 = vst [vmem:[%s1829_s1 + $0x6e] sm:$0x3] %v584_v31  ;;  %1248 = vst [vmem:[%s1829_s1 + $0x90] sm:$0x3] %v686_v32  ;;  %v698_v34 = vld [vmem:[#allocation0 + $0x250] sm:$0x3] }
  0xb4   :  { %1249 = vst [vmem:[%s1829_s1 + $0x92] sm:$0x3] %v692_v33  ;;  %v704_v35 = vld [vmem:[#allocation0 + $0x258] sm:$0x3]  ;;  %v710_v36 = vld [vmem:[#allocation0 + $0x260] sm:$0x3] }
  0xb5   :  { %1250 = vst [vmem:[%s1829_s1 + $0x94] sm:$0x3] %v698_v34  ;;  %1251 = vst [vmem:[%s1829_s1 + $0x96] sm:$0x3] %v704_v35  ;;  %v716_v37 = vld [vmem:[#allocation0 + $0x268] sm:$0x3] }
  0xb6   :  { %1252 = vst [vmem:[%s1829_s1 + $0x98] sm:$0x3] %v710_v36  ;;  %v722_v38 = vld [vmem:[#allocation0 + $0x270] sm:$0x3]  ;;  %v728_v39 = vld [vmem:[#allocation0 + $0x278] sm:$0x3] }
  0xb7   :  { %1253 = vst [vmem:[%s1829_s1 + $0x9a] sm:$0x3] %v716_v37  ;;  %1254 = vst [vmem:[%s1829_s1 + $0x9c] sm:$0x3] %v722_v38  ;;  %v638_v40 = vld [vmem:[#allocation0 + $0x200] sm:$0x3] }
  0xb8   :  { %1255 = vst [vmem:[%s1829_s1 + $0x9e] sm:$0x3] %v728_v39  ;;  %v644_v41 = vld [vmem:[#allocation0 + $0x208] sm:$0x3]  ;;  %v650_v42 = vld [vmem:[#allocation0 + $0x210] sm:$0x3] }
  0xb9   :  { %1240 = vst [vmem:[%s1829_s1 + $0x80] sm:$0x3] %v638_v40  ;;  %1241 = vst [vmem:[%s1829_s1 + $0x82] sm:$0x3] %v644_v41  ;;  %v656_v43 = vld [vmem:[#allocation0 + $0x218] sm:$0x3] }
  0xba   :  { %1242 = vst [vmem:[%s1829_s1 + $0x84] sm:$0x3] %v650_v42  ;;  %v662_v44 = vld [vmem:[#allocation0 + $0x220] sm:$0x3]  ;;  %v668_v45 = vld [vmem:[#allocation0 + $0x228] sm:$0x3] }
  0xbb   :  { %1243 = vst [vmem:[%s1829_s1 + $0x86] sm:$0x3] %v656_v43  ;;  %1244 = vst [vmem:[%s1829_s1 + $0x88] sm:$0x3] %v662_v44  ;;  %v674_v46 = vld [vmem:[#allocation0 + $0x230] sm:$0x3] }
  0xbc   :  { %1245 = vst [vmem:[%s1829_s1 + $0x8a] sm:$0x3] %v668_v45  ;;  %v680_v47 = vld [vmem:[#allocation0 + $0x238] sm:$0x3]  ;;  %v782_v48 = vld [vmem:[#allocation0 + $0x2c0] sm:$0x3] }
  0xbd   :  { %1246 = vst [vmem:[%s1829_s1 + $0x8c] sm:$0x3] %v674_v46  ;;  %1247 = vst [vmem:[%s1829_s1 + $0x8e] sm:$0x3] %v680_v47  ;;  %v788_v49 = vld [vmem:[#allocation0 + $0x2c8] sm:$0x3] }
  0xbe   :  { %1264 = vst [vmem:[%s1829_s1 + $0xb0] sm:$0x3] %v782_v48  ;;  %v794_v50 = vld [vmem:[#allocation0 + $0x2d0] sm:$0x3]  ;;  %v800_v51 = vld [vmem:[#allocation0 + $0x2d8] sm:$0x3] }
  0xbf   :  { %1265 = vst [vmem:[%s1829_s1 + $0xb2] sm:$0x3] %v788_v49  ;;  %1266 = vst [vmem:[%s1829_s1 + $0xb4] sm:$0x3] %v794_v50  ;;  %v806_v52 = vld [vmem:[#allocation0 + $0x2e0] sm:$0x3] }
  0xc0   :  { %1267 = vst [vmem:[%s1829_s1 + $0xb6] sm:$0x3] %v800_v51  ;;  %v812_v53 = vld [vmem:[#allocation0 + $0x2e8] sm:$0x3]  ;;  %v818_v54 = vld [vmem:[#allocation0 + $0x2f0] sm:$0x3] }
  0xc1   :  { %1268 = vst [vmem:[%s1829_s1 + $0xb8] sm:$0x3] %v806_v52  ;;  %1269 = vst [vmem:[%s1829_s1 + $0xba] sm:$0x3] %v812_v53  ;;  %v824_v55 = vld [vmem:[#allocation0 + $0x2f8] sm:$0x3] }
  0xc2   :  { %1270 = vst [vmem:[%s1829_s1 + $0xbc] sm:$0x3] %v818_v54  ;;  %v734_v56 = vld [vmem:[#allocation0 + $0x280] sm:$0x3]  ;;  %v740_v57 = vld [vmem:[#allocation0 + $0x288] sm:$0x3] }
  0xc3   :  { %1271 = vst [vmem:[%s1829_s1 + $0xbe] sm:$0x3] %v824_v55  ;;  %1256 = vst [vmem:[%s1829_s1 + $0xa0] sm:$0x3] %v734_v56  ;;  %v746_v58 = vld [vmem:[#allocation0 + $0x290] sm:$0x3] }
  0xc4   :  { %1257 = vst [vmem:[%s1829_s1 + $0xa2] sm:$0x3] %v740_v57  ;;  %v752_v59 = vld [vmem:[#allocation0 + $0x298] sm:$0x3]  ;;  %v758_v60 = vld [vmem:[#allocation0 + $0x2a0] sm:$0x3] }
  0xc5   :  { %1258 = vst [vmem:[%s1829_s1 + $0xa4] sm:$0x3] %v746_v58  ;;  %1259 = vst [vmem:[%s1829_s1 + $0xa6] sm:$0x3] %v752_v59  ;;  %v764_v61 = vld [vmem:[#allocation0 + $0x2a8] sm:$0x3] }
  0xc6   :  { %1260 = vst [vmem:[%s1829_s1 + $0xa8] sm:$0x3] %v758_v60  ;;  %v770_v62 = vld [vmem:[#allocation0 + $0x2b0] sm:$0x3]  ;;  %v776_v63 = vld [vmem:[#allocation0 + $0x2b8] sm:$0x3] }
  0xc7   :  { %1261 = vst [vmem:[%s1829_s1 + $0xaa] sm:$0x3] %v764_v61  ;;  %1262 = vst [vmem:[%s1829_s1 + $0xac] sm:$0x3] %v770_v62  ;;  %v878_v0 = vld [vmem:[#allocation0 + $0x340] sm:$0x3] }
  0xc8   :  { %1263 = vst [vmem:[%s1829_s1 + $0xae] sm:$0x3] %v776_v63  ;;  %v884_v1 = vld [vmem:[#allocation0 + $0x348] sm:$0x3]  ;;  %v890_v2 = vld [vmem:[#allocation0 + $0x350] sm:$0x3] }
  0xc9   :  { %1280 = vst [vmem:[%s1829_s1 + $0xd0] sm:$0x3] %v878_v0  ;;  %1281 = vst [vmem:[%s1829_s1 + $0xd2] sm:$0x3] %v884_v1  ;;  %v896_v3 = vld [vmem:[#allocation0 + $0x358] sm:$0x3] }
  0xca   :  { %1282 = vst [vmem:[%s1829_s1 + $0xd4] sm:$0x3] %v890_v2  ;;  %v902_v4 = vld [vmem:[#allocation0 + $0x360] sm:$0x3]  ;;  %v908_v5 = vld [vmem:[#allocation0 + $0x368] sm:$0x3] }
  0xcb   :  { %1283 = vst [vmem:[%s1829_s1 + $0xd6] sm:$0x3] %v896_v3  ;;  %1284 = vst [vmem:[%s1829_s1 + $0xd8] sm:$0x3] %v902_v4  ;;  %v914_v6 = vld [vmem:[#allocation0 + $0x370] sm:$0x3] }
  0xcc   :  { %1285 = vst [vmem:[%s1829_s1 + $0xda] sm:$0x3] %v908_v5  ;;  %v920_v7 = vld [vmem:[#allocation0 + $0x378] sm:$0x3]  ;;  %v830_v8 = vld [vmem:[#allocation0 + $0x300] sm:$0x3] }
  0xcd   :  { %1286 = vst [vmem:[%s1829_s1 + $0xdc] sm:$0x3] %v914_v6  ;;  %1287 = vst [vmem:[%s1829_s1 + $0xde] sm:$0x3] %v920_v7  ;;  %v836_v9 = vld [vmem:[#allocation0 + $0x308] sm:$0x3] }
  0xce   :  { %1272 = vst [vmem:[%s1829_s1 + $0xc0] sm:$0x3] %v830_v8  ;;  %v842_v10 = vld [vmem:[#allocation0 + $0x310] sm:$0x3]  ;;  %v848_v11 = vld [vmem:[#allocation0 + $0x318] sm:$0x3] }
  0xcf   :  { %1273 = vst [vmem:[%s1829_s1 + $0xc2] sm:$0x3] %v836_v9  ;;  %1274 = vst [vmem:[%s1829_s1 + $0xc4] sm:$0x3] %v842_v10  ;;  %v854_v12 = vld [vmem:[#allocation0 + $0x320] sm:$0x3] }
  0xd0   :  { %1275 = vst [vmem:[%s1829_s1 + $0xc6] sm:$0x3] %v848_v11  ;;  %v860_v13 = vld [vmem:[#allocation0 + $0x328] sm:$0x3]  ;;  %v866_v14 = vld [vmem:[#allocation0 + $0x330] sm:$0x3] }
  0xd1   :  { %1276 = vst [vmem:[%s1829_s1 + $0xc8] sm:$0x3] %v854_v12  ;;  %1277 = vst [vmem:[%s1829_s1 + $0xca] sm:$0x3] %v860_v13  ;;  %v872_v15 = vld [vmem:[#allocation0 + $0x338] sm:$0x3] }
  0xd2   :  { %1278 = vst [vmem:[%s1829_s1 + $0xcc] sm:$0x3] %v866_v14  ;;  %v974_v16 = vld [vmem:[#allocation0 + $0x3c0] sm:$0x3]  ;;  %v980_v17 = vld [vmem:[#allocation0 + $0x3c8] sm:$0x3] }
  0xd3   :  { %1279 = vst [vmem:[%s1829_s1 + $0xce] sm:$0x3] %v872_v15  ;;  %1296 = vst [vmem:[%s1829_s1 + $0xf0] sm:$0x3] %v974_v16  ;;  %v986_v18 = vld [vmem:[#allocation0 + $0x3d0] sm:$0x3] }
  0xd4   :  { %1297 = vst [vmem:[%s1829_s1 + $0xf2] sm:$0x3] %v980_v17  ;;  %v992_v19 = vld [vmem:[#allocation0 + $0x3d8] sm:$0x3]  ;;  %v998_v20 = vld [vmem:[#allocation0 + $0x3e0] sm:$0x3] }
  0xd5   :  { %1298 = vst [vmem:[%s1829_s1 + $0xf4] sm:$0x3] %v986_v18  ;;  %1299 = vst [vmem:[%s1829_s1 + $0xf6] sm:$0x3] %v992_v19  ;;  %v1004_v21 = vld [vmem:[#allocation0 + $0x3e8] sm:$0x3] }
  0xd6   :  { %1300 = vst [vmem:[%s1829_s1 + $0xf8] sm:$0x3] %v998_v20  ;;  %v1010_v22 = vld [vmem:[#allocation0 + $0x3f0] sm:$0x3]  ;;  %v1016_v23 = vld [vmem:[#allocation0 + $0x3f8] sm:$0x3] }
  0xd7   :  { %1301 = vst [vmem:[%s1829_s1 + $0xfa] sm:$0x3] %v1004_v21  ;;  %1302 = vst [vmem:[%s1829_s1 + $0xfc] sm:$0x3] %v1010_v22  ;;  %v926_v24 = vld [vmem:[#allocation0 + $0x380] sm:$0x3] }
  0xd8   :  { %1303 = vst [vmem:[%s1829_s1 + $0xfe] sm:$0x3] %v1016_v23  ;;  %v932_v25 = vld [vmem:[#allocation0 + $0x388] sm:$0x3]  ;;  %v938_v26 = vld [vmem:[#allocation0 + $0x390] sm:$0x3] }
  0xd9   :  { %1288 = vst [vmem:[%s1829_s1 + $0xe0] sm:$0x3] %v926_v24  ;;  %1289 = vst [vmem:[%s1829_s1 + $0xe2] sm:$0x3] %v932_v25  ;;  %v944_v27 = vld [vmem:[#allocation0 + $0x398] sm:$0x3] }
  0xda   :  { %1290 = vst [vmem:[%s1829_s1 + $0xe4] sm:$0x3] %v938_v26  ;;  %v950_v28 = vld [vmem:[#allocation0 + $0x3a0] sm:$0x3]  ;;  %v956_v29 = vld [vmem:[#allocation0 + $0x3a8] sm:$0x3] }
  0xdb   :  { %1291 = vst [vmem:[%s1829_s1 + $0xe6] sm:$0x3] %v944_v27  ;;  %1292 = vst [vmem:[%s1829_s1 + $0xe8] sm:$0x3] %v950_v28  ;;  %v962_v30 = vld [vmem:[#allocation0 + $0x3b0] sm:$0x3] }
  0xdc   :  { %1293 = vst [vmem:[%s1829_s1 + $0xea] sm:$0x3] %v956_v29  ;;  %v968_v31 = vld [vmem:[#allocation0 + $0x3b8] sm:$0x3]  ;;  %1294 = vst [vmem:[%s1829_s1 + $0xec] sm:$0x3] %v962_v30 }
  0xdd   :  { %1295 = vst [vmem:[%s1829_s1 + $0xee] sm:$0x3] %v968_v31 }

// kernel: ttm_forward.4
= control target key start
LH: loop header
LB: loop body
LE: loop exit
PB: predicated region body
PF: predicated region fallthrough
CT: control target
= control target key end

     0   :  { %vm31_vm0 = vcmask 523264   ;;  %s230_s1 = inlined_call_operand.vmem [shape: f32[64,128], index: 1, kind: input, shape index: {}]   ;;  %s231_s0 = inlined_call_operand.vmem [shape: f32[16,64], index: 0, kind: input, shape index: {}]   ;;  %s232_s2 = inlined_call_operand.vmem [shape: f32[1,128], index: 2, kind: input, shape index: {}]   ;;  %s233_s3 = inlined_call_operand.vmem [shape: f32[16,128], index: 3, kind: output, shape index: {}]  }
   0x1   :  { %v16_v0 = vld [vmem:[%s230_s1] sm:$0xff]  ;;  %v17_v1 = vld [vmem:[%s230_s1 + $0x8] sm:$0xff]  ;;  %v18_v2 = vld [vmem:[%s230_s1 + $0x10] sm:$0xff] }
   0x2   :  { %v153_v3 = vpack.c.bf16 %v17_v1, %v16_v0  ;;  %v19_v4 = vld [vmem:[%s230_s1 + $0x18] sm:$0xff]  ;;  %v20_v6 = vld [vmem:[%s230_s1 + $0x20] sm:$0xff]  ;;  %v21_v7 = vld [vmem:[%s230_s1 + $0x28] sm:$0xff] }
   0x3   :  { %v157_v5 = vpack.c.bf16 %v19_v4, %v18_v2  ;;  %v14_v8 = vld [vmem:[%s231_s0] sm:$0xff]  ;;  %v161_v9 = vpack.c.bf16 %v21_v7, %v20_v6  ;;  %v22_v10 = vld [vmem:[%s230_s1 + $0x30] sm:$0xff]  ;;  %v23_v11 = vld [vmem:[%s230_s1 + $0x38] sm:$0xff] }
   0x4   :  { %154 = vmatprep.subr.bf16.mxu0 %v153_v3  ;;  %150 = vmatprep.mubr.msk.f32.mxu0 %vm31_vm0, %v14_v8  ;;  %v165_v12 = vpack.c.bf16 %v23_v11, %v22_v10  ;;  %v15_v13 = vld [vmem:[%s231_s0 + $0x8] sm:$0xff]  ;;  %v121_v14 = vld [vmem:[%s232_s2] ss:$0 sm:$0xff] }
   0x5   :  { %156 = vmatpush3.bf16.msra.mxu0 %v153_v3 }
   0x6   :  { %158 = vmatprep.subr.bf16.mxu0 %v157_v5 }
   0x9   :  { %160 = vmatpush3.bf16.msra.mxu0 %v157_v5 }
   0xa   :  { %162 = vmatprep.subr.bf16.mxu0 %v161_v9 }
   0xd   :  { %164 = vmatpush3.bf16.msra.mxu0 %v161_v9 }
   0xe   :  { %166 = vmatprep.subr.bf16.mxu0 %v165_v12 }
  0x11   :  { %168 = vmatpush3.bf16.msra.mxu0 %v165_v12 }
  0x14   :  { %151 = vmatmul.mubr.msk.f32.vlgmr.msra.gmra.mrb[0].mxu0 %vm31_vm0, %v15_v13 }
  0xe7   :  { %v152_v15 = vpop.f32.mrb[0].mxu0 }
  0xe8   :  { %v110_v16 = vadd.f32 %v152_v15, %v121_v14  ;;  %v104_v17 = vpop.f32.mrb[1].mxu0 }
  0xe9   :  { %v105_v18 = vadd.f32 %v121_v14, %v104_v17 }
  0xea   :  { %v114_v19 = vmax.f32 %v110_v16, 0.0 }
  0xeb   :  { %v113_v20 = vmax.f32 %v105_v18, 0.0 }
  0xec   :  { %116 = vst [vmem:[%s233_s3 + $0x8] sm:$0xff] %v114_v19 }
  0xed   :  { %115 = vst [vmem:[%s233_s3] sm:$0xff] %v113_v20 }

// kernel: ttm_forward.7
= control target key start
LH: loop header
LB: loop body
LE: loop exit
PB: predicated region body
PF: predicated region fallthrough
CT: control target
= control target key end

     0   :  { %s1285_s0 = inlined_call_operand.vmem [shape: f32[2,16,128], index: 0, kind: input, shape index: {}]   ;;  %s1286_s1 = inlined_call_operand.vmem [shape: f32[2,16,128], index: 1, kind: input, shape index: {}]   ;;  %s1287_s2 = inlined_call_operand.vmem [shape: f32[2,16,128], index: 2, kind: input, shape index: {}]   ;;  %s1288_s3 = inlined_call_operand.vmem [shape: f32[1,16], index: 3, kind: input, shape index: {}]   ;;  %s1289_s4 = inlined_call_operand.<no memory space> [shape: f32[1,1], index: 4, kind: input, shape index: {}]   ;;  %s1290_s5 = inlined_call_operand.vmem [shape: f32[128,11], index: 5, kind: input, shape index: {}]   ;;  %s1291_s6 = inlined_call_operand.vmem [shape: f32[1,11], index: 6, kind: input, shape index: {}]   ;;  %s1292_s7 = inlined_call_operand.vmem [shape: f32[2,128], index: 7, kind: input, shape index: {}]   ;;  %s1293_s8 = inlined_call_operand.hbm [shape: f32[2,1,11], index: 8, kind: output, shape index: {0}]   ;;  %s1294_s9 = inlined_call_operand.hbm [shape: f32[2,16,128], index: 9, kind: output, shape index: {1}]  }
   0x1   :  { %1295 = sst [smem:[#allocation9_spill]] %s1285_s0  ;;  %v15_v0 = vstv %s1289_s4 }
   0x2   :  { %16 = vst [vmem:[#allocation2] sm:$0x1] %v15_v0 }
   0x3   :  { %17 = vsyncpa [#allocation4], 0 }
   0x4   :  { %19 = vsyncpa [#allocation4 + $0x1], 0 }
   0x5   :  { %20 = vsyncpa [#allocation6], 0 }
   0x6   :  { %22 = vsyncpa [#allocation6 + $0x1], 0  ;;  %s1077_s11 = smov 0   ;;  %s1079_s12 = smov 0  }
   0x7   :  { %s1081_s13 = smov 0   ;;  %s1083_s14 = smov 0  }
   0x8 LB: > { %s1098_s4 = sadd.s32 4294967295, %s1014_s14   ;;  %s752_s15 = sadd.s32 4294967294, %s1014_s14   ;;  %s1014_s14 = sphi %s1083_s14, %s1302_s14   ;;  %s1010_s13 = sphi %s1081_s13, %s1301_s13   ;;  %s1006_s12 = sphi %s1079_s12, %s1300_s12   ;;  %s1002_s11 = sphi %s1077_s11, %s1299_s11  }
   0x9   : > { %s1102_s16 = sadd.s32 1, %s1014_s14   ;;  %s218_s17 = sadd.s32 1, %s1010_s13 }
   0xa   : > { %s215_s18 = ssub.s32 %s1014_s14, %s1102_s16  ;;  %p228_p0 = scmp.ne.s32.totalorder %s1010_s13, %s1006_s12 }
   0xb   : > { %p216_p1 = scmp.eq.s32.totalorder %s215_s18, 0  ;;  %p229_p2 = scmp.eq.s32.totalorder %s1098_s4, 1 }
   0xc   : > { %p234_p3 = scmp.ne.s32.totalorder %s1006_s12, %s1002_s11  ;;  %p235_p4 = scmp.eq.s32.totalorder %s752_s15, 1 }
   0xd   : > { %s1113_s19 = scalar_select %p216_p1, %s1010_s13, %s218_s17  }
   0xe   : > { %p1115_p5 = por %p229_p2, %p228_p0  ;;  %p1119_p6 = por %p235_p4, %p234_p3 }
   0xf   : > { %p755_p7 = scmp.ge.s32.totalorder %s1014_s14, 1  ;;  %p318_p8 = scmp.lt.s32.totalorder %s1014_s14, 3 }
  0x11   : > { %p319_p9 = pnand %p755_p7, %p318_p8 }
  0x12   : > { %v386_v1 = vld [vmem:[#allocation2] sm:$0x1] (!%p319_p9)  ;;  %p368_p10 = scmp.lt.s32.totalorder (!%p319_p9), %s1098_s4, 1  ;;  %v1016_v2 = vmov (!%p319_p9), 0   ;;  %v1017_v3 = vmov (!%p319_p9), 0.0|0.0   ;;  %vm1018_vm0 = vmmov (!%p319_p9), 0   ;;  %v392_v44 = vlaneseq (!%p319_p9) }
  0x13   : > { %322 = sbr.rel (%p319_p9) target bundleno = 480 (0x1e0), region = 52  ;;  %915 = vset.pattern.permute.xlu0 (!%p319_p9), %v1016_v2  ;;  %838 = vmatprep.subr.bf16.mxu0 (!%p319_p9), %v1017_v3  ;;  %v1019_v4 = vmov (!%p319_p9), 0.0   ;;  %s1298_s0 = sld [smem:[#allocation9_spill]] (!%p319_p9)  ;;  %v383_v9 = vld [vmem:[%s1288_s3] sm:$0x1] (!%p319_p9)  ;;  %vm396_vm1 = vcmask (!%p319_p9), 130048  }
  0x14   : > { %389 = vperm.xlu0 (!%p319_p9), %915, %v386_v1   ;;  %800 = vmatprep.mubr.msk.f32.mxu0 (!%p319_p9), %vm1018_vm0, %v1019_v4  ;;  %v471_v11 = vld [vmem:[%s1290_s5] sm:$0xff] (!%p319_p9)  ;;  %v472_v12 = vld [vmem:[%s1290_s5 + $0x8] sm:$0xff] (!%p319_p9)  ;;  %v473_v13 = vld [vmem:[%s1290_s5 + $0x10] sm:$0xff] (!%p319_p9)  ;;  %v393_v45 = vshrl.u32 (!%p319_p9), %v392_v44, 7  ;;  %s1196_s17 = sand.u32 (!%p319_p9), 1, %s1006_s12   ;;  %s1020_s15 = smov (!%p319_p9), [#allocation5]  }
  0x15   : > { %841 = vmatprep.subr.bf16.mxu1 (!%p319_p9), %v1017_v3  ;;  %835 = vmatprep.mubr.msk.f32.mxu1 (!%p319_p9), %vm1018_vm0, %v1019_v4  ;;  %v842_v14 = vpack.c.bf16 (!%p319_p9), %v472_v12, %v471_v11  ;;  %v474_v15 = vld [vmem:[%s1290_s5 + $0x18] sm:$0xff] (!%p319_p9)  ;;  %v475_v17 = vld [vmem:[%s1290_s5 + $0x20] sm:$0xff] (!%p319_p9)  ;;  %v476_v18 = vld [vmem:[%s1290_s5 + $0x28] sm:$0xff] (!%p319_p9)  ;;  %s756_s24 = sshll.u32 (!%p319_p9), %s1196_s17, 4  ;;  %s924_s18 = sshll.u32 (!%p319_p9), %s1020_s15, 4  ;;  %s925_s18 = int_to_ptr.vmem [resolvable:$false] %s924_s18 }
  0x16   : > { %v845_v16 = vpack.c.bf16 (!%p319_p9), %v474_v15, %v473_v13  ;;  %v848_v19 = vpack.c.bf16 (!%p319_p9), %v476_v18, %v475_v17  ;;  %v477_v20 = vld [vmem:[%s1290_s5 + $0x30] sm:$0xff] (!%p319_p9)  ;;  %v478_v21 = vld [vmem:[%s1290_s5 + $0x38] sm:$0xff] (!%p319_p9)  ;;  %v479_v23 = vld [vmem:[%s1290_s5 + $0x40] sm:$0xff] (!%p319_p9)  ;;  %v394_v46 = vsub.s32 (!%p319_p9), 0, %v393_v45  ;;  %s367_s25 = scalar_lea.vmem (!%p319_p9), [#allocation5], %s756_s24 }
  0x17   : > { %843 = vmatpush3.bf16.msra.mxu1 (!%p319_p9), %v842_v14  ;;  %v851_v22 = vpack.c.bf16 (!%p319_p9), %v478_v21, %v477_v20  ;;  %v480_v24 = vld [vmem:[%s1290_s5 + $0x48] sm:$0xff] (!%p319_p9)  ;;  %v481_v26 = vld [vmem:[%s1290_s5 + $0x50] sm:$0xff] (!%p319_p9)  ;;  %v482_v27 = vld [vmem:[%s1290_s5 + $0x58] sm:$0xff] (!%p319_p9) }
  0x18   : > { %844 = vmatprep.subr.bf16.mxu1 (!%p319_p9), %v1017_v3  ;;  %v854_v25 = vpack.c.bf16 (!%p319_p9), %v480_v24, %v479_v23  ;;  %v857_v28 = vpack.c.bf16 (!%p319_p9), %v482_v27, %v481_v26  ;;  %v483_v29 = vld [vmem:[%s1290_s5 + $0x60] sm:$0xff] (!%p319_p9)  ;;  %v484_v30 = vld [vmem:[%s1290_s5 + $0x68] sm:$0xff] (!%p319_p9)  ;;  %v485_v32 = vld [vmem:[%s1290_s5 + $0x70] sm:$0xff] (!%p319_p9) }
  0x19   : > { %v860_v31 = vpack.c.bf16 (!%p319_p9), %v484_v30, %v483_v29  ;;  %v486_v33 = vld [vmem:[%s1290_s5 + $0x78] sm:$0xff] (!%p319_p9)  ;;  %v764_v60 = vld [vmem:[%s1292_s7] ss:$0 sm:$0xff] (!%p319_p9)  ;;  %v765_v62 = vld [vmem:[%s1292_s7 + $0x1] ss:$0 sm:$0xff] (!%p319_p9) }
  0x1a   : > { %s369_s22 = scalar_select %p368_p10, %s1098_s4, 1  ;;  %v863_v34 = vpack.c.bf16 %v486_v33, %v485_v32 }
  0x1b   : > { %846 = vmatpush3.bf16.msra.mxu1 %v845_v16 }
  0x1c   : > { %s1127_s23 = sshll.u32 %s369_s22, 4  ;;  %847 = vmatprep.subr.bf16.mxu1 %v1017_v3  ;;  %s926_s22 = scalar_lea.vmem %s925_s18, 512 }
  0x1d   : > { %s372_s26 = scalar_lea.vmem %s1298_s0, %s1127_s23  ;;  %s377_s29 = scalar_lea.vmem %s1286_s1, %s1127_s23 }
  0x1e   : > { %v384_v5 = vld [vmem:[%s372_s26] sm:$0xff]  ;;  %v385_v6 = vld [vmem:[%s372_s26 + $0x8] sm:$0xff]  ;;  %s382_s30 = scalar_lea.vmem %s1287_s2, %s1127_s23  ;;  %s775_s23 = sshll.u32 %s1098_s4, 8 }
  0x1f   : > { %v839_v7 = vpack.c.bf16 %v385_v6, %v384_v5  ;;  %v561_v8 = vld [vmem:[%s377_s29 + $0x8] sm:$0xff]  ;;  %v560_v10 = vld [vmem:[%s377_s29] sm:$0xff]  ;;  %849 = vmatpush3.bf16.msra.mxu1 %v848_v19  ;;  %s638_s26 = sshll.u32 %s367_s25, 4  ;;  %s1206_s29 = scalar_lea.hbm %s1294_s9, %s775_s23  ;;  %s1208_s26 = int_to_ptr.vmem [resolvable:$true] %s638_s26 }
  0x20   : > { %564 = vadd.xlane.f32.xlu1 %v561_v8  ;;  %850 = vmatprep.subr.bf16.mxu1 %v1017_v3  ;;  %v599_v59 = vld [vmem:[%s382_s30] sm:$0xff]  ;;  %v600_v2 = vld [vmem:[%s382_s30 + $0x8] sm:$0xff]  ;;  %s612_s30 = scalar_lea.sflag [#allocation6], %s1196_s17  ;;  %s920_s10 = scalar_lea.vmem %s1208_s26, 256 }
  0x21   : > { %840 = vmatpush3.bf16.msra.mxu0 %v839_v7  ;;  %v601_v63 = vmul.f32 0.42, %v599_v59  ;;  %v602_v5 = vmul.f32 0.42, %v600_v2  ;;  %p921_p11 = scmp.ne.s32.totalorder %s1208_s26, %s920_s10  ;;  %p927_p0 = scmp.lt.s32.totalorder %s1208_s26, %s925_s18 }
  0x22   : > { %p928_p1 = scmp.lt.s32.totalorder %s926_s22, %s920_s10 }
  0x23   : > { %852 = vmatpush3.bf16.msra.mxu1 %v851_v22  ;;  %p922_p12 = pnand %p921_p11, %p1115_p5 }
  0x24   : > { %801 = vmatmul.mubr.msk.f32.vlgmr.msra.gmra.mrb[0].mxu0 %vm396_vm1, %v383_v9  ;;  %853 = vmatprep.subr.bf16.mxu1 %v1017_v3  ;;  %p929_p2 = por %p928_p1, %p927_p0 }
  0x25   : > { %p923_p13 = pneg %p922_p12 }
  0x27   : > { %855 = vmatpush3.bf16.msra.mxu1 %v854_v25  ;;  %p930_p3 = pnand %p929_p2, %p923_p13 }
  0x28   : > { %856 = vmatprep.subr.bf16.mxu1 %v1017_v3 }
  0x2b   : > { %858 = vmatpush3.bf16.msra.mxu1 %v857_v28 }
  0x2c   : > { %859 = vmatprep.subr.bf16.mxu1 %v1017_v3 }
  0x2f   : > { %861 = vmatpush3.bf16.msra.mxu1 %v860_v31 }
  0x30   : > { %862 = vmatprep.subr.bf16.mxu1 %v1017_v3 }
  0x33   : > { %562 = vadd.xlane.f32.xlu0 %v560_v10  ;;  %864 = vmatpush3.bf16.msra.mxu1 %v863_v34 }
  0x93   : > { %v390_v35 = vpop.permute.xlu0 %389 }
  0x94   : > { %v395_v47 = vrot.slane %v390_v35, %v394_v46 }
  0xad   : > { %v565_v36 = vpop.xlane.xlu1 %564 }
  0xae   : > { %v568_v37 = vmul.f32 0.0078125, %v565_v36 }
  0xb0   : > { %v570_v41 = vsub.f32 %v561_v8, %v568_v37 }
  0xb2   : > { %v572_v43 = vmul.f32 %v570_v41, %v570_v41 }
  0xc0   : > { %v563_v38 = vpop.xlane.xlu0 %562 }
  0xc1   : > { %v567_v39 = vmul.f32 0.0078125, %v563_v38 }
  0xc3   : > { %v569_v40 = vsub.f32 %v560_v10, %v567_v39 }
  0xc5   : > { %v571_v42 = vmul.f32 %v569_v40, %v569_v40 }
  0xc7   : > { %573 = vadd.xlane.f32.xlu1 %v571_v42 }
  0xcb   : > { %575 = vadd.xlane.f32.xlu1 %v572_v43 }
  0xf7   : > { %v466_v48 = vpop.f32.mrb[0].mxu0 }
  0xf8   : > { %v467_v49 = vadd.f32 %v466_v48, %v395_v47  ;;  %v802_v50 = vpop.f32.mrb[1].mxu0 }
  0xfa   : > { %v470_v51 = vmax.f32 %v467_v49, 0.0 }
  0xfc   : > { %836 = vmatmul.mubr.f32.vlgmr.msra.gmra.mrb[0].mxu1 %v470_v51 }
 0x154   : > { %v574_v52 = vpop.xlane.xlu1 %573 }
 0x155   : > { %v577_v53 = vmul.f32 0.0078125, %v574_v52 }
 0x157   : > { %v579_v54 = vadd.f32 1e-05, %v577_v53 }
 0x158   : > { %v576_v55 = vpop.xlane.xlu1 %575 }
 0x159   : > { %916 = vrsqrt.f32 %v579_v54  ;;  %v578_v56 = vmul.f32 0.0078125, %v576_v55 }
 0x15b   : > { %v580_v57 = vadd.f32 1e-05, %v578_v56 }
 0x15d   : > { %918 = vrsqrt.f32 %v580_v57 }
 0x163   : > { %v917_v58 = vpop.eup %916 }
 0x164   : > { %v583_v61 = vmul.f32 %v917_v58, %v569_v40 }
 0x166   : > { %v590_v0 = vmul.f32 %v764_v60, %v583_v61 }
 0x167   : > { %v919_v1 = vpop.eup %918 }
 0x168   : > { %v584_v3 = vmul.f32 %v919_v1, %v570_v41  ;;  %v597_v4 = vadd.f32 %v765_v62, %v590_v0 }
 0x16a   : > { %v591_v6 = vmul.f32 %v764_v60, %v584_v3  ;;  %v603_v7 = vadd.f32 %v601_v63, %v597_v4 }
 0x16c   : > { %v598_v8 = vadd.f32 %v765_v62, %v591_v6  ;;  %605 = vst [vmem:[%s367_s25] sm:$0xff] %v603_v7 }
 0x16e   : > { %v604_v9 = vadd.f32 %v602_v5, %v598_v8 }
 0x170   : > { %606 = vst [vmem:[%s367_s25 + $0x8] sm:$0xff] %v604_v9 }
 0x171   : > { %933 = shalt.err (!%p930_p3)
}
 0x172   : > { %s934_s24 = scalar_lea.hbm %s1206_s29, 256  ;;  %s938_s27 = scalar_lea.hbm %s1294_s9, 512 }
 0x173   : > { %p935_p4 = scmp.ne.s32.totalorder %s1206_s29, %s934_s24  ;;  %p939_p9 = scmp.lt.u32.totalorder %s1206_s29, %s1294_s9 }
 0x174   : > { %p940_p10 = scmp.lt.u32.totalorder %s938_s27, %s934_s24  ;;  %p942_p12 = scmp.lt.u32.totalorder %s934_s24, %s1206_s29 }
 0x175   : > { %p936_p7 = pnand %p935_p4, %p1115_p5 }
 0x176   : > { %p941_p11 = por %p940_p10, %p939_p9 }
 0x177   : > { %p937_p8 = pneg %p936_p7 }
 0x178   : > { %p943_p13 = por %p942_p12, %p941_p11 }
 0x17a   : > { %p944_p0 = pnand %p943_p13, %p937_p8 }
 0x17c   : > { %947 = shalt.err (!%p944_p0)
}
 0x17d   : > { %s1021_s10 = smov 128   ;;  %s1022_s18 = smov 8   ;;  %v487_v10 = vld [vmem:[%s1291_s6] sm:$0x1]  ;;  %vm558_vm2 = vcmask 81920  }
 0x17e   : > { %866 = dma.vmem_to_hbm [thread:$0]  (%p1115_p5), %s1208_s26, 256, %s1206_s29, %s612_s30, %s1021_s10, %s1021_s10, %s1022_s18  }
 0x17f   : > { %s767_s24 = sshll.u32 %s1098_s4, 4  ;;  %s360_s25 = scalar_lea.vmem [#allocation3], %s1196_s17 }
 0x180   : > { %s625_s27 = sshll.u32 %s360_s25, 4  ;;  %s1242_s0 = scalar_lea.hbm %s1293_s8, %s767_s24  ;;  %s1244_s27 = int_to_ptr.vmem [resolvable:$true] %s625_s27 }
 0x181   : > { %s608_s26 = scalar_lea.sflag [#allocation4], %s1196_s17  ;;  %s948_s29 = scalar_lea.vmem %s1244_s27, 16 }
 0x182   : > { %p949_p1 = scmp.ne.s32.totalorder %s1244_s27, %s948_s29  ;;  %s1023_s4 = smov [#allocation3]  }
 0x183   : > { %s952_s30 = sshll.u32 %s1023_s4, 4  ;;  %s953_s30 = int_to_ptr.vmem [resolvable:$false] %s952_s30 }
 0x184   : > { %p950_p2 = pnand %p949_p1, %p1115_p5  ;;  %s954_s10 = scalar_lea.vmem %s953_s30, 32 }
 0x185   : > { %p955_p4 = scmp.lt.s32.totalorder %s1244_s27, %s953_s30  ;;  %p956_p7 = scmp.lt.s32.totalorder %s954_s10, %s948_s29 }
 0x186   : > { %p951_p3 = pneg %p950_p2 }
 0x187   : > { %p957_p8 = por %p956_p7, %p955_p4 }
 0x189   : > { %p958_p9 = pnand %p957_p8, %p951_p3 }
 0x1cf   : > { %v554_v11 = vpop.f32.mrb[0].mxu1 }
 0x1d0   : > { %v555_v12 = vadd.f32 %v554_v11, %v487_v10  ;;  %v837_v13 = vpop.f32.mrb[1].mxu1 }
 0x1d2   : > { %559 = vst.msk [vmem:[%s360_s25] sm:$0x1] %vm558_vm2, %v555_v12 }
 0x1d3   : > { %961 = shalt.err (!%p958_p9)
}
 0x1d4   : > { %s962_s17 = scalar_lea.hbm %s1242_s0, 16  ;;  %s966_s23 = scalar_lea.hbm %s1293_s8, 32 }
 0x1d5   : > { %p963_p10 = scmp.ne.s32.totalorder %s1242_s0, %s962_s17  ;;  %p967_p13 = scmp.lt.u32.totalorder %s1242_s0, %s1293_s8 }
 0x1d6   : > { %p968_p0 = scmp.lt.u32.totalorder %s966_s23, %s962_s17  ;;  %p970_p2 = scmp.lt.u32.totalorder %s962_s17, %s1242_s0 }
 0x1d7   : > { %p964_p11 = pnand %p963_p10, %p1115_p5 }
 0x1d8   : > { %p969_p1 = por %p968_p0, %p967_p13 }
 0x1d9   : > { %p965_p12 = pneg %p964_p11 }
 0x1da   : > { %p971_p3 = por %p970_p2, %p969_p1 }
 0x1dc   : > { %p972_p4 = pnand %p971_p3, %p965_p12 }
 0x1de   : > { %975 = shalt.err (!%p972_p4)
}
 0x1df   : > { %865 = dma.vmem_to_hbm [thread:$0]  (%p1115_p5), %s1244_s27, 16, %s1242_s0, %s608_s26  }
 0x1e0 PF: > { %p876_p7 = scmp.ge.s32.totalorder %s1014_s14, 2  ;;  %s653_s28 = sand.u32 1, %s1002_s11  }
 0x1e1   : > { %s654_s15 = scalar_lea.sflag [#allocation4], %s653_s28 }
 0x1e2   : > { %p870_p8 = pnand %p876_p7, %p1119_p6 }
 0x1e4   : > { %993 = dma.done.wait (!%p870_p8), %s654_s15, 16  }
 0x1e5   : > { %995 = vsyncadd (!%p870_p8), %s654_s15, 4294967280  ;;  %s662_s29 = scalar_lea.sflag [#allocation6], %s653_s28 }
 0x1e6   : > { %997 = dma.done.wait (!%p870_p8), %s662_s29, 256  }
 0x1e7   : > { %999 = vsyncadd (!%p870_p8), %s662_s29, 4294967040  ;;  %p25_p5 = scmp.ge.s32.totalorder %s1102_s16, 4   ;;  %s1299_s11 = smov %s1006_s12 }
 0x1e8   : > { %s1300_s12 = smov %s1010_s13  ;;  %s1301_s13 = smov %s1113_s19 }
 0x1e9   : > { %s1302_s14 = smov %s1102_s16  ;;  %27 = sbr.rel (!%p25_p5) target bundleno = 8 (0x8), region = 110 }
 0x1f0   :  { %667 = vsyncpa [#allocation4], 1 }
 0x1f1   :  { %669 = vsyncpa [#allocation4 + $0x1], 1 }
 0x1f2   :  { %670 = vsyncpa [#allocation6], 1 }
 0x1f3   :  { %672 = vsyncpa [#allocation6 + $0x1], 1 }

// kernel: ttm_forward.5
= control target key start
LH: loop header
LB: loop body
LE: loop exit
PB: predicated region body
PF: predicated region fallthrough
CT: control target
= control target key end

     0   :  { %s13784_s6 = smov 1   ;;  %s13785_s10 = smov 2   ;;  %s15423_s0 = inlined_call_operand.smem [shape: u32[40], index: -1, kind: input, shape index: {}] }
   0x1   :  { %s13843_s5 = sld [smem:[%s15423_s0]]   ;;  %s13786_s14 = smov 3  }
   0x2   :  { %s13848_s9 = sld [smem:[%s15423_s0 + %s13784_s6]]   ;;  %s13787_s18 = smov 4  }
   0x3   :  { %s13853_s13 = sld [smem:[%s15423_s0 + %s13785_s10]]   ;;  %s13788_s22 = smov 5  }
   0x4   :  { %s13858_s17 = sld [smem:[%s15423_s0 + %s13786_s14]]   ;;  %s13789_s26 = smov 6  }
   0x5   :  { %s13863_s21 = sld [smem:[%s15423_s0 + %s13787_s18]]   ;;  %s13790_s30 = smov 7  }
   0x6   :  { %s13868_s25 = sld [smem:[%s15423_s0 + %s13788_s22]]   ;;  %s13791_s4 = smov 8  }
   0x7   :  { %s13873_s29 = sld [smem:[%s15423_s0 + %s13789_s26]]   ;;  %s13792_s10 = smov 9  }
   0x8   :  { %15480 = sst [smem:[#allocation4_spill]] %s13848_s9  ;;  %s13793_s15 = smov 10  }
   0x9   :  { %s13878_s3 = sld [smem:[%s15423_s0 + %s13790_s30]]   ;;  %s13794_s20 = smov 11  }
   0xa   :  { %s13883_s8 = sld [smem:[%s15423_s0 + %s13791_s4]]   ;;  %s13795_s26 = smov 12  }
   0xb   :  { %s13888_s14 = sld [smem:[%s15423_s0 + %s13792_s10]]   ;;  %s13796_s1 = smov 13  }
   0xc   :  { %s13893_s19 = sld [smem:[%s15423_s0 + %s13793_s15]]   ;;  %s13797_s7 = smov 14  }
   0xd   :  { %s13898_s24 = sld [smem:[%s15423_s0 + %s13794_s20]]   ;;  %s13798_s15 = smov 15  }
   0xe   :  { %s13903_s30 = sld [smem:[%s15423_s0 + %s13795_s26]]   ;;  %s13799_s22 = smov 16  }
   0xf   :  { %15481 = sst [smem:[#allocation5_spill]] %s13878_s3  ;;  %s13800_s28 = smov 17  }
  0x10   :  { %s13908_s6 = sld [smem:[%s15423_s0 + %s13796_s1]]  }
  0x11   :  { %s13913_s12 = sld [smem:[%s15423_s0 + %s13797_s7]]   ;;  %s13801_s7 = smov 18  }
  0x12   :  { %s13918_s20 = sld [smem:[%s15423_s0 + %s13798_s15]]   ;;  %s13802_s15 = smov 19  }
  0x13   :  { %s13923_s27 = sld [smem:[%s15423_s0 + %s13799_s22]]   ;;  %s13803_s22 = smov 20  }
  0x14   :  { %s13928_s4 = sld [smem:[%s15423_s0 + %s13800_s28]]   ;;  %s13804_s28 = smov 21  }
  0x15   :  { %s13933_s9 = sld [smem:[%s15423_s0 + %s13801_s7]]   ;;  %s13805_s7 = smov 22  }
  0x18   :  { %15482 = sst [smem:[#allocation6_spill]] %s13918_s20 }
  0x19   :  { %15483 = sst [smem:[#allocation7_spill]] %s13923_s27 }
  0x1a   :  { %15484 = sst [smem:[#allocation8_spill]] %s13928_s4 }
  0x1b   :  { %15485 = sst [smem:[#allocation9_spill]] %s13933_s9 }
  0x1c   :  { %s13938_s20 = sld [smem:[%s15423_s0 + %s13802_s15]]   ;;  %s13806_s15 = smov 23  }
  0x1d   :  { %s13943_s27 = sld [smem:[%s15423_s0 + %s13803_s22]]   ;;  %s13807_s22 = smov 24  }
  0x1e   :  { %s13948_s4 = sld [smem:[%s15423_s0 + %s13804_s28]]   ;;  %s13808_s28 = smov 25  }
  0x1f   :  { %s13953_s9 = sld [smem:[%s15423_s0 + %s13805_s7]]   ;;  %s13809_s7 = smov 26  }
  0x22   :  { %15486 = sst [smem:[#allocation10_spill]] %s13938_s20 }
  0x23   :  { %15487 = sst [smem:[#allocation11_spill]] %s13943_s27 }
  0x24   :  { %15488 = sst [smem:[#allocation12_spill]] %s13948_s4 }
  0x25   :  { %15489 = sst [smem:[#allocation13_spill]] %s13953_s9 }
  0x26   :  { %s13958_s20 = sld [smem:[%s15423_s0 + %s13806_s15]]   ;;  %s13810_s15 = smov 27  }
  0x27   :  { %s13963_s27 = sld [smem:[%s15423_s0 + %s13807_s22]]   ;;  %s13811_s22 = smov 28  }
  0x28   :  { %s13968_s4 = sld [smem:[%s15423_s0 + %s13808_s28]]   ;;  %s13812_s28 = smov 29  }
  0x29   :  { %s13973_s9 = sld [smem:[%s15423_s0 + %s13809_s7]]   ;;  %s13813_s7 = smov 30  }
  0x2c   :  { %15490 = sst [smem:[#allocation14_spill]] %s13958_s20 }
  0x2d   :  { %15491 = sst [smem:[#allocation15_spill]] %s13963_s27 }
  0x2e   :  { %15492 = sst [smem:[#allocation16_spill]] %s13968_s4 }
  0x2f   :  { %15493 = sst [smem:[#allocation17_spill]] %s13973_s9 }
  0x30   :  { %s13978_s20 = sld [smem:[%s15423_s0 + %s13810_s15]]   ;;  %s13814_s15 = smov 31  }
  0x31   :  { %s13983_s27 = sld [smem:[%s15423_s0 + %s13811_s22]]   ;;  %s13815_s22 = smov 32  }
  0x32   :  { %s13988_s4 = sld [smem:[%s15423_s0 + %s13812_s28]]   ;;  %s13816_s28 = smov 33  }
  0x33   :  { %s13993_s9 = sld [smem:[%s15423_s0 + %s13813_s7]]   ;;  %s13817_s7 = smov 34  }
  0x36   :  { %15494 = sst [smem:[#allocation18_spill]] %s13978_s20 }
  0x37   :  { %15495 = sst [smem:[#allocation19_spill]] %s13983_s27 }
  0x38   :  { %15496 = sst [smem:[#allocation20_spill]] %s13988_s4 }
  0x39   :  { %15497 = sst [smem:[#allocation21_spill]] %s13993_s9 }
  0x3a   :  { %s13998_s20 = sld [smem:[%s15423_s0 + %s13814_s15]]   ;;  %s13818_s15 = smov 35  }
  0x3b   :  { %s14003_s27 = sld [smem:[%s15423_s0 + %s13815_s22]]   ;;  %s13819_s22 = smov 36  }
  0x3c   :  { %s14008_s4 = sld [smem:[%s15423_s0 + %s13816_s28]]   ;;  %s13820_s28 = smov 37  }
  0x3d   :  { %s14013_s9 = sld [smem:[%s15423_s0 + %s13817_s7]]   ;;  %s13821_s7 = smov 38  }
  0x40   :  { %15498 = sst [smem:[#allocation22_spill]] %s13998_s20 }
  0x41   :  { %15499 = sst [smem:[#allocation23_spill]] %s14003_s27 }
  0x42   :  { %15500 = sst [smem:[#allocation24_spill]] %s14008_s4 }
  0x43   :  { %15501 = sst [smem:[#allocation25_spill]] %s14013_s9 }
  0x44   :  { %s14018_s20 = sld [smem:[%s15423_s0 + %s13818_s15]]   ;;  %s13822_s15 = smov 39  }
  0x45   :  { %s14023_s27 = sld [smem:[%s15423_s0 + %s13819_s22]]   ;;  %s14040_s22 = smov 0  }
  0x46   :  { %s14028_s4 = sld [smem:[%s15423_s0 + %s13820_s28]]  }
  0x47   :  { %s14033_s9 = sld [smem:[%s15423_s0 + %s13821_s7]]  }
  0x4a   :  { %15502 = sst [smem:[#allocation26_spill]] %s14018_s20 }
  0x4b   :  { %s14038_s20 = sld [smem:[%s15423_s0 + %s13822_s15]]  }
  0x4c LB: > { %s15503_s3 = sld [smem:[#allocation5_spill]]  ;;  %s10354_s23 = sadd.s32 4294967295, %s13782_s22   ;;  %s13782_s22 = sphi %s14040_s22, %s90_s22  }
  0x4d   : > { %p10358_p0 = scmp.ge.s32.totalorder %s13782_s22, 1  ;;  %p1099_p1 = scmp.lt.s32.totalorder %s13782_s22, 3 }
  0x4f   : > { %p1100_p2 = pnand %p10358_p0, %p1099_p1 }
  0x51   : > { %1103 = sbr.rel (%p1100_p2) target bundleno = 13062 (0x3306), region = 172 }
  0x58   : > { %v13208_v0 = vld [vmem:[%s13868_s25] sm:$0xff]   ;;  %v13209_v1 = vld [vmem:[%s13868_s25 + $0x8] sm:$0xff]   ;;  %v15440_v2 = vmov 0.0   ;;  %p1208_p3 = scmp.lt.s32.totalorder %s10354_s23, 1  ;;  %v13210_v3 = vld [vmem:[%s13868_s25 + $0x10] sm:$0xff]   ;;  %vm13824_vm0 = vmmov 0  }
  0x59   : > { %12009 = vmatprep.subr.bf16.mxu0 %v15440_v2  ;;  %12029 = vmatprep.subr.bf16.mxu1 %v13208_v0  ;;  %v13212_v4 = vld [vmem:[%s13858_s17] sm:$0xff]   ;;  %v13214_v5 = vld [vmem:[%s13858_s17 + $0x8] sm:$0xff]   ;;  %v13211_v6 = vld [vmem:[%s13868_s25 + $0x18] sm:$0xff]   ;;  %v15437_v24 = vmov 0.0|0.0   ;;  %vm1590_vm1 = vcmask 130048   ;;  %vm1674_vm3 = vcmask 162816  }
  0x5a   : > { %12030 = vmatpush3.bf16.msra.mxu1 %v13208_v0  ;;  %s15580_s23 = smov (!%p1208_p3, %s10354_s23), 1  ;;  %12025 = vmatprep.mubr.msk.bf16.mxu0 %vm13824_vm0, %v15440_v2  ;;  %v13216_v7 = vld [vmem:[%s13858_s17 + $0x10] sm:$0xff]   ;;  %v13213_v8 = vld [vmem:[%s13868_s25 + $0x20] sm:$0xff]   ;;  %v13218_v11 = vld [vmem:[%s13858_s17 + $0x18] sm:$0xff]   ;;  %vm1689_vm4 = vcmask 1043456   ;;  %s15526_s2 = sld [smem:[#allocation6_spill]] }
  0x5b   : > { %12031 = vmatprep.subr.bf16.mxu1 %v13209_v1  ;;  %12010 = vmatpush3.bf16.msra.mxu0 %v13212_v4  ;;  %s13135_s0 = smul.u32 24, %s15580_s23  ;;  %v13215_v13 = vld [vmem:[%s13868_s25 + $0x28] sm:$0xff]   ;;  %v13220_v14 = vld [vmem:[%s13858_s17 + $0x20] sm:$0xff]   ;;  %s10362_s28 = sshll.u32 %s15580_s23, 3  ;;  %v13217_v15 = vld [vmem:[%s13868_s25 + $0x30] sm:$0xff]   ;;  %vm7528_vm5 = vcmask 64512  }
  0x5c   : > { %12011 = vmatprep.subr.bf16.mxu0 %v15440_v2  ;;  %v13221_v16 = vld [vmem:[%s13858_s17 + $0x28] sm:$0xff]   ;;  %v13219_v17 = vld [vmem:[%s13868_s25 + $0x38] sm:$0xff]   ;;  %v13222_v18 = vld [vmem:[%s13858_s17 + $0x30] sm:$0xff]   ;;  %s1221_s1 = scalar_lea.vmem %s13853_s13, %s10362_s28  ;;  %s15539_s7 = sld [smem:[#allocation4_spill]] }
  0x5d   : > { %s1212_s26 = scalar_lea.vmem %s13843_s5, %s13135_s0  ;;  %v13223_v20 = vld [vmem:[%s13858_s17 + $0x38] sm:$0xff]   ;;  %v1239_v21 = vld [vmem:[%s1221_s1] sm:$0xff]  ;;  %vm14098_vm2 = vmpackc.low %vm1590_vm1, %vm1590_vm1  ;;  %s15474_s10 = sshll.u32 %s15580_s23, 4 }
  0x5e   : > { %12032 = vmatpush3.bf16.msra.mxu1 %v13209_v1  ;;  %v1232_v9 = vld [vmem:[%s1212_s26] sm:$0xff]  ;;  %v1233_v10 = vld [vmem:[%s1212_s26 + $0x8] sm:$0xff]  ;;  %v1234_v19 = vld [vmem:[%s1212_s26 + $0x10] sm:$0xf]  ;;  %v14087_v23 = vpack.c.bf16 %v1239_v21, %v1239_v21  ;;  %s15542_s15 = sld [smem:[#allocation9_spill]]  ;;  %s15555_s16 = sld [smem:[#allocation8_spill]] }
  0x5f   : > { %12033 = vmatprep.subr.bf16.mxu1 %v13210_v3  ;;  %12012 = vmatpush3.bf16.msra.mxu0 %v13214_v5  ;;  %v14066_v12 = vpack.c.bf16 %v1233_v10, %v1232_v9  ;;  %v14084_v22 = vpack.c.bf16 %v1234_v19, %v1234_v19  ;;  %v10375_v25 = vld [vmem:[%s13873_s29] ss:$0 sm:$0xff]  ;;  %v13225_v42 = vld [vmem:[%s15503_s3 + $0x8] sm:$0xff]   ;;  %v13226_v43 = vld [vmem:[%s15503_s3 + $0x10] sm:$0xff]   ;;  %s15556_s18 = sld [smem:[#allocation11_spill]]  ;;  %s15558_s0 = sld [smem:[#allocation10_spill]] }
  0x60   : > { %12013 = vmatprep.subr.bf16.mxu0 %v15440_v2  ;;  %v10366_v38 = vld [vmem:[%s13863_s21] ss:$0 sm:$0xff]  ;;  %v13227_v44 = vld [vmem:[%s15503_s3 + $0x18] sm:$0xff]   ;;  %v13229_v46 = vld [vmem:[%s15503_s3 + $0x28] sm:$0xff]   ;;  %s15562_s26 = sld [smem:[#allocation12_spill]]  ;;  %s15563_s1 = sld [smem:[#allocation7_spill]] }
  0x61   : > { %12045 = vmatprep.mubr.bf16.mxu1 %v14066_v12  ;;  %v13224_v41 = vld [vmem:[%s15503_s3] sm:$0xff]   ;;  %v13230_v47 = vld [vmem:[%s15503_s3 + $0x30] sm:$0xff]   ;;  %v13231_v48 = vld [vmem:[%s15503_s3 + $0x38] sm:$0xff]  }
  0x62   : > { %12034 = vmatpush3.bf16.msra.mxu1 %v13210_v3  ;;  %v13228_v45 = vld [vmem:[%s15503_s3 + $0x20] sm:$0xff]   ;;  %v13233_v54 = vld [vmem:[%s13868_s25 + $0x48] sm:$0xff]   ;;  %v13234_v55 = vld [vmem:[%s13868_s25 + $0x50] sm:$0xff]   ;;  %s14957_s11 = scalar_lea.vmem %s15539_s7, %s15474_s10  ;;  %s1230_s7 = scalar_lea.vmem %s14038_s20, %s10362_s28 }
  0x63   : > { %12035 = vmatprep.subr.bf16.mxu1 %v13211_v6  ;;  %12014 = vmatpush3.bf16.msra.mxu0 %v13216_v7  ;;  %v13232_v53 = vld [vmem:[%s13868_s25 + $0x40] sm:$0xff]   ;;  %v13235_v56 = vld [vmem:[%s13868_s25 + $0x58] sm:$0xff]   ;;  %v13237_v9 = vld [vmem:[%s13868_s25 + $0x68] sm:$0xff]   ;;  %s15567_s28 = sld [smem:[#allocation13_spill]] }
  0x64   : > { %12015 = vmatprep.subr.bf16.mxu0 %v15440_v2  ;;  %v13236_v57 = vld [vmem:[%s13868_s25 + $0x60] sm:$0xff]   ;;  %v13238_v10 = vld [vmem:[%s13868_s25 + $0x70] sm:$0xff]   ;;  %v13243_v19 = vld [vmem:[%s13858_s17 + $0x58] sm:$0xff]   ;;  %s15571_s10 = sld [smem:[#allocation21_spill]] }
  0x65   : > { %v10384_v58 = vld [vmem:[%s13883_s8] ss:$0 sm:$0xff]  ;;  %v13245_v21 = vld [vmem:[%s13858_s17 + $0x68] sm:$0xff]  }
  0x66   : > { %12036 = vmatpush3.bf16.msra.mxu1 %v13211_v6 }
  0x67   : > { %12037 = vmatprep.subr.bf16.mxu1 %v13213_v8  ;;  %12016 = vmatpush3.bf16.msra.mxu0 %v13218_v11  ;;  %v13239_v11 = vld [vmem:[%s13868_s25 + $0x78] sm:$0xff]  }
  0x68   : > { %12017 = vmatprep.subr.bf16.mxu0 %v15440_v2 }
  0x6a   : > { %12038 = vmatpush3.bf16.msra.mxu1 %v13213_v8 }
  0x6b   : > { %12039 = vmatprep.subr.bf16.mxu1 %v13215_v13  ;;  %12018 = vmatpush3.bf16.msra.mxu0 %v13220_v14 }
  0x6c   : > { %12019 = vmatprep.subr.bf16.mxu0 %v15440_v2 }
  0x6e   : > { %12040 = vmatpush3.bf16.msra.mxu1 %v13215_v13 }
  0x6f   : > { %12041 = vmatprep.subr.bf16.mxu1 %v13217_v15  ;;  %12020 = vmatpush3.bf16.msra.mxu0 %v13221_v16 }
  0x70   : > { %12021 = vmatprep.subr.bf16.mxu0 %v15440_v2 }
  0x72   : > { %12042 = vmatpush3.bf16.msra.mxu1 %v13217_v15  ;;  %v13240_v15 = vld [vmem:[%s13858_s17 + $0x40] sm:$0xff]  }
  0x73   : > { %12043 = vmatprep.subr.bf16.mxu1 %v13219_v17  ;;  %12022 = vmatpush3.bf16.msra.mxu0 %v13222_v18  ;;  %v13242_v18 = vld [vmem:[%s13858_s17 + $0x50] sm:$0xff]  }
  0x74   : > { %12023 = vmatprep.subr.bf16.mxu0 %v15440_v2 }
  0x76   : > { %12044 = vmatpush3.bf16.msra.mxu1 %v13219_v17  ;;  %v13241_v17 = vld [vmem:[%s13858_s17 + $0x48] sm:$0xff]  }
  0x77   : > { %12024 = vmatpush3.bf16.msra.mxu0 %v13223_v20  ;;  %13074 = vmatprep.subr.bf16.mxu1 %v15437_v24  ;;  %v13244_v20 = vld [vmem:[%s13858_s17 + $0x60] sm:$0xff]  }
  0x78   : > { %12049 = vmatprep.subr.bf16.mxu0 %v13224_v41 }
  0x79   : > { %12046 = vmatmul.mubr.bf16.vlgmr.msra.gmra.mrb[0].mxu1 %v14084_v22 }
  0x7a   : > { %12075 = vmatprep.mubr.msk.f32.mxu1 %vm13824_vm0, %v15440_v2  ;;  %12026 = vmatmul.mubr.bf16.vlgmr.msra.gmra.mrb[0].mxu0 %v14087_v23 }
  0x7b   : > { %12065 = vmatprep.mubr.bf16.mxu0 %v14066_v12  ;;  %12050 = vmatpush3.bf16.msra.mxu0 %v13224_v41 }
  0x7c   : > { %12051 = vmatprep.subr.bf16.mxu0 %v13225_v42 }
  0x7f   : > { %12052 = vmatpush3.bf16.msra.mxu0 %v13225_v42 }
  0x80   : > { %12053 = vmatprep.subr.bf16.mxu0 %v13226_v43 }
  0x83   : > { %12054 = vmatpush3.bf16.msra.mxu0 %v13226_v43 }
  0x84   : > { %12055 = vmatprep.subr.bf16.mxu0 %v13227_v44 }
  0x87   : > { %12056 = vmatpush3.bf16.msra.mxu0 %v13227_v44 }
  0x88   : > { %12057 = vmatprep.subr.bf16.mxu0 %v13228_v45 }
  0x8b   : > { %12058 = vmatpush3.bf16.msra.mxu0 %v13228_v45  ;;  %v13248_v45 = vld [vmem:[%s15503_s3 + $0x40] sm:$0xff]  }
  0x8c   : > { %12059 = vmatprep.subr.bf16.mxu0 %v13229_v46 }
  0x8f   : > { %12060 = vmatpush3.bf16.msra.mxu0 %v13229_v46  ;;  %v13249_v46 = vld [vmem:[%s15503_s3 + $0x48] sm:$0xff]  }
  0x90   : > { %12061 = vmatprep.subr.bf16.mxu0 %v13230_v47 }
  0x93   : > { %12062 = vmatpush3.bf16.msra.mxu0 %v13230_v47  ;;  %v13250_v47 = vld [vmem:[%s15503_s3 + $0x50] sm:$0xff]  }
  0x94   : > { %12063 = vmatprep.subr.bf16.mxu0 %v13231_v48 }
  0x97   : > { %12064 = vmatpush3.bf16.msra.mxu0 %v13231_v48  ;;  %v13251_v48 = vld [vmem:[%s15503_s3 + $0x58] sm:$0xff]  }
  0x98   : > { %12107 = vmatprep.subr.bf16.mxu0 %v13232_v53 }
  0x9a   : > { %12066 = vmatmul.mubr.bf16.vlgmr.msra.gmra.mrb[4].mxu0 %v14084_v22 }
  0x9b   : > { %12123 = vmatprep.mubr.bf16.mxu0 %v14066_v12  ;;  %12108 = vmatpush3.bf16.msra.mxu0 %v13232_v53 }
  0x9c   : > { %12109 = vmatprep.subr.bf16.mxu0 %v13233_v54 }
  0x9f   : > { %12110 = vmatpush3.bf16.msra.mxu0 %v13233_v54 }
  0xa0   : > { %12111 = vmatprep.subr.bf16.mxu0 %v13234_v55 }
  0xa3   : > { %12112 = vmatpush3.bf16.msra.mxu0 %v13234_v55 }
  0xa4   : > { %12113 = vmatprep.subr.bf16.mxu0 %v13235_v56 }
  0xa7   : > { %12114 = vmatpush3.bf16.msra.mxu0 %v13235_v56 }
  0xa8   : > { %12115 = vmatprep.subr.bf16.mxu0 %v13236_v57 }
  0xab   : > { %12116 = vmatpush3.bf16.msra.mxu0 %v13236_v57  ;;  %v10468_v57 = vld [vmem:[%s13883_s8 + $0x1] ss:$0 sm:$0xff] }
  0xac   : > { %12117 = vmatprep.subr.bf16.mxu0 %v13237_v9 }
  0xaf   : > { %12118 = vmatpush3.bf16.msra.mxu0 %v13237_v9 }
  0xb0   : > { %12119 = vmatprep.subr.bf16.mxu0 %v13238_v10 }
  0xb3   : > { %12120 = vmatpush3.bf16.msra.mxu0 %v13238_v10 }
  0xb4   : > { %12121 = vmatprep.subr.bf16.mxu0 %v13239_v11 }
  0xb7   : > { %12122 = vmatpush3.bf16.msra.mxu0 %v13239_v11  ;;  %v13256_v11 = vld [vmem:[%s13888_s14] sm:$0xff]  }
  0xb8   : > { %13081 = vmatprep.subr.bf16.mxu0 %v15437_v24 }
  0xba   : > { %12124 = vmatmul.mubr.bf16.vlgmr.msra.gmra.mrb[8].mxu0 %v14084_v22 }
  0xbb   : > { %12153 = vmatprep.mubr.msk.f32.mxu0 %vm13824_vm0, %v15440_v2 }
 0x14c   : > { %v12047_v26 = vpop.f32.mrb[0].mxu1 }
 0x14d   : > { %v1457_v27 = vpop.f32.mrb[1].mxu1  ;;  %v1346_v31 = vpop.f32.mrb[0].mxu0  ;;  %v1466_v39 = vadd.f32 %v12047_v26, %v10375_v25  ;;  %v13247_v26 = vld [vmem:[%s13858_s17 + $0x78] sm:$0xff]  }
 0x14e   : > { %v12048_v28 = vpop.f32.mrb[2].mxu1  ;;  %v1458_v32 = vadd.f32 %v10375_v25, %v1457_v27  ;;  %v12027_v34 = vpop.f32.mrb[1].mxu0  ;;  %v1347_v40 = vadd.f32 %v10366_v38, %v1346_v31  ;;  %v10442_v27 = vld [vmem:[%s13873_s29 + $0x1] ss:$0 sm:$0xff] }
 0x14f   : > { %v1460_v29 = vpop.f32.mrb[3].mxu1  ;;  %v1349_v35 = vpop.f32.mrb[2].mxu0 }
 0x150   : > { %v1461_v33 = vadd.f32 %v10375_v25, %v1460_v29  ;;  %v12028_v37 = vpop.f32.mrb[3].mxu0  ;;  %v13246_v25 = vld [vmem:[%s13858_s17 + $0x70] sm:$0xff]  }
 0x152   : > { %v13075_v36 = vpack.c.bf16 %v1461_v33, %v1458_v32 }
 0x154   : > { %13077 = vmatpush3.bf16.xpose.msk.msra.mxu1 %vm14098_vm2, %v13075_v36 }
 0x155   : > { %12073 = vmatprep.subr.mxu1 %v15440_v2 }
 0x15c   : > { %12074 = vmatpush3.xpose.msk.msra.mxu1 %vm1590_vm1, %v1466_v39  ;;  %v10416_v39 = vld [vmem:[%s13863_s21 + $0x1] ss:$0 sm:$0xff] }
 0x15d   : > { %13078 = vmatprep.subr.bf16.mxu1 %v15437_v24 }
 0x15f   : > { %12076 = vmatmul.mubr.msk.f32.vlgmr.msra.gmra.mrb[4].mxu1 %vm1590_vm1, %v1347_v40 }
 0x160   : > { %12084 = vmatprep.mubr.msk.f32.mxu1 %vm13824_vm0, %v15440_v2 }
 0x16d   : > { %v12067_v59 = vpop.f32.mrb[4].mxu0 }
 0x16e   : > { %v1576_v60 = vpop.f32.mrb[5].mxu0  ;;  %v1585_v8 = vadd.f32 %v12067_v59, %v10384_v58 }
 0x16f   : > { %v1577_v61 = vadd.f32 %v10384_v58, %v1576_v60  ;;  %v12068_v62 = vpop.f32.mrb[6].mxu0 }
 0x170   : > { %v1579_v63 = vpop.f32.mrb[7].mxu0 }
 0x171   : > { %v1580_v0 = vadd.f32 %v10384_v58, %v1579_v63 }
 0x173   : > { %v13079_v1 = vpack.c.bf16 %v1580_v0, %v1577_v61 }
 0x175   : > { %13080 = vmatpush3.bf16.msra.mxu1 %v13079_v1 }
 0x176   : > { %12082 = vmatprep.subr.mxu1 %v15440_v2 }
 0x179   : > { %12083 = vmatpush3.msk.msra.mxu1 %vm1689_vm4, %v1585_v8  ;;  %v13264_v8 = vld [vmem:[%s13888_s14 + $0x8] sm:$0xff]  }
 0x17a   : > { %12087 = vmatprep.subr.bf16.mxu1 %v15440_v2 }
 0x18d   : > { %v12125_v28 = vpop.f32.mrb[8].mxu0 }
 0x18e   : > { %v1986_v29 = vpop.f32.mrb[9].mxu0  ;;  %v1995_v36 = vadd.f32 %v12125_v28, %v10442_v27 }
 0x18f   : > { %v1987_v31 = vadd.f32 %v10442_v27, %v1986_v29  ;;  %v12126_v32 = vpop.f32.mrb[10].mxu0 }
 0x190   : > { %v1989_v33 = vpop.f32.mrb[11].mxu0  ;;  %v13267_v32 = vld [vmem:[%s13858_s17 + $0x88] sm:$0xff]  }
 0x191   : > { %v1990_v34 = vadd.f32 %v10442_v27, %v1989_v33  ;;  %v13266_v27 = vld [vmem:[%s13858_s17 + $0x80] sm:$0xff]  }
 0x193   : > { %v13082_v35 = vpack.c.bf16 %v1990_v34, %v1987_v31 }
 0x195   : > { %13084 = vmatpush3.bf16.xpose.msk.msra.mxu0 %vm14098_vm2, %v13082_v35 }
 0x196   : > { %12151 = vmatprep.subr.mxu0 %v15440_v2 }
 0x19d   : > { %12152 = vmatpush3.xpose.msk.msra.mxu0 %vm1590_vm1, %v1995_v36  ;;  %v13268_v36 = vld [vmem:[%s13858_s17 + $0x90] sm:$0xff]  }
 0x19e   : > { %12165 = vmatprep.subr.bf16.mxu0 %v15440_v2 }
 0x232   : > { %v1669_v49 = vpop.f32.mrb[4].mxu1 }
 0x233   : > { %v1673_v50 = vmul.f32 0.25, %v1669_v49  ;;  %v12077_v51 = vpop.f32.mrb[5].mxu1  ;;  %v13252_v49 = vld [vmem:[%s15503_s3 + $0x60] sm:$0xff]  }
 0x234   : > { %v13254_v51 = vld [vmem:[%s15503_s3 + $0x70] sm:$0xff]  }
 0x235   : > { %v1675_v52 = vsel %vm1674_vm3, %v1673_v50, -inf }
 0x236   : > { %1676 = vmax.xlane.f32.xlu0 %v1675_v52  ;;  %v13255_v52 = vld [vmem:[%s15503_s3 + $0x78] sm:$0xff]  }
 0x2c3   : > { %v1677_v3 = vpop.xlane.xlu0 %1676 }
 0x2c4   : > { %v1678_v4 = vsub.f32 %v1673_v50, %v1677_v3  ;;  %v13253_v50 = vld [vmem:[%s15503_s3 + $0x68] sm:$0xff]  }
 0x2c6   : > { %v1679_v5 = vmul.f32 1.442695, %v1678_v4 }
 0x2c8   : > { %13686 = vpow2.f32 %v1679_v5 }
 0x2d2   : > { %v13687_v6 = vpop.eup %13686 }
 0x2d3   : > { %v1681_v7 = vsel %vm1674_vm3, %v13687_v6, 0.0 }
 0x2d4   : > { %1682 = vadd.xlane.f32.xlu0 %v1681_v7 }
 0x361   : > { %v1683_v13 = vpop.xlane.xlu0 %1682 }
 0x362   : > { %13688 = vrcp.f32 %v1683_v13 }
 0x36c   : > { %v13689_v14 = vpop.eup %13688 }
 0x36d   : > { %v1685_v16 = vmul.f32 %v13689_v14, %v13687_v6  ;;  %v13257_v14 = vld [vmem:[%s13868_s25 + $0x80] sm:$0xff]  }
 0x36f   : > { %12085 = vmatmul.mubr.msk.f32.vlgmr.msra.gmra.mrb[6].mxu1 %vm1674_vm3, %v1685_v16  ;;  %v13258_v16 = vld [vmem:[%s13868_s25 + $0x88] sm:$0xff]  }
 0x370   : > { %12088 = vmatpush3.bf16.msra.mxu1 %v13240_v15  ;;  %12103 = vmatprep.mubr.msk.bf16.mxu1 %vm13824_vm0, %v15440_v2 }
 0x371   : > { %12089 = vmatprep.subr.bf16.mxu1 %v15440_v2 }
 0x374   : > { %12090 = vmatpush3.bf16.msra.mxu1 %v13241_v17  ;;  %v13259_v17 = vld [vmem:[%s13868_s25 + $0x90] sm:$0xff]  }
 0x375   : > { %12091 = vmatprep.subr.bf16.mxu1 %v15440_v2 }
 0x378   : > { %12092 = vmatpush3.bf16.msra.mxu1 %v13242_v18  ;;  %v13260_v18 = vld [vmem:[%s13868_s25 + $0x98] sm:$0xff]  }
 0x379   : > { %12093 = vmatprep.subr.bf16.mxu1 %v15440_v2 }
 0x37c   : > { %12094 = vmatpush3.bf16.msra.mxu1 %v13243_v19  ;;  %v13261_v19 = vld [vmem:[%s13868_s25 + $0xa0] sm:$0xff]  }
 0x37d   : > { %12095 = vmatprep.subr.bf16.mxu1 %v15440_v2 }
 0x380   : > { %12096 = vmatpush3.bf16.msra.mxu1 %v13244_v20  ;;  %v13262_v20 = vld [vmem:[%s13868_s25 + $0xa8] sm:$0xff]  }
 0x381   : > { %12097 = vmatprep.subr.bf16.mxu1 %v15440_v2 }
 0x384   : > { %12098 = vmatpush3.bf16.msra.mxu1 %v13245_v21  ;;  %v13263_v21 = vld [vmem:[%s13868_s25 + $0xb0] sm:$0xff]  }
 0x385   : > { %12099 = vmatprep.subr.bf16.mxu1 %v15440_v2 }
 0x388   : > { %12100 = vmatpush3.bf16.msra.mxu1 %v13246_v25  ;;  %v13265_v25 = vld [vmem:[%s13868_s25 + $0xb8] sm:$0xff]  }
 0x389   : > { %12101 = vmatprep.subr.bf16.mxu1 %v15440_v2 }
 0x38c   : > { %12102 = vmatpush3.bf16.msra.mxu1 %v13247_v26 }
 0x38d   : > { %12127 = vmatprep.subr.bf16.mxu1 %v13248_v45 }
 0x38f   : > { %12104 = vmatmul.mubr.bf16.vlgmr.msra.gmra.mrb[8].mxu1 %v14087_v23 }
 0x390   : > { %12143 = vmatprep.mubr.bf16.mxu1 %v14066_v12  ;;  %12128 = vmatpush3.bf16.msra.mxu1 %v13248_v45 }
 0x391   : > { %12129 = vmatprep.subr.bf16.mxu1 %v13249_v46 }
 0x394   : > { %12130 = vmatpush3.bf16.msra.mxu1 %v13249_v46 }
 0x395   : > { %12131 = vmatprep.subr.bf16.mxu1 %v13250_v47 }
 0x398   : > { %12132 = vmatpush3.bf16.msra.mxu1 %v13250_v47 }
 0x399   : > { %12133 = vmatprep.subr.bf16.mxu1 %v13251_v48 }
 0x39c   : > { %12134 = vmatpush3.bf16.msra.mxu1 %v13251_v48 }
 0x39d   : > { %12135 = vmatprep.subr.bf16.mxu1 %v13252_v49 }
 0x3a0   : > { %12136 = vmatpush3.bf16.msra.mxu1 %v13252_v49 }
 0x3a1   : > { %12137 = vmatprep.subr.bf16.mxu1 %v13253_v50 }
 0x3a4   : > { %12138 = vmatpush3.bf16.msra.mxu1 %v13253_v50 }
 0x3a5   : > { %12139 = vmatprep.subr.bf16.mxu1 %v13254_v51 }
 0x3a8   : > { %12140 = vmatpush3.bf16.msra.mxu1 %v13254_v51 }
 0x3a9   : > { %12141 = vmatprep.subr.bf16.mxu1 %v13255_v52 }
 0x3ac   : > { %12142 = vmatpush3.bf16.msra.mxu1 %v13255_v52 }
 0x3ad   : > { %13085 = vmatprep.subr.bf16.mxu1 %v15437_v24 }
 0x3af   : > { %12144 = vmatmul.mubr.bf16.vlgmr.msra.gmra.mrb[12].mxu1 %v14084_v22 }
 0x3b0   : > { %12162 = vmatprep.mubr.msk.f32.mxu1 %vm13824_vm0, %v15440_v2 }
 0x442   : > { %v14165_v37 = vpop.f32.mrb[6].mxu1 }
 0x443   : > { %v12086_v38 = vpop.f32.mrb[7].mxu1  ;;  %v1763_v15 = vpack.c.bf16 %v14165_v37, %v14165_v37  ;;  %v13269_v37 = vld [vmem:[%s13858_s17 + $0x98] sm:$0xff]  }
 0x444   : > { %v13270_v38 = vld [vmem:[%s13858_s17 + $0xa0] sm:$0xff]  }
 0x462   : > { %v1873_v40 = vpop.f32.mrb[8].mxu1 }
 0x463   : > { %v1874_v41 = vadd.f32 %v10416_v39, %v1873_v40  ;;  %v12105_v42 = vpop.f32.mrb[9].mxu1  ;;  %v13271_v39 = vld [vmem:[%s13858_s17 + $0xa8] sm:$0xff]   ;;  %v13272_v40 = vld [vmem:[%s13858_s17 + $0xb0] sm:$0xff]  }
 0x464   : > { %v1876_v43 = vpop.f32.mrb[10].mxu1 }
 0x465   : > { %v12106_v44 = vpop.f32.mrb[11].mxu1  ;;  %12154 = vmatmul.mubr.msk.f32.vlgmr.msra.gmra.mrb[12].mxu0 %vm1590_vm1, %v1874_v41  ;;  %v13273_v41 = vld [vmem:[%s13858_s17 + $0xb8] sm:$0xff]   ;;  %v10532_v43 = vld [vmem:[%s13873_s29 + $0x2] ss:$0 sm:$0xff] }
 0x466   : > { %12167 = vmatprep.mubr.msk.bf16.mxu0 %vm13824_vm0, %v15440_v2  ;;  %12166 = vmatpush3.bf16.msra.mxu0 %v13264_v8 }
 0x467   : > { %12177 = vmatprep.subr.bf16.mxu0 %v15440_v2 }
 0x482   : > { %v12145_v58 = vpop.f32.mrb[12].mxu1 }
 0x483   : > { %v2107_v59 = vpop.f32.mrb[13].mxu1  ;;  %v2116_v1 = vadd.f32 %v12145_v58, %v10468_v57 }
 0x484   : > { %v2108_v60 = vadd.f32 %v10468_v57, %v2107_v59  ;;  %v12146_v61 = vpop.f32.mrb[14].mxu1 }
 0x485   : > { %v2110_v62 = vpop.f32.mrb[15].mxu1 }
 0x486   : > { %v2111_v63 = vadd.f32 %v10468_v57, %v2110_v62  ;;  %v13274_v62 = vld [vmem:[%s15503_s3 + $0x80] sm:$0xff]  }
 0x488   : > { %v13086_v0 = vpack.c.bf16 %v2111_v63, %v2108_v60  ;;  %v13275_v63 = vld [vmem:[%s15503_s3 + $0x88] sm:$0xff]  }
 0x48a   : > { %13087 = vmatpush3.bf16.msra.mxu1 %v13086_v0  ;;  %v13276_v0 = vld [vmem:[%s15503_s3 + $0x90] sm:$0xff]  }
 0x48b   : > { %12160 = vmatprep.subr.mxu1 %v15440_v2 }
 0x48e   : > { %12161 = vmatpush3.msk.msra.mxu1 %vm1689_vm4, %v2116_v1  ;;  %v13277_v1 = vld [vmem:[%s15503_s3 + $0x98] sm:$0xff]  }
 0x48f   : > { %12171 = vmatprep.subr.bf16.mxu1 %v15440_v2 }
 0x538   : > { %v2199_v53 = vpop.f32.mrb[12].mxu0 }
 0x539   : > { %v2203_v54 = vmul.f32 0.25, %v2199_v53  ;;  %v12155_v55 = vpop.f32.mrb[13].mxu0 }
 0x53b   : > { %v2204_v56 = vsel %vm1674_vm3, %v2203_v54, -inf }
 0x53c   : > { %2205 = vmax.xlane.f32.xlu1 %v2204_v56  ;;  %v10506_v56 = vld [vmem:[%s13863_s21 + $0x2] ss:$0 sm:$0xff] }
 0x5c9   : > { %v2206_v3 = vpop.xlane.xlu1 %2205 }
 0x5ca   : > { %v2207_v4 = vsub.f32 %v2203_v54, %v2206_v3  ;;  %v13278_v3 = vld [vmem:[%s15503_s3 + $0xa0] sm:$0xff]  }
 0x5cc   : > { %v2208_v5 = vmul.f32 1.442695, %v2207_v4  ;;  %v13279_v4 = vld [vmem:[%s15503_s3 + $0xa8] sm:$0xff]  }
 0x5ce   : > { %13690 = vpow2.f32 %v2208_v5  ;;  %v13280_v5 = vld [vmem:[%s15503_s3 + $0xb0] sm:$0xff]  }
 0x5d8   : > { %v13691_v6 = vpop.eup %13690 }
 0x5d9   : > { %v2210_v7 = vsel %vm1674_vm3, %v13691_v6, 0.0 }
 0x5da   : > { %2211 = vadd.xlane.f32.xlu1 %v2210_v7 }
 0x667   : > { %v2212_v9 = vpop.xlane.xlu1 %2211 }
 0x668   : > { %13692 = vrcp.f32 %v2212_v9 }
 0x672   : > { %v13693_v10 = vpop.eup %13692 }
 0x673   : > { %v2214_v13 = vmul.f32 %v13693_v10, %v13691_v6  ;;  %v13281_v6 = vld [vmem:[%s15503_s3 + $0xb8] sm:$0xff]  }
 0x675   : > { %12163 = vmatmul.mubr.msk.f32.vlgmr.msra.gmra.mrb[16].mxu1 %vm1674_vm3, %v2214_v13 }
 0x676   : > { %12172 = vmatpush3.bf16.msra.mxu1 %v13256_v11  ;;  %12173 = vmatprep.mubr.msk.bf16.mxu1 %vm13824_vm0, %v15440_v2  ;;  %v10558_v11 = vld [vmem:[%s13883_s8 + $0x2] ss:$0 sm:$0xff] }
 0x677   : > { %12197 = vmatprep.subr.bf16.mxu1 %v13257_v14 }
 0x679   : > { %12174 = vmatmul.mubr.msk.bf16.vlgmr.msra.gmra.mrb[20].mxu1 %vm1590_vm1, %v1763_v15 }
 0x67a   : > { %12198 = vmatpush3.bf16.msra.mxu1 %v13257_v14  ;;  %12213 = vmatprep.mubr.bf16.mxu1 %v14066_v12 }
 0x67b   : > { %12199 = vmatprep.subr.bf16.mxu1 %v13258_v16 }
 0x67e   : > { %12200 = vmatpush3.bf16.msra.mxu1 %v13258_v16 }
 0x67f   : > { %12201 = vmatprep.subr.bf16.mxu1 %v13259_v17 }
 0x682   : > { %12202 = vmatpush3.bf16.msra.mxu1 %v13259_v17 }
 0x683   : > { %12203 = vmatprep.subr.bf16.mxu1 %v13260_v18 }
 0x686   : > { %12204 = vmatpush3.bf16.msra.mxu1 %v13260_v18 }
 0x687   : > { %12205 = vmatprep.subr.bf16.mxu1 %v13261_v19 }
 0x68a   : > { %12206 = vmatpush3.bf16.msra.mxu1 %v13261_v19 }
 0x68b   : > { %12207 = vmatprep.subr.bf16.mxu1 %v13262_v20 }
 0x68e   : > { %12208 = vmatpush3.bf16.msra.mxu1 %v13262_v20 }
 0x68f   : > { %12209 = vmatprep.subr.bf16.mxu1 %v13263_v21 }
 0x692   : > { %12210 = vmatpush3.bf16.msra.mxu1 %v13263_v21 }
 0x693   : > { %12211 = vmatprep.subr.bf16.mxu1 %v13265_v25 }
 0x696   : > { %12212 = vmatpush3.bf16.msra.mxu1 %v13265_v25 }
 0x697   : > { %13088 = vmatprep.subr.bf16.mxu1 %v15437_v24 }
 0x699   : > { %12214 = vmatmul.mubr.bf16.vlgmr.msra.gmra.mrb[24].mxu1 %v14084_v22 }
 0x69a   : > { %12243 = vmatprep.mubr.msk.f32.mxu1 %vm13824_vm0, %v15440_v2 }
 0x748   : > { %v2287_v26 = vpop.f32.mrb[16].mxu1 }
 0x749   : > { %v2291_v28 = vpack.c.bf16 %v2287_v26, %v2287_v26  ;;  %v12164_v29 = vpop.f32.mrb[17].mxu1 }
 0x74a   : > { %v13282_v29 = vld [vmem:[%s13868_s25 + $0xc0] sm:$0xff]  }
 0x74b   : > { %12168 = vmatmul.mubr.msk.bf16.vlgmr.msra.gmra.mrb[16].mxu0 %vm1590_vm1, %v2291_v28 }
 0x74c   : > { %12178 = vmatpush3.bf16.msra.mxu0 %v13266_v27  ;;  %v2387_v31 = vpop.f32.mrb[20].mxu1  ;;  %12193 = vmatprep.mubr.msk.bf16.mxu0 %vm13824_vm0, %v15440_v2 }
 0x74d   : > { %v12175_v33 = vpop.f32.mrb[21].mxu1  ;;  %12179 = vmatprep.subr.bf16.mxu0 %v15440_v2 }
 0x74e   : > { %v2390_v34 = vpop.f32.mrb[22].mxu1  ;;  %v13285_v33 = vld [vmem:[%s13868_s25 + $0xd8] sm:$0xff]  }
 0x74f   : > { %v12176_v35 = vpop.f32.mrb[23].mxu1  ;;  %v13286_v34 = vld [vmem:[%s13868_s25 + $0xe0] sm:$0xff]  }
 0x750   : > { %12180 = vmatpush3.bf16.msra.mxu0 %v13267_v32  ;;  %v13284_v32 = vld [vmem:[%s13868_s25 + $0xd0] sm:$0xff]   ;;  %v13287_v35 = vld [vmem:[%s13868_s25 + $0xe8] sm:$0xff]  }
 0x751   : > { %12181 = vmatprep.subr.bf16.mxu0 %v15440_v2 }
 0x754   : > { %12182 = vmatpush3.bf16.msra.mxu0 %v13268_v36  ;;  %v13288_v36 = vld [vmem:[%s13868_s25 + $0xf0] sm:$0xff]  }
 0x755   : > { %12183 = vmatprep.subr.bf16.mxu0 %v15440_v2 }
 0x758   : > { %12184 = vmatpush3.bf16.msra.mxu0 %v13269_v37 }
 0x759   : > { %12185 = vmatprep.subr.bf16.mxu0 %v15440_v2 }
 0x75c   : > { %12186 = vmatpush3.bf16.msra.mxu0 %v13270_v38 }
 0x75d   : > { %12187 = vmatprep.subr.bf16.mxu0 %v15440_v2 }
 0x760   : > { %12188 = vmatpush3.bf16.msra.mxu0 %v13271_v39  ;;  %v13289_v39 = vld [vmem:[%s13888_s14 + $0x10] sm:$0xff]  }
 0x761   : > { %12189 = vmatprep.subr.bf16.mxu0 %v15440_v2 }
 0x764   : > { %12190 = vmatpush3.bf16.msra.mxu0 %v13272_v40 }
 0x765   : > { %12191 = vmatprep.subr.bf16.mxu0 %v15440_v2 }
 0x768   : > { %12192 = vmatpush3.bf16.msra.mxu0 %v13273_v41  ;;  %v13290_v41 = vld [vmem:[%s13868_s25 + $0xf8] sm:$0xff]  }
 0x769   : > { %12217 = vmatprep.subr.bf16.mxu0 %v13274_v62 }
 0x76b   : > { %12194 = vmatmul.mubr.bf16.vlgmr.msra.gmra.mrb[20].mxu0 %v14087_v23 }
 0x76c   : > { %12233 = vmatprep.mubr.bf16.mxu0 %v14066_v12  ;;  %v12215_v42 = vpop.f32.mrb[24].mxu1  ;;  %12218 = vmatpush3.bf16.msra.mxu0 %v13274_v62 }
 0x76d   : > { %v2613_v44 = vpop.f32.mrb[25].mxu1  ;;  %v2622_v50 = vadd.f32 %v12215_v42, %v10532_v43  ;;  %12219 = vmatprep.subr.bf16.mxu0 %v13275_v63 }
 0x76e   : > { %v2614_v45 = vadd.f32 %v10532_v43, %v2613_v44  ;;  %v12216_v46 = vpop.f32.mrb[26].mxu1 }
 0x76f   : > { %v2616_v47 = vpop.f32.mrb[27].mxu1  ;;  %v13292_v46 = vld [vmem:[%s13858_s17 + $0xc8] sm:$0xff]  }
 0x770   : > { %v2617_v48 = vadd.f32 %v10532_v43, %v2616_v47  ;;  %12220 = vmatpush3.bf16.msra.mxu0 %v13275_v63  ;;  %v13291_v43 = vld [vmem:[%s13858_s17 + $0xc0] sm:$0xff]   ;;  %v13293_v47 = vld [vmem:[%s13858_s17 + $0xd0] sm:$0xff]  }
 0x771   : > { %12221 = vmatprep.subr.bf16.mxu0 %v13276_v0 }
 0x772   : > { %v13089_v49 = vpack.c.bf16 %v2617_v48, %v2614_v45  ;;  %v13294_v48 = vld [vmem:[%s13858_s17 + $0xd8] sm:$0xff]  }
 0x774   : > { %13091 = vmatpush3.bf16.xpose.msk.msra.mxu1 %vm14098_vm2, %v13089_v49  ;;  %12222 = vmatpush3.bf16.msra.mxu0 %v13276_v0  ;;  %v13295_v49 = vld [vmem:[%s13858_s17 + $0xe0] sm:$0xff]  }
 0x775   : > { %12241 = vmatprep.subr.mxu1 %v15440_v2  ;;  %12223 = vmatprep.subr.bf16.mxu0 %v13277_v1 }
 0x778   : > { %12224 = vmatpush3.bf16.msra.mxu0 %v13277_v1 }
 0x779   : > { %12225 = vmatprep.subr.bf16.mxu0 %v13278_v3 }
 0x77c   : > { %12242 = vmatpush3.xpose.msk.msra.mxu1 %vm1590_vm1, %v2622_v50  ;;  %12226 = vmatpush3.bf16.msra.mxu0 %v13278_v3  ;;  %v13296_v50 = vld [vmem:[%s13858_s17 + $0xe8] sm:$0xff]  }
 0x77d   : > { %13092 = vmatprep.subr.bf16.mxu1 %v15437_v24  ;;  %12227 = vmatprep.subr.bf16.mxu0 %v13279_v4 }
 0x780   : > { %12228 = vmatpush3.bf16.msra.mxu0 %v13279_v4 }
 0x781   : > { %12229 = vmatprep.subr.bf16.mxu0 %v13280_v5 }
 0x784   : > { %12230 = vmatpush3.bf16.msra.mxu0 %v13280_v5  ;;  %v10594_v5 = vld [vmem:[%s13863_s21 + $0x3] ss:$0 sm:$0xff] }
 0x785   : > { %12231 = vmatprep.subr.bf16.mxu0 %v13281_v6 }
 0x788   : > { %12232 = vmatpush3.bf16.msra.mxu0 %v13281_v6 }
 0x789   : > { %12281 = vmatprep.subr.bf16.mxu0 %v13282_v29 }
 0x78b   : > { %12234 = vmatmul.mubr.bf16.vlgmr.msra.gmra.mrb[24].mxu0 %v14084_v22 }
 0x78c   : > { %12297 = vmatprep.mubr.bf16.mxu0 %v14066_v12  ;;  %12282 = vmatpush3.bf16.msra.mxu0 %v13282_v29 }
 0x81e   : > { %v2338_v51 = vpop.f32.mrb[16].mxu0 }
 0x81f   : > { %v14237_v52 = vadd.f32 %v2387_v31, %v2338_v51  ;;  %v12169_v53 = vpop.f32.mrb[17].mxu0  ;;  %v13283_v31 = vld [vmem:[%s13868_s25 + $0xc8] sm:$0xff]   ;;  %v13297_v51 = vld [vmem:[%s13858_s17 + $0xf0] sm:$0xff]  }
 0x820   : > { %v2341_v54 = vpop.f32.mrb[18].mxu0  ;;  %12283 = vmatprep.subr.bf16.mxu0 %v13283_v31  ;;  %v13298_v53 = vld [vmem:[%s13858_s17 + $0xf8] sm:$0xff]  }
 0x821   : > { %v12170_v55 = vpop.f32.mrb[19].mxu0  ;;  %12284 = vmatpush3.bf16.msra.mxu0 %v13283_v31 }
 0x822   : > { %12285 = vmatprep.subr.bf16.mxu0 %v13284_v32  ;;  %v10620_v55 = vld [vmem:[%s13873_s29 + $0x3] ss:$0 sm:$0xff] }
 0x825   : > { %12286 = vmatpush3.bf16.msra.mxu0 %v13284_v32 }
 0x826   : > { %12287 = vmatprep.subr.bf16.mxu0 %v13285_v33 }
 0x829   : > { %12288 = vmatpush3.bf16.msra.mxu0 %v13285_v33 }
 0x82a   : > { %12289 = vmatprep.subr.bf16.mxu0 %v13286_v34 }
 0x82d   : > { %12290 = vmatpush3.bf16.msra.mxu0 %v13286_v34 }
 0x82e   : > { %12291 = vmatprep.subr.bf16.mxu0 %v13287_v35 }
 0x831   : > { %12292 = vmatpush3.bf16.msra.mxu0 %v13287_v35 }
 0x832   : > { %12293 = vmatprep.subr.bf16.mxu0 %v13288_v36 }
 0x835   : > { %12294 = vmatpush3.bf16.msra.mxu0 %v13288_v36 }
 0x836   : > { %12295 = vmatprep.subr.bf16.mxu0 %v13290_v41 }
 0x839   : > { %12296 = vmatpush3.bf16.msra.mxu0 %v13290_v41  ;;  %v13307_v41 = vld [vmem:[%s13868_s25 + $0x100] sm:$0xff]  }
 0x83a   : > { %13095 = vmatprep.subr.bf16.mxu0 %v15437_v24 }
 0x83c   : > { %12298 = vmatmul.mubr.bf16.vlgmr.msra.gmra.mrb[28].mxu0 %v14084_v22 }
 0x83d   : > { %12327 = vmatprep.mubr.msk.f32.mxu0 %vm13824_vm0, %v15440_v2 }
 0x83e   : > { %v2500_v57 = vpop.f32.mrb[20].mxu0 }
 0x83f   : > { %v2501_v58 = vadd.f32 %v10506_v56, %v2500_v57  ;;  %v12195_v59 = vpop.f32.mrb[21].mxu0 }
 0x840   : > { %v2503_v60 = vpop.f32.mrb[22].mxu0 }
 0x841   : > { %v12196_v61 = vpop.f32.mrb[23].mxu0  ;;  %12244 = vmatmul.mubr.msk.f32.vlgmr.msra.gmra.mrb[18].mxu1 %vm1590_vm1, %v2501_v58 }
 0x842   : > { %12252 = vmatprep.mubr.msk.f32.mxu1 %vm13824_vm0, %v15440_v2 }
 0x85e   : > { %v12235_v13 = vpop.f32.mrb[24].mxu0 }
 0x85f   : > { %v2734_v14 = vpop.f32.mrb[25].mxu0  ;;  %v2743_v20 = vadd.f32 %v12235_v13, %v10558_v11  ;;  %v13301_v13 = vld [vmem:[%s15503_s3 + $0xd0] sm:$0xff]  }
 0x860   : > { %v2735_v15 = vadd.f32 %v10558_v11, %v2734_v14  ;;  %v12236_v16 = vpop.f32.mrb[26].mxu0  ;;  %v13302_v14 = vld [vmem:[%s15503_s3 + $0xd8] sm:$0xff]  }
 0x861   : > { %v2737_v17 = vpop.f32.mrb[27].mxu0  ;;  %v13304_v16 = vld [vmem:[%s15503_s3 + $0xe8] sm:$0xff]  }
 0x862   : > { %v2738_v18 = vadd.f32 %v10558_v11, %v2737_v17  ;;  %v13300_v11 = vld [vmem:[%s15503_s3 + $0xc8] sm:$0xff]   ;;  %v13305_v17 = vld [vmem:[%s15503_s3 + $0xf0] sm:$0xff]  }
 0x864   : > { %v13093_v19 = vpack.c.bf16 %v2738_v18, %v2735_v15  ;;  %v13303_v15 = vld [vmem:[%s15503_s3 + $0xe0] sm:$0xff]   ;;  %v13306_v18 = vld [vmem:[%s15503_s3 + $0xf8] sm:$0xff]  }
 0x866   : > { %13094 = vmatpush3.bf16.msra.mxu1 %v13093_v19 }
 0x867   : > { %12250 = vmatprep.subr.mxu1 %v15440_v2 }
 0x86a   : > { %12251 = vmatpush3.msk.msra.mxu1 %vm1689_vm4, %v2743_v20 }
 0x86b   : > { %12255 = vmatprep.subr.bf16.mxu1 %v15440_v2 }
 0x90f   : > { %v12299_v54 = vpop.f32.mrb[28].mxu0 }
 0x910   : > { %v3192_v56 = vpop.f32.mrb[29].mxu0  ;;  %v3201_v62 = vadd.f32 %v12299_v54, %v10620_v55 }
 0x911   : > { %v3193_v57 = vadd.f32 %v10620_v55, %v3192_v56  ;;  %v12300_v58 = vpop.f32.mrb[30].mxu0 }
 0x912   : > { %v3195_v59 = vpop.f32.mrb[31].mxu0  ;;  %v13317_v58 = vld [vmem:[%s13858_s17 + $0x108] sm:$0xff]  }
 0x913   : > { %v3196_v60 = vadd.f32 %v10620_v55, %v3195_v59  ;;  %v13316_v55 = vld [vmem:[%s13858_s17 + $0x100] sm:$0xff]   ;;  %v13318_v59 = vld [vmem:[%s13858_s17 + $0x110] sm:$0xff]  }
 0x914   : > { %v2826_v7 = vpop.f32.mrb[18].mxu1 }
 0x915   : > { %v2830_v8 = vmul.f32 0.25, %v2826_v7  ;;  %v12245_v9 = vpop.f32.mrb[19].mxu1  ;;  %v13096_v61 = vpack.c.bf16 %v3196_v60, %v3193_v57  ;;  %v13319_v60 = vld [vmem:[%s13858_s17 + $0x118] sm:$0xff]  }
 0x917   : > { %v2831_v10 = vsel %vm1674_vm3, %v2830_v8, -inf  ;;  %13098 = vmatpush3.bf16.xpose.msk.msra.mxu0 %vm14098_vm2, %v13096_v61  ;;  %v13320_v61 = vld [vmem:[%s13858_s17 + $0x120] sm:$0xff]  }
 0x918   : > { %2832 = vmax.xlane.f32.xlu0 %v2831_v10  ;;  %12325 = vmatprep.subr.mxu0 %v15440_v2 }
 0x91f   : > { %12326 = vmatpush3.xpose.msk.msra.mxu0 %vm1590_vm1, %v3201_v62  ;;  %v13321_v62 = vld [vmem:[%s13858_s17 + $0x128] sm:$0xff]  }
 0x920   : > { %13099 = vmatprep.subr.bf16.mxu0 %v15437_v24 }
 0x9a5   : > { %v2833_v21 = vpop.xlane.xlu0 %2832 }
 0x9a6   : > { %v2834_v25 = vsub.f32 %v2830_v8, %v2833_v21 }
 0x9a8   : > { %v2835_v26 = vmul.f32 1.442695, %v2834_v25 }
 0x9aa   : > { %13694 = vpow2.f32 %v2835_v26  ;;  %v10646_v26 = vld [vmem:[%s13883_s8 + $0x3] ss:$0 sm:$0xff] }
 0x9b4   : > { %v13695_v27 = vpop.eup %13694 }
 0x9b5   : > { %v2837_v28 = vsel %vm1674_vm3, %v13695_v27, 0.0 }
 0x9b6   : > { %2838 = vadd.xlane.f32.xlu1 %v2837_v28 }
 0xa43   : > { %v2839_v37 = vpop.xlane.xlu1 %2838 }
 0xa44   : > { %13696 = vrcp.f32 %v2839_v37 }
 0xa4e   : > { %v13697_v38 = vpop.eup %13696 }
 0xa4f   : > { %v2841_v40 = vmul.f32 %v13697_v38, %v13695_v27 }
 0xa51   : > { %12253 = vmatmul.mubr.msk.f32.vlgmr.msra.gmra.mrb[28].mxu1 %vm1674_vm3, %v2841_v40 }
 0xa52   : > { %12256 = vmatpush3.bf16.msra.mxu1 %v13289_v39  ;;  %12257 = vmatprep.mubr.msk.bf16.mxu1 %vm13824_vm0, %v15440_v2 }
 0xa53   : > { %12261 = vmatprep.subr.bf16.mxu1 %v15440_v2 }
 0xb24   : > { %v2914_v42 = vpop.f32.mrb[28].mxu1 }
 0xb25   : > { %v2918_v44 = vpack.c.bf16 %v2914_v42, %v2914_v42  ;;  %v12254_v45 = vpop.f32.mrb[29].mxu1  ;;  %v13308_v42 = vld [vmem:[%s13868_s25 + $0x108] sm:$0xff]  }
 0xb26   : > { %v13311_v45 = vld [vmem:[%s13868_s25 + $0x120] sm:$0xff]  }
 0xb27   : > { %12258 = vmatmul.mubr.msk.bf16.vlgmr.msra.gmra.mrb[32].mxu1 %vm1590_vm1, %v2918_v44  ;;  %v13310_v44 = vld [vmem:[%s13868_s25 + $0x118] sm:$0xff]  }
 0xb28   : > { %12262 = vmatpush3.bf16.msra.mxu1 %v13291_v43  ;;  %12277 = vmatprep.mubr.msk.bf16.mxu1 %vm13824_vm0, %v15440_v2  ;;  %v13309_v43 = vld [vmem:[%s13868_s25 + $0x110] sm:$0xff]  }
 0xb29   : > { %12263 = vmatprep.subr.bf16.mxu1 %v15440_v2 }
 0xb2c   : > { %12264 = vmatpush3.bf16.msra.mxu1 %v13292_v46  ;;  %v13312_v46 = vld [vmem:[%s13868_s25 + $0x128] sm:$0xff]  }
 0xb2d   : > { %12265 = vmatprep.subr.bf16.mxu1 %v15440_v2 }
 0xb30   : > { %12266 = vmatpush3.bf16.msra.mxu1 %v13293_v47  ;;  %v13313_v47 = vld [vmem:[%s13868_s25 + $0x130] sm:$0xff]  }
 0xb31   : > { %12267 = vmatprep.subr.bf16.mxu1 %v15440_v2 }
 0xb34   : > { %12268 = vmatpush3.bf16.msra.mxu1 %v13294_v48 }
 0xb35   : > { %12269 = vmatprep.subr.bf16.mxu1 %v15440_v2 }
 0xb38   : > { %12270 = vmatpush3.bf16.msra.mxu1 %v13295_v49 }
 0xb39   : > { %12271 = vmatprep.subr.bf16.mxu1 %v15440_v2 }
 0xb3c   : > { %12272 = vmatpush3.bf16.msra.mxu1 %v13296_v50  ;;  %v13314_v50 = vld [vmem:[%s13888_s14 + $0x18] sm:$0xff]  }
 0xb3d   : > { %12273 = vmatprep.subr.bf16.mxu1 %v15440_v2 }
 0xb40   : > { %12274 = vmatpush3.bf16.msra.mxu1 %v13297_v51 }
 0xb41   : > { %12275 = vmatprep.subr.bf16.mxu1 %v15440_v2 }
 0xb44   : > { %12276 = vmatpush3.bf16.msra.mxu1 %v13298_v53  ;;  %v13315_v53 = vld [vmem:[%s13868_s25 + $0x138] sm:$0xff]  }
 0xb47   : > { %12278 = vmatmul.mubr.bf16.vlgmr.msra.gmra.mrb[36].mxu1 %v14087_v23 }
 0xb48   : > { %12317 = vmatprep.mubr.bf16.mxu1 %v14066_v12 }
 0xbfa   : > { %v2965_v63 = vpop.f32.mrb[32].mxu1 }
 0xbfb   : > { %v14303_v0 = vadd.f32 %v2965_v63, %v14237_v52  ;;  %v12259_v1 = vpop.f32.mrb[33].mxu1  ;;  %v13299_v52 = vld [vmem:[%s15503_s3 + $0xc0] sm:$0xff]   ;;  %v13322_v63 = vld [vmem:[%s13858_s17 + $0x130] sm:$0xff]  }
 0xbfc   : > { %v2968_v3 = vpop.f32.mrb[34].mxu1  ;;  %12301 = vmatprep.subr.bf16.mxu1 %v13299_v52  ;;  %v13323_v1 = vld [vmem:[%s13858_s17 + $0x138] sm:$0xff]  }
 0xbfd   : > { %v12260_v4 = vpop.f32.mrb[35].mxu1  ;;  %12302 = vmatpush3.bf16.msra.mxu1 %v13299_v52 }
 0xbfe   : > { %12303 = vmatprep.subr.bf16.mxu1 %v13300_v11  ;;  %v10708_v4 = vld [vmem:[%s13873_s29 + $0x4] ss:$0 sm:$0xff] }
 0xc01   : > { %12304 = vmatpush3.bf16.msra.mxu1 %v13300_v11 }
 0xc02   : > { %12305 = vmatprep.subr.bf16.mxu1 %v13301_v13 }
 0xc05   : > { %12306 = vmatpush3.bf16.msra.mxu1 %v13301_v13 }
 0xc06   : > { %12307 = vmatprep.subr.bf16.mxu1 %v13302_v14 }
 0xc09   : > { %12308 = vmatpush3.bf16.msra.mxu1 %v13302_v14 }
 0xc0a   : > { %12309 = vmatprep.subr.bf16.mxu1 %v13303_v15 }
 0xc0d   : > { %12310 = vmatpush3.bf16.msra.mxu1 %v13303_v15 }
 0xc0e   : > { %12311 = vmatprep.subr.bf16.mxu1 %v13304_v16 }
 0xc11   : > { %12312 = vmatpush3.bf16.msra.mxu1 %v13304_v16 }
 0xc12   : > { %12313 = vmatprep.subr.bf16.mxu1 %v13305_v17 }
 0xc15   : > { %12314 = vmatpush3.bf16.msra.mxu1 %v13305_v17  ;;  %v10682_v17 = vld [vmem:[%s13863_s21 + $0x4] ss:$0 sm:$0xff] }
 0xc16   : > { %12315 = vmatprep.subr.bf16.mxu1 %v13306_v18 }
 0xc19   : > { %12316 = vmatpush3.bf16.msra.mxu1 %v13306_v18 }
 0xc1a   : > { %v3079_v6 = vpop.f32.mrb[36].mxu1  ;;  %12365 = vmatprep.subr.bf16.mxu1 %v13307_v41 }
 0xc1b   : > { %v3080_v7 = vadd.f32 %v10594_v5, %v3079_v6  ;;  %v12279_v8 = vpop.f32.mrb[37].mxu1 }
 0xc1c   : > { %v3082_v9 = vpop.f32.mrb[38].mxu1  ;;  %12318 = vmatmul.mubr.bf16.vlgmr.msra.gmra.mrb[40].mxu1 %v14084_v22 }
 0xc1d   : > { %v12280_v10 = vpop.f32.mrb[39].mxu1  ;;  %12328 = vmatmul.mubr.msk.f32.vlgmr.msra.gmra.mrb[14].mxu0 %vm1590_vm1, %v3080_v7  ;;  %12381 = vmatprep.mubr.bf16.mxu1 %v14066_v12 }
 0xc1e   : > { %12336 = vmatprep.mubr.msk.f32.mxu0 %vm13824_vm0, %v15440_v2  ;;  %12366 = vmatpush3.bf16.msra.mxu1 %v13307_v41 }
 0xc1f   : > { %12367 = vmatprep.subr.bf16.mxu1 %v13308_v42 }
 0xc22   : > { %12368 = vmatpush3.bf16.msra.mxu1 %v13308_v42 }
 0xc23   : > { %12369 = vmatprep.subr.bf16.mxu1 %v13309_v43 }
 0xc26   : > { %12370 = vmatpush3.bf16.msra.mxu1 %v13309_v43 }
 0xc27   : > { %12371 = vmatprep.subr.bf16.mxu1 %v13310_v44 }
 0xc2a   : > { %12372 = vmatpush3.bf16.msra.mxu1 %v13310_v44 }
 0xc2b   : > { %12373 = vmatprep.subr.bf16.mxu1 %v13311_v45 }
 0xc2e   : > { %12374 = vmatpush3.bf16.msra.mxu1 %v13311_v45 }
 0xc2f   : > { %12375 = vmatprep.subr.bf16.mxu1 %v13312_v46 }
 0xc32   : > { %12376 = vmatpush3.bf16.msra.mxu1 %v13312_v46 }
 0xc33   : > { %12377 = vmatprep.subr.bf16.mxu1 %v13313_v47 }
 0xc36   : > { %12378 = vmatpush3.bf16.msra.mxu1 %v13313_v47 }
 0xc37   : > { %12379 = vmatprep.subr.bf16.mxu1 %v13315_v53 }
 0xc3a   : > { %12380 = vmatpush3.bf16.msra.mxu1 %v13315_v53  ;;  %v13332_v53 = vld [vmem:[%s13868_s25 + $0x140] sm:$0xff]  }
 0xc3b   : > { %13102 = vmatprep.subr.bf16.mxu1 %v15437_v24 }
 0xc3d   : > { %12382 = vmatmul.mubr.bf16.vlgmr.msra.gmra.mrb[44].mxu1 %v14084_v22 }
 0xc3e   : > { %12411 = vmatprep.mubr.msk.f32.mxu1 %vm13824_vm0, %v15440_v2 }
 0xcef   : > { %v12319_v27 = vpop.f32.mrb[40].mxu1 }
 0xcf0   : > { %v3405_v19 = vpop.f32.mrb[14].mxu0  ;;  %v3313_v28 = vpop.f32.mrb[41].mxu1  ;;  %v3322_v35 = vadd.f32 %v12319_v27, %v10646_v26  ;;  %v13326_v27 = vld [vmem:[%s15503_s3 + $0x110] sm:$0xff]  }
 0xcf1   : > { %v3409_v20 = vmul.f32 0.25, %v3405_v19  ;;  %v12329_v21 = vpop.f32.mrb[15].mxu0  ;;  %v3314_v29 = vadd.f32 %v10646_v26, %v3313_v28  ;;  %v12320_v31 = vpop.f32.mrb[42].mxu1  ;;  %v13327_v28 = vld [vmem:[%s15503_s3 + $0x118] sm:$0xff]  }
 0xcf2   : > { %v3316_v32 = vpop.f32.mrb[43].mxu1  ;;  %v13329_v31 = vld [vmem:[%s15503_s3 + $0x128] sm:$0xff]  }
 0xcf3   : > { %v3410_v25 = vsel %vm1674_vm3, %v3409_v20, -inf  ;;  %v3317_v33 = vadd.f32 %v10646_v26, %v3316_v32  ;;  %v13325_v26 = vld [vmem:[%s15503_s3 + $0x108] sm:$0xff]   ;;  %v13330_v32 = vld [vmem:[%s15503_s3 + $0x130] sm:$0xff]  }
 0xcf4   : > { %3411 = vmax.xlane.f32.xlu0 %v3410_v25 }
 0xcf5   : > { %v13100_v34 = vpack.c.bf16 %v3317_v33, %v3314_v29  ;;  %v13328_v29 = vld [vmem:[%s15503_s3 + $0x120] sm:$0xff]   ;;  %v13331_v33 = vld [vmem:[%s15503_s3 + $0x138] sm:$0xff]  }
 0xcf7   : > { %13101 = vmatpush3.bf16.msra.mxu0 %v13100_v34 }
 0xcf8   : > { %12334 = vmatprep.subr.mxu0 %v15440_v2 }
 0xcfb   : > { %12335 = vmatpush3.msk.msra.mxu0 %vm1689_vm4, %v3322_v35 }
 0xcfc   : > { %12339 = vmatprep.subr.bf16.mxu0 %v15440_v2 }
 0xd10   : > { %v12383_v3 = vpop.f32.mrb[44].mxu1 }
 0xd11   : > { %v3771_v5 = vpop.f32.mrb[45].mxu1  ;;  %v3780_v52 = vadd.f32 %v12383_v3, %v10708_v4 }
 0xd12   : > { %v3772_v6 = vadd.f32 %v10708_v4, %v3771_v5  ;;  %v12384_v7 = vpop.f32.mrb[46].mxu1 }
 0xd13   : > { %v3774_v8 = vpop.f32.mrb[47].mxu1  ;;  %v13342_v7 = vld [vmem:[%s13858_s17 + $0x148] sm:$0xff]  }
 0xd14   : > { %v3775_v9 = vadd.f32 %v10708_v4, %v3774_v8  ;;  %v13341_v4 = vld [vmem:[%s13858_s17 + $0x140] sm:$0xff]   ;;  %v13343_v8 = vld [vmem:[%s13858_s17 + $0x150] sm:$0xff]  }
 0xd16   : > { %v13103_v10 = vpack.c.bf16 %v3775_v9, %v3772_v6  ;;  %v13344_v9 = vld [vmem:[%s13858_s17 + $0x158] sm:$0xff]  }
 0xd18   : > { %13105 = vmatpush3.bf16.xpose.msk.msra.mxu1 %vm14098_vm2, %v13103_v10  ;;  %v13345_v10 = vld [vmem:[%s13858_s17 + $0x160] sm:$0xff]  }
 0xd19   : > { %12409 = vmatprep.subr.mxu1 %v15440_v2 }
 0xd20   : > { %12410 = vmatpush3.xpose.msk.msra.mxu1 %vm1590_vm1, %v3780_v52  ;;  %v13346_v52 = vld [vmem:[%s13858_s17 + $0x168] sm:$0xff]  }
 0xd21   : > { %13106 = vmatprep.subr.bf16.mxu1 %v15437_v24 }
 0xd81   : > { %v3412_v36 = vpop.xlane.xlu0 %3411 }
 0xd82   : > { %v3413_v37 = vsub.f32 %v3409_v20, %v3412_v36 }
 0xd84   : > { %v3414_v38 = vmul.f32 1.442695, %v3413_v37 }
 0xd86   : > { %13698 = vpow2.f32 %v3414_v38  ;;  %v10734_v38 = vld [vmem:[%s13883_s8 + $0x4] ss:$0 sm:$0xff] }
 0xd90   : > { %v13699_v39 = vpop.eup %13698 }
 0xd91   : > { %v3416_v40 = vsel %vm1674_vm3, %v13699_v39, 0.0 }
 0xd92   : > { %3417 = vadd.xlane.f32.xlu1 %v3416_v40 }
 0xe1f   : > { %v3418_v48 = vpop.xlane.xlu1 %3417 }
 0xe20   : > { %13700 = vrcp.f32 %v3418_v48 }
 0xe2a   : > { %v13701_v49 = vpop.eup %13700 }
 0xe2b   : > { %v3420_v51 = vmul.f32 %v13701_v49, %v13699_v39 }
 0xe2d   : > { %12337 = vmatmul.mubr.msk.f32.vlgmr.msra.gmra.mrb[32].mxu0 %vm1674_vm3, %v3420_v51 }
 0xe2e   : > { %12340 = vmatpush3.bf16.msra.mxu0 %v13314_v50  ;;  %12341 = vmatprep.mubr.msk.bf16.mxu0 %vm13824_vm0, %v15440_v2 }
 0xe2f   : > { %12345 = vmatprep.subr.bf16.mxu0 %v15440_v2 }
 0xf00   : > { %v3493_v54 = vpop.f32.mrb[32].mxu0 }
 0xf01   : > { %v3497_v56 = vpack.c.bf16 %v3493_v54, %v3493_v54  ;;  %v12338_v57 = vpop.f32.mrb[33].mxu0  ;;  %v13333_v54 = vld [vmem:[%s13868_s25 + $0x148] sm:$0xff]  }
 0xf02   : > { %v13336_v57 = vld [vmem:[%s13868_s25 + $0x160] sm:$0xff]  }
 0xf03   : > { %12342 = vmatmul.mubr.msk.bf16.vlgmr.msra.gmra.mrb[36].mxu0 %vm1590_vm1, %v3497_v56  ;;  %v13335_v56 = vld [vmem:[%s13868_s25 + $0x158] sm:$0xff]  }
 0xf04   : > { %12346 = vmatpush3.bf16.msra.mxu0 %v13316_v55  ;;  %12361 = vmatprep.mubr.msk.bf16.mxu0 %vm13824_vm0, %v15440_v2  ;;  %v13334_v55 = vld [vmem:[%s13868_s25 + $0x150] sm:$0xff]  }
 0xf05   : > { %12347 = vmatprep.subr.bf16.mxu0 %v15440_v2 }
 0xf08   : > { %12348 = vmatpush3.bf16.msra.mxu0 %v13317_v58  ;;  %v13337_v58 = vld [vmem:[%s13868_s25 + $0x168] sm:$0xff]  }
 0xf09   : > { %12349 = vmatprep.subr.bf16.mxu0 %v15440_v2 }
 0xf0c   : > { %12350 = vmatpush3.bf16.msra.mxu0 %v13318_v59  ;;  %v13338_v59 = vld [vmem:[%s13868_s25 + $0x170] sm:$0xff]  }
 0xf0d   : > { %12351 = vmatprep.subr.bf16.mxu0 %v15440_v2 }
 0xf10   : > { %12352 = vmatpush3.bf16.msra.mxu0 %v13319_v60 }
 0xf11   : > { %12353 = vmatprep.subr.bf16.mxu0 %v15440_v2 }
 0xf14   : > { %12354 = vmatpush3.bf16.msra.mxu0 %v13320_v61 }
 0xf15   : > { %12355 = vmatprep.subr.bf16.mxu0 %v15440_v2 }
 0xf18   : > { %12356 = vmatpush3.bf16.msra.mxu0 %v13321_v62  ;;  %v13339_v62 = vld [vmem:[%s13888_s14 + $0x20] sm:$0xff]  }
 0xf19   : > { %12357 = vmatprep.subr.bf16.mxu0 %v15440_v2 }
 0xf1c   : > { %12358 = vmatpush3.bf16.msra.mxu0 %v13322_v63 }
 0xf1d   : > { %12359 = vmatprep.subr.bf16.mxu0 %v15440_v2 }
 0xf20   : > { %12360 = vmatpush3.bf16.msra.mxu0 %v13323_v1  ;;  %v13340_v1 = vld [vmem:[%s13868_s25 + $0x178] sm:$0xff]  }
 0xf23   : > { %12362 = vmatmul.mubr.bf16.vlgmr.msra.gmra.mrb[40].mxu0 %v14087_v23 }
 0xf24   : > { %12401 = vmatprep.mubr.bf16.mxu0 %v14066_v12 }
 0xfd6   : > { %v3544_v11 = vpop.f32.mrb[36].mxu0 }
 0xfd7   : > { %v14369_v13 = vadd.f32 %v3544_v11, %v14303_v0  ;;  %v12343_v14 = vpop.f32.mrb[37].mxu0  ;;  %v13324_v0 = vld [vmem:[%s15503_s3 + $0x100] sm:$0xff]   ;;  %v13347_v11 = vld [vmem:[%s13858_s17 + $0x170] sm:$0xff]  }
 0xfd8   : > { %v3547_v15 = vpop.f32.mrb[38].mxu0  ;;  %12385 = vmatprep.subr.bf16.mxu0 %v13324_v0  ;;  %v13348_v14 = vld [vmem:[%s13858_s17 + $0x178] sm:$0xff]  }
 0xfd9   : > { %v12344_v16 = vpop.f32.mrb[39].mxu0  ;;  %12386 = vmatpush3.bf16.msra.mxu0 %v13324_v0 }
 0xfda   : > { %12387 = vmatprep.subr.bf16.mxu0 %v13325_v26  ;;  %v10796_v16 = vld [vmem:[%s13873_s29 + $0x5] ss:$0 sm:$0xff] }
 0xfdd   : > { %12388 = vmatpush3.bf16.msra.mxu0 %v13325_v26 }
 0xfde   : > { %12389 = vmatprep.subr.bf16.mxu0 %v13326_v27 }
 0xfe1   : > { %12390 = vmatpush3.bf16.msra.mxu0 %v13326_v27 }
 0xfe2   : > { %12391 = vmatprep.subr.bf16.mxu0 %v13327_v28 }
 0xfe5   : > { %12392 = vmatpush3.bf16.msra.mxu0 %v13327_v28 }
 0xfe6   : > { %12393 = vmatprep.subr.bf16.mxu0 %v13328_v29 }
 0xfe9   : > { %12394 = vmatpush3.bf16.msra.mxu0 %v13328_v29 }
 0xfea   : > { %12395 = vmatprep.subr.bf16.mxu0 %v13329_v31 }
 0xfed   : > { %12396 = vmatpush3.bf16.msra.mxu0 %v13329_v31 }
 0xfee   : > { %12397 = vmatprep.subr.bf16.mxu0 %v13330_v32 }
 0xff1   : > { %12398 = vmatpush3.bf16.msra.mxu0 %v13330_v32  ;;  %v10770_v32 = vld [vmem:[%s13863_s21 + $0x5] ss:$0 sm:$0xff] }
 0xff2   : > { %12399 = vmatprep.subr.bf16.mxu0 %v13331_v33 }
 0xff5   : > { %12400 = vmatpush3.bf16.msra.mxu0 %v13331_v33 }
 0xff6   : > { %v3658_v18 = vpop.f32.mrb[40].mxu0  ;;  %12449 = vmatprep.subr.bf16.mxu0 %v13332_v53 }
 0xff7   : > { %v3659_v19 = vadd.f32 %v10682_v17, %v3658_v18  ;;  %v12363_v20 = vpop.f32.mrb[41].mxu0 }
 0xff8   : > { %v3661_v21 = vpop.f32.mrb[42].mxu0  ;;  %12402 = vmatmul.mubr.bf16.vlgmr.msra.gmra.mrb[44].mxu0 %v14084_v22 }
 0xff9   : > { %v12364_v25 = vpop.f32.mrb[43].mxu0  ;;  %12412 = vmatmul.mubr.msk.f32.vlgmr.msra.gmra.mrb[30].mxu1 %vm1590_vm1, %v3659_v19  ;;  %12465 = vmatprep.mubr.bf16.mxu0 %v14066_v12 }
 0xffa   : > { %12420 = vmatprep.mubr.msk.f32.mxu1 %vm13824_vm0, %v15440_v2  ;;  %12450 = vmatpush3.bf16.msra.mxu0 %v13332_v53 }
 0xffb   : > { %12451 = vmatprep.subr.bf16.mxu0 %v13333_v54 }
 0xffe   : > { %12452 = vmatpush3.bf16.msra.mxu0 %v13333_v54 }
 0xfff   : > { %12453 = vmatprep.subr.bf16.mxu0 %v13334_v55 }
0x1002   : > { %12454 = vmatpush3.bf16.msra.mxu0 %v13334_v55 }
0x1003   : > { %12455 = vmatprep.subr.bf16.mxu0 %v13335_v56 }
0x1006   : > { %12456 = vmatpush3.bf16.msra.mxu0 %v13335_v56 }
0x1007   : > { %12457 = vmatprep.subr.bf16.mxu0 %v13336_v57 }
0x100a   : > { %12458 = vmatpush3.bf16.msra.mxu0 %v13336_v57 }
0x100b   : > { %12459 = vmatprep.subr.bf16.mxu0 %v13337_v58 }
0x100e   : > { %12460 = vmatpush3.bf16.msra.mxu0 %v13337_v58 }
0x100f   : > { %12461 = vmatprep.subr.bf16.mxu0 %v13338_v59 }
0x1012   : > { %12462 = vmatpush3.bf16.msra.mxu0 %v13338_v59 }
0x1013   : > { %12463 = vmatprep.subr.bf16.mxu0 %v13340_v1 }
0x1016   : > { %12464 = vmatpush3.bf16.msra.mxu0 %v13340_v1  ;;  %v13357_v1 = vld [vmem:[%s13868_s25 + $0x180] sm:$0xff]  }
0x1017   : > { %13109 = vmatprep.subr.bf16.mxu0 %v15437_v24 }
0x1019   : > { %12466 = vmatmul.mubr.bf16.vlgmr.msra.gmra.mrb[48].mxu0 %v14084_v22 }
0x101a   : > { %12495 = vmatprep.mubr.msk.f32.mxu0 %vm13824_vm0, %v15440_v2 }
0x10cb   : > { %v12403_v39 = vpop.f32.mrb[44].mxu0 }
0x10cc   : > { %v3984_v34 = vpop.f32.mrb[30].mxu1  ;;  %v3892_v40 = vpop.f32.mrb[45].mxu0  ;;  %v3901_v46 = vadd.f32 %v12403_v39, %v10734_v38  ;;  %v13351_v39 = vld [vmem:[%s15503_s3 + $0x150] sm:$0xff]  }
0x10cd   : > { %v3988_v35 = vmul.f32 0.25, %v3984_v34  ;;  %v12413_v36 = vpop.f32.mrb[31].mxu1  ;;  %v3893_v41 = vadd.f32 %v10734_v38, %v3892_v40  ;;  %v12404_v42 = vpop.f32.mrb[46].mxu0  ;;  %v13352_v40 = vld [vmem:[%s15503_s3 + $0x158] sm:$0xff]  }
0x10ce   : > { %v3895_v43 = vpop.f32.mrb[47].mxu0  ;;  %v13354_v42 = vld [vmem:[%s15503_s3 + $0x168] sm:$0xff]  }
0x10cf   : > { %v3989_v37 = vsel %vm1674_vm3, %v3988_v35, -inf  ;;  %v3896_v44 = vadd.f32 %v10734_v38, %v3895_v43  ;;  %v13350_v38 = vld [vmem:[%s15503_s3 + $0x148] sm:$0xff]   ;;  %v13355_v43 = vld [vmem:[%s15503_s3 + $0x170] sm:$0xff]  }
0x10d0   : > { %3990 = vmax.xlane.f32.xlu0 %v3989_v37 }
0x10d1   : > { %v13107_v45 = vpack.c.bf16 %v3896_v44, %v3893_v41  ;;  %v13353_v41 = vld [vmem:[%s15503_s3 + $0x160] sm:$0xff]   ;;  %v13356_v44 = vld [vmem:[%s15503_s3 + $0x178] sm:$0xff]  }
0x10d3   : > { %13108 = vmatpush3.bf16.msra.mxu1 %v13107_v45 }
0x10d4   : > { %12418 = vmatprep.subr.mxu1 %v15440_v2 }
0x10d7   : > { %12419 = vmatpush3.msk.msra.mxu1 %vm1689_vm4, %v3901_v46 }
0x10d8   : > { %12423 = vmatprep.subr.bf16.mxu1 %v15440_v2 }
0x10ec   : > { %v12467_v15 = vpop.f32.mrb[48].mxu0 }
0x10ed   : > { %v4350_v17 = vpop.f32.mrb[49].mxu0  ;;  %v4359_v0 = vadd.f32 %v12467_v15, %v10796_v16 }
0x10ee   : > { %v4351_v18 = vadd.f32 %v10796_v16, %v4350_v17  ;;  %v12468_v19 = vpop.f32.mrb[50].mxu0 }
0x10ef   : > { %v4353_v20 = vpop.f32.mrb[51].mxu0  ;;  %v13367_v19 = vld [vmem:[%s13858_s17 + $0x188] sm:$0xff]  }
0x10f0   : > { %v4354_v21 = vadd.f32 %v10796_v16, %v4353_v20  ;;  %v13366_v16 = vld [vmem:[%s13858_s17 + $0x180] sm:$0xff]   ;;  %v13368_v20 = vld [vmem:[%s13858_s17 + $0x190] sm:$0xff]  }
0x10f2   : > { %v13110_v25 = vpack.c.bf16 %v4354_v21, %v4351_v18  ;;  %v13369_v21 = vld [vmem:[%s13858_s17 + $0x198] sm:$0xff]  }
0x10f4   : > { %13112 = vmatpush3.bf16.xpose.msk.msra.mxu0 %vm14098_vm2, %v13110_v25  ;;  %v13370_v25 = vld [vmem:[%s13858_s17 + $0x1a0] sm:$0xff]  }
0x10f5   : > { %12493 = vmatprep.subr.mxu0 %v15440_v2 }
0x10fc   : > { %12494 = vmatpush3.xpose.msk.msra.mxu0 %vm1590_vm1, %v4359_v0  ;;  %v13371_v0 = vld [vmem:[%s13858_s17 + $0x1a8] sm:$0xff]  }
0x10fd   : > { %13113 = vmatprep.subr.bf16.mxu0 %v15437_v24 }
0x115d   : > { %v3991_v47 = vpop.xlane.xlu0 %3990 }
0x115e   : > { %v3992_v48 = vsub.f32 %v3988_v35, %v3991_v47 }
0x1160   : > { %v3993_v49 = vmul.f32 1.442695, %v3992_v48 }
0x1162   : > { %13702 = vpow2.f32 %v3993_v49  ;;  %v10822_v49 = vld [vmem:[%s13883_s8 + $0x5] ss:$0 sm:$0xff] }
0x116c   : > { %v13703_v50 = vpop.eup %13702 }
0x116d   : > { %v3995_v51 = vsel %vm1674_vm3, %v13703_v50, 0.0 }
0x116e   : > { %3996 = vadd.xlane.f32.xlu1 %v3995_v51 }
0x11fb   : > { %v3997_v60 = vpop.xlane.xlu1 %3996 }
0x11fc   : > { %13704 = vrcp.f32 %v3997_v60 }
0x1206   : > { %v13705_v61 = vpop.eup %13704 }
0x1207   : > { %v3999_v63 = vmul.f32 %v13705_v61, %v13703_v50 }
0x1209   : > { %12421 = vmatmul.mubr.msk.f32.vlgmr.msra.gmra.mrb[48].mxu1 %vm1674_vm3, %v3999_v63 }
0x120a   : > { %12424 = vmatpush3.bf16.msra.mxu1 %v13339_v62  ;;  %12425 = vmatprep.mubr.msk.bf16.mxu1 %vm13824_vm0, %v15440_v2 }
0x120b   : > { %12429 = vmatprep.subr.bf16.mxu1 %v15440_v2 }
0x12dc   : > { %v4072_v3 = vpop.f32.mrb[48].mxu1 }
0x12dd   : > { %v4076_v5 = vpack.c.bf16 %v4072_v3, %v4072_v3  ;;  %v12422_v6 = vpop.f32.mrb[49].mxu1  ;;  %v13358_v3 = vld [vmem:[%s13868_s25 + $0x188] sm:$0xff]  }
0x12de   : > { %v13361_v6 = vld [vmem:[%s13868_s25 + $0x1a0] sm:$0xff]  }
0x12df   : > { %12426 = vmatmul.mubr.msk.bf16.vlgmr.msra.gmra.mrb[52].mxu1 %vm1590_vm1, %v4076_v5  ;;  %v13360_v5 = vld [vmem:[%s13868_s25 + $0x198] sm:$0xff]  }
0x12e0   : > { %12430 = vmatpush3.bf16.msra.mxu1 %v13341_v4  ;;  %12445 = vmatprep.mubr.msk.bf16.mxu1 %vm13824_vm0, %v15440_v2  ;;  %v13359_v4 = vld [vmem:[%s13868_s25 + $0x190] sm:$0xff]  }
0x12e1   : > { %12431 = vmatprep.subr.bf16.mxu1 %v15440_v2 }
0x12e4   : > { %12432 = vmatpush3.bf16.msra.mxu1 %v13342_v7  ;;  %v13362_v7 = vld [vmem:[%s13868_s25 + $0x1a8] sm:$0xff]  }
0x12e5   : > { %12433 = vmatprep.subr.bf16.mxu1 %v15440_v2 }
0x12e8   : > { %12434 = vmatpush3.bf16.msra.mxu1 %v13343_v8  ;;  %v13363_v8 = vld [vmem:[%s13868_s25 + $0x1b0] sm:$0xff]  }
0x12e9   : > { %12435 = vmatprep.subr.bf16.mxu1 %v15440_v2 }
0x12ec   : > { %12436 = vmatpush3.bf16.msra.mxu1 %v13344_v9 }
0x12ed   : > { %12437 = vmatprep.subr.bf16.mxu1 %v15440_v2 }
0x12f0   : > { %12438 = vmatpush3.bf16.msra.mxu1 %v13345_v10 }
0x12f1   : > { %12439 = vmatprep.subr.bf16.mxu1 %v15440_v2 }
0x12f4   : > { %12440 = vmatpush3.bf16.msra.mxu1 %v13346_v52  ;;  %v13364_v52 = vld [vmem:[%s13888_s14 + $0x28] sm:$0xff]  }
0x12f5   : > { %12441 = vmatprep.subr.bf16.mxu1 %v15440_v2 }
0x12f8   : > { %12442 = vmatpush3.bf16.msra.mxu1 %v13347_v11 }
0x12f9   : > { %12443 = vmatprep.subr.bf16.mxu1 %v15440_v2 }
0x12fc   : > { %12444 = vmatpush3.bf16.msra.mxu1 %v13348_v14  ;;  %v13365_v14 = vld [vmem:[%s13868_s25 + $0x1b8] sm:$0xff]  }
0x12ff   : > { %12446 = vmatmul.mubr.bf16.vlgmr.msra.gmra.mrb[56].mxu1 %v14087_v23 }
0x1300   : > { %12485 = vmatprep.mubr.bf16.mxu1 %v14066_v12 }
0x13b2   : > { %v4123_v26 = vpop.f32.mrb[52].mxu1 }
0x13b3   : > { %v14435_v27 = vadd.f32 %v4123_v26, %v14369_v13  ;;  %v12427_v28 = vpop.f32.mrb[53].mxu1  ;;  %v13349_v13 = vld [vmem:[%s15503_s3 + $0x140] sm:$0xff]   ;;  %v13372_v26 = vld [vmem:[%s13858_s17 + $0x1b0] sm:$0xff]  }
0x13b4   : > { %v4126_v29 = vpop.f32.mrb[54].mxu1  ;;  %12469 = vmatprep.subr.bf16.mxu1 %v13349_v13  ;;  %v13373_v28 = vld [vmem:[%s13858_s17 + $0x1b8] sm:$0xff]  }
0x13b5   : > { %v12428_v31 = vpop.f32.mrb[55].mxu1  ;;  %12470 = vmatpush3.bf16.msra.mxu1 %v13349_v13 }
0x13b6   : > { %12471 = vmatprep.subr.bf16.mxu1 %v13350_v38  ;;  %v10884_v31 = vld [vmem:[%s13873_s29 + $0x6] ss:$0 sm:$0xff] }
0x13b9   : > { %12472 = vmatpush3.bf16.msra.mxu1 %v13350_v38 }
0x13ba   : > { %12473 = vmatprep.subr.bf16.mxu1 %v13351_v39 }
0x13bd   : > { %12474 = vmatpush3.bf16.msra.mxu1 %v13351_v39 }
0x13be   : > { %12475 = vmatprep.subr.bf16.mxu1 %v13352_v40 }
0x13c1   : > { %12476 = vmatpush3.bf16.msra.mxu1 %v13352_v40 }
0x13c2   : > { %12477 = vmatprep.subr.bf16.mxu1 %v13353_v41 }
0x13c5   : > { %12478 = vmatpush3.bf16.msra.mxu1 %v13353_v41 }
0x13c6   : > { %12479 = vmatprep.subr.bf16.mxu1 %v13354_v42 }
0x13c9   : > { %12480 = vmatpush3.bf16.msra.mxu1 %v13354_v42 }
0x13ca   : > { %12481 = vmatprep.subr.bf16.mxu1 %v13355_v43 }
0x13cd   : > { %12482 = vmatpush3.bf16.msra.mxu1 %v13355_v43  ;;  %v10858_v43 = vld [vmem:[%s13863_s21 + $0x6] ss:$0 sm:$0xff] }
0x13ce   : > { %12483 = vmatprep.subr.bf16.mxu1 %v13356_v44 }
0x13d1   : > { %12484 = vmatpush3.bf16.msra.mxu1 %v13356_v44 }
0x13d2   : > { %v4237_v33 = vpop.f32.mrb[56].mxu1  ;;  %12533 = vmatprep.subr.bf16.mxu1 %v13357_v1 }
0x13d3   : > { %v4238_v34 = vadd.f32 %v10770_v32, %v4237_v33  ;;  %v12447_v35 = vpop.f32.mrb[57].mxu1 }
0x13d4   : > { %v4240_v36 = vpop.f32.mrb[58].mxu1  ;;  %12486 = vmatmul.mubr.bf16.vlgmr.msra.gmra.mrb[60].mxu1 %v14084_v22 }
0x13d5   : > { %v12448_v37 = vpop.f32.mrb[59].mxu1  ;;  %12496 = vmatmul.mubr.msk.f32.vlgmr.msra.gmra.mrb[34].mxu0 %vm1590_vm1, %v4238_v34  ;;  %12549 = vmatprep.mubr.bf16.mxu1 %v14066_v12 }
0x13d6   : > { %12504 = vmatprep.mubr.msk.f32.mxu0 %vm13824_vm0, %v15440_v2  ;;  %12534 = vmatpush3.bf16.msra.mxu1 %v13357_v1 }
0x13d7   : > { %12535 = vmatprep.subr.bf16.mxu1 %v13358_v3 }
0x13da   : > { %12536 = vmatpush3.bf16.msra.mxu1 %v13358_v3 }
0x13db   : > { %12537 = vmatprep.subr.bf16.mxu1 %v13359_v4 }
0x13de   : > { %12538 = vmatpush3.bf16.msra.mxu1 %v13359_v4 }
0x13df   : > { %12539 = vmatprep.subr.bf16.mxu1 %v13360_v5 }
0x13e2   : > { %12540 = vmatpush3.bf16.msra.mxu1 %v13360_v5 }
0x13e3   : > { %12541 = vmatprep.subr.bf16.mxu1 %v13361_v6 }
0x13e6   : > { %12542 = vmatpush3.bf16.msra.mxu1 %v13361_v6 }
0x13e7   : > { %12543 = vmatprep.subr.bf16.mxu1 %v13362_v7 }
0x13ea   : > { %12544 = vmatpush3.bf16.msra.mxu1 %v13362_v7 }
0x13eb   : > { %12545 = vmatprep.subr.bf16.mxu1 %v13363_v8 }
0x13ee   : > { %12546 = vmatpush3.bf16.msra.mxu1 %v13363_v8 }
0x13ef   : > { %12547 = vmatprep.subr.bf16.mxu1 %v13365_v14 }
0x13f2   : > { %12548 = vmatpush3.bf16.msra.mxu1 %v13365_v14  ;;  %v13382_v14 = vld [vmem:[%s13868_s25 + $0x1c0] sm:$0xff]  }
0x13f3   : > { %13116 = vmatprep.subr.bf16.mxu1 %v15437_v24 }
0x13f5   : > { %12550 = vmatmul.mubr.bf16.vlgmr.msra.gmra.mrb[64].mxu1 %v14084_v22 }
0x13f6   : > { %12579 = vmatprep.mubr.msk.f32.mxu1 %vm13824_vm0, %v15440_v2 }
0x14a7   : > { %v12487_v50 = vpop.f32.mrb[60].mxu1 }
0x14a8   : > { %v4563_v45 = vpop.f32.mrb[34].mxu0  ;;  %v4471_v51 = vpop.f32.mrb[61].mxu1  ;;  %v4480_v58 = vadd.f32 %v12487_v50, %v10822_v49  ;;  %v13376_v50 = vld [vmem:[%s15503_s3 + $0x190] sm:$0xff]  }
0x14a9   : > { %v4567_v46 = vmul.f32 0.25, %v4563_v45  ;;  %v12497_v47 = vpop.f32.mrb[35].mxu0  ;;  %v4472_v53 = vadd.f32 %v10822_v49, %v4471_v51  ;;  %v12488_v54 = vpop.f32.mrb[62].mxu1  ;;  %v13377_v51 = vld [vmem:[%s15503_s3 + $0x198] sm:$0xff]  }
0x14aa   : > { %v4474_v55 = vpop.f32.mrb[63].mxu1  ;;  %v13379_v54 = vld [vmem:[%s15503_s3 + $0x1a8] sm:$0xff]  }
0x14ab   : > { %v4568_v48 = vsel %vm1674_vm3, %v4567_v46, -inf  ;;  %v4475_v56 = vadd.f32 %v10822_v49, %v4474_v55  ;;  %v13375_v49 = vld [vmem:[%s15503_s3 + $0x188] sm:$0xff]   ;;  %v13380_v55 = vld [vmem:[%s15503_s3 + $0x1b0] sm:$0xff]  }
0x14ac   : > { %4569 = vmax.xlane.f32.xlu0 %v4568_v48 }
0x14ad   : > { %v13114_v57 = vpack.c.bf16 %v4475_v56, %v4472_v53  ;;  %v13378_v53 = vld [vmem:[%s15503_s3 + $0x1a0] sm:$0xff]   ;;  %v13381_v56 = vld [vmem:[%s15503_s3 + $0x1b8] sm:$0xff]  }
0x14af   : > { %13115 = vmatpush3.bf16.msra.mxu0 %v13114_v57 }
0x14b0   : > { %12502 = vmatprep.subr.mxu0 %v15440_v2 }
0x14b3   : > { %12503 = vmatpush3.msk.msra.mxu0 %vm1689_vm4, %v4480_v58 }
0x14b4   : > { %12507 = vmatprep.subr.bf16.mxu0 %v15440_v2 }
0x14c8   : > { %v12551_v29 = vpop.f32.mrb[64].mxu1 }
0x14c9   : > { %v4929_v32 = vpop.f32.mrb[65].mxu1  ;;  %v4938_v13 = vadd.f32 %v12551_v29, %v10884_v31 }
0x14ca   : > { %v4930_v33 = vadd.f32 %v10884_v31, %v4929_v32  ;;  %v12552_v34 = vpop.f32.mrb[66].mxu1 }
0x14cb   : > { %v4932_v35 = vpop.f32.mrb[67].mxu1  ;;  %v13392_v34 = vld [vmem:[%s13858_s17 + $0x1c8] sm:$0xff]  }
0x14cc   : > { %v4933_v36 = vadd.f32 %v10884_v31, %v4932_v35  ;;  %v13391_v31 = vld [vmem:[%s13858_s17 + $0x1c0] sm:$0xff]   ;;  %v13393_v35 = vld [vmem:[%s13858_s17 + $0x1d0] sm:$0xff]  }
0x14ce   : > { %v13117_v37 = vpack.c.bf16 %v4933_v36, %v4930_v33  ;;  %v13394_v36 = vld [vmem:[%s13858_s17 + $0x1d8] sm:$0xff]  }
0x14d0   : > { %13119 = vmatpush3.bf16.xpose.msk.msra.mxu1 %vm14098_vm2, %v13117_v37  ;;  %v13395_v37 = vld [vmem:[%s13858_s17 + $0x1e0] sm:$0xff]  }
0x14d1   : > { %12577 = vmatprep.subr.mxu1 %v15440_v2 }
0x14d8   : > { %12578 = vmatpush3.xpose.msk.msra.mxu1 %vm1590_vm1, %v4938_v13  ;;  %v13396_v13 = vld [vmem:[%s13858_s17 + $0x1e8] sm:$0xff]  }
0x14d9   : > { %13120 = vmatprep.subr.bf16.mxu1 %v15437_v24 }
0x1539   : > { %v4570_v59 = vpop.xlane.xlu0 %4569 }
0x153a   : > { %v4571_v60 = vsub.f32 %v4567_v46, %v4570_v59 }
0x153c   : > { %v4572_v61 = vmul.f32 1.442695, %v4571_v60 }
0x153e   : > { %13706 = vpow2.f32 %v4572_v61  ;;  %v10910_v61 = vld [vmem:[%s13883_s8 + $0x6] ss:$0 sm:$0xff] }
0x1548   : > { %v13707_v62 = vpop.eup %13706 }
0x1549   : > { %v4574_v63 = vsel %vm1674_vm3, %v13707_v62, 0.0 }
0x154a   : > { %4575 = vadd.xlane.f32.xlu1 %v4574_v63 }
0x15d7   : > { %v4576_v9 = vpop.xlane.xlu1 %4575 }
0x15d8   : > { %13708 = vrcp.f32 %v4576_v9 }
0x15e2   : > { %v13709_v10 = vpop.eup %13708 }
0x15e3   : > { %v4578_v11 = vmul.f32 %v13709_v10, %v13707_v62 }
0x15e5   : > { %12505 = vmatmul.mubr.msk.f32.vlgmr.msra.gmra.mrb[52].mxu0 %vm1674_vm3, %v4578_v11 }
0x15e6   : > { %12508 = vmatpush3.bf16.msra.mxu0 %v13364_v52  ;;  %12509 = vmatprep.mubr.msk.bf16.mxu0 %vm13824_vm0, %v15440_v2 }
0x15e7   : > { %12513 = vmatprep.subr.bf16.mxu0 %v15440_v2 }
0x16b8   : > { %v4651_v15 = vpop.f32.mrb[52].mxu0 }
0x16b9   : > { %v4655_v17 = vpack.c.bf16 %v4651_v15, %v4651_v15  ;;  %v12506_v18 = vpop.f32.mrb[53].mxu0  ;;  %v13383_v15 = vld [vmem:[%s13868_s25 + $0x1c8] sm:$0xff]  }
0x16ba   : > { %v13386_v18 = vld [vmem:[%s13868_s25 + $0x1e0] sm:$0xff]  }
0x16bb   : > { %12510 = vmatmul.mubr.msk.bf16.vlgmr.msra.gmra.mrb[56].mxu0 %vm1590_vm1, %v4655_v17  ;;  %v13385_v17 = vld [vmem:[%s13868_s25 + $0x1d8] sm:$0xff]  }
0x16bc   : > { %12514 = vmatpush3.bf16.msra.mxu0 %v13366_v16  ;;  %12529 = vmatprep.mubr.msk.bf16.mxu0 %vm13824_vm0, %v15440_v2  ;;  %v13384_v16 = vld [vmem:[%s13868_s25 + $0x1d0] sm:$0xff]  }
0x16bd   : > { %12515 = vmatprep.subr.bf16.mxu0 %v15440_v2 }
0x16c0   : > { %12516 = vmatpush3.bf16.msra.mxu0 %v13367_v19  ;;  %v13387_v19 = vld [vmem:[%s13868_s25 + $0x1e8] sm:$0xff]  }
0x16c1   : > { %12517 = vmatprep.subr.bf16.mxu0 %v15440_v2 }
0x16c4   : > { %12518 = vmatpush3.bf16.msra.mxu0 %v13368_v20  ;;  %v13388_v20 = vld [vmem:[%s13868_s25 + $0x1f0] sm:$0xff]  }
0x16c5   : > { %12519 = vmatprep.subr.bf16.mxu0 %v15440_v2 }
0x16c8   : > { %12520 = vmatpush3.bf16.msra.mxu0 %v13369_v21 }
0x16c9   : > { %12521 = vmatprep.subr.bf16.mxu0 %v15440_v2 }
0x16cc   : > { %12522 = vmatpush3.bf16.msra.mxu0 %v13370_v25 }
0x16cd   : > { %12523 = vmatprep.subr.bf16.mxu0 %v15440_v2 }
0x16d0   : > { %12524 = vmatpush3.bf16.msra.mxu0 %v13371_v0  ;;  %v13389_v0 = vld [vmem:[%s13888_s14 + $0x30] sm:$0xff]  }
0x16d1   : > { %12525 = vmatprep.subr.bf16.mxu0 %v15440_v2 }
0x16d4   : > { %12526 = vmatpush3.bf16.msra.mxu0 %v13372_v26 }
0x16d5   : > { %12527 = vmatprep.subr.bf16.mxu0 %v15440_v2 }
0x16d8   : > { %12528 = vmatpush3.bf16.msra.mxu0 %v13373_v28  ;;  %v13390_v28 = vld [vmem:[%s13868_s25 + $0x1f8] sm:$0xff]  }
0x16db   : > { %12530 = vmatmul.mubr.bf16.vlgmr.msra.gmra.mrb[60].mxu0 %v14087_v23 }
0x16dc   : > { %12569 = vmatprep.mubr.bf16.mxu0 %v14066_v12 }
0x178e   : > { %v4702_v38 = vpop.f32.mrb[56].mxu0 }
0x178f   : > { %v14501_v39 = vadd.f32 %v4702_v38, %v14435_v27  ;;  %v12511_v40 = vpop.f32.mrb[57].mxu0  ;;  %v13374_v27 = vld [vmem:[%s15503_s3 + $0x180] sm:$0xff]   ;;  %v13397_v38 = vld [vmem:[%s13858_s17 + $0x1f0] sm:$0xff]  }
0x1790   : > { %v4705_v41 = vpop.f32.mrb[58].mxu0  ;;  %12553 = vmatprep.subr.bf16.mxu0 %v13374_v27  ;;  %v13398_v40 = vld [vmem:[%s13858_s17 + $0x1f8] sm:$0xff]  }
0x1791   : > { %v12512_v42 = vpop.f32.mrb[59].mxu0  ;;  %12554 = vmatpush3.bf16.msra.mxu0 %v13374_v27 }
0x1792   : > { %12555 = vmatprep.subr.bf16.mxu0 %v13375_v49  ;;  %v10972_v42 = vld [vmem:[%s13873_s29 + $0x7] ss:$0 sm:$0xff] }
0x1795   : > { %12556 = vmatpush3.bf16.msra.mxu0 %v13375_v49 }
0x1796   : > { %12557 = vmatprep.subr.bf16.mxu0 %v13376_v50 }
0x1799   : > { %12558 = vmatpush3.bf16.msra.mxu0 %v13376_v50 }
0x179a   : > { %12559 = vmatprep.subr.bf16.mxu0 %v13377_v51 }
0x179d   : > { %12560 = vmatpush3.bf16.msra.mxu0 %v13377_v51 }
0x179e   : > { %12561 = vmatprep.subr.bf16.mxu0 %v13378_v53 }
0x17a1   : > { %12562 = vmatpush3.bf16.msra.mxu0 %v13378_v53  ;;  %v10946_v53 = vld [vmem:[%s13863_s21 + $0x7] ss:$0 sm:$0xff] }
0x17a2   : > { %12563 = vmatprep.subr.bf16.mxu0 %v13379_v54 }
0x17a5   : > { %12564 = vmatpush3.bf16.msra.mxu0 %v13379_v54 }
0x17a6   : > { %12565 = vmatprep.subr.bf16.mxu0 %v13380_v55 }
0x17a9   : > { %12566 = vmatpush3.bf16.msra.mxu0 %v13380_v55 }
0x17aa   : > { %12567 = vmatprep.subr.bf16.mxu0 %v13381_v56 }
0x17ad   : > { %12568 = vmatpush3.bf16.msra.mxu0 %v13381_v56 }
0x17ae   : > { %v4816_v44 = vpop.f32.mrb[60].mxu0  ;;  %12617 = vmatprep.subr.bf16.mxu0 %v13382_v14 }
0x17af   : > { %v4817_v45 = vadd.f32 %v10858_v43, %v4816_v44  ;;  %v12531_v46 = vpop.f32.mrb[61].mxu0 }
0x17b0   : > { %v4819_v47 = vpop.f32.mrb[62].mxu0  ;;  %12570 = vmatmul.mubr.bf16.vlgmr.msra.gmra.mrb[64].mxu0 %v14084_v22 }
0x17b1   : > { %v12532_v48 = vpop.f32.mrb[63].mxu0  ;;  %12580 = vmatmul.mubr.msk.f32.vlgmr.msra.gmra.mrb[50].mxu1 %vm1590_vm1, %v4817_v45  ;;  %12633 = vmatprep.mubr.bf16.mxu0 %v14066_v12 }
0x17b2   : > { %12588 = vmatprep.mubr.msk.f32.mxu1 %vm13824_vm0, %v15440_v2  ;;  %12618 = vmatpush3.bf16.msra.mxu0 %v13382_v14 }
0x17b3   : > { %12619 = vmatprep.subr.bf16.mxu0 %v13383_v15 }
0x17b6   : > { %12620 = vmatpush3.bf16.msra.mxu0 %v13383_v15 }
0x17b7   : > { %12621 = vmatprep.subr.bf16.mxu0 %v13384_v16 }
0x17ba   : > { %12622 = vmatpush3.bf16.msra.mxu0 %v13384_v16 }
0x17bb   : > { %12623 = vmatprep.subr.bf16.mxu0 %v13385_v17 }
0x17be   : > { %12624 = vmatpush3.bf16.msra.mxu0 %v13385_v17 }
0x17bf   : > { %12625 = vmatprep.subr.bf16.mxu0 %v13386_v18 }
0x17c2   : > { %12626 = vmatpush3.bf16.msra.mxu0 %v13386_v18 }
0x17c3   : > { %12627 = vmatprep.subr.bf16.mxu0 %v13387_v19 }
0x17c6   : > { %12628 = vmatpush3.bf16.msra.mxu0 %v13387_v19 }
0x17c7   : > { %12629 = vmatprep.subr.bf16.mxu0 %v13388_v20 }
0x17ca   : > { %12630 = vmatpush3.bf16.msra.mxu0 %v13388_v20 }
0x17cb   : > { %12631 = vmatprep.subr.bf16.mxu0 %v13390_v28 }
0x17ce   : > { %12632 = vmatpush3.bf16.msra.mxu0 %v13390_v28 }
0x17cf   : > { %13123 = vmatprep.subr.bf16.mxu0 %v15437_v24 }
0x17d1   : > { %12634 = vmatmul.mubr.bf16.vlgmr.msra.gmra.mrb[68].mxu0 %v14084_v22 }
0x17d2   : > { %12663 = vmatprep.mubr.msk.f32.mxu0 %vm13824_vm0, %v15440_v2 }
0x1883   : > { %v12571_v62 = vpop.f32.mrb[64].mxu0 }
0x1884   : > { %v5142_v57 = vpop.f32.mrb[50].mxu1  ;;  %v5050_v63 = vpop.f32.mrb[65].mxu0  ;;  %v5059_v7 = vadd.f32 %v12571_v62, %v10910_v61  ;;  %v13404_v62 = vld [vmem:[%s15503_s3 + $0x1e8] sm:$0xff]  }
0x1885   : > { %v5146_v58 = vmul.f32 0.25, %v5142_v57  ;;  %v12581_v59 = vpop.f32.mrb[51].mxu1  ;;  %v5051_v1 = vadd.f32 %v10910_v61, %v5050_v63  ;;  %v12572_v3 = vpop.f32.mrb[66].mxu0  ;;  %v13405_v63 = vld [vmem:[%s15503_s3 + $0x1f0] sm:$0xff]  }
0x1886   : > { %v5053_v4 = vpop.f32.mrb[67].mxu0  ;;  %v13401_v59 = vld [vmem:[%s15503_s3 + $0x1d0] sm:$0xff]  }
0x1887   : > { %v5147_v60 = vsel %vm1674_vm3, %v5146_v58, -inf  ;;  %v5054_v5 = vadd.f32 %v10910_v61, %v5053_v4  ;;  %v13403_v61 = vld [vmem:[%s15503_s3 + $0x1e0] sm:$0xff]  }
0x1888   : > { %5148 = vmax.xlane.f32.xlu0 %v5147_v60  ;;  %v13402_v60 = vld [vmem:[%s15503_s3 + $0x1d8] sm:$0xff]  }
0x1889   : > { %v13121_v6 = vpack.c.bf16 %v5054_v5, %v5051_v1  ;;  %v13406_v1 = vld [vmem:[%s15503_s3 + $0x1f8] sm:$0xff]  }
0x188b   : > { %13122 = vmatpush3.bf16.msra.mxu1 %v13121_v6 }
0x188c   : > { %12586 = vmatprep.subr.mxu1 %v15440_v2 }
0x188f   : > { %12587 = vmatpush3.msk.msra.mxu1 %vm1689_vm4, %v5059_v7  ;;  %v10998_v7 = vld [vmem:[%s13883_s8 + $0x7] ss:$0 sm:$0xff] }
0x1890   : > { %12591 = vmatprep.subr.bf16.mxu1 %v15440_v2 }
0x18a4   : > { %v12635_v41 = vpop.f32.mrb[68].mxu0 }
0x18a5   : > { %v5508_v43 = vpop.f32.mrb[69].mxu0  ;;  %v5517_v27 = vadd.f32 %v12635_v41, %v10972_v42  ;;  %v14605_v41 = vld [vmem:[%s13903_s30 + $0x8] ss:$12 sps:$4 sm:$0xff]  }
0x18a6   : > { %v5509_v44 = vadd.f32 %v10972_v42, %v5508_v43  ;;  %v12636_v45 = vpop.f32.mrb[70].mxu0  ;;  %v14613_v43 = vld [vmem:[%s13903_s30 + $0x20] ss:$12 sps:$4 sm:$0xff]  }
0x18a7   : > { %v5511_v46 = vpop.f32.mrb[71].mxu0  ;;  %v14622_v45 = vld [vmem:[%s13903_s30 + $0x34] ss:$12 sps:$4 sm:$0xff]  }
0x18a8   : > { %v5512_v47 = vadd.f32 %v10972_v42, %v5511_v46  ;;  %v14608_v42 = vld [vmem:[%s13903_s30 + $0x1c] ss:$12 sps:$4 sm:$0xff]  }
0x18a9   : > { %v14627_v46 = vld [vmem:[%s13903_s30 + $0x30] ss:$12 sps:$4 sm:$0xff]  }
0x18aa   : > { %v13124_v48 = vpack.c.bf16 %v5512_v47, %v5509_v44  ;;  %v14617_v44 = vld [vmem:[%s13903_s30 + $0x18] ss:$12 sps:$4 sm:$0xff]  }
0x18ac   : > { %13126 = vmatpush3.bf16.xpose.msk.msra.mxu0 %vm14098_vm2, %v13124_v48 }
0x18ad   : > { %12661 = vmatprep.subr.mxu0 %v15440_v2 }
0x18b4   : > { %12662 = vmatpush3.xpose.msk.msra.mxu0 %vm1590_vm1, %v5517_v27 }
0x18b5   : > { %13127 = vmatprep.subr.bf16.mxu0 %v15437_v24 }
0x1915   : > { %v5149_v8 = vpop.xlane.xlu0 %5148 }
0x1916   : > { %v5150_v9 = vsub.f32 %v5146_v58, %v5149_v8  ;;  %v13400_v58 = vld [vmem:[%s15503_s3 + $0x1c8] sm:$0xff]  }
0x1918   : > { %v5151_v10 = vmul.f32 1.442695, %v5150_v9 }
0x191a   : > { %13710 = vpow2.f32 %v5151_v10 }
0x1924   : > { %v13711_v52 = vpop.eup %13710 }
0x1925   : > { %v5153_v11 = vsel %vm1674_vm3, %v13711_v52, 0.0 }
0x1926   : > { %5154 = vadd.xlane.f32.xlu1 %v5153_v11 }
0x19b3   : > { %v5155_v21 = vpop.xlane.xlu1 %5154 }
0x19b4   : > { %13712 = vrcp.f32 %v5155_v21 }
0x19be   : > { %v13713_v25 = vpop.eup %13712 }
0x19bf   : > { %v5157_v26 = vmul.f32 %v13713_v25, %v13711_v52 }
0x19c1   : > { %12589 = vmatmul.mubr.msk.f32.vlgmr.msra.gmra.mrb[68].mxu1 %vm1674_vm3, %v5157_v26  ;;  %v13407_v26 = vld [vmem:[%s13888_s14 + $0x38] sm:$0xff]  }
0x19c2   : > { %12592 = vmatpush3.bf16.msra.mxu1 %v13389_v0  ;;  %12593 = vmatprep.mubr.msk.bf16.mxu1 %vm13824_vm0, %v15440_v2 }
0x19c3   : > { %12597 = vmatprep.subr.bf16.mxu1 %v15440_v2 }
0x1a94   : > { %v5230_v29 = vpop.f32.mrb[68].mxu1 }
0x1a95   : > { %v5234_v32 = vpack.c.bf16 %v5230_v29, %v5230_v29  ;;  %v12590_v33 = vpop.f32.mrb[69].mxu1 }
0x1a96   : > { %v11017_v33 = vld [vmem:[%s13893_s19] ss:$0 sm:$0xff] }
0x1a97   : > { %12594 = vmatmul.mubr.msk.bf16.vlgmr.msra.gmra.mrb[72].mxu1 %vm1590_vm1, %v5234_v32 }
0x1a98   : > { %12598 = vmatpush3.bf16.msra.mxu1 %v13391_v31  ;;  %12613 = vmatprep.mubr.msk.bf16.mxu1 %vm13824_vm0, %v15440_v2 }
0x1a99   : > { %12599 = vmatprep.subr.bf16.mxu1 %v15440_v2 }
0x1a9c   : > { %12600 = vmatpush3.bf16.msra.mxu1 %v13392_v34 }
0x1a9d   : > { %12601 = vmatprep.subr.bf16.mxu1 %v15440_v2 }
0x1aa0   : > { %12602 = vmatpush3.bf16.msra.mxu1 %v13393_v35 }
0x1aa1   : > { %12603 = vmatprep.subr.bf16.mxu1 %v15440_v2 }
0x1aa4   : > { %12604 = vmatpush3.bf16.msra.mxu1 %v13394_v36 }
0x1aa5   : > { %12605 = vmatprep.subr.bf16.mxu1 %v15440_v2 }
0x1aa8   : > { %12606 = vmatpush3.bf16.msra.mxu1 %v13395_v37 }
0x1aa9   : > { %12607 = vmatprep.subr.bf16.mxu1 %v15440_v2 }
0x1aac   : > { %12608 = vmatpush3.bf16.msra.mxu1 %v13396_v13 }
0x1aad   : > { %12609 = vmatprep.subr.bf16.mxu1 %v15440_v2 }
0x1ab0   : > { %12610 = vmatpush3.bf16.msra.mxu1 %v13397_v38  ;;  %v14599_v38 = vld [vmem:[%s13903_s30] ss:$12 sps:$4 sm:$0xff]  }
0x1ab1   : > { %12611 = vmatprep.subr.bf16.mxu1 %v15440_v2 }
0x1ab4   : > { %12612 = vmatpush3.bf16.msra.mxu1 %v13398_v40  ;;  %v14602_v40 = vld [vmem:[%s13903_s30 + $0x4] ss:$12 sps:$4 sm:$0xff]  }
0x1ab5   : > { %15506 = vst [vmem:[#allocation27_spill] sm:$0xff] %v14602_v40 }
0x1ab7   : > { %12614 = vmatmul.mubr.bf16.vlgmr.msra.gmra.mrb[76].mxu1 %v14087_v23 }
0x1ab8   : > { %12653 = vmatprep.mubr.bf16.mxu1 %v14066_v12 }
0x1b6a   : > { %v5281_v12 = vpop.f32.mrb[72].mxu1 }
0x1b6b   : > { %v14567_v23 = vadd.f32 %v5281_v12, %v14501_v39  ;;  %v12595_v49 = vpop.f32.mrb[73].mxu1  ;;  %v13399_v39 = vld [vmem:[%s15503_s3 + $0x1c0] sm:$0xff]   ;;  %s15576_s3 = sld [smem:[#allocation20_spill]] }
0x1b6c   : > { %v5284_v50 = vpop.f32.mrb[74].mxu1  ;;  %12637 = vmatprep.subr.bf16.mxu1 %v13399_v39  ;;  %v14637_v49 = vld [vmem:[%s13903_s30 + $0x4c] ss:$12 sps:$4 sm:$0xff]  }
0x1b6d   : > { %v12596_v51 = vpop.f32.mrb[75].mxu1  ;;  %12638 = vmatpush3.bf16.msra.mxu1 %v13399_v39  ;;  %v14641_v50 = vld [vmem:[%s13903_s30 + $0x48] ss:$12 sps:$4 sm:$0xff]  }
0x1b6e   : > { %12639 = vmatprep.subr.bf16.mxu1 %v13400_v58  ;;  %v14644_v51 = vld [vmem:[%s13903_s30 + $0x50] ss:$12 sps:$4 sm:$0xff]   ;;  %v14674_v39 = vld [vmem:[%s13903_s30 + $0x94] ss:$12 sps:$4 sm:$0xff]  }
0x1b71   : > { %12640 = vmatpush3.bf16.msra.mxu1 %v13400_v58  ;;  %v15438_v58 = vmov 0  }
0x1b72   : > { %12641 = vmatprep.subr.bf16.mxu1 %v13401_v59  ;;  %13195 = vset.pattern.permute.xlu0 %v15438_v58 }
0x1b73   : > { %13196 = vset.pattern.permute.xlu1 %v15438_v58 }
0x1b75   : > { %12642 = vmatpush3.bf16.msra.mxu1 %v13401_v59  ;;  %v14682_v59 = vld [vmem:[%s13903_s30 + $0x90] ss:$12 sps:$4 sm:$0xff]  }
0x1b76   : > { %12643 = vmatprep.subr.bf16.mxu1 %v13402_v60 }
0x1b79   : > { %12644 = vmatpush3.bf16.msra.mxu1 %v13402_v60  ;;  %v14685_v60 = vld [vmem:[%s13903_s30 + $0x98] ss:$12 sps:$4 sm:$0xff]  }
0x1b7a   : > { %12645 = vmatprep.subr.bf16.mxu1 %v13403_v61 }
0x1b7d   : > { %12646 = vmatpush3.bf16.msra.mxu1 %v13403_v61  ;;  %v14690_v61 = vld [vmem:[%s13903_s30 + $0xac] ss:$12 sps:$4 sm:$0xff]  }
0x1b7e   : > { %12647 = vmatprep.subr.bf16.mxu1 %v13404_v62 }
0x1b81   : > { %12648 = vmatpush3.bf16.msra.mxu1 %v13404_v62  ;;  %v14695_v62 = vld [vmem:[%s13903_s30 + $0xa8] ss:$12 sps:$4 sm:$0xff]  }
0x1b82   : > { %12649 = vmatprep.subr.bf16.mxu1 %v13405_v63 }
0x1b85   : > { %12650 = vmatpush3.bf16.msra.mxu1 %v13405_v63  ;;  %v14698_v63 = vld [vmem:[%s13903_s30 + $0xb0] ss:$12 sps:$4 sm:$0xff]  }
0x1b86   : > { %12651 = vmatprep.subr.bf16.mxu1 %v13406_v1 }
0x1b89   : > { %12652 = vmatpush3.bf16.msra.mxu1 %v13406_v1 }
0x1b8a   : > { %v5395_v30 = vpop.f32.mrb[76].mxu1  ;;  %12681 = vmatprep.subr.bf16.mxu1 %v15440_v2 }
0x1b8b   : > { %v5396_v54 = vadd.f32 %v10946_v53, %v5395_v30  ;;  %v12615_v55 = vpop.f32.mrb[77].mxu1  ;;  %v14650_v53 = vld [vmem:[%s13903_s30 + $0x60] ss:$12 sps:$4 sm:$0xff]   ;;  %v14653_v30 = vld [vmem:[%s13903_s30 + $0x64] ss:$12 sps:$4 sm:$0xff]  }
0x1b8c   : > { %v5398_v56 = vpop.f32.mrb[78].mxu1  ;;  %12654 = vmatmul.mubr.bf16.vlgmr.msra.gmra.mrb[80].mxu1 %v14084_v22  ;;  %v14660_v55 = vld [vmem:[%s13903_s30 + $0x7c] ss:$12 sps:$4 sm:$0xff]  }
0x1b8d   : > { %v12616_v57 = vpop.f32.mrb[79].mxu1  ;;  %12664 = vmatmul.mubr.msk.f32.vlgmr.msra.gmra.mrb[54].mxu0 %vm1590_vm1, %v5396_v54  ;;  %12697 = vmatprep.mubr.msk.bf16.mxu1 %vm13824_vm0, %v15440_v2  ;;  %v14656_v54 = vld [vmem:[%s13903_s30 + $0x68] ss:$12 sps:$4 sm:$0xff]   ;;  %v14666_v56 = vld [vmem:[%s13903_s30 + $0x78] ss:$12 sps:$4 sm:$0xff]  }
0x1b8e   : > { %12672 = vmatprep.mubr.msk.f32.mxu0 %vm13824_vm0, %v15440_v2  ;;  %12682 = vmatpush3.bf16.msra.mxu1 %v14605_v41  ;;  %v14669_v57 = vld [vmem:[%s13903_s30 + $0x80] ss:$12 sps:$4 sm:$0xff]  }
0x1b8f   : > { %12683 = vmatprep.subr.bf16.mxu1 %v15440_v2 }
0x1b92   : > { %12684 = vmatpush3.bf16.msra.mxu1 %v14613_v43 }
0x1b93   : > { %12685 = vmatprep.subr.bf16.mxu1 %v15440_v2 }
0x1c5f   : > { %v12655_v8 = vpop.f32.mrb[80].mxu1 }
0x1c60   : > { %v5721_v3 = vpop.f32.mrb[54].mxu0  ;;  %v5629_v9 = vpop.f32.mrb[81].mxu1  ;;  %v5638_v16 = vadd.f32 %v12655_v8, %v10998_v7  ;;  %v14709_v8 = vld [vmem:[%s13898_s24 + $0x1] ss:$0 sm:$0xff] }
0x1c61   : > { %v5725_v4 = vmul.f32 0.25, %v5721_v3  ;;  %v12665_v5 = vpop.f32.mrb[55].mxu0  ;;  %v5630_v10 = vadd.f32 %v10998_v7, %v5629_v9  ;;  %v12656_v52 = vpop.f32.mrb[82].mxu1 }
0x1c62   : > { %v5632_v11 = vpop.f32.mrb[83].mxu1  ;;  %v14714_v52 = vld [vmem:[%s13913_s12 + $0x80] sm:$0xff]  }
0x1c63   : > { %v5726_v6 = vsel %vm1674_vm3, %v5725_v4, -inf  ;;  %v5633_v14 = vadd.f32 %v10998_v7, %v5632_v11 }
0x1c64   : > { %5727 = vmax.xlane.f32.xlu0 %v5726_v6  ;;  %v14706_v6 = vld [vmem:[%s13898_s24] ss:$0 sm:$0xff] }
0x1c65   : > { %v13128_v15 = vpack.c.bf16 %v5633_v14, %v5630_v10  ;;  %v14721_v14 = vld [vmem:[%s13913_s12 + $0x40] sm:$0xff]  }
0x1c67   : > { %13129 = vmatpush3.bf16.msra.mxu0 %v13128_v15  ;;  %v14724_v15 = vld [vmem:[%s13913_s12] sm:$0xff]  }
0x1c68   : > { %12670 = vmatprep.subr.mxu0 %v15440_v2 }
0x1c6b   : > { %12671 = vmatpush3.msk.msra.mxu0 %vm1689_vm4, %v5638_v16  ;;  %v14729_v16 = vld [vmem:[%s13913_s12 + $0x88] sm:$0xff]  }
0x1c6c   : > { %12675 = vmatprep.subr.bf16.mxu0 %v15440_v2 }
0x1cf1   : > { %v5728_v22 = vpop.xlane.xlu0 %5727 }
0x1cf2   : > { %v5729_v17 = vsub.f32 %v5725_v4, %v5728_v22  ;;  %v14732_v22 = vld [vmem:[%s13913_s12 + $0x48] sm:$0xff]  }
0x1cf4   : > { %v5730_v18 = vmul.f32 1.442695, %v5729_v17  ;;  %v14736_v17 = vld [vmem:[%s13913_s12 + $0x8] sm:$0xff]  }
0x1cf6   : > { %13714 = vpow2.f32 %v5730_v18  ;;  %v14742_v18 = vld [vmem:[%s13913_s12 + $0x90] sm:$0xff]  }
0x1d00   : > { %v13715_v19 = vpop.eup %13714 }
0x1d01   : > { %v5732_v20 = vsel %vm1674_vm3, %v13715_v19, 0.0 }
0x1d02   : > { %5733 = vadd.xlane.f32.xlu1 %v5732_v20  ;;  %v14749_v20 = vld [vmem:[%s13913_s12 + $0x10] sm:$0xff]  }
0x1d8f   : > { %v5734_v21 = vpop.xlane.xlu1 %5733 }
0x1d90   : > { %13716 = vrcp.f32 %v5734_v21  ;;  %v14755_v21 = vld [vmem:[%s13913_s12 + $0x98] sm:$0xff]  }
0x1d9a   : > { %v13717_v25 = vpop.eup %13716 }
0x1d9b   : > { %v5736_v0 = vmul.f32 %v13717_v25, %v13715_v19  ;;  %v14745_v19 = vld [vmem:[%s13913_s12 + $0x50] sm:$0xff]   ;;  %v14758_v25 = vld [vmem:[%s13913_s12 + $0x58] sm:$0xff]  }
0x1d9d   : > { %12673 = vmatmul.mubr.msk.f32.vlgmr.msra.gmra.mrb[72].mxu0 %vm1674_vm3, %v5736_v0  ;;  %v14761_v0 = vld [vmem:[%s13913_s12 + $0x18] sm:$0xff]  }
0x1d9e   : > { %12677 = vmatprep.mubr.msk.bf16.mxu0 %vm13824_vm0, %v15440_v2  ;;  %12676 = vmatpush3.bf16.msra.mxu0 %v13407_v26  ;;  %v14764_v26 = vld [vmem:[%s13913_s12 + $0x60] sm:$0xff]  }
0x1d9f   : > { %6077 = vmatprep.subr.bf16.mxu0 %v14602_v40  ;;  %15507 = vst [vmem:[#allocation28_spill] sm:$0xff] %v14764_v26 }
0x1e70   : > { %v5809_v28 = vpop.f32.mrb[72].mxu0 }
0x1e71   : > { %v5813_v29 = vpack.c.bf16 %v5809_v28, %v5809_v28  ;;  %v12674_v31 = vpop.f32.mrb[73].mxu0  ;;  %v14769_v28 = vld [vmem:[%s13913_s12 + $0xa0] sm:$0xff]  }
0x1e72   : > { %15508 = vst [vmem:[#allocation29_spill] sm:$0xff] %v14769_v28  ;;  %v14778_v31 = vld [vmem:[%s13913_s12 + $0x68] sm:$0xff]  }
0x1e73   : > { %12678 = vmatmul.mubr.msk.bf16.vlgmr.msra.gmra.mrb[76].mxu0 %vm1590_vm1, %v5813_v29  ;;  %v14774_v29 = vld [vmem:[%s13913_s12 + $0x20] sm:$0xff]   ;;  %15510 = vst [vmem:[#allocation31_spill] sm:$0xff] %v14778_v31 }
0x1e74   : > { %6078 = vmatpush1.bf16.msra.mxu0 %v14599_v38  ;;  %6109 = vmatprep.mubr.bf16.mxu0 %v15438_v58  ;;  %15509 = vst [vmem:[#allocation30_spill] sm:$0xff] %v14774_v29 }
0x1e75   : > { %6079 = vmatprep.subr.bf16.mxu0 %v14608_v42 }
0x1e78   : > { %6080 = vmatpush1.bf16.msra.mxu0 %v14617_v44 }
0x1e79   : > { %6081 = vmatprep.subr.bf16.mxu0 %v14622_v45 }
0x1e7c   : > { %6082 = vmatpush1.bf16.msra.mxu0 %v14627_v46 }
0x1e7d   : > { %6083 = vmatprep.subr.bf16.mxu0 %v14637_v49 }
0x1e80   : > { %6084 = vmatpush1.bf16.msra.mxu0 %v14641_v50 }
0x1e81   : > { %6085 = vmatprep.subr.bf16.mxu0 %v14653_v30 }
0x1e84   : > { %6086 = vmatpush1.bf16.msra.mxu0 %v14650_v53 }
0x1e85   : > { %6087 = vmatprep.subr.bf16.mxu0 %v14660_v55 }
0x1e88   : > { %6088 = vmatpush1.bf16.msra.mxu0 %v14666_v56 }
0x1e89   : > { %6089 = vmatprep.subr.bf16.mxu0 %v14674_v39 }
0x1e8c   : > { %6090 = vmatpush1.bf16.msra.mxu0 %v14682_v59 }
0x1e8d   : > { %6091 = vmatprep.subr.bf16.mxu0 %v14690_v61 }
0x1e90   : > { %6092 = vmatpush1.bf16.msra.mxu0 %v14695_v62 }
0x1e91   : > { %11661 = vmatprep.subr.bf16.mxu0 %v14721_v14 }
0x1f46   : > { %v5860_v32 = vpop.f32.mrb[76].mxu0 }
0x1f47   : > { %v5866_v34 = vadd.f32 %v5860_v32, %v14567_v23  ;;  %v12679_v35 = vpop.f32.mrb[77].mxu0  ;;  %v14633_v23 = vld [vmem:[%s13903_s30 + $0x38] ss:$12 sps:$4 sm:$0xff]   ;;  %v14782_v32 = vld [vmem:[%s13913_s12 + $0xa8] sm:$0xff]  }
0x1f48   : > { %v5863_v36 = vpop.f32.mrb[78].mxu0  ;;  %12686 = vmatpush3.bf16.msra.mxu1 %v14633_v23  ;;  %15511 = vst [vmem:[#allocation32_spill] sm:$0xff] %v14782_v32  ;;  %v14795_v35 = vld [vmem:[%s13913_s12 + $0xb0] sm:$0xff]  }
0x1f49   : > { %v12680_v37 = vpop.f32.mrb[79].mxu0  ;;  %v5874_v13 = vadd.f32 %v11017_v33, %v5866_v34  ;;  %12687 = vmatprep.subr.bf16.mxu1 %v15440_v2  ;;  %v14787_v33 = vld [vmem:[%s13913_s12 + $0x28] sm:$0xff]   ;;  %v14791_v34 = vld [vmem:[%s13913_s12 + $0x70] sm:$0xff]   ;;  %15514 = vst [vmem:[#allocation35_spill] sm:$0xff] %v14795_v35 }
0x1f4a   : > { %15512 = vst [vmem:[#allocation33_spill] sm:$0xff] %v14787_v33  ;;  %15513 = vst [vmem:[#allocation34_spill] sm:$0xff] %v14791_v34  ;;  %v14800_v36 = vld [vmem:[%s13913_s12 + $0x30] sm:$0xff]   ;;  %v14804_v37 = vld [vmem:[%s13913_s12 + $0x78] sm:$0xff]  }
0x1f4b   : > { %5875 = vadd.xlane.f32.xlu0 %v5874_v13  ;;  %15515 = vst [vmem:[#allocation36_spill] sm:$0xff] %v14800_v36  ;;  %15516 = vst [vmem:[#allocation37_spill] sm:$0xff] %v14804_v37 }
0x1f4c   : > { %12688 = vmatpush3.bf16.msra.mxu1 %v14644_v51 }
0x1f4d   : > { %12689 = vmatprep.subr.bf16.mxu1 %v15440_v2 }
0x1f50   : > { %12690 = vmatpush3.bf16.msra.mxu1 %v14656_v54 }
0x1f51   : > { %12691 = vmatprep.subr.bf16.mxu1 %v15440_v2 }
0x1f54   : > { %12692 = vmatpush3.bf16.msra.mxu1 %v14669_v57 }
0x1f55   : > { %12693 = vmatprep.subr.bf16.mxu1 %v15440_v2 }
0x1f58   : > { %12694 = vmatpush3.bf16.msra.mxu1 %v14685_v60 }
0x1f59   : > { %12695 = vmatprep.subr.bf16.mxu1 %v15440_v2 }
0x1f5c   : > { %12696 = vmatpush3.bf16.msra.mxu1 %v14698_v63 }
0x1f5d   : > { %12701 = vmatprep.subr.bf16.mxu1 %v15440_v2 }
0x1fd8   : > { %v5876_v47 = vpop.xlane.xlu0 %5875 }
0x1fd9   : > { %v5878_v48 = vmul.f32 0.0078125, %v5876_v47  ;;  %v14813_v47 = vld [vmem:[%s13913_s12 + $0x38] sm:$0xff]  }
0x1fda   : > { %15518 = vst [vmem:[#allocation39_spill] sm:$0xff] %v14813_v47 }
0x1fdb   : > { %v5879_v27 = vsub.f32 %v5874_v13, %v5878_v48  ;;  %v14808_v13 = vld [vmem:[%s13913_s12 + $0xb8] sm:$0xff]   ;;  %v5934_v48 = vlaneseq }
0x1fdc   : > { %15517 = vst [vmem:[#allocation38_spill] sm:$0xff] %v14808_v13 }
0x1fdd   : > { %v5880_v12 = vmul.f32 %v5879_v27, %v5879_v27 }
0x1fdf   : > { %5881 = vadd.xlane.f32.xlu1 %v5880_v12 }
0x206c   : > { %v5882_v1 = vpop.xlane.xlu1 %5881 }
0x206d   : > { %v5883_v3 = vmul.f32 0.0078125, %v5882_v1 }
0x206f   : > { %v5884_v4 = vadd.f32 1e-05, %v5883_v3  ;;  %v5932_v3 = vld [vmem:[%s13908_s6] sm:$0x7] }
0x2071   : > { %13718 = vrsqrt.f32 %v5884_v4 }
0x207b   : > { %v13719_v5 = vpop.eup %13718 }
0x207c   : > { %v5886_v7 = vmul.f32 %v13719_v5, %v5879_v27  ;;  %v5935_v27 = vshrl.u32 %v5934_v48, 7 }
0x207e   : > { %v5892_v9 = vmul.f32 %v14706_v6, %v5886_v7  ;;  %v14820_v12 = vsub.s32 0, %v5935_v27  ;;  %v14822_v1 = vsub.s32 2, %v5935_v27  ;;  %v14825_v4 = vsub.s32 1, %v5935_v27 }
0x2080   : > { %v5898_v10 = vadd.f32 %v14709_v8, %v5892_v9  ;;  %15519 = vst [vmem:[#allocation40_spill] sm:$0xff] %v14820_v12  ;;  %15520 = vst [vmem:[#allocation41_spill] sm:$0xff] %v14822_v1  ;;  %v14828_v5 = vrot.slane %v5932_v3, %v14820_v12  ;;  %v14831_v7 = vrot.slane %v5932_v3, %v14822_v1 }
0x2081   : > { %15521 = vst [vmem:[#allocation42_spill] sm:$0xff] %v14825_v4  ;;  %v14834_v9 = vrot.slane %v5932_v3, %v14825_v4 }
0x2082   : > { %v5899_v11 = vpack.c.bf16 %v5898_v10, %v5898_v10  ;;  %15522 = vst [vmem:[#allocation43_spill] sm:$0xff] %v14828_v5  ;;  %15523 = vst [vmem:[#allocation44_spill] sm:$0xff] %v14831_v7 }
0x2084   : > { %6110 = vmatmul.mubr.bf16.vlgmr.msra.gmra.mrb[80].mxu0 %v5899_v11  ;;  %12698 = vmatmul.mubr.bf16.vlgmr.msra.gmra.mrb[84].mxu1 %v5899_v11 }
0x2085   : > { %12702 = vmatpush3.bf16.msra.mxu1 %v14714_v52  ;;  %12717 = vmatprep.mubr.msk.bf16.mxu1 %vm13824_vm0, %v15440_v2 }
0x2086   : > { %12703 = vmatprep.subr.bf16.mxu1 %v15440_v2  ;;  %11662 = vmatpush3.bf16.msra.mxu0 %v14724_v15 }
0x2087   : > { %11663 = vmatprep.subr.bf16.mxu0 %v14732_v22 }
0x2089   : > { %12704 = vmatpush3.bf16.msra.mxu1 %v14729_v16 }
0x208a   : > { %12705 = vmatprep.subr.bf16.mxu1 %v15440_v2  ;;  %11664 = vmatpush3.bf16.msra.mxu0 %v14736_v17 }
0x208b   : > { %11665 = vmatprep.subr.bf16.mxu0 %v14745_v19 }
0x208d   : > { %12706 = vmatpush3.bf16.msra.mxu1 %v14742_v18 }
0x208e   : > { %12707 = vmatprep.subr.bf16.mxu1 %v15440_v2  ;;  %11666 = vmatpush3.bf16.msra.mxu0 %v14749_v20 }
0x208f   : > { %11667 = vmatprep.subr.bf16.mxu0 %v14758_v25 }
0x2091   : > { %12708 = vmatpush3.bf16.msra.mxu1 %v14755_v21 }
0x2092   : > { %12709 = vmatprep.subr.bf16.mxu1 %v15440_v2  ;;  %11668 = vmatpush3.bf16.msra.mxu0 %v14761_v0 }
0x2093   : > { %11669 = vmatprep.subr.bf16.mxu0 %v14764_v26 }
0x2095   : > { %12710 = vmatpush3.bf16.msra.mxu1 %v14769_v28 }
0x2096   : > { %12711 = vmatprep.subr.bf16.mxu1 %v15440_v2  ;;  %11670 = vmatpush3.bf16.msra.mxu0 %v14774_v29 }
0x2097   : > { %11671 = vmatprep.subr.bf16.mxu0 %v14778_v31 }
0x2099   : > { %12712 = vmatpush3.bf16.msra.mxu1 %v14782_v32 }
0x209a   : > { %12713 = vmatprep.subr.bf16.mxu1 %v15440_v2  ;;  %11672 = vmatpush3.bf16.msra.mxu0 %v14787_v33 }
0x209b   : > { %11673 = vmatprep.subr.bf16.mxu0 %v14791_v34 }
0x209d   : > { %12714 = vmatpush3.bf16.msra.mxu1 %v14795_v35 }
0x209e   : > { %12715 = vmatprep.subr.bf16.mxu1 %v15440_v2  ;;  %11674 = vmatpush3.bf16.msra.mxu0 %v14800_v36 }
0x209f   : > { %11675 = vmatprep.subr.bf16.mxu0 %v14804_v37 }
0x20a1   : > { %12716 = vmatpush3.bf16.msra.mxu1 %v14808_v13 }
0x20a2   : > { %12721 = vmatprep.subr.bf16.mxu1 %v15440_v2  ;;  %11676 = vmatpush3.bf16.msra.mxu0 %v14813_v47 }
0x20a3   : > { %6490 = vmatprep.subr.bf16.mxu0 %v14602_v40 }
0x2157   : > { %v6111_v10 = vpop.f32.mrb[80].mxu0  ;;  %v6152_v11 = vpop.f32.mrb[84].mxu1 }
0x2158   : > { %v6112_v48 = vadd.f32 %v6111_v10, %v14828_v5  ;;  %v6153_v24 = vadd.f32 %v6152_v11, %v14831_v7  ;;  %v6113_v58 = vpop.f32.mrb[81].mxu0  ;;  %v12699_v2 = vpop.f32.mrb[85].mxu1 }
0x2159   : > { %v6114_v27 = vadd.f32 %v6113_v58, %v14834_v9  ;;  %v6115_v40 = vpop.f32.mrb[82].mxu0  ;;  %v6155_v47 = vpop.f32.mrb[86].mxu1 }
0x215a   : > { %v6161_v12 = vmul.f32 0.044715, %v6112_v48  ;;  %v6163_v13 = vmul.f32 0.044715, %v6153_v24  ;;  %v6116_v37 = vpop.f32.mrb[83].mxu0  ;;  %v12700_v1 = vpop.f32.mrb[87].mxu1 }
0x215b   : > { %v6162_v36 = vmul.f32 0.044715, %v6114_v27  ;;  %v6160_v37 = vmul.f32 0.5, %v6153_v24 }
0x215c   : > { %v6164_v35 = vmul.f32 %v6161_v12, %v6112_v48  ;;  %v6166_v3 = vmul.f32 %v6163_v13, %v6153_v24  ;;  %v6159_v12 = vmul.f32 0.5, %v6114_v27 }
0x215d   : > { %v6165_v4 = vmul.f32 %v6162_v36, %v6114_v27 }
0x215e   : > { %v6167_v34 = vmul.f32 %v6164_v35, %v6112_v48  ;;  %v6169_v33 = vmul.f32 %v6166_v3, %v6153_v24  ;;  %v6158_v35 = vmul.f32 0.5, %v6112_v48 }
0x215f   : > { %v6168_v32 = vmul.f32 %v6165_v4, %v6114_v27 }
0x2160   : > { %v6170_v10 = vadd.f32 %v6167_v34, %v6112_v48  ;;  %v6172_v5 = vadd.f32 %v6169_v33, %v6153_v24  ;;  %v15525_v24 = vmov 0  }
0x2161   : > { %v6171_v11 = vadd.f32 %v6168_v32, %v6114_v27 }
0x2162   : > { %v6175_v7 = vmul.f32 0.7978846, %v6172_v5  ;;  %v6173_v2 = vmul.f32 0.7978846, %v6170_v10 }
0x2163   : > { %v6174_v31 = vmul.f32 0.7978846, %v6171_v11  ;;  %v14875_v11 = vld [vmem:[%s15526_s2] ss:$0 sm:$0xff]  ;;  %s15564_s2 = sld [smem:[#allocation16_spill]] }
0x2164   : > { %13720 = vtanh.f32 %v6175_v7 }
0x2165   : > { %13722 = vtanh.f32 %v6174_v31  ;;  %v15524_v31 = vmov 0.0  }
0x2166   : > { %13724 = vtanh.f32 %v6173_v2 }
0x216e   : > { %v13721_v40 = vpop.eup %13720 }
0x216f   : > { %v13723_v58 = vpop.eup %13722  ;;  %v6181_v47 = vadd.f32 1.0, %v13721_v40 }
0x2170   : > { %v13725_v1 = vpop.eup %13724  ;;  %v6180_v13 = vadd.f32 1.0, %v13723_v58 }
0x2171   : > { %v6184_v36 = vmul.f32 %v6181_v47, %v6160_v37  ;;  %v6179_v3 = vadd.f32 1.0, %v13725_v1 }
0x2172   : > { %v6183_v4 = vmul.f32 %v6180_v13, %v6159_v12 }
0x2173   : > { %v6187_v34 = vpack.c.bf16 %v6184_v36, %v6184_v36  ;;  %v6182_v33 = vmul.f32 %v6179_v3, %v6158_v35 }
0x2174   : > { %v6186_v32 = vpack.c.bf16 %v6183_v4, %v6183_v4 }
0x2175   : > { %12718 = vmatmul.mubr.bf16.vlgmr.msra.gmra.mrb[88].mxu1 %v6187_v34  ;;  %v6185_v5 = vpack.c.bf16 %v6182_v33, %v6182_v33 }
0x2176   : > { %6419 = vmatprep.mubr.bf16.mxu0 %v6186_v32  ;;  %12722 = vmatpush3.bf16.msra.mxu1 %v14605_v41 }
0x2177   : > { %6420 = vmatmul.mubr.bf16.vlgmr.msra.gmra.mrb[84].mxu0 %v6185_v5  ;;  %12723 = vmatprep.subr.bf16.mxu1 %v15524_v31 }
0x2178   : > { %6491 = vmatpush1.bf16.msra.mxu0 %v14599_v38  ;;  %6522 = vmatprep.mubr.bf16.mxu0 %v15525_v24 }
0x2179   : > { %6492 = vmatprep.subr.bf16.mxu0 %v14608_v42  ;;  %12737 = vmatprep.mubr.msk.bf16.mxu1 %vm13824_vm0, %v15524_v31 }
0x217a   : > { %12724 = vmatpush3.bf16.msra.mxu1 %v14613_v43 }
0x217b   : > { %12725 = vmatprep.subr.bf16.mxu1 %v15524_v31 }
0x217c   : > { %6493 = vmatpush1.bf16.msra.mxu0 %v14617_v44 }
0x217d   : > { %6494 = vmatprep.subr.bf16.mxu0 %v14622_v45 }
0x217e   : > { %12726 = vmatpush3.bf16.msra.mxu1 %v14633_v23 }
0x217f   : > { %12727 = vmatprep.subr.bf16.mxu1 %v15524_v31 }
0x2180   : > { %6495 = vmatpush1.bf16.msra.mxu0 %v14627_v46 }
0x2181   : > { %6496 = vmatprep.subr.bf16.mxu0 %v14637_v49 }
0x2182   : > { %12728 = vmatpush3.bf16.msra.mxu1 %v14644_v51 }
0x2183   : > { %12729 = vmatprep.subr.bf16.mxu1 %v15524_v31 }
0x2184   : > { %6497 = vmatpush1.bf16.msra.mxu0 %v14641_v50 }
0x2185   : > { %6498 = vmatprep.subr.bf16.mxu0 %v14653_v30 }
0x2186   : > { %12730 = vmatpush3.bf16.msra.mxu1 %v14656_v54 }
0x2187   : > { %12731 = vmatprep.subr.bf16.mxu1 %v15524_v31 }
0x2188   : > { %6499 = vmatpush1.bf16.msra.mxu0 %v14650_v53 }
0x2189   : > { %6500 = vmatprep.subr.bf16.mxu0 %v14660_v55 }
0x218a   : > { %12732 = vmatpush3.bf16.msra.mxu1 %v14669_v57 }
0x218b   : > { %12733 = vmatprep.subr.bf16.mxu1 %v15524_v31 }
0x218c   : > { %6501 = vmatpush1.bf16.msra.mxu0 %v14666_v56 }
0x218d   : > { %6502 = vmatprep.subr.bf16.mxu0 %v14674_v39 }
0x218e   : > { %12734 = vmatpush3.bf16.msra.mxu1 %v14685_v60 }
0x218f   : > { %12735 = vmatprep.subr.bf16.mxu1 %v15524_v31 }
0x2190   : > { %6503 = vmatpush1.bf16.msra.mxu0 %v14682_v59 }
0x2191   : > { %6504 = vmatprep.subr.bf16.mxu0 %v14690_v61 }
0x2192   : > { %12736 = vmatpush3.bf16.msra.mxu1 %v14698_v63 }
0x2193   : > { %12741 = vmatprep.subr.bf16.mxu1 %v15524_v31 }
0x2194   : > { %6505 = vmatpush1.bf16.msra.mxu0 %v14695_v62 }
0x2195   : > { %11701 = vmatprep.subr.bf16.mxu0 %v14721_v14 }
0x2248   : > { %v6461_v7 = vpop.f32.mrb[88].mxu1 }
0x2249   : > { %v12719_v48 = vpop.f32.mrb[89].mxu1 }
0x224a   : > { %v11677_v27 = vpop.f32.mrb[84].mxu0  ;;  %v6464_v10 = vpop.f32.mrb[90].mxu1 }
0x224b   : > { %v11678_v2 = vpop.f32.mrb[85].mxu0  ;;  %v12720_v40 = vpop.f32.mrb[91].mxu1 }
0x224c   : > { %v11679_v58 = vadd.f32 %v11678_v2, %v11677_v27  ;;  %v11680_v37 = vpop.f32.mrb[86].mxu0 }
0x224d   : > { %v11681_v47 = vpop.f32.mrb[87].mxu0 }
0x224e   : > { %v6422_v1 = vadd.f32 %v11679_v58, %v14875_v11 }
0x2250   : > { %v6462_v12 = vadd.f32 %v6461_v7, %v6422_v1 }
0x2252   : > { %v6468_v13 = vmul.f32 0.044715, %v6462_v12  ;;  %v6467_v33 = vmul.f32 0.5, %v6462_v12 }
0x2254   : > { %v6469_v36 = vmul.f32 %v6468_v13, %v6462_v12 }
0x2256   : > { %v6470_v35 = vmul.f32 %v6469_v36, %v6462_v12 }
0x2258   : > { %v6471_v3 = vadd.f32 %v6470_v35, %v6462_v12  ;;  %v15527_v12 = vld [vmem:[#allocation31_spill] sm:$0xff]  ;;  %v15528_v35 = vld [vmem:[#allocation32_spill] sm:$0xff] }
0x225a   : > { %v6472_v4 = vmul.f32 0.7978846, %v6471_v3  ;;  %v15529_v3 = vld [vmem:[#allocation33_spill] sm:$0xff] }
0x225c   : > { %13726 = vtanh.f32 %v6472_v4  ;;  %v15530_v4 = vld [vmem:[#allocation34_spill] sm:$0xff] }
0x2266   : > { %v13727_v34 = vpop.eup %13726 }
0x2267   : > { %v6474_v32 = vadd.f32 1.0, %v13727_v34  ;;  %v15531_v34 = vld [vmem:[#allocation35_spill] sm:$0xff] }
0x2269   : > { %v6475_v5 = vmul.f32 %v6474_v32, %v6467_v33  ;;  %v15532_v33 = vld [vmem:[#allocation36_spill] sm:$0xff]  ;;  %v15533_v32 = vld [vmem:[#allocation37_spill] sm:$0xff] }
0x226b   : > { %6476 = vadd.xlane.f32.xlu0 %v6475_v5 }
0x22f8   : > { %v6477_v48 = vpop.xlane.xlu0 %6476 }
0x22f9   : > { %v6478_v10 = vmul.f32 0.0078125, %v6477_v48  ;;  %v15535_v48 = vld [vmem:[#allocation39_spill] sm:$0xff] }
0x22fb   : > { %v6479_v40 = vsub.f32 %v6475_v5, %v6478_v10  ;;  %v15534_v5 = vld [vmem:[#allocation38_spill] sm:$0xff]  ;;  %v15536_v10 = vld [vmem:[#allocation27_spill] sm:$0xff] }
0x22fd   : > { %v6480_v27 = vmul.f32 %v6479_v40, %v6479_v40 }
0x22ff   : > { %6481 = vadd.xlane.f32.xlu1 %v6480_v27 }
0x238c   : > { %v6482_v2 = vpop.xlane.xlu1 %6481 }
0x238d   : > { %v6483_v37 = vmul.f32 0.0078125, %v6482_v2  ;;  %v15537_v2 = vld [vmem:[#allocation43_spill] sm:$0xff] }
0x238f   : > { %v6484_v58 = vadd.f32 1e-05, %v6483_v37 }
0x2391   : > { %13728 = vrsqrt.f32 %v6484_v58  ;;  %v15538_v58 = vld [vmem:[#allocation44_spill] sm:$0xff] }
0x239b   : > { %v13729_v7 = vpop.eup %13728 }
0x239c   : > { %v6486_v47 = vmul.f32 %v13729_v7, %v6479_v40 }
0x239e   : > { %v6487_v1 = vmul.f32 %v14706_v6, %v6486_v47 }
0x23a0   : > { %v6488_v13 = vadd.f32 %v14709_v8, %v6487_v1 }
0x23a2   : > { %v6489_v36 = vpack.c.bf16 %v6488_v13, %v6488_v13 }
0x23a4   : > { %6523 = vmatmul.mubr.bf16.vlgmr.msra.gmra.mrb[88].mxu0 %v6489_v36  ;;  %12738 = vmatmul.mubr.bf16.vlgmr.msra.gmra.mrb[92].mxu1 %v6489_v36 }
0x23a5   : > { %12742 = vmatpush3.bf16.msra.mxu1 %v14714_v52  ;;  %11702 = vmatpush3.bf16.msra.mxu0 %v14724_v15 }
0x23a6   : > { %12743 = vmatprep.subr.bf16.mxu1 %v15524_v31  ;;  %11703 = vmatprep.subr.bf16.mxu0 %v14732_v22 }
0x23a7   : > { %12757 = vmatprep.mubr.msk.bf16.mxu1 %vm13824_vm0, %v15524_v31 }
0x23a9   : > { %12744 = vmatpush3.bf16.msra.mxu1 %v14729_v16  ;;  %11704 = vmatpush3.bf16.msra.mxu0 %v14736_v17 }
0x23aa   : > { %12745 = vmatprep.subr.bf16.mxu1 %v15524_v31  ;;  %11705 = vmatprep.subr.bf16.mxu0 %v14745_v19 }
0x23ad   : > { %12746 = vmatpush3.bf16.msra.mxu1 %v14742_v18  ;;  %11706 = vmatpush3.bf16.msra.mxu0 %v14749_v20 }
0x23ae   : > { %12747 = vmatprep.subr.bf16.mxu1 %v15524_v31  ;;  %11707 = vmatprep.subr.bf16.mxu0 %v14758_v25 }
0x23b1   : > { %12748 = vmatpush3.bf16.msra.mxu1 %v14755_v21  ;;  %11708 = vmatpush3.bf16.msra.mxu0 %v14761_v0 }
0x23b2   : > { %12749 = vmatprep.subr.bf16.mxu1 %v15524_v31  ;;  %11709 = vmatprep.subr.bf16.mxu0 %v14764_v26 }
0x23b5   : > { %12750 = vmatpush3.bf16.msra.mxu1 %v14769_v28  ;;  %11710 = vmatpush3.bf16.msra.mxu0 %v14774_v29 }
0x23b6   : > { %12751 = vmatprep.subr.bf16.mxu1 %v15524_v31  ;;  %11711 = vmatprep.subr.bf16.mxu0 %v15527_v12 }
0x23b9   : > { %12752 = vmatpush3.bf16.msra.mxu1 %v15528_v35  ;;  %11712 = vmatpush3.bf16.msra.mxu0 %v15529_v3 }
0x23ba   : > { %12753 = vmatprep.subr.bf16.mxu1 %v15524_v31  ;;  %11713 = vmatprep.subr.bf16.mxu0 %v15530_v4 }
0x23bd   : > { %12754 = vmatpush3.bf16.msra.mxu1 %v15531_v34  ;;  %11714 = vmatpush3.bf16.msra.mxu0 %v15532_v33 }
0x23be   : > { %12755 = vmatprep.subr.bf16.mxu1 %v15524_v31  ;;  %11715 = vmatprep.subr.bf16.mxu0 %v15533_v32 }
0x23c1   : > { %12756 = vmatpush3.bf16.msra.mxu1 %v15534_v5  ;;  %11716 = vmatpush3.bf16.msra.mxu0 %v15535_v48 }
0x23c2   : > { %6704 = vmatprep.subr.bf16.mxu0 %v15536_v10  ;;  %12761 = vmatprep.subr.bf16.mxu1 %v15524_v31 }
0x2477   : > { %v6524_v40 = vpop.f32.mrb[88].mxu0  ;;  %v6565_v27 = vpop.f32.mrb[92].mxu1 }
0x2478   : > { %v6525_v37 = vadd.f32 %v6524_v40, %v15537_v2  ;;  %v6566_v7 = vadd.f32 %v6565_v27, %v15538_v58  ;;  %v6526_v47 = vpop.f32.mrb[89].mxu0  ;;  %v12739_v1 = vpop.f32.mrb[93].mxu1 }
0x2479   : > { %v6527_v13 = vadd.f32 %v6526_v47, %v14834_v9  ;;  %v6528_v36 = vpop.f32.mrb[90].mxu0  ;;  %v6568_v32 = vpop.f32.mrb[94].mxu1 }
0x247a   : > { %v6574_v33 = vmul.f32 0.044715, %v6525_v37  ;;  %v6576_v5 = vmul.f32 0.044715, %v6566_v7  ;;  %v6529_v34 = vpop.f32.mrb[91].mxu0  ;;  %v12740_v48 = vpop.f32.mrb[95].mxu1 }
0x247b   : > { %v6575_v4 = vmul.f32 0.044715, %v6527_v13  ;;  %v6573_v34 = vmul.f32 0.5, %v6566_v7 }
0x247c   : > { %v6577_v10 = vmul.f32 %v6574_v33, %v6525_v37  ;;  %v6579_v3 = vmul.f32 %v6576_v5, %v6566_v7  ;;  %v6572_v33 = vmul.f32 0.5, %v6527_v13 }
0x247d   : > { %v6578_v35 = vmul.f32 %v6575_v4, %v6527_v13 }
0x247e   : > { %v6580_v12 = vmul.f32 %v6577_v10, %v6525_v37  ;;  %v6582_v29 = vmul.f32 %v6579_v3, %v6566_v7  ;;  %v6571_v10 = vmul.f32 0.5, %v6525_v37 }
0x247f   : > { %v6581_v28 = vmul.f32 %v6578_v35, %v6527_v13 }
0x2480   : > { %v6583_v40 = vadd.f32 %v6580_v12, %v6525_v37  ;;  %v6585_v2 = vadd.f32 %v6582_v29, %v6566_v7  ;;  %v1236_v37 = vld [vmem:[%s14957_s11 + $0x8] sm:$0xff] }
0x2481   : > { %v6584_v27 = vadd.f32 %v6581_v28, %v6527_v13 }
0x2482   : > { %v6588_v58 = vmul.f32 0.7978846, %v6585_v2  ;;  %v6586_v1 = vmul.f32 0.7978846, %v6583_v40 }
0x2483   : > { %v6587_v26 = vmul.f32 0.7978846, %v6584_v27 }
0x2484   : > { %13730 = vtanh.f32 %v6588_v58 }
0x2485   : > { %13732 = vtanh.f32 %v6587_v26 }
0x2486   : > { %13734 = vtanh.f32 %v6586_v1 }
0x248e   : > { %v13731_v32 = vpop.eup %13730 }
0x248f   : > { %v13733_v47 = vpop.eup %13732  ;;  %v6594_v48 = vadd.f32 1.0, %v13731_v32 }
0x2490   : > { %v13735_v36 = vpop.eup %13734  ;;  %v6593_v5 = vadd.f32 1.0, %v13733_v47 }
0x2491   : > { %v6597_v4 = vmul.f32 %v6594_v48, %v6573_v34  ;;  %v6592_v3 = vadd.f32 1.0, %v13735_v36 }
0x2492   : > { %v6596_v35 = vmul.f32 %v6593_v5, %v6572_v33 }
0x2493   : > { %v6600_v12 = vpack.c.bf16 %v6597_v4, %v6597_v4  ;;  %v6595_v29 = vmul.f32 %v6592_v3, %v6571_v10 }
0x2494   : > { %v6599_v28 = vpack.c.bf16 %v6596_v35, %v6596_v35 }
0x2495   : > { %12758 = vmatmul.mubr.bf16.vlgmr.msra.gmra.mrb[96].mxu1 %v6600_v12  ;;  %v6598_v2 = vpack.c.bf16 %v6595_v29, %v6595_v29  ;;  %v15553_v29 = vld [vmem:[#allocation43_spill] sm:$0xff] }
0x2496   : > { %6633 = vmatprep.mubr.bf16.mxu0 %v6599_v28  ;;  %12762 = vmatpush3.bf16.msra.mxu1 %v14605_v41 }
0x2497   : > { %6634 = vmatmul.mubr.bf16.vlgmr.msra.gmra.mrb[92].mxu0 %v6598_v2  ;;  %12763 = vmatprep.subr.bf16.mxu1 %v15524_v31  ;;  %v15554_v2 = vld [vmem:[#allocation44_spill] sm:$0xff] }
0x2498   : > { %6705 = vmatpush1.bf16.msra.mxu0 %v14599_v38  ;;  %6736 = vmatprep.mubr.bf16.mxu0 %v15525_v24 }
0x2499   : > { %6706 = vmatprep.subr.bf16.mxu0 %v14608_v42  ;;  %12777 = vmatprep.mubr.msk.bf16.mxu1 %vm13824_vm0, %v15524_v31 }
0x249a   : > { %12764 = vmatpush3.bf16.msra.mxu1 %v14613_v43 }
0x249b   : > { %12765 = vmatprep.subr.bf16.mxu1 %v15524_v31 }
0x249c   : > { %6707 = vmatpush1.bf16.msra.mxu0 %v14617_v44 }
0x249d   : > { %6708 = vmatprep.subr.bf16.mxu0 %v14622_v45 }
0x249e   : > { %12766 = vmatpush3.bf16.msra.mxu1 %v14633_v23 }
0x249f   : > { %12767 = vmatprep.subr.bf16.mxu1 %v15524_v31 }
0x24a0   : > { %6709 = vmatpush1.bf16.msra.mxu0 %v14627_v46 }
0x24a1   : > { %6710 = vmatprep.subr.bf16.mxu0 %v14637_v49 }
0x24a2   : > { %12768 = vmatpush3.bf16.msra.mxu1 %v14644_v51 }
0x24a3   : > { %12769 = vmatprep.subr.bf16.mxu1 %v15524_v31 }
0x24a4   : > { %6711 = vmatpush1.bf16.msra.mxu0 %v14641_v50 }
0x24a5   : > { %6712 = vmatprep.subr.bf16.mxu0 %v14653_v30 }
0x24a6   : > { %12770 = vmatpush3.bf16.msra.mxu1 %v14656_v54 }
0x24a7   : > { %12771 = vmatprep.subr.bf16.mxu1 %v15524_v31 }
0x24a8   : > { %6713 = vmatpush1.bf16.msra.mxu0 %v14650_v53 }
0x24a9   : > { %6714 = vmatprep.subr.bf16.mxu0 %v14660_v55 }
0x24aa   : > { %12772 = vmatpush3.bf16.msra.mxu1 %v14669_v57 }
0x24ab   : > { %12773 = vmatprep.subr.bf16.mxu1 %v15524_v31 }
0x24ac   : > { %6715 = vmatpush1.bf16.msra.mxu0 %v14666_v56 }
0x24ad   : > { %6716 = vmatprep.subr.bf16.mxu0 %v14674_v39 }
0x24ae   : > { %12774 = vmatpush3.bf16.msra.mxu1 %v14685_v60 }
0x24af   : > { %12775 = vmatprep.subr.bf16.mxu1 %v15524_v31 }
0x24b0   : > { %6717 = vmatpush1.bf16.msra.mxu0 %v14682_v59 }
0x24b1   : > { %6718 = vmatprep.subr.bf16.mxu0 %v14690_v61  ;;  %v1235_v61 = vld [vmem:[%s14957_s11] sm:$0xff] }
0x24b2   : > { %12776 = vmatpush3.bf16.msra.mxu1 %v14698_v63 }
0x24b3   : > { %12781 = vmatprep.subr.bf16.mxu1 %v15524_v31 }
0x24b4   : > { %6719 = vmatpush1.bf16.msra.mxu0 %v14695_v62 }
0x24b5   : > { %11741 = vmatprep.subr.bf16.mxu0 %v14721_v14 }
0x2568   : > { %v6675_v38 = vpop.f32.mrb[96].mxu1 }
0x2569   : > { %v12759_v41 = vpop.f32.mrb[97].mxu1 }
0x256a   : > { %v11717_v42 = vpop.f32.mrb[92].mxu0  ;;  %v6678_v43 = vpop.f32.mrb[98].mxu1 }
0x256b   : > { %v11718_v44 = vpop.f32.mrb[93].mxu0  ;;  %v12760_v45 = vpop.f32.mrb[99].mxu1 }
0x256c   : > { %v11719_v46 = vadd.f32 %v11718_v44, %v11717_v42  ;;  %v11720_v23 = vpop.f32.mrb[94].mxu0 }
0x256d   : > { %v11721_v49 = vpop.f32.mrb[95].mxu0 }
0x256e   : > { %v6636_v50 = vadd.f32 %v11719_v46, %v14875_v11 }
0x2570   : > { %v6676_v51 = vadd.f32 %v6675_v38, %v6636_v50 }
0x2572   : > { %v6682_v53 = vmul.f32 0.044715, %v6676_v51  ;;  %v6681_v39 = vmul.f32 0.5, %v6676_v51 }
0x2574   : > { %v6683_v30 = vmul.f32 %v6682_v53, %v6676_v51 }
0x2576   : > { %v6684_v54 = vmul.f32 %v6683_v30, %v6676_v51 }
0x2578   : > { %v6685_v55 = vadd.f32 %v6684_v54, %v6676_v51 }
0x257a   : > { %v6686_v56 = vmul.f32 0.7978846, %v6685_v55 }
0x257c   : > { %13736 = vtanh.f32 %v6686_v56 }
0x2586   : > { %v13737_v57 = vpop.eup %13736 }
0x2587   : > { %v6688_v59 = vadd.f32 1.0, %v13737_v57 }
0x2589   : > { %v6689_v60 = vmul.f32 %v6688_v59, %v6681_v39 }
0x258b   : > { %6690 = vadd.xlane.f32.xlu0 %v6689_v60 }
0x258f   : > { %6928 = vadd.xlane.f32.xlu0 %v1235_v61 }
0x2618   : > { %v6691_v62 = vpop.xlane.xlu0 %6690 }
0x2619   : > { %v6692_v63 = vmul.f32 0.0078125, %v6691_v62 }
0x261b   : > { %v6693_v14 = vsub.f32 %v6689_v60, %v6692_v63 }
0x261c   : > { %v6929_v58 = vpop.xlane.xlu0 %6928 }
0x261d   : > { %v6694_v26 = vmul.f32 %v6693_v14, %v6693_v14  ;;  %v6932_v7 = vmul.f32 0.0078125, %v6929_v58 }
0x261f   : > { %6695 = vadd.xlane.f32.xlu1 %v6694_v26  ;;  %v14961_v13 = vsub.f32 %v1235_v61, %v6932_v7 }
0x2621   : > { %v6936_v40 = vmul.f32 %v14961_v13, %v14961_v13 }
0x2623   : > { %6930 = vadd.xlane.f32.xlu1 %v1236_v37  ;;  %6938 = vadd.xlane.f32.xlu0 %v6936_v40 }
0x26ac   : > { %v6696_v27 = vpop.xlane.xlu1 %6695 }
0x26ad   : > { %v6697_v1 = vmul.f32 0.0078125, %v6696_v27 }
0x26af   : > { %v6698_v32 = vadd.f32 1e-05, %v6697_v1 }
0x26b0   : > { %v6931_v47 = vpop.xlane.xlu1 %6930 }
0x26b1   : > { %13738 = vrsqrt.f32 %v6698_v32  ;;  %v6933_v34 = vmul.f32 0.0078125, %v6931_v47 }
0x26b3   : > { %v14965_v48 = vsub.f32 %v1236_v37, %v6933_v34 }
0x26b5   : > { %v6937_v36 = vmul.f32 %v14965_v48, %v14965_v48 }
0x26b7   : > { %6940 = vadd.xlane.f32.xlu1 %v6937_v36 }
0x26bb   : > { %v13739_v33 = vpop.eup %13738 }
0x26bc   : > { %v6700_v5 = vmul.f32 %v13739_v33, %v6693_v14  ;;  %v6939_v14 = vpop.xlane.xlu0 %6938 }
0x26bd   : > { %v6942_v36 = vmul.f32 0.0078125, %v6939_v14  ;;  %v13502_v14 = vld [vmem:[%s15556_s18 + $0x10] sm:$0xff]  }
0x26be   : > { %v6701_v4 = vmul.f32 %v14706_v6, %v6700_v5  ;;  %v15540_v6 = vld [vmem:[#allocation28_spill] sm:$0xff]  ;;  %v13473_v5 = vld [vmem:[%s15542_s15 + $0x8] ss:$12 sps:$4 sm:$0xff]  }
0x26c0   : > { %v6702_v10 = vadd.f32 %v14709_v8, %v6701_v4  ;;  %v15541_v8 = vld [vmem:[#allocation29_spill] sm:$0xff] }
0x26c2   : > { %v6703_v3 = vpack.c.bf16 %v6702_v10, %v6702_v10 }
0x26c4   : > { %6737 = vmatmul.mubr.bf16.vlgmr.msra.gmra.mrb[96].mxu0 %v6703_v3  ;;  %12778 = vmatmul.mubr.bf16.vlgmr.msra.gmra.mrb[100].mxu1 %v6703_v3 }
0x26c5   : > { %12782 = vmatpush3.bf16.msra.mxu1 %v14714_v52  ;;  %11742 = vmatpush3.bf16.msra.mxu0 %v14724_v15  ;;  %v15543_v52 = vld [vmem:[#allocation30_spill] sm:$0xff]  ;;  %v15544_v15 = vld [vmem:[#allocation31_spill] sm:$0xff] }
0x26c6   : > { %12783 = vmatprep.subr.bf16.mxu1 %v15524_v31  ;;  %11743 = vmatprep.subr.bf16.mxu0 %v14732_v22  ;;  %v15546_v22 = vld [vmem:[#allocation33_spill] sm:$0xff] }
0x26c7   : > { %12797 = vmatprep.mubr.msk.bf16.mxu1 %vm13824_vm0, %v15524_v31 }
0x26c9   : > { %12784 = vmatpush3.bf16.msra.mxu1 %v14729_v16  ;;  %11744 = vmatpush3.bf16.msra.mxu0 %v14736_v17  ;;  %v15545_v16 = vld [vmem:[#allocation32_spill] sm:$0xff]  ;;  %v15547_v17 = vld [vmem:[#allocation34_spill] sm:$0xff] }
0x26ca   : > { %12785 = vmatprep.subr.bf16.mxu1 %v15524_v31  ;;  %11745 = vmatprep.subr.bf16.mxu0 %v14745_v19  ;;  %v15549_v19 = vld [vmem:[#allocation36_spill] sm:$0xff] }
0x26cd   : > { %12786 = vmatpush3.bf16.msra.mxu1 %v14742_v18  ;;  %11746 = vmatpush3.bf16.msra.mxu0 %v14749_v20  ;;  %v15548_v18 = vld [vmem:[#allocation35_spill] sm:$0xff]  ;;  %v15550_v20 = vld [vmem:[#allocation37_spill] sm:$0xff] }
0x26ce   : > { %12787 = vmatprep.subr.bf16.mxu1 %v15524_v31  ;;  %11747 = vmatprep.subr.bf16.mxu0 %v14758_v25  ;;  %v15552_v25 = vld [vmem:[#allocation39_spill] sm:$0xff] }
0x26d1   : > { %12788 = vmatpush3.bf16.msra.mxu1 %v14755_v21  ;;  %11748 = vmatpush3.bf16.msra.mxu0 %v14761_v0  ;;  %v15551_v21 = vld [vmem:[#allocation38_spill] sm:$0xff] }
0x26d2   : > { %12789 = vmatprep.subr.bf16.mxu1 %v15524_v31  ;;  %11749 = vmatprep.subr.bf16.mxu0 %v15540_v6  ;;  %v13466_v0 = vld [vmem:[%s15542_s15 + $0x4] ss:$12 sps:$4 sm:$0xff]  }
0x26d5   : > { %12790 = vmatpush3.bf16.msra.mxu1 %v15541_v8  ;;  %11750 = vmatpush3.bf16.msra.mxu0 %v15543_v52  ;;  %v13464_v8 = vld [vmem:[%s15542_s15] ss:$12 sps:$4 sm:$0xff]  }
0x26d6   : > { %12791 = vmatprep.subr.bf16.mxu1 %v15524_v31  ;;  %11751 = vmatprep.subr.bf16.mxu0 %v15544_v15  ;;  %v13469_v15 = vld [vmem:[%s15542_s15 + $0x1c] ss:$12 sps:$4 sm:$0xff]  }
0x26d9   : > { %12792 = vmatpush3.bf16.msra.mxu1 %v15545_v16  ;;  %11752 = vmatpush3.bf16.msra.mxu0 %v15546_v22  ;;  %v6944_v16 = vadd.f32 1e-05, %v6942_v36  ;;  %v13514_v36 = vld [vmem:[%s15556_s18 + $0x30] sm:$0xff]  }
0x26da   : > { %12793 = vmatprep.subr.bf16.mxu1 %v15524_v31  ;;  %11753 = vmatprep.subr.bf16.mxu0 %v15547_v17  ;;  %v13477_v17 = vld [vmem:[%s15542_s15 + $0x20] ss:$12 sps:$4 sm:$0xff]  }
0x26dd   : > { %12794 = vmatpush3.bf16.msra.mxu1 %v15548_v18  ;;  %11754 = vmatpush3.bf16.msra.mxu0 %v15549_v19  ;;  %v13467_v18 = vld [vmem:[%s15542_s15 + $0x18] ss:$12 sps:$4 sm:$0xff]   ;;  %v13472_v19 = vld [vmem:[%s15542_s15 + $0x34] ss:$12 sps:$4 sm:$0xff]  }
0x26de   : > { %12795 = vmatprep.subr.bf16.mxu1 %v15524_v31  ;;  %11755 = vmatprep.subr.bf16.mxu0 %v15550_v20  ;;  %v13481_v20 = vld [vmem:[%s15542_s15 + $0x38] ss:$12 sps:$4 sm:$0xff]  }
0x26e1   : > { %12796 = vmatpush3.bf16.msra.mxu1 %v15551_v21  ;;  %11756 = vmatpush3.bf16.msra.mxu0 %v15552_v25  ;;  %v13470_v21 = vld [vmem:[%s15542_s15 + $0x30] ss:$12 sps:$4 sm:$0xff]   ;;  %v13476_v25 = vld [vmem:[%s15542_s15 + $0x4c] ss:$12 sps:$4 sm:$0xff]  }
0x26e2   : > { %12801 = vmatprep.subr.bf16.mxu1 %v15524_v31  ;;  %7142 = vmatprep.subr.bf16.mxu0 %v13466_v0  ;;  %v13485_v0 = vld [vmem:[%s15542_s15 + $0x50] ss:$12 sps:$4 sm:$0xff]  }
0x2744   : > { %v6941_v7 = vpop.xlane.xlu1 %6940 }
0x2745   : > { %v6943_v4 = vmul.f32 0.0078125, %v6941_v7  ;;  %v13509_v7 = vld [vmem:[%s15556_s18 + $0x98] sm:$0xff]  }
0x2747   : > { %v6945_v22 = vadd.f32 1e-05, %v6943_v4  ;;  %v13517_v4 = vld [vmem:[%s15556_s18 + $0x38] sm:$0xff]  }
0x2797   : > { %v6738_v35 = vpop.f32.mrb[96].mxu0  ;;  %v6779_v12 = vpop.f32.mrb[100].mxu1 }
0x2798   : > { %v6739_v28 = vadd.f32 %v6738_v35, %v15553_v29  ;;  %v6780_v38 = vadd.f32 %v6779_v12, %v15554_v2  ;;  %v6740_v41 = vpop.f32.mrb[97].mxu0  ;;  %v12779_v42 = vpop.f32.mrb[101].mxu1  ;;  %v13474_v35 = vld [vmem:[%s15542_s15 + $0x48] ss:$12 sps:$4 sm:$0xff]   ;;  %v13480_v12 = vld [vmem:[%s15542_s15 + $0x64] ss:$12 sps:$4 sm:$0xff]  }
0x2799   : > { %v6741_v43 = vadd.f32 %v6740_v41, %v14834_v9  ;;  %v6742_v44 = vpop.f32.mrb[98].mxu0  ;;  %v6782_v45 = vpop.f32.mrb[102].mxu1  ;;  %v13489_v29 = vld [vmem:[%s15542_s15 + $0x68] ss:$12 sps:$4 sm:$0xff]   ;;  %v13493_v42 = vld [vmem:[%s15542_s15 + $0x80] ss:$12 sps:$4 sm:$0xff]  }
0x279a   : > { %v6788_v46 = vmul.f32 0.044715, %v6739_v28  ;;  %v6790_v23 = vmul.f32 0.044715, %v6780_v38  ;;  %v6743_v49 = vpop.f32.mrb[99].mxu0  ;;  %v12780_v50 = vpop.f32.mrb[103].mxu1 }
0x279b   : > { %v6789_v51 = vmul.f32 0.044715, %v6741_v43  ;;  %v6787_v37 = vmul.f32 0.5, %v6780_v38  ;;  %v6786_v27 = vmul.f32 0.5, %v6741_v43  ;;  %v6785_v47 = vmul.f32 0.5, %v6739_v28 }
0x279c   : > { %v6791_v53 = vmul.f32 %v6788_v46, %v6739_v28  ;;  %v6793_v30 = vmul.f32 %v6790_v23, %v6780_v38  ;;  %v13484_v41 = vld [vmem:[%s15542_s15 + $0x7c] ss:$12 sps:$4 sm:$0xff]   ;;  %v13482_v45 = vld [vmem:[%s15542_s15 + $0x78] ss:$12 sps:$4 sm:$0xff]   ;;  %v11071_v46 = vld [vmem:[%s15555_s16] ss:$0 sm:$0xff] }
0x279d   : > { %v6792_v54 = vmul.f32 %v6789_v51, %v6741_v43  ;;  %v13488_v23 = vld [vmem:[%s15542_s15 + $0x94] ss:$12 sps:$4 sm:$0xff]   ;;  %v13494_v49 = vld [vmem:[%s15542_s15 + $0x98] ss:$12 sps:$4 sm:$0xff]  }
0x279e   : > { %v6794_v55 = vmul.f32 %v6791_v53, %v6739_v28  ;;  %v6796_v56 = vmul.f32 %v6793_v30, %v6780_v38  ;;  %v11072_v53 = vld [vmem:[%s15555_s16 + $0x1] ss:$0 sm:$0xff]  ;;  %v13495_v30 = vld [vmem:[%s15542_s15 + $0xb0] ss:$12 sps:$4 sm:$0xff]  }
0x279f   : > { %v6795_v57 = vmul.f32 %v6792_v54, %v6741_v43 }
0x27a0   : > { %v6797_v39 = vadd.f32 %v6794_v55, %v6739_v28  ;;  %v6799_v59 = vadd.f32 %v6796_v56, %v6780_v38  ;;  %v13478_v38 = vld [vmem:[%s15542_s15 + $0x60] ss:$12 sps:$4 sm:$0xff]   ;;  %v13490_v56 = vld [vmem:[%s15542_s15 + $0xa8] ss:$12 sps:$4 sm:$0xff]  }
0x27a1   : > { %v6798_v60 = vadd.f32 %v6795_v57, %v6741_v43 }
0x27a2   : > { %v6802_v61 = vmul.f32 0.7978846, %v6799_v59  ;;  %v6800_v62 = vmul.f32 0.7978846, %v6797_v39  ;;  %v13496_v39 = vld [vmem:[%s15556_s18 + $0x40] sm:$0xff]  }
0x27a3   : > { %v6801_v63 = vmul.f32 0.7978846, %v6798_v60  ;;  %v13497_v59 = vld [vmem:[%s15556_s18] sm:$0xff]   ;;  %v13498_v60 = vld [vmem:[%s15556_s18 + $0x48] sm:$0xff]  }
0x27a4   : > { %13740 = vtanh.f32 %v6802_v61  ;;  %v13500_v61 = vld [vmem:[%s15556_s18 + $0x80] sm:$0xff]  }
0x27a5   : > { %13742 = vtanh.f32 %v6801_v63  ;;  %v13503_v63 = vld [vmem:[%s15556_s18 + $0x88] sm:$0xff]  }
0x27a6   : > { %13744 = vtanh.f32 %v6800_v62  ;;  %v13499_v62 = vld [vmem:[%s15556_s18 + $0x8] sm:$0xff]  }
0x27a7   : > { %13746 = vrsqrt.f32 %v6944_v16 }
0x27a8   : > { %13748 = vrsqrt.f32 %v6945_v22 }
0x27ae   : > { %v13741_v9 = vpop.eup %13740 }
0x27af   : > { %v13743_v26 = vpop.eup %13742  ;;  %v6808_v58 = vadd.f32 1.0, %v13741_v9  ;;  %v13501_v9 = vld [vmem:[%s15556_s18 + $0x50] sm:$0xff]  }
0x27b0   : > { %v13745_v40 = vpop.eup %13744  ;;  %v6807_v1 = vadd.f32 1.0, %v13743_v26  ;;  %v13506_v26 = vld [vmem:[%s15556_s18 + $0x90] sm:$0xff]  }
0x27b1   : > { %v6811_v32 = vmul.f32 %v6808_v58, %v6787_v37  ;;  %v6806_v34 = vadd.f32 1.0, %v13745_v40  ;;  %v13747_v28 = vpop.eup %13746  ;;  %v13504_v37 = vld [vmem:[%s15556_s18 + $0x58] sm:$0xff]   ;;  %v13507_v40 = vld [vmem:[%s15556_s18 + $0x60] sm:$0xff]  }
0x27b2   : > { %v6810_v33 = vmul.f32 %v6807_v1, %v6786_v27  ;;  %v13749_v2 = vpop.eup %13748  ;;  %v6948_v44 = vmul.f32 %v13747_v28, %v14961_v13  ;;  %v13492_v13 = vld [vmem:[%s15542_s15 + $0xac] ss:$12 sps:$4 sm:$0xff]   ;;  %v13508_v27 = vld [vmem:[%s15556_s18 + $0x20] sm:$0xff]  }
0x27b3   : > { %v6814_v10 = vpack.c.bf16 %v6811_v32, %v6811_v32  ;;  %v6809_v3 = vmul.f32 %v6806_v34, %v6785_v47  ;;  %v6949_v43 = vmul.f32 %v13749_v2, %v14965_v48  ;;  %v13486_v48 = vld [vmem:[%s15542_s15 + $0x90] ss:$12 sps:$4 sm:$0xff]   ;;  %v13512_v1 = vld [vmem:[%s15556_s18 + $0xa0] sm:$0xff]   ;;  %v13510_v32 = vld [vmem:[%s15556_s18 + $0x68] sm:$0xff]  }
0x27b4   : > { %v6813_v6 = vpack.c.bf16 %v6810_v33, %v6810_v33  ;;  %v6955_v50 = vmul.f32 %v11071_v46, %v6948_v44  ;;  %v13505_v58 = vld [vmem:[%s15556_s18 + $0x18] sm:$0xff]   ;;  %v13511_v47 = vld [vmem:[%s15556_s18 + $0x28] sm:$0xff]   ;;  %v13513_v34 = vld [vmem:[%s15556_s18 + $0x70] sm:$0xff]  }
0x27b5   : > { %12798 = vmatmul.mubr.bf16.vlgmr.msra.gmra.mrb[104].mxu1 %v6814_v10  ;;  %v6812_v52 = vpack.c.bf16 %v6809_v3, %v6809_v3  ;;  %v6956_v51 = vmul.f32 %v11071_v46, %v6949_v43  ;;  %v13515_v33 = vld [vmem:[%s15556_s18 + $0xa8] sm:$0xff]   ;;  %v13518_v10 = vld [vmem:[%s15556_s18 + $0xb0] sm:$0xff]   ;;  %v15557_v3 = vmov 0.0|0.0   ;;  %v6997_v2 = vld [vmem:[%s15558_s0] sm:$0x7]  ;;  %s15565_s0 = sld [smem:[#allocation24_spill]] }
0x27b6   : > { %6847 = vmatprep.mubr.bf16.mxu0 %v6813_v6  ;;  %12802 = vmatpush3.bf16.msra.mxu1 %v13473_v5  ;;  %v6962_v54 = vadd.f32 %v11072_v53, %v6955_v50  ;;  %v13516_v5 = vld [vmem:[%s15556_s18 + $0x78] sm:$0xff]   ;;  %v15560_v43 = vld [vmem:[#allocation40_spill] sm:$0xff] }
0x27b7   : > { %6848 = vmatmul.mubr.bf16.vlgmr.msra.gmra.mrb[100].mxu0 %v6812_v52  ;;  %12803 = vmatprep.subr.bf16.mxu1 %v15524_v31  ;;  %v6963_v55 = vadd.f32 %v11072_v53, %v6956_v51  ;;  %v13519_v6 = vld [vmem:[%s15556_s18 + $0xb8] sm:$0xff]   ;;  %v7002_v44 = vrot.slane %v6997_v2, %v15560_v43 }
0x27b8   : > { %7143 = vmatpush1.bf16.msra.mxu0 %v13464_v8  ;;  %7174 = vmatprep.mubr.bf16.mxu0 %v15525_v24 }
0x27b9   : > { %7144 = vmatprep.subr.bf16.mxu0 %v13469_v15  ;;  %12817 = vmatprep.mubr.msk.bf16.mxu1 %vm13824_vm0, %v15524_v31  ;;  %v6964_v57 = vpack.c.bf16 %v6963_v55, %v6962_v54 }
0x27ba   : > { %12804 = vmatpush3.bf16.msra.mxu1 %v13477_v17 }
0x27bb   : > { %12805 = vmatprep.subr.bf16.mxu1 %v15524_v31 }
0x27bc   : > { %7145 = vmatpush1.bf16.msra.mxu0 %v13467_v18 }
0x27bd   : > { %7146 = vmatprep.subr.bf16.mxu0 %v13472_v19 }
0x27be   : > { %12806 = vmatpush3.bf16.msra.mxu1 %v13481_v20 }
0x27bf   : > { %12807 = vmatprep.subr.bf16.mxu1 %v15524_v31 }
0x27c0   : > { %7147 = vmatpush1.bf16.msra.mxu0 %v13470_v21 }
0x27c1   : > { %7148 = vmatprep.subr.bf16.mxu0 %v13476_v25 }
0x27c2   : > { %12808 = vmatpush3.bf16.msra.mxu1 %v13485_v0 }
0x27c3   : > { %12809 = vmatprep.subr.bf16.mxu1 %v15524_v31 }
0x27c4   : > { %7149 = vmatpush1.bf16.msra.mxu0 %v13474_v35 }
0x27c5   : > { %7150 = vmatprep.subr.bf16.mxu0 %v13480_v12 }
0x27c6   : > { %12810 = vmatpush3.bf16.msra.mxu1 %v13489_v29 }
0x27c7   : > { %12811 = vmatprep.subr.bf16.mxu1 %v15524_v31 }
0x27c8   : > { %7151 = vmatpush1.bf16.msra.mxu0 %v13478_v38  ;;  %v15559_v38 = vld [vmem:[#allocation41_spill] sm:$0xff] }
0x27c9   : > { %7152 = vmatprep.subr.bf16.mxu0 %v13484_v41  ;;  %v7010_v41 = vrot.slane %v6997_v2, %v15559_v38 }
0x27ca   : > { %12812 = vmatpush3.bf16.msra.mxu1 %v13493_v42 }
0x27cb   : > { %12813 = vmatprep.subr.bf16.mxu1 %v15524_v31 }
0x27cc   : > { %7153 = vmatpush1.bf16.msra.mxu0 %v13482_v45 }
0x27cd   : > { %7154 = vmatprep.subr.bf16.mxu0 %v13488_v23  ;;  %v15561_v23 = vld [vmem:[#allocation42_spill] sm:$0xff] }
0x27ce   : > { %12814 = vmatpush3.bf16.msra.mxu1 %v13494_v49  ;;  %v7006_v49 = vrot.slane %v6997_v2, %v15561_v23 }
0x27cf   : > { %12815 = vmatprep.subr.bf16.mxu1 %v15524_v31 }
0x27d0   : > { %7155 = vmatpush1.bf16.msra.mxu0 %v13486_v48 }
0x27d1   : > { %7156 = vmatprep.subr.bf16.mxu0 %v13492_v13 }
0x27d2   : > { %12816 = vmatpush3.bf16.msra.mxu1 %v13495_v30 }
0x27d3   : > { %12821 = vmatprep.subr.bf16.mxu1 %v15524_v31 }
0x27d4   : > { %7157 = vmatpush1.bf16.msra.mxu0 %v13490_v56 }
0x27d5   : > { %12818 = vmatmul.mubr.bf16.vlgmr.msra.gmra.mrb[108].mxu1 %v6964_v57  ;;  %11781 = vmatprep.subr.bf16.mxu0 %v13496_v39 }
0x27d6   : > { %12837 = vmatprep.mubr.msk.bf16.mxu1 %vm13824_vm0, %v15524_v31  ;;  %12822 = vmatpush3.bf16.msra.mxu1 %v13500_v61 }
0x27d7   : > { %7175 = vmatmul.mubr.bf16.vlgmr.msra.gmra.mrb[104].mxu0 %v6964_v57  ;;  %12823 = vmatprep.subr.bf16.mxu1 %v15524_v31 }
0x27d8   : > { %11782 = vmatpush3.bf16.msra.mxu0 %v13497_v59 }
0x27d9   : > { %11783 = vmatprep.subr.bf16.mxu0 %v13498_v60 }
0x27da   : > { %12824 = vmatpush3.bf16.msra.mxu1 %v13503_v63 }
0x27db   : > { %12825 = vmatprep.subr.bf16.mxu1 %v15524_v31 }
0x27dc   : > { %11784 = vmatpush3.bf16.msra.mxu0 %v13499_v62 }
0x27dd   : > { %11785 = vmatprep.subr.bf16.mxu0 %v13501_v9 }
0x27de   : > { %12826 = vmatpush3.bf16.msra.mxu1 %v13506_v26 }
0x27df   : > { %12827 = vmatprep.subr.bf16.mxu1 %v15524_v31 }
0x27e0   : > { %11786 = vmatpush3.bf16.msra.mxu0 %v13502_v14 }
0x27e1   : > { %11787 = vmatprep.subr.bf16.mxu0 %v13504_v37 }
0x27e2   : > { %12828 = vmatpush3.bf16.msra.mxu1 %v13509_v7 }
0x27e3   : > { %12829 = vmatprep.subr.bf16.mxu1 %v15524_v31 }
0x27e4   : > { %11788 = vmatpush3.bf16.msra.mxu0 %v13505_v58 }
0x27e5   : > { %11789 = vmatprep.subr.bf16.mxu0 %v13507_v40 }
0x27e6   : > { %12830 = vmatpush3.bf16.msra.mxu1 %v13512_v1 }
0x27e7   : > { %12831 = vmatprep.subr.bf16.mxu1 %v15524_v31 }
0x27e8   : > { %11790 = vmatpush3.bf16.msra.mxu0 %v13508_v27 }
0x27e9   : > { %11791 = vmatprep.subr.bf16.mxu0 %v13510_v32 }
0x27ea   : > { %12832 = vmatpush3.bf16.msra.mxu1 %v13515_v33 }
0x27eb   : > { %12833 = vmatprep.subr.bf16.mxu1 %v15524_v31 }
0x27ec   : > { %11792 = vmatpush3.bf16.msra.mxu0 %v13511_v47 }
0x27ed   : > { %11793 = vmatprep.subr.bf16.mxu0 %v13513_v34  ;;  %v11097_v34 = vld [vmem:[%s15562_s26] ss:$0 sm:$0xff]  ;;  %s15566_s26 = sld [smem:[#allocation14_spill]] }
0x27ee   : > { %12834 = vmatpush3.bf16.msra.mxu1 %v13518_v10 }
0x27ef   : > { %12835 = vmatprep.subr.bf16.mxu1 %v15524_v31 }
0x27f0   : > { %11794 = vmatpush3.bf16.msra.mxu0 %v13514_v36 }
0x27f1   : > { %11795 = vmatprep.subr.bf16.mxu0 %v13516_v5 }
0x27f2   : > { %12836 = vmatpush3.bf16.msra.mxu1 %v13519_v6 }
0x27f4   : > { %11796 = vmatpush3.bf16.msra.mxu0 %v13517_v4 }
0x27f5   : > { %13130 = vmatprep.subr.bf16.mxu0 %v15557_v3 }
0x2888   : > { %v6889_v8 = vpop.f32.mrb[104].mxu1 }
0x2889   : > { %v12799_v52 = vpop.f32.mrb[105].mxu1 }
0x288a   : > { %v11757_v15 = vpop.f32.mrb[100].mxu0  ;;  %v6892_v16 = vpop.f32.mrb[106].mxu1 }
0x288b   : > { %v11758_v22 = vpop.f32.mrb[101].mxu0  ;;  %v12800_v17 = vpop.f32.mrb[107].mxu1 }
0x288c   : > { %v11759_v18 = vadd.f32 %v11758_v22, %v11757_v15  ;;  %v11760_v19 = vpop.f32.mrb[102].mxu0 }
0x288d   : > { %v11761_v20 = vpop.f32.mrb[103].mxu0 }
0x288e   : > { %v6850_v21 = vadd.f32 %v11759_v18, %v14875_v11 }
0x2890   : > { %v6890_v25 = vadd.f32 %v6889_v8, %v6850_v21 }
0x2892   : > { %v6896_v0 = vmul.f32 0.044715, %v6890_v25  ;;  %v6895_v45 = vmul.f32 0.5, %v6890_v25 }
0x2894   : > { %v6897_v35 = vmul.f32 %v6896_v0, %v6890_v25 }
0x2896   : > { %v6898_v12 = vmul.f32 %v6897_v35, %v6890_v25 }
0x2898   : > { %v6899_v29 = vadd.f32 %v6898_v12, %v6890_v25 }
0x289a   : > { %v6900_v28 = vmul.f32 0.7978846, %v6899_v29 }
0x289c   : > { %13750 = vtanh.f32 %v6900_v28 }
0x28a6   : > { %v13751_v42 = vpop.eup %13750 }
0x28a7   : > { %v6902_v46 = vadd.f32 1.0, %v13751_v42 }
0x28a8   : > { %v7219_v50 = vpop.f32.mrb[108].mxu1 }
0x28a9   : > { %v6903_v51 = vmul.f32 %v6902_v46, %v6895_v45  ;;  %v7220_v11 = vadd.f32 %v7219_v50, %v7010_v41  ;;  %v12819_v48 = vpop.f32.mrb[109].mxu1 }
0x28aa   : > { %v7176_v53 = vpop.f32.mrb[104].mxu0  ;;  %v7222_v13 = vpop.f32.mrb[110].mxu1 }
0x28ab   : > { %v7177_v30 = vadd.f32 %v7176_v53, %v7002_v44  ;;  %v7178_v54 = vpop.f32.mrb[105].mxu0  ;;  %6904 = vadd.xlane.f32.xlu0 %v6903_v51  ;;  %v7223_v55 = vadd.f32 %v7222_v13, %v7010_v41  ;;  %v12820_v56 = vpop.f32.mrb[111].mxu1 }
0x28ac   : > { %v7179_v57 = vadd.f32 %v7178_v54, %v7006_v49  ;;  %v7180_v39 = vpop.f32.mrb[106].mxu0 }
0x28ad   : > { %v7181_v59 = vadd.f32 %v7180_v39, %v7002_v44  ;;  %v7182_v60 = vpop.f32.mrb[107].mxu0  ;;  %v7228_v61 = vpack.c.bf16 %v7223_v55, %v7220_v11 }
0x28ae   : > { %v7183_v62 = vadd.f32 %v7182_v60, %v7006_v49 }
0x28af   : > { %v7226_v63 = vpack.c.bf16 %v7181_v59, %v7177_v30  ;;  %12838 = vmatmul.mubr.bf16.vlgmr.msra.gmra.mrb[112].mxu1 %v7228_v61 }
0x28b0   : > { %v7227_v9 = vpack.c.bf16 %v7183_v62, %v7179_v57 }
0x28b2   : > { %7460 = vmatprep.mubr.bf16.mxu0 %v7227_v9 }
0x28b3   : > { %7461 = vmatmul.mubr.bf16.vlgmr.msra.gmra.mrb[108].mxu0 %v7226_v63 }
0x28b4   : > { %12845 = vmatprep.mubr.msk.f32.mxu0 %vm13824_vm0, %v15524_v31 }
0x2938   : > { %v6905_v14 = vpop.xlane.xlu0 %6904 }
0x2939   : > { %v6906_v26 = vmul.f32 0.0078125, %v6905_v14 }
0x293b   : > { %v15087_v37 = vsub.f32 %v6903_v51, %v6906_v26 }
0x293d   : > { %v6908_v58 = vmul.f32 %v15087_v37, %v15087_v37 }
0x293f   : > { %6909 = vadd.xlane.f32.xlu1 %v6908_v58 }
0x2982   : > { %v7503_v7 = vpop.f32.mrb[112].mxu1 }
0x2983   : > { %v12839_v40 = vpop.f32.mrb[113].mxu1 }
0x2984   : > { %v7506_v27 = vpop.f32.mrb[114].mxu1 }
0x2985   : > { %v12840_v1 = vpop.f32.mrb[115].mxu1 }
0x2986   : > { %v11797_v32 = vpop.f32.mrb[108].mxu0 }
0x2987   : > { %v11798_v47 = vpop.f32.mrb[109].mxu0 }
0x2988   : > { %v11799_v36 = vadd.f32 %v11798_v47, %v11797_v32  ;;  %v11800_v33 = vpop.f32.mrb[110].mxu0 }
0x2989   : > { %v11801_v5 = vpop.f32.mrb[111].mxu0 }
0x298a   : > { %v7463_v4 = vadd.f32 %v11799_v36, %v11097_v34  ;;  %v11802_v10 = vadd.f32 %v11801_v5, %v11800_v33 }
0x298c   : > { %v7504_v3 = vadd.f32 %v7503_v7, %v7463_v4  ;;  %v7466_v6 = vadd.f32 %v11802_v10, %v11097_v34 }
0x298e   : > { %v7512_v8 = vmul.f32 0.044715, %v7504_v3  ;;  %v7507_v52 = vadd.f32 %v7506_v27, %v7466_v6  ;;  %v7510_v0 = vmul.f32 0.5, %v7504_v3 }
0x2990   : > { %v7514_v15 = vmul.f32 %v7512_v8, %v7504_v3  ;;  %v7513_v16 = vmul.f32 0.044715, %v7507_v52  ;;  %v7511_v29 = vmul.f32 0.5, %v7507_v52 }
0x2992   : > { %v7516_v22 = vmul.f32 %v7514_v15, %v7504_v3  ;;  %v7515_v17 = vmul.f32 %v7513_v16, %v7507_v52 }
0x2994   : > { %v7518_v18 = vadd.f32 %v7516_v22, %v7504_v3  ;;  %v7517_v19 = vmul.f32 %v7515_v17, %v7507_v52  ;;  %v11070_v22 = vld [vmem:[%s15563_s1 + $0x1] ss:$0 sm:$0xff] }
0x2996   : > { %v7520_v20 = vmul.f32 0.7978846, %v7518_v18  ;;  %v7519_v21 = vadd.f32 %v7517_v19, %v7507_v52  ;;  %v11069_v52 = vld [vmem:[%s15563_s1] ss:$0 sm:$0xff]  ;;  %s15572_s1 = sld [smem:[#allocation18_spill]] }
0x2998   : > { %13752 = vtanh.f32 %v7520_v20  ;;  %v7521_v25 = vmul.f32 0.7978846, %v7519_v21  ;;  %v13827_v21 = vmov 1.0  }
0x299a   : > { %13754 = vtanh.f32 %v7521_v25  ;;  %v8172_v25 = vld [vmem:[%s15564_s2] sm:$0xff]  ;;  %s15568_s2 = sld [smem:[#allocation15_spill]] }
0x29a2   : > { %v13753_v35 = vpop.eup %13752 }
0x29a3   : > { %v7524_v12 = vadd.f32 1.0, %v13753_v35 }
0x29a4   : > { %v13755_v28 = vpop.eup %13754 }
0x29a5   : > { %v7526_v2 = vmul.f32 %v7524_v12, %v7510_v0  ;;  %v7525_v41 = vadd.f32 1.0, %v13755_v28  ;;  %v13828_v0 = vmov 3   ;;  %v9336_v28 = vld [vmem:[%s15565_s0] sm:$0xff]  ;;  %s15570_s0 = sld [smem:[#allocation19_spill]] }
0x29a7   : > { %7529 = vst.msk [vmem:[#allocation2] sm:$0xff] %vm7528_vm5, %v7526_v2  ;;  %v7527_v42 = vmul.f32 %v7525_v41, %v7511_v29 }
0x29a9   : > { %7530 = vst.msk [vmem:[#allocation2 + $0x8] sm:$0xff] %vm7528_vm5, %v7527_v42 }
0x29ae   : > { %v7531_v44 = vld [vmem:[#allocation2] sm:$0x1]  ;;  %v7532_v45 = vld [vmem:[#allocation2 + $0x1] sm:$0x1]  ;;  %v7534_v46 = vld [vmem:[#allocation2 + $0x2] sm:$0x1] }
0x29af   : > { %v7533_v49 = vmax.f32 %v7531_v44, %v7532_v45  ;;  %v7536_v50 = vld [vmem:[#allocation2 + $0x3] sm:$0x1]  ;;  %v7538_v11 = vld [vmem:[#allocation2 + $0x4] sm:$0x1]  ;;  %v7540_v53 = vld [vmem:[#allocation2 + $0x5] sm:$0x1] }
0x29b0   : > { %v7542_v30 = vld [vmem:[#allocation2 + $0x6] sm:$0x1]  ;;  %v7544_v55 = vld [vmem:[#allocation2 + $0x7] sm:$0x1]  ;;  %v7546_v57 = vld [vmem:[#allocation2 + $0x8] sm:$0x1] }
0x29b1   : > { %v7535_v51 = vmax.f32 %v7533_v49, %v7534_v46  ;;  %v7548_v59 = vld [vmem:[#allocation2 + $0x9] sm:$0x1]  ;;  %v7550_v61 = vld [vmem:[#allocation2 + $0xa] sm:$0x1]  ;;  %v7552_v63 = vld [vmem:[#allocation2 + $0xb] sm:$0x1] }
0x29b2   : > { %v7554_v14 = vld [vmem:[#allocation2 + $0xc] sm:$0x1]  ;;  %v7556_v58 = vld [vmem:[#allocation2 + $0xd] sm:$0x1]  ;;  %v7558_v40 = vld [vmem:[#allocation2 + $0xe] sm:$0x1] }
0x29b3   : > { %v7537_v48 = vmax.f32 %v7535_v51, %v7536_v50  ;;  %v7560_v1 = vld [vmem:[#allocation2 + $0xf] sm:$0x1] }
0x29b5   : > { %v7539_v13 = vmax.f32 %v7537_v48, %v7538_v11  ;;  %v13829_v48 = vmov 5  }
0x29b7   : > { %v7541_v54 = vmax.f32 %v7539_v13, %v7540_v53  ;;  %v13830_v53 = vmov 1   ;;  %v13831_v13 = vmov 6  }
0x29b9   : > { %v7543_v56 = vmax.f32 %v7541_v54, %v7542_v30  ;;  %v13832_v30 = vmov 7   ;;  %v13833_v54 = vmov 2  }
0x29bb   : > { %v7545_v39 = vmax.f32 %v7543_v56, %v7544_v55  ;;  %v13834_v55 = vmov 4  }
0x29bd   : > { %v7547_v60 = vmax.f32 %v7545_v39, %v7546_v57 }
0x29bf   : > { %v7549_v62 = vmax.f32 %v7547_v60, %v7548_v59  ;;  %v11123_v60 = vld [vmem:[%s15567_s28] ss:$0 sm:$0xff] }
0x29c1   : > { %v7551_v9 = vmax.f32 %v7549_v62, %v7550_v61  ;;  %v11124_v62 = vld [vmem:[%s15567_s28 + $0x1] ss:$0 sm:$0xff] }
0x29c3   : > { %v7553_v26 = vmax.f32 %v7551_v9, %v7552_v63 }
0x29c5   : > { %v7555_v7 = vmax.f32 %v7553_v26, %v7554_v14 }
0x29c7   : > { %v7557_v27 = vmax.f32 %v7555_v7, %v7556_v58  ;;  %v13521_v58 = vld [vmem:[%s15566_s26 + $0x8] sm:$0xff]   ;;  %v13522_v7 = vld [vmem:[%s15566_s26 + $0x10] sm:$0xff]  }
0x29c9   : > { %v7559_v32 = vmax.f32 %v7557_v27, %v7558_v40  ;;  %v13523_v40 = vld [vmem:[%s15566_s26 + $0x18] sm:$0xff]   ;;  %v13524_v27 = vld [vmem:[%s15566_s26 + $0x20] sm:$0xff]  }
0x29cb   : > { %v7561_v47 = vmax.f32 %v7559_v32, %v7560_v1  ;;  %v13525_v1 = vld [vmem:[%s15566_s26 + $0x28] sm:$0xff]   ;;  %v13526_v32 = vld [vmem:[%s15566_s26 + $0x30] sm:$0xff]  }
0x29cc   : > { %v6910_v34 = vpop.xlane.xlu1 %6909 }
0x29cd   : > { %v7565_v36 = vrot.slane %v7561_v47, %v15560_v43  ;;  %v6911_v33 = vmul.f32 0.0078125, %v6910_v34  ;;  %v13527_v47 = vld [vmem:[%s15566_s26 + $0x38] sm:$0xff]   ;;  %v13528_v34 = vld [vmem:[%s15566_s26 + $0x40] sm:$0xff]  }
0x29cf   : > { %v7567_v5 = vsub.f32 %v7527_v42, %v7565_v36  ;;  %v6912_v4 = vadd.f32 1e-05, %v6911_v33  ;;  %v7566_v10 = vsub.f32 %v7526_v2, %v7565_v36  ;;  %v13520_v2 = vld [vmem:[%s15566_s26] sm:$0xff]   ;;  %v13529_v36 = vld [vmem:[%s15566_s26 + $0x48] sm:$0xff]   ;;  %v13530_v33 = vld [vmem:[%s15566_s26 + $0x50] sm:$0xff]  }
0x29d1   : > { %v7570_v3 = vmul.f32 1.442695, %v7567_v5  ;;  %13756 = vrsqrt.f32 %v6912_v4  ;;  %v7568_v6 = vmul.f32 1.442695, %v7566_v10  ;;  %v13531_v5 = vld [vmem:[%s15566_s26 + $0x58] sm:$0xff]   ;;  %v13532_v4 = vld [vmem:[%s15566_s26 + $0x60] sm:$0xff]  }
0x29d2   : > { %v13533_v10 = vld [vmem:[%s15566_s26 + $0x68] sm:$0xff]  }
0x29d3   : > { %13758 = vpow2.f32 %v7570_v3  ;;  %v13534_v3 = vld [vmem:[%s15566_s26 + $0x70] sm:$0xff]  }
0x29d4   : > { %13760 = vpow2.f32 %v7568_v6  ;;  %v13535_v6 = vld [vmem:[%s15566_s26 + $0x78] sm:$0xff]  }
0x29db   : > { %v13757_v8 = vpop.eup %13756 }
0x29dc   : > { %v6914_v15 = vmul.f32 %v13757_v8, %v15087_v37  ;;  %v13536_v8 = vld [vmem:[%s15566_s26 + $0x80] sm:$0xff]  }
0x29dd   : > { %v13759_v16 = vpop.eup %13758 }
0x29de   : > { %v13761_v17 = vpop.eup %13760  ;;  %v6920_v18 = vmul.f32 %v11069_v52, %v6914_v15  ;;  %v13537_v52 = vld [vmem:[%s15566_s26 + $0x88] sm:$0xff]   ;;  %v13538_v15 = vld [vmem:[%s15566_s26 + $0x90] sm:$0xff]  }
0x29df   : > { %v13131_v19 = vpack.c.bf16 %v13759_v16, %v13761_v17 }
0x29e0   : > { %v6926_v20 = vadd.f32 %v11070_v22, %v6920_v18  ;;  %v13540_v22 = vld [vmem:[%s15566_s26 + $0xa0] sm:$0xff]   ;;  %v13542_v18 = vld [vmem:[%s15566_s26 + $0xb0] sm:$0xff]  }
0x29e1   : > { %13132 = vmatpush3.bf16.msra.mxu0 %v13131_v19  ;;  %v13543_v19 = vld [vmem:[%s15566_s26 + $0xb8] sm:$0xff]  }
0x29e2   : > { %7654 = vadd.xlane.f32.xlu0 %v6926_v20  ;;  %6927 = vst [vmem:[%s1230_s7] sm:$0xff] %v6926_v20  ;;  %s15569_s7 = sld [smem:[#allocation17_spill]] }
0x29e4   : > { %12846 = vmatmul.mubr.msk.f32.vlgmr.msra.gmra.mrb[74].mxu0 %vm1590_vm1, %v13827_v21 }
0x29e5   : > { %12850 = vmatprep.mubr.msk.bf16.mxu0 %vm7528_vm5, %v13520_v2 }
0x29f8   : > { %8175 = vperm.xlu0 %13195, %v8172_v25  }
0x29fc   : > { %13200 = vset.pattern.permute.xlu0 %v13828_v0 }
0x2a6f   : > { %v7655_v37 = vpop.xlane.xlu0 %7654 }
0x2a70   : > { %v7656_v35 = vmul.f32 0.0078125, %v7655_v37 }
0x2a72   : > { %v7657_v12 = vsub.f32 %v6926_v20, %v7656_v35  ;;  %v15174_v20 = vld [vmem:[%s15568_s2] sm:$0xff] }
0x2a73   : > { %v11174_v21 = vcombine.high %v15174_v20, %v15174_v20 }
0x2a74   : > { %v7658_v29 = vmul.f32 %v7657_v12, %v7657_v12 }
0x2a75   : > { %8221 = vmatprep.mubr.bf16.mxu1 %v11174_v21 }
0x2a76   : > { %7659 = vadd.xlane.f32.xlu1 %v7658_v29 }
0x2a87   : > { %9339 = vperm.xlu1 %13196, %v9336_v28  }
0x2ab7   : > { %v7641_v41 = vpop.f32.mrb[74].mxu0 }
0x2ab8   : > { %13762 = vrcp.f32 %v7641_v41  ;;  %v12847_v42 = vpop.f32.mrb[75].mxu0 }
0x2ac2   : > { %v13763_v44 = vpop.eup %13762 }
0x2ac3   : > { %v7649_v45 = vrot.slane %v13763_v44, %v15560_v43 }
0x2ac5   : > { %v15107_v46 = vmul.f32 %v13761_v17, %v7649_v45  ;;  %v15109_v49 = vmul.f32 %v13759_v16, %v7649_v45  ;;  %v13539_v16 = vld [vmem:[%s15566_s26 + $0x98] sm:$0xff]   ;;  %v13541_v17 = vld [vmem:[%s15566_s26 + $0xa8] sm:$0xff]  }
0x2ac7   : > { %7652 = vst.msk [vmem:[#allocation2] sm:$0xff] %vm7528_vm5, %v15107_v46  ;;  %7653 = vst.msk [vmem:[#allocation2 + $0x8] sm:$0xff] %vm7528_vm5, %v15109_v49  ;;  %v10146_v50 = vpack.c.bf16 %v15109_v49, %v15107_v46 }
0x2ace   : > { %v9993_v51 = vld [vmem:[#allocation2 + $0x8] sm:$0xff]  ;;  %v9992_v11 = vld [vmem:[#allocation2] sm:$0xff] }
0x2acf   : > { %10057 = vperm.xlu0 %13200, %v9993_v51   ;;  %9997 = vperm.xlu1 %13196, %v9992_v11  }
0x2ad3   : > { %13202 = vset.pattern.permute.xlu0 %v13829_v48  ;;  %10002 = vperm.xlu1 %13196, %v9993_v51  }
0x2ad4   : > { %10091 = vperm.xlu0 %13202, %v9992_v11  }
0x2ad7   : > { %13197 = vset.pattern.permute.xlu1 %v13830_v53 }
0x2ad8   : > { %13205 = vset.pattern.permute.xlu0 %v13831_v13  ;;  %10015 = vperm.xlu1 %13197, %v9992_v11  }
0x2ad9   : > { %10114 = vperm.xlu0 %13205, %v9993_v51  }
0x2adc   : > { %10019 = vperm.xlu1 %13197, %v9993_v51  }
0x2add   : > { %13207 = vset.pattern.permute.xlu0 %v13832_v30 }
0x2ae0   : > { %13198 = vset.pattern.permute.xlu1 %v13833_v54 }
0x2ae1   : > { %10034 = vperm.xlu1 %13198, %v9992_v11  }
0x2ae5   : > { %10038 = vperm.xlu1 %13198, %v9993_v51  }
0x2ae9   : > { %13199 = vset.pattern.permute.xlu1 %v13828_v0 }
0x2aea   : > { %10053 = vperm.xlu1 %13199, %v9992_v11  }
0x2aee   : > { %13201 = vset.pattern.permute.xlu1 %v13834_v55 }
0x2aef   : > { %10072 = vperm.xlu1 %13201, %v9992_v11  }
0x2af3   : > { %10076 = vperm.xlu1 %13201, %v9993_v51  }
0x2af7   : > { %13203 = vset.pattern.permute.xlu1 %v13829_v48 }
0x2af8   : > { %10095 = vperm.xlu1 %13203, %v9993_v51  }
0x2afc   : > { %13204 = vset.pattern.permute.xlu1 %v13831_v13 }
0x2afd   : > { %10110 = vperm.xlu1 %13204, %v9992_v11  }
0x2b01   : > { %13206 = vset.pattern.permute.xlu1 %v13832_v30 }
0x2b02   : > { %10129 = vperm.xlu1 %13206, %v9992_v11  }
0x2b03   : > { %v7660_v56 = vpop.xlane.xlu1 %7659 }
0x2b04   : > { %v7661_v57 = vmul.f32 0.0078125, %v7660_v56 }
0x2b06   : > { %v7662_v39 = vadd.f32 1e-05, %v7661_v57  ;;  %10133 = vperm.xlu1 %13206, %v9993_v51  }
0x2b08   : > { %13764 = vrsqrt.f32 %v7662_v39 }
0x2b12   : > { %v13765_v59 = vpop.eup %13764 }
0x2b13   : > { %v15118_v61 = vmul.f32 %v13765_v59, %v7657_v12 }
0x2b15   : > { %v7670_v63 = vmul.f32 %v11123_v60, %v15118_v61 }
0x2b17   : > { %v7676_v9 = vadd.f32 %v11124_v62, %v7670_v63 }
0x2b19   : > { %v7725_v14 = vpack.c.bf16 %v7676_v9, %v7676_v9 }
0x2b1b   : > { %13133 = vmatprep.subr.msk.bf16.mxu0 %vm1689_vm4, %v7725_v14  ;;  %v7919_v26 = vsel %vm1689_vm4, %v7725_v14, 0 }
0x2b1c   : > { %12849 = vmatpush3.bf16.msra.mxu0 %v7919_v26 }
0x2b1d   : > { %12918 = vmatprep.subr.bf16.mxu0 %v15524_v31 }
0x2b1f   : > { %12851 = vmatmul.mubr.msk.bf16.vlgmr.msra.gmra.mrb[112].mxu0 %vm7528_vm5, %v13521_v58 }
0x2b20   : > { %12854 = vmatprep.mubr.msk.bf16.mxu0 %vm7528_vm5, %v13522_v7 }
0x2b27   : > { %12855 = vmatmul.mubr.msk.bf16.gmra.mrb[116].mxu0 %vm7528_vm5, %v13523_v40 }
0x2b28   : > { %12858 = vmatprep.mubr.msk.bf16.mxu0 %vm7528_vm5, %v13524_v27 }
0x2b2f   : > { %12859 = vmatmul.mubr.msk.bf16.gmra.mrb[120].mxu0 %vm7528_vm5, %v13525_v1 }
0x2b30   : > { %12862 = vmatprep.mubr.msk.bf16.mxu0 %vm7528_vm5, %v13526_v32 }
0x2b37   : > { %12863 = vmatmul.mubr.msk.bf16.gmra.mrb[124].mxu0 %vm7528_vm5, %v13527_v47 }
0x2b38   : > { %12866 = vmatprep.mubr.msk.bf16.mxu0 %vm7528_vm5, %v13528_v34 }
0x2b3f   : > { %12867 = vmatmul.mubr.msk.bf16.gmra.mrb[128].mxu0 %vm7528_vm5, %v13529_v36 }
0x2b40   : > { %12870 = vmatprep.mubr.msk.bf16.mxu0 %vm7528_vm5, %v13530_v33 }
0x2b47   : > { %12871 = vmatmul.mubr.msk.bf16.gmra.mrb[132].mxu0 %vm7528_vm5, %v13531_v5 }
0x2b48   : > { %12874 = vmatprep.mubr.msk.bf16.mxu0 %vm7528_vm5, %v13532_v4 }
0x2b4f   : > { %12875 = vmatmul.mubr.msk.bf16.gmra.mrb[136].mxu0 %vm7528_vm5, %v13533_v10 }
0x2b50   : > { %12878 = vmatprep.mubr.msk.bf16.mxu0 %vm7528_vm5, %v13534_v3 }
0x2b57   : > { %12879 = vmatmul.mubr.msk.bf16.gmra.mrb[140].mxu0 %vm7528_vm5, %v13535_v6 }
0x2b58   : > { %12882 = vmatprep.mubr.msk.bf16.mxu0 %vm7528_vm5, %v13536_v8 }
0x2b5f   : > { %12883 = vmatmul.mubr.msk.bf16.gmra.mrb[144].mxu0 %vm7528_vm5, %v13537_v52 }
0x2b60   : > { %12886 = vmatprep.mubr.msk.bf16.mxu0 %vm7528_vm5, %v13538_v15 }
0x2b67   : > { %12887 = vmatmul.mubr.msk.bf16.gmra.mrb[148].mxu0 %vm7528_vm5, %v13539_v16 }
0x2b68   : > { %12890 = vmatprep.mubr.msk.bf16.mxu0 %vm7528_vm5, %v13540_v22 }
0x2b6f   : > { %12891 = vmatmul.mubr.msk.bf16.gmra.mrb[152].mxu0 %vm7528_vm5, %v13541_v17 }
0x2b70   : > { %12894 = vmatprep.mubr.msk.bf16.mxu0 %vm7528_vm5, %v13542_v18  ;;  %v11173_v18 = vcombine.low %v15174_v20, %v15174_v20 }
0x2b77   : > { %12895 = vmatmul.mubr.msk.bf16.gmra.mrb[156].mxu0 %vm7528_vm5, %v13543_v19 }
0x2b78   : > { %12934 = vmatprep.mubr.msk.bf16.mxu0 %vm13824_vm0, %v15524_v31 }
0x2bf2   : > { %v12852_v25 = vpop.f32.mrb[112].mxu0 }
0x2bf3   : > { %v7955_v0 = vpop.f32.mrb[113].mxu0 }
0x2bf4   : > { %v12853_v37 = vpop.f32.mrb[114].mxu0 }
0x2bf5   : > { %v8149_v35 = vpack.c.bf16 %v12853_v37, %v12852_v25  ;;  %v7958_v12 = vpop.f32.mrb[115].mxu0 }
0x2bf6   : > { %v8148_v29 = vpack.c.bf16 %v7958_v12, %v7955_v0 }
0x2bfa   : > { %v12856_v28 = vpop.f32.mrb[116].mxu0 }
0x2bfb   : > { %v7971_v2 = vpop.f32.mrb[117].mxu0 }
0x2bfc   : > { %v12857_v41 = vpop.f32.mrb[118].mxu0 }
0x2bfd   : > { %v8151_v42 = vpack.c.bf16 %v12857_v41, %v12856_v28  ;;  %v7974_v44 = vpop.f32.mrb[119].mxu0 }
0x2bfe   : > { %v8150_v45 = vpack.c.bf16 %v7974_v44, %v7971_v2 }
0x2c02   : > { %v12860_v51 = vpop.f32.mrb[120].mxu0 }
0x2c03   : > { %v7987_v11 = vpop.f32.mrb[121].mxu0 }
0x2c04   : > { %v12861_v48 = vpop.f32.mrb[122].mxu0 }
0x2c05   : > { %v8153_v53 = vpack.c.bf16 %v12861_v48, %v12860_v51  ;;  %v7990_v13 = vpop.f32.mrb[123].mxu0 }
0x2c06   : > { %v8152_v30 = vpack.c.bf16 %v7990_v13, %v7987_v11 }
0x2c0a   : > { %v12864_v54 = vpop.f32.mrb[124].mxu0 }
0x2c0b   : > { %v8003_v55 = vpop.f32.mrb[125].mxu0 }
0x2c0c   : > { %v12865_v56 = vpop.f32.mrb[126].mxu0 }
0x2c0d   : > { %v8155_v57 = vpack.c.bf16 %v12865_v56, %v12864_v54  ;;  %v8006_v39 = vpop.f32.mrb[127].mxu0  ;;  %v13546_v54 = vld [vmem:[%s15568_s2 + $0x8] ss:$0 sps:$4 sm:$0xff]   ;;  %v13549_v56 = vld [vmem:[%s15569_s7 + $0x4] ss:$12 sps:$4 sm:$0xff]   ;;  %s15573_s2 = sld [smem:[#allocation22_spill]] }
0x2c0e   : > { %v8154_v59 = vpack.c.bf16 %v8006_v39, %v8003_v55  ;;  %v13547_v55 = vld [vmem:[%s15569_s7] ss:$12 sps:$4 sm:$0xff]   ;;  %v13553_v39 = vld [vmem:[%s15569_s7 + $0x1c] ss:$12 sps:$4 sm:$0xff]  }
0x2c12   : > { %v12868_v60 = vpop.f32.mrb[128].mxu0 }
0x2c13   : > { %v8019_v62 = vpop.f32.mrb[129].mxu0 }
0x2c14   : > { %v12869_v63 = vpop.f32.mrb[130].mxu0 }
0x2c15   : > { %v8157_v9 = vpack.c.bf16 %v12869_v63, %v12868_v60  ;;  %v8022_v14 = vpop.f32.mrb[131].mxu0  ;;  %v13554_v60 = vld [vmem:[%s15569_s7 + $0x20] ss:$12 sps:$4 sm:$0xff]   ;;  %v13555_v63 = vld [vmem:[%s15569_s7 + $0x30] ss:$12 sps:$4 sm:$0xff]  }
0x2c16   : > { %v8156_v26 = vpack.c.bf16 %v8022_v14, %v8019_v62  ;;  %v13557_v62 = vld [vmem:[%s15569_s7 + $0x34] ss:$12 sps:$4 sm:$0xff]  }
0x2c17   : > { %v13559_v14 = vld [vmem:[%s15569_s7 + $0x48] ss:$12 sps:$4 sm:$0xff]  }
0x2c18   : > { %11840 = vmatprep.subr.bf16.mxu1 %v8156_v26  ;;  %v13561_v26 = vld [vmem:[%s15569_s7 + $0x4c] ss:$12 sps:$4 sm:$0xff]  }
0x2c19   : > { %11841 = vmatpush3.bf16.msra.mxu1 %v8148_v29 }
0x2c1a   : > { %v12872_v58 = vpop.f32.mrb[132].mxu0  ;;  %11842 = vmatprep.subr.bf16.mxu1 %v8157_v9  ;;  %v13558_v9 = vld [vmem:[%s15569_s7 + $0x38] ss:$12 sps:$4 sm:$0xff]  }
0x2c1b   : > { %v8035_v7 = vpop.f32.mrb[133].mxu0 }
0x2c1c   : > { %v12873_v40 = vpop.f32.mrb[134].mxu0 }
0x2c1d   : > { %v8159_v27 = vpack.c.bf16 %v12873_v40, %v12872_v58  ;;  %v8038_v1 = vpop.f32.mrb[135].mxu0  ;;  %11843 = vmatpush3.bf16.msra.mxu1 %v8149_v35  ;;  %v13562_v58 = vld [vmem:[%s15569_s7 + $0x50] ss:$12 sps:$4 sm:$0xff]   ;;  %v13563_v40 = vld [vmem:[%s15569_s7 + $0x60] ss:$12 sps:$4 sm:$0xff]  }
0x2c1e   : > { %v8158_v32 = vpack.c.bf16 %v8038_v1, %v8035_v7  ;;  %v13565_v7 = vld [vmem:[%s15569_s7 + $0x64] ss:$12 sps:$4 sm:$0xff]   ;;  %v13569_v1 = vld [vmem:[%s15569_s7 + $0x7c] ss:$12 sps:$4 sm:$0xff]  }
0x2c20   : > { %11844 = vmatprep.subr.bf16.mxu1 %v8158_v32  ;;  %v13567_v32 = vld [vmem:[%s15569_s7 + $0x78] ss:$12 sps:$4 sm:$0xff]  }
0x2c21   : > { %11845 = vmatpush3.bf16.msra.mxu1 %v8150_v45 }
0x2c22   : > { %v12876_v47 = vpop.f32.mrb[136].mxu0  ;;  %11846 = vmatprep.subr.bf16.mxu1 %v8159_v27  ;;  %v13566_v27 = vld [vmem:[%s15569_s7 + $0x68] ss:$12 sps:$4 sm:$0xff]  }
0x2c23   : > { %v8051_v34 = vpop.f32.mrb[137].mxu0 }
0x2c24   : > { %v12877_v36 = vpop.f32.mrb[138].mxu0 }
0x2c25   : > { %v8161_v33 = vpack.c.bf16 %v12877_v36, %v12876_v47  ;;  %v8054_v5 = vpop.f32.mrb[139].mxu0  ;;  %11847 = vmatpush3.bf16.msra.mxu1 %v8151_v42  ;;  %v13570_v47 = vld [vmem:[%s15569_s7 + $0x80] ss:$12 sps:$4 sm:$0xff]   ;;  %v13571_v36 = vld [vmem:[%s15569_s7 + $0x90] ss:$12 sps:$4 sm:$0xff]  }
0x2c26   : > { %v8160_v4 = vpack.c.bf16 %v8054_v5, %v8051_v34  ;;  %v13573_v34 = vld [vmem:[%s15569_s7 + $0x94] ss:$12 sps:$4 sm:$0xff]   ;;  %v13577_v5 = vld [vmem:[%s15569_s7 + $0xac] ss:$12 sps:$4 sm:$0xff]  }
0x2c28   : > { %11848 = vmatprep.subr.bf16.mxu1 %v8160_v4  ;;  %v13575_v4 = vld [vmem:[%s15569_s7 + $0xa8] ss:$12 sps:$4 sm:$0xff]  }
0x2c29   : > { %11849 = vmatpush3.bf16.msra.mxu1 %v8152_v30 }
0x2c2a   : > { %v12880_v10 = vpop.f32.mrb[140].mxu0  ;;  %11850 = vmatprep.subr.bf16.mxu1 %v8161_v33  ;;  %v13574_v33 = vld [vmem:[%s15569_s7 + $0x98] ss:$12 sps:$4 sm:$0xff]  }
0x2c2b   : > { %v8067_v3 = vpop.f32.mrb[141].mxu0 }
0x2c2c   : > { %v12881_v6 = vpop.f32.mrb[142].mxu0 }
0x2c2d   : > { %v8163_v8 = vpack.c.bf16 %v12881_v6, %v12880_v10  ;;  %v8070_v52 = vpop.f32.mrb[143].mxu0  ;;  %11851 = vmatpush3.bf16.msra.mxu1 %v8153_v53  ;;  %v13578_v10 = vld [vmem:[%s15569_s7 + $0xb0] ss:$12 sps:$4 sm:$0xff]  }
0x2c2e   : > { %v8162_v15 = vpack.c.bf16 %v8070_v52, %v8067_v3  ;;  %v13579_v3 = vld [vmem:[%s15570_s0 + $0x40] sm:$0xff]  }
0x2c30   : > { %11852 = vmatprep.subr.bf16.mxu1 %v8162_v15 }
0x2c31   : > { %11853 = vmatpush3.bf16.msra.mxu1 %v8154_v59  ;;  %v13551_v59 = vld [vmem:[%s15569_s7 + $0x18] ss:$12 sps:$4 sm:$0xff]  }
0x2c32   : > { %v12884_v16 = vpop.f32.mrb[144].mxu0  ;;  %11854 = vmatprep.subr.bf16.mxu1 %v8163_v8 }
0x2c33   : > { %v8083_v22 = vpop.f32.mrb[145].mxu0 }
0x2c34   : > { %v12885_v17 = vpop.f32.mrb[146].mxu0 }
0x2c35   : > { %v8165_v19 = vpack.c.bf16 %v12885_v17, %v12884_v16  ;;  %v8086_v21 = vpop.f32.mrb[147].mxu0  ;;  %11855 = vmatpush3.bf16.msra.mxu1 %v8155_v57  ;;  %v13550_v57 = vld [vmem:[%s15569_s7 + $0x8] ss:$12 sps:$4 sm:$0xff]  }
0x2c36   : > { %v8164_v25 = vpack.c.bf16 %v8086_v21, %v8083_v22  ;;  %12898 = vmatprep.subr.bf16.mxu1 %v15524_v31  ;;  %12919 = vmatpush3.bf16.msra.mxu0 %v13550_v57  ;;  %v8176_v22 = vpop.permute.xlu0 %8175  ;;  %v13598_v57 = vld [vmem:[%s15570_s0 + $0x98] sm:$0xff]  }
0x2c37   : > { %12920 = vmatprep.subr.bf16.mxu0 %v15524_v31 }
0x2c38   : > { %8222 = vmatmul.mubr.bf16.vlgmr.msra.gmra.mrb[116].mxu1 %v11173_v18 }
0x2c39   : > { %12899 = vmatpush3.bf16.msra.mxu1 %v8164_v25  ;;  %12914 = vmatprep.mubr.msk.bf16.mxu1 %vm13824_vm0, %v15524_v31 }
0x2c3a   : > { %v12888_v0 = vpop.f32.mrb[148].mxu0  ;;  %12900 = vmatprep.subr.bf16.mxu1 %v15524_v31  ;;  %12921 = vmatpush3.bf16.msra.mxu0 %v13554_v60  ;;  %v13599_v60 = vld [vmem:[%s15570_s0 + $0xa0] sm:$0xff]  }
0x2c3b   : > { %v8099_v37 = vpop.f32.mrb[149].mxu0  ;;  %12922 = vmatprep.subr.bf16.mxu0 %v15524_v31 }
0x2c3c   : > { %v12889_v35 = vpop.f32.mrb[150].mxu0 }
0x2c3d   : > { %v8167_v12 = vpack.c.bf16 %v12889_v35, %v12888_v0  ;;  %v8102_v29 = vpop.f32.mrb[151].mxu0  ;;  %12901 = vmatpush3.bf16.msra.mxu1 %v8165_v19 }
0x2c3e   : > { %v8166_v20 = vpack.c.bf16 %v8102_v29, %v8099_v37  ;;  %12902 = vmatprep.subr.bf16.mxu1 %v15524_v31  ;;  %12923 = vmatpush3.bf16.msra.mxu0 %v13558_v9  ;;  %v11225_v9 = vld [vmem:[%s15571_s10] ss:$0 sm:$0xff] }
0x2c3f   : > { %12924 = vmatprep.subr.bf16.mxu0 %v15524_v31 }
0x2c41   : > { %12903 = vmatpush3.bf16.msra.mxu1 %v8166_v20 }
0x2c42   : > { %v12892_v28 = vpop.f32.mrb[152].mxu0  ;;  %12904 = vmatprep.subr.bf16.mxu1 %v15524_v31  ;;  %12925 = vmatpush3.bf16.msra.mxu0 %v13562_v58  ;;  %v8834_v58 = vmul.f32 %v11225_v9, %v15118_v61  ;;  %v13602_v61 = vld [vmem:[%s15570_s0 + $0xb8] sm:$0xff]  }
0x2c43   : > { %v8115_v2 = vpop.f32.mrb[153].mxu0  ;;  %12926 = vmatprep.subr.bf16.mxu0 %v15524_v31 }
0x2c44   : > { %v12893_v41 = vpop.f32.mrb[154].mxu0 }
0x2c45   : > { %v8169_v42 = vpack.c.bf16 %v12893_v41, %v12892_v28  ;;  %v8118_v44 = vpop.f32.mrb[155].mxu0  ;;  %12905 = vmatpush3.bf16.msra.mxu1 %v8167_v12 }
0x2c46   : > { %v8168_v45 = vpack.c.bf16 %v8118_v44, %v8115_v2  ;;  %12906 = vmatprep.subr.bf16.mxu1 %v15524_v31  ;;  %12927 = vmatpush3.bf16.msra.mxu0 %v13566_v27  ;;  %v13580_v44 = vld [vmem:[%s15570_s0] sm:$0xff]   ;;  %v13601_v27 = vld [vmem:[%s15570_s0 + $0xb0] sm:$0xff]  }
0x2c47   : > { %12928 = vmatprep.subr.bf16.mxu0 %v15524_v31 }
0x2c49   : > { %12907 = vmatpush3.bf16.msra.mxu1 %v8168_v45  ;;  %v13595_v45 = vld [vmem:[%s15570_s0 + $0x80] sm:$0xff]  }
0x2c4a   : > { %v12896_v51 = vpop.f32.mrb[156].mxu0  ;;  %12908 = vmatprep.subr.bf16.mxu1 %v15524_v31  ;;  %12929 = vmatpush3.bf16.msra.mxu0 %v13570_v47  ;;  %v13594_v47 = vld [vmem:[%s15570_s0 + $0x38] sm:$0xff]  }
0x2c4b   : > { %v8131_v11 = vpop.f32.mrb[157].mxu0  ;;  %12930 = vmatprep.subr.bf16.mxu0 %v15524_v31 }
0x2c4c   : > { %v12897_v48 = vpop.f32.mrb[158].mxu0 }
0x2c4d   : > { %v8171_v53 = vpack.c.bf16 %v12897_v48, %v12896_v51  ;;  %v8134_v13 = vpop.f32.mrb[159].mxu0  ;;  %12909 = vmatpush3.bf16.msra.mxu1 %v8169_v42  ;;  %v13582_v48 = vld [vmem:[%s15570_s0 + $0x8] sm:$0xff]  }
0x2c4e   : > { %v8170_v30 = vpack.c.bf16 %v8134_v13, %v8131_v11  ;;  %12910 = vmatprep.subr.bf16.mxu1 %v15524_v31  ;;  %12931 = vmatpush3.bf16.msra.mxu0 %v13574_v33  ;;  %v13581_v11 = vld [vmem:[%s15570_s0 + $0x48] sm:$0xff]   ;;  %v13583_v13 = vld [vmem:[%s15570_s0 + $0x50] sm:$0xff]  }
0x2c4f   : > { %12932 = vmatprep.subr.bf16.mxu0 %v15524_v31 }
0x2c51   : > { %12911 = vmatpush3.bf16.msra.mxu1 %v8170_v30  ;;  %v13584_v30 = vld [vmem:[%s15570_s0 + $0x10] sm:$0xff]  }
0x2c52   : > { %12912 = vmatprep.subr.bf16.mxu1 %v15524_v31  ;;  %12933 = vmatpush3.bf16.msra.mxu0 %v13578_v10 }
0x2c53   : > { %12938 = vmatprep.subr.bf16.mxu0 %v15524_v31 }
0x2c55   : > { %12913 = vmatpush3.bf16.msra.mxu1 %v8171_v53  ;;  %v13596_v53 = vld [vmem:[%s15570_s0 + $0x88] sm:$0xff]  }
0x2c56   : > { %8456 = vmatprep.subr.bf16.mxu1 %v13549_v56  ;;  %v13586_v56 = vld [vmem:[%s15570_s0 + $0x18] sm:$0xff]  }
0x2c58   : > { %12915 = vmatmul.mubr.bf16.vlgmr.msra.gmra.mrb[120].mxu1 %v13546_v54  ;;  %v13597_v54 = vld [vmem:[%s15570_s0 + $0x90] sm:$0xff]  }
0x2c59   : > { %8488 = vmatprep.mubr.bf16.mxu1 %v15525_v24  ;;  %8457 = vmatpush1.bf16.msra.mxu1 %v13547_v55  ;;  %v13585_v55 = vld [vmem:[%s15570_s0 + $0x58] sm:$0xff]  }
0x2c5a   : > { %8458 = vmatprep.subr.bf16.mxu1 %v13553_v39  ;;  %v13587_v39 = vld [vmem:[%s15570_s0 + $0x60] sm:$0xff]  }
0x2c5d   : > { %8459 = vmatpush1.bf16.msra.mxu1 %v13551_v59  ;;  %v13588_v59 = vld [vmem:[%s15570_s0 + $0x20] sm:$0xff]  }
0x2c5e   : > { %8460 = vmatprep.subr.bf16.mxu1 %v13557_v62  ;;  %v13589_v62 = vld [vmem:[%s15570_s0 + $0x68] sm:$0xff]  }
0x2c61   : > { %8461 = vmatpush1.bf16.msra.mxu1 %v13555_v63  ;;  %v13590_v63 = vld [vmem:[%s15570_s0 + $0x28] sm:$0xff]  }
0x2c62   : > { %8462 = vmatprep.subr.bf16.mxu1 %v13561_v26  ;;  %v13591_v26 = vld [vmem:[%s15570_s0 + $0x70] sm:$0xff]  }
0x2c65   : > { %8463 = vmatpush1.bf16.msra.mxu1 %v13559_v14  ;;  %v13600_v14 = vld [vmem:[%s15570_s0 + $0xa8] sm:$0xff]  }
0x2c66   : > { %8464 = vmatprep.subr.bf16.mxu1 %v13565_v7  ;;  %v13592_v7 = vld [vmem:[%s15570_s0 + $0x30] sm:$0xff]  }
0x2c69   : > { %8465 = vmatpush1.bf16.msra.mxu1 %v13563_v40  ;;  %v11226_v40 = vld [vmem:[%s15571_s10 + $0x1] ss:$0 sm:$0xff] }
0x2c6a   : > { %8466 = vmatprep.subr.bf16.mxu1 %v13569_v1  ;;  %v13593_v1 = vld [vmem:[%s15570_s0 + $0x78] sm:$0xff]   ;;  %s15575_s0 = sld [smem:[#allocation25_spill]] }
0x2c6d   : > { %8467 = vmatpush1.bf16.msra.mxu1 %v13567_v32  ;;  %v8840_v32 = vadd.f32 %v11226_v40, %v8834_v58 }
0x2c6e   : > { %8468 = vmatprep.subr.bf16.mxu1 %v13573_v34 }
0x2c6f   : > { %v8889_v34 = vpack.c.bf16 %v8840_v32, %v8840_v32 }
0x2c71   : > { %8469 = vmatpush1.bf16.msra.mxu1 %v13571_v36  ;;  %v8311_v36 = vld [vmem:[%s15572_s1] sm:$0x7]  ;;  %s15574_s1 = sld [smem:[#allocation23_spill]] }
0x2c72   : > { %8470 = vmatprep.subr.bf16.mxu1 %v13577_v5  ;;  %v8316_v33 = vrot.slane %v8311_v36, %v15560_v43  ;;  %v8324_v5 = vrot.slane %v8311_v36, %v15559_v38 }
0x2c75   : > { %8471 = vmatpush1.bf16.msra.mxu1 %v13575_v4  ;;  %v8320_v4 = vrot.slane %v8311_v36, %v15561_v23 }
0x2c76   : > { %11880 = vmatprep.subr.bf16.mxu1 %v13579_v3 }
0x2d0b   : > { %v11856_v6 = vpop.f32.mrb[116].mxu1 }
0x2d0c   : > { %v11857_v8 = vpop.f32.mrb[117].mxu1 }
0x2d0d   : > { %v11858_v52 = vadd.f32 %v11857_v8, %v11856_v6  ;;  %v11859_v15 = vpop.f32.mrb[118].mxu1 }
0x2d0e   : > { %v11860_v16 = vpop.f32.mrb[119].mxu1 }
0x2d0f   : > { %v8224_v17 = vadd.f32 %v11858_v52, %v8176_v22 }
0x2d2b   : > { %v8263_v18 = vpop.f32.mrb[120].mxu1 }
0x2d2c   : > { %v8264_v19 = vadd.f32 %v8263_v18, %v8224_v17  ;;  %v12916_v21 = vpop.f32.mrb[121].mxu1 }
0x2d2d   : > { %v8266_v25 = vpop.f32.mrb[122].mxu1 }
0x2d2e   : > { %v8270_v0 = vmul.f32 0.044715, %v8264_v19  ;;  %v12917_v37 = vpop.f32.mrb[123].mxu1  ;;  %v8269_v2 = vmul.f32 0.5, %v8264_v19 }
0x2d30   : > { %v8271_v35 = vmul.f32 %v8270_v0, %v8264_v19  ;;  %v13603_v0 = vld [vmem:[%s15573_s2] sm:$0xff]  }
0x2d32   : > { %v8272_v12 = vmul.f32 %v8271_v35, %v8264_v19  ;;  %v9083_v35 = vsel %vm1689_vm4, %v8889_v34, 0 }
0x2d34   : > { %v8273_v29 = vadd.f32 %v8272_v12, %v8264_v19  ;;  %v13604_v12 = vld [vmem:[%s15573_s2 + $0x8] sm:$0xff]  }
0x2d36   : > { %v8274_v20 = vmul.f32 0.7978846, %v8273_v29  ;;  %v13605_v29 = vld [vmem:[%s15573_s2 + $0x10] sm:$0xff]  }
0x2d38   : > { %13766 = vtanh.f32 %v8274_v20  ;;  %v13606_v20 = vld [vmem:[%s15573_s2 + $0x18] sm:$0xff]  }
0x2d42   : > { %v13767_v28 = vpop.eup %13766 }
0x2d43   : > { %v8276_v41 = vadd.f32 1.0, %v13767_v28  ;;  %v13607_v28 = vld [vmem:[%s15573_s2 + $0x20] sm:$0xff]  }
0x2d45   : > { %v8277_v42 = vmul.f32 %v8276_v41, %v8269_v2  ;;  %v13608_v2 = vld [vmem:[%s15573_s2 + $0x28] sm:$0xff]   ;;  %v13609_v41 = vld [vmem:[%s15573_s2 + $0x30] sm:$0xff]  }
0x2d47   : > { %v8278_v51 = vpack.c.bf16 %v8277_v42, %v8277_v42  ;;  %v13610_v42 = vld [vmem:[%s15573_s2 + $0x38] sm:$0xff]  }
0x2d49   : > { %8489 = vmatmul.mubr.bf16.vlgmr.msra.gmra.mrb[124].mxu1 %v8278_v51  ;;  %12935 = vmatmul.mubr.bf16.vlgmr.msra.gmra.mrb[160].mxu0 %v8278_v51  ;;  %v13613_v51 = vld [vmem:[%s15573_s2 + $0x50] sm:$0xff]  }
0x2d4a   : > { %11881 = vmatpush3.bf16.msra.mxu1 %v13580_v44  ;;  %12939 = vmatpush3.bf16.msra.mxu0 %v13595_v45  ;;  %v13611_v44 = vld [vmem:[%s15573_s2 + $0x40] sm:$0xff]   ;;  %v13612_v45 = vld [vmem:[%s15573_s2 + $0x48] sm:$0xff]  }
0x2d4b   : > { %11882 = vmatprep.subr.bf16.mxu1 %v13581_v11  ;;  %12940 = vmatprep.subr.bf16.mxu0 %v15524_v31  ;;  %v13614_v11 = vld [vmem:[%s15573_s2 + $0x58] sm:$0xff]  }
0x2d4c   : > { %12954 = vmatprep.mubr.msk.bf16.mxu0 %vm13824_vm0, %v15524_v31 }
0x2d4e   : > { %11883 = vmatpush3.bf16.msra.mxu1 %v13582_v48  ;;  %12941 = vmatpush3.bf16.msra.mxu0 %v13596_v53  ;;  %v13615_v48 = vld [vmem:[%s15573_s2 + $0x60] sm:$0xff]   ;;  %v13616_v53 = vld [vmem:[%s15573_s2 + $0x68] sm:$0xff]  }
0x2d4f   : > { %11884 = vmatprep.subr.bf16.mxu1 %v13583_v13  ;;  %12942 = vmatprep.subr.bf16.mxu0 %v15524_v31  ;;  %v13617_v13 = vld [vmem:[%s15573_s2 + $0x70] sm:$0xff]  }
0x2d52   : > { %11885 = vmatpush3.bf16.msra.mxu1 %v13584_v30  ;;  %12943 = vmatpush3.bf16.msra.mxu0 %v13597_v54  ;;  %v13618_v30 = vld [vmem:[%s15573_s2 + $0x78] sm:$0xff]   ;;  %v13619_v54 = vld [vmem:[%s15573_s2 + $0x80] sm:$0xff]  }
0x2d53   : > { %11886 = vmatprep.subr.bf16.mxu1 %v13585_v55  ;;  %12944 = vmatprep.subr.bf16.mxu0 %v15524_v31  ;;  %v13620_v55 = vld [vmem:[%s15573_s2 + $0x88] sm:$0xff]  }
0x2d56   : > { %11887 = vmatpush3.bf16.msra.mxu1 %v13586_v56  ;;  %12945 = vmatpush3.bf16.msra.mxu0 %v13598_v57  ;;  %v13621_v56 = vld [vmem:[%s15573_s2 + $0x90] sm:$0xff]   ;;  %v13622_v57 = vld [vmem:[%s15573_s2 + $0x98] sm:$0xff]  }
0x2d57   : > { %11888 = vmatprep.subr.bf16.mxu1 %v13587_v39  ;;  %12946 = vmatprep.subr.bf16.mxu0 %v15524_v31  ;;  %v13623_v39 = vld [vmem:[%s15573_s2 + $0xa0] sm:$0xff]  }
0x2d5a   : > { %11889 = vmatpush3.bf16.msra.mxu1 %v13588_v59  ;;  %12947 = vmatpush3.bf16.msra.mxu0 %v13599_v60  ;;  %v13624_v59 = vld [vmem:[%s15573_s2 + $0xa8] sm:$0xff]   ;;  %v13625_v60 = vld [vmem:[%s15573_s2 + $0xb0] sm:$0xff]  }
0x2d5b   : > { %11890 = vmatprep.subr.bf16.mxu1 %v13589_v62  ;;  %12948 = vmatprep.subr.bf16.mxu0 %v15524_v31  ;;  %v13626_v62 = vld [vmem:[%s15573_s2 + $0xb8] sm:$0xff]  }
0x2d5e   : > { %11891 = vmatpush3.bf16.msra.mxu1 %v13590_v63  ;;  %12949 = vmatpush3.bf16.msra.mxu0 %v13600_v14  ;;  %v15318_v63 = vld [vmem:[%s15574_s1] sm:$0xff]  ;;  %v13630_v14 = vld [vmem:[%s15575_s0 + $0x8] ss:$12 sps:$4 sm:$0xff]  }
0x2d5f   : > { %11892 = vmatprep.subr.bf16.mxu1 %v13591_v26  ;;  %12950 = vmatprep.subr.bf16.mxu0 %v15524_v31  ;;  %v11276_v9 = vcombine.high %v15318_v63, %v15318_v63  ;;  %v13631_v26 = vld [vmem:[%s15575_s0 + $0x20] ss:$12 sps:$4 sm:$0xff]  }
0x2d62   : > { %11893 = vmatpush3.bf16.msra.mxu1 %v13592_v7  ;;  %12951 = vmatpush3.bf16.msra.mxu0 %v13601_v27 }
0x2d63   : > { %11894 = vmatprep.subr.bf16.mxu1 %v13593_v1  ;;  %12952 = vmatprep.subr.bf16.mxu0 %v15524_v31  ;;  %v11200_v1 = vld [vmem:[%s15576_s3] ss:$0 sm:$0xff]  ;;  %s15577_s3 = sld [smem:[#allocation26_spill]] }
0x2d66   : > { %11895 = vmatpush3.bf16.msra.mxu1 %v13594_v47  ;;  %12953 = vmatpush3.bf16.msra.mxu0 %v13602_v61 }
0x2d67   : > { %13134 = vmatprep.subr.msk.bf16.mxu1 %vm1689_vm4, %v8889_v34 }
0x2e1c   : > { %v8490_v10 = vpop.f32.mrb[124].mxu1  ;;  %v8531_v3 = vpop.f32.mrb[160].mxu0 }
0x2e1d   : > { %v8491_v6 = vadd.f32 %v8490_v10, %v8316_v33  ;;  %v8532_v8 = vadd.f32 %v8531_v3, %v8324_v5  ;;  %v8492_v52 = vpop.f32.mrb[125].mxu1  ;;  %v12936_v15 = vpop.f32.mrb[161].mxu0 }
0x2e1e   : > { %v8493_v16 = vadd.f32 %v8492_v52, %v8320_v4  ;;  %v8494_v22 = vpop.f32.mrb[126].mxu1  ;;  %v8534_v17 = vpop.f32.mrb[162].mxu0 }
0x2e1f   : > { %v8539_v18 = vpack.c.bf16 %v8532_v8, %v8532_v8  ;;  %v8495_v19 = vpop.f32.mrb[127].mxu1  ;;  %v12937_v21 = vpop.f32.mrb[163].mxu0  ;;  %v8537_v37 = vpack.c.bf16 %v8491_v6, %v8491_v6 }
0x2e20   : > { %v8538_v25 = vpack.c.bf16 %v8493_v16, %v8493_v16 }
0x2e21   : > { %12955 = vmatmul.mubr.bf16.vlgmr.msra.gmra.mrb[164].mxu0 %v8539_v18 }
0x2e22   : > { %8771 = vmatprep.mubr.bf16.mxu1 %v8538_v25  ;;  %9385 = vmatprep.mubr.bf16.mxu0 %v11276_v9 }
0x2e23   : > { %8772 = vmatmul.mubr.bf16.vlgmr.msra.gmra.mrb[128].mxu1 %v8537_v37 }
0x2e24   : > { %12959 = vmatpush3.bf16.msra.mxu1 %v9083_v35  ;;  %12960 = vmatprep.mubr.msk.bf16.mxu1 %vm7528_vm5, %v13603_v0 }
0x2e25   : > { %13028 = vmatprep.subr.bf16.mxu1 %v15524_v31 }
0x2e2b   : > { %12961 = vmatmul.mubr.msk.bf16.vlgmr.msra.gmra.mrb[132].mxu1 %vm7528_vm5, %v13604_v12 }
0x2e2c   : > { %12964 = vmatprep.mubr.msk.bf16.mxu1 %vm7528_vm5, %v13605_v29  ;;  %13029 = vmatpush3.bf16.msra.mxu1 %v13630_v14 }
0x2e2d   : > { %13030 = vmatprep.subr.bf16.mxu1 %v15524_v31 }
0x2e30   : > { %13031 = vmatpush3.bf16.msra.mxu1 %v13631_v26 }
0x2e31   : > { %13032 = vmatprep.subr.bf16.mxu1 %v15524_v31 }
0x2e33   : > { %12965 = vmatmul.mubr.msk.bf16.gmra.mrb[136].mxu1 %vm7528_vm5, %v13606_v20 }
0x2e34   : > { %12968 = vmatprep.mubr.msk.bf16.mxu1 %vm7528_vm5, %v13607_v28 }
0x2e3b   : > { %12969 = vmatmul.mubr.msk.bf16.gmra.mrb[140].mxu1 %vm7528_vm5, %v13608_v2 }
0x2e3c   : > { %12972 = vmatprep.mubr.msk.bf16.mxu1 %vm7528_vm5, %v13609_v41 }
0x2e43   : > { %12973 = vmatmul.mubr.msk.bf16.gmra.mrb[144].mxu1 %vm7528_vm5, %v13610_v42 }
0x2e44   : > { %12976 = vmatprep.mubr.msk.bf16.mxu1 %vm7528_vm5, %v13611_v44 }
0x2e4b   : > { %12977 = vmatmul.mubr.msk.bf16.gmra.mrb[148].mxu1 %vm7528_vm5, %v13612_v45 }
0x2e4c   : > { %12980 = vmatprep.mubr.msk.bf16.mxu1 %vm7528_vm5, %v13613_v51 }
0x2e53   : > { %12981 = vmatmul.mubr.msk.bf16.gmra.mrb[152].mxu1 %vm7528_vm5, %v13614_v11 }
0x2e54   : > { %12984 = vmatprep.mubr.msk.bf16.mxu1 %vm7528_vm5, %v13615_v48 }
0x2e5b   : > { %12985 = vmatmul.mubr.msk.bf16.gmra.mrb[156].mxu1 %vm7528_vm5, %v13616_v53 }
0x2e5c   : > { %12988 = vmatprep.mubr.msk.bf16.mxu1 %vm7528_vm5, %v13617_v13 }
0x2e63   : > { %12989 = vmatmul.mubr.msk.bf16.gmra.mrb[160].mxu1 %vm7528_vm5, %v13618_v30 }
0x2e64   : > { %12992 = vmatprep.mubr.msk.bf16.mxu1 %vm7528_vm5, %v13619_v54 }
0x2e6b   : > { %12993 = vmatmul.mubr.msk.bf16.gmra.mrb[164].mxu1 %vm7528_vm5, %v13620_v55 }
0x2e6c   : > { %12996 = vmatprep.mubr.msk.bf16.mxu1 %vm7528_vm5, %v13621_v56 }
0x2e73   : > { %12997 = vmatmul.mubr.msk.bf16.gmra.mrb[168].mxu1 %vm7528_vm5, %v13622_v57 }
0x2e74   : > { %13000 = vmatprep.mubr.msk.bf16.mxu1 %vm7528_vm5, %v13623_v39 }
0x2e7b   : > { %13001 = vmatmul.mubr.msk.bf16.gmra.mrb[172].mxu1 %vm7528_vm5, %v13624_v59 }
0x2e7c   : > { %13004 = vmatprep.mubr.msk.bf16.mxu1 %vm7528_vm5, %v13625_v60 }
0x2e83   : > { %13005 = vmatmul.mubr.msk.bf16.gmra.mrb[176].mxu1 %vm7528_vm5, %v13626_v62 }
0x2e84   : > { %13044 = vmatprep.mubr.msk.bf16.mxu1 %vm13824_vm0, %v15524_v31 }
0x2ef4   : > { %v8813_v58 = vpop.f32.mrb[164].mxu0 }
0x2ef5   : > { %v12956_v7 = vpop.f32.mrb[165].mxu0 }
0x2ef6   : > { %v11896_v40 = vpop.f32.mrb[128].mxu1  ;;  %v8816_v27 = vpop.f32.mrb[166].mxu0 }
0x2ef7   : > { %v11897_v32 = vpop.f32.mrb[129].mxu1  ;;  %v12957_v47 = vpop.f32.mrb[167].mxu0 }
0x2ef8   : > { %v11898_v34 = vadd.f32 %v11897_v32, %v11896_v40  ;;  %v11899_v61 = vpop.f32.mrb[130].mxu1 }
0x2ef9   : > { %v11900_v36 = vpop.f32.mrb[131].mxu1 }
0x2efa   : > { %v8774_v33 = vadd.f32 %v11898_v34, %v11200_v1 }
0x2efc   : > { %v8814_v5 = vadd.f32 %v8813_v58, %v8774_v33 }
0x2efe   : > { %v8820_v4 = vmul.f32 0.044715, %v8814_v5  ;;  %v12962_v10 = vpop.f32.mrb[132].mxu1  ;;  %v8819_v44 = vmul.f32 0.5, %v8814_v5 }
0x2eff   : > { %v9119_v3 = vpop.f32.mrb[133].mxu1 }
0x2f00   : > { %v8821_v6 = vmul.f32 %v8820_v4, %v8814_v5  ;;  %v12963_v8 = vpop.f32.mrb[134].mxu1 }
0x2f01   : > { %v9313_v52 = vpack.c.bf16 %v12963_v8, %v12962_v10  ;;  %v9122_v15 = vpop.f32.mrb[135].mxu1 }
0x2f02   : > { %v8822_v16 = vmul.f32 %v8821_v6, %v8814_v5  ;;  %v9312_v22 = vpack.c.bf16 %v9122_v15, %v9119_v3 }
0x2f04   : > { %v8823_v17 = vadd.f32 %v8822_v16, %v8814_v5 }
0x2f06   : > { %v8824_v18 = vmul.f32 0.7978846, %v8823_v17  ;;  %v12966_v19 = vpop.f32.mrb[136].mxu1 }
0x2f07   : > { %v9135_v21 = vpop.f32.mrb[137].mxu1 }
0x2f08   : > { %13768 = vtanh.f32 %v8824_v18  ;;  %v12967_v25 = vpop.f32.mrb[138].mxu1 }
0x2f09   : > { %v9315_v0 = vpack.c.bf16 %v12967_v25, %v12966_v19  ;;  %v9138_v37 = vpop.f32.mrb[139].mxu1 }
0x2f0a   : > { %v9314_v35 = vpack.c.bf16 %v9138_v37, %v9135_v21 }
0x2f0e   : > { %v12970_v12 = vpop.f32.mrb[140].mxu1 }
0x2f0f   : > { %v9151_v29 = vpop.f32.mrb[141].mxu1 }
0x2f10   : > { %v12971_v20 = vpop.f32.mrb[142].mxu1 }
0x2f11   : > { %v9317_v28 = vpack.c.bf16 %v12971_v20, %v12970_v12  ;;  %v9154_v2 = vpop.f32.mrb[143].mxu1 }
0x2f12   : > { %v13769_v41 = vpop.eup %13768  ;;  %v9316_v42 = vpack.c.bf16 %v9154_v2, %v9151_v29 }
0x2f13   : > { %v8826_v45 = vadd.f32 1.0, %v13769_v41 }
0x2f15   : > { %v8827_v51 = vmul.f32 %v8826_v45, %v8819_v44 }
0x2f16   : > { %v12974_v11 = vpop.f32.mrb[144].mxu1 }
0x2f17   : > { %8828 = vst [vmem:[#allocation3] sm:$0xff] %v8827_v51  ;;  %v9167_v48 = vpop.f32.mrb[145].mxu1  ;;  %v13629_v51 = vld [vmem:[%s15574_s1 + $0x8] ss:$0 sps:$4 sm:$0xff]  }
0x2f18   : > { %v12975_v53 = vpop.f32.mrb[146].mxu1 }
0x2f19   : > { %v9319_v13 = vpack.c.bf16 %v12975_v53, %v12974_v11  ;;  %v9170_v30 = vpop.f32.mrb[147].mxu1  ;;  %v13632_v11 = vld [vmem:[%s15575_s0 + $0x38] ss:$12 sps:$4 sm:$0xff]   ;;  %v13633_v53 = vld [vmem:[%s15575_s0 + $0x50] ss:$12 sps:$4 sm:$0xff]  }
0x2f1a   : > { %v9318_v54 = vpack.c.bf16 %v9170_v30, %v9167_v48  ;;  %v13635_v48 = vld [vmem:[%s15575_s0] ss:$12 sps:$4 sm:$0xff]   ;;  %13033 = vmatpush3.bf16.msra.mxu1 %v13632_v11  ;;  %v13634_v30 = vld [vmem:[%s15575_s0 + $0x68] ss:$12 sps:$4 sm:$0xff]  }
0x2f1b   : > { %13034 = vmatprep.subr.bf16.mxu1 %v15524_v31  ;;  %v13674_v11 = vld [vmem:[%s14023_s27 + $0xa0] sm:$0xff]  }
0x2f1e   : > { %v12978_v55 = vpop.f32.mrb[148].mxu1  ;;  %13035 = vmatpush3.bf16.msra.mxu1 %v13633_v53  ;;  %v13678_v53 = vld [vmem:[%s14023_s27 + $0x68] sm:$0xff]  }
0x2f1f   : > { %v9183_v56 = vpop.f32.mrb[149].mxu1  ;;  %13036 = vmatprep.subr.bf16.mxu1 %v15524_v31 }
0x2f20   : > { %v12979_v57 = vpop.f32.mrb[150].mxu1 }
0x2f21   : > { %v9321_v39 = vpack.c.bf16 %v12979_v57, %v12978_v55  ;;  %v9186_v59 = vpop.f32.mrb[151].mxu1  ;;  %v13643_v55 = vld [vmem:[%s15575_s0 + $0x34] ss:$12 sps:$4 sm:$0xff]  }
0x2f22   : > { %v9320_v60 = vpack.c.bf16 %v9186_v59, %v9183_v56  ;;  %13037 = vmatpush3.bf16.msra.mxu1 %v13634_v30  ;;  %v13641_v56 = vld [vmem:[%s15575_s0 + $0x30] ss:$12 sps:$4 sm:$0xff]   ;;  %v13644_v57 = vld [vmem:[%s15575_s0 + $0x80] ss:$12 sps:$4 sm:$0xff]  }
0x2f23   : > { %13038 = vmatprep.subr.bf16.mxu1 %v15524_v31  ;;  %v13647_v59 = vld [vmem:[%s15575_s0 + $0x4c] ss:$12 sps:$4 sm:$0xff]  }
0x2f24   : > { %11936 = vmatprep.subr.bf16.mxu0 %v9320_v60  ;;  %v13650_v60 = vld [vmem:[%s15575_s0 + $0x64] ss:$12 sps:$4 sm:$0xff]   ;;  %v13679_v30 = vld [vmem:[%s14023_s27 + $0x28] sm:$0xff]  }
0x2f25   : > { %11937 = vmatpush3.bf16.msra.mxu0 %v9312_v22 }
0x2f26   : > { %v12982_v62 = vpop.f32.mrb[152].mxu1  ;;  %11938 = vmatprep.subr.bf16.mxu0 %v9321_v39  ;;  %v13645_v39 = vld [vmem:[%s15575_s0 + $0x48] ss:$12 sps:$4 sm:$0xff]   ;;  %13039 = vmatpush3.bf16.msra.mxu1 %v13644_v57  ;;  %v13684_v57 = vld [vmem:[%s14023_s27 + $0x78] sm:$0xff]  }
0x2f27   : > { %v9199_v9 = vpop.f32.mrb[153].mxu1  ;;  %13040 = vmatprep.subr.bf16.mxu1 %v15524_v31 }
0x2f28   : > { %v12983_v14 = vpop.f32.mrb[154].mxu1 }
0x2f29   : > { %v9323_v26 = vpack.c.bf16 %v12983_v14, %v12982_v62  ;;  %v9202_v58 = vpop.f32.mrb[155].mxu1  ;;  %11939 = vmatpush3.bf16.msra.mxu0 %v9313_v52  ;;  %v11275_v52 = vcombine.low %v15318_v63, %v15318_v63  ;;  %v13654_v62 = vld [vmem:[%s15575_s0 + $0x98] ss:$12 sps:$4 sm:$0xff]   ;;  %v13653_v14 = vld [vmem:[%s15575_s0 + $0x7c] ss:$12 sps:$4 sm:$0xff]  }
0x2f2a   : > { %v9322_v7 = vpack.c.bf16 %v9202_v58, %v9199_v9  ;;  %v13648_v9 = vld [vmem:[%s15575_s0 + $0x60] ss:$12 sps:$4 sm:$0xff]   ;;  %13041 = vmatpush3.bf16.msra.mxu1 %v13654_v62  ;;  %v13651_v58 = vld [vmem:[%s15575_s0 + $0x78] ss:$12 sps:$4 sm:$0xff]  }
0x2f2b   : > { %13042 = vmatprep.subr.bf16.mxu1 %v15524_v31 }
0x2f2c   : > { %11940 = vmatprep.subr.bf16.mxu0 %v9322_v7  ;;  %v13657_v7 = vld [vmem:[%s15575_s0 + $0x94] ss:$12 sps:$4 sm:$0xff]  }
0x2f2d   : > { %11941 = vmatpush3.bf16.msra.mxu0 %v9314_v35 }
0x2f2e   : > { %v12986_v40 = vpop.f32.mrb[156].mxu1  ;;  %11942 = vmatprep.subr.bf16.mxu0 %v9323_v26  ;;  %v13661_v26 = vld [vmem:[%s15575_s0 + $0xb0] ss:$12 sps:$4 sm:$0xff]  }
0x2f2f   : > { %v9215_v27 = vpop.f32.mrb[157].mxu1  ;;  %13043 = vmatpush3.bf16.msra.mxu1 %v13661_v26 }
0x2f30   : > { %v12987_v1 = vpop.f32.mrb[158].mxu1  ;;  %13048 = vmatprep.subr.bf16.mxu1 %v15524_v31 }
0x2f31   : > { %v9325_v32 = vpack.c.bf16 %v12987_v1, %v12986_v40  ;;  %v9218_v47 = vpop.f32.mrb[159].mxu1  ;;  %11943 = vmatpush3.bf16.msra.mxu0 %v9315_v0  ;;  %v13655_v40 = vld [vmem:[%s15575_s0 + $0x90] ss:$12 sps:$4 sm:$0xff]   ;;  %v13658_v1 = vld [vmem:[%s15575_s0 + $0xa8] ss:$12 sps:$4 sm:$0xff]  }
0x2f32   : > { %v9324_v34 = vpack.c.bf16 %v9218_v47, %v9215_v27  ;;  %v13660_v27 = vld [vmem:[%s15575_s0 + $0xac] ss:$12 sps:$4 sm:$0xff]  }
0x2f34   : > { %11944 = vmatprep.subr.bf16.mxu0 %v9324_v34 }
0x2f35   : > { %11945 = vmatpush3.bf16.msra.mxu0 %v9316_v42 }
0x2f36   : > { %v12990_v61 = vpop.f32.mrb[160].mxu1  ;;  %11946 = vmatprep.subr.bf16.mxu0 %v9325_v32  ;;  %v13663_v32 = vld [vmem:[%s14023_s27 + $0x40] sm:$0xff]  }
0x2f37   : > { %v9231_v36 = vpop.f32.mrb[161].mxu1 }
0x2f38   : > { %v12991_v33 = vpop.f32.mrb[162].mxu1 }
0x2f39   : > { %v9327_v5 = vpack.c.bf16 %v12991_v33, %v12990_v61  ;;  %v9234_v4 = vpop.f32.mrb[163].mxu1  ;;  %11947 = vmatpush3.bf16.msra.mxu0 %v9317_v28 }
0x2f3a   : > { %v9326_v10 = vpack.c.bf16 %v9234_v4, %v9231_v36 }
0x2f3c   : > { %11948 = vmatprep.subr.bf16.mxu0 %v9326_v10 }
0x2f3d   : > { %11949 = vmatpush3.bf16.msra.mxu0 %v9318_v54  ;;  %v13638_v54 = vld [vmem:[%s15575_s0 + $0x18] ss:$12 sps:$4 sm:$0xff]  }
0x2f3e   : > { %v12994_v3 = vpop.f32.mrb[164].mxu1  ;;  %11950 = vmatprep.subr.bf16.mxu0 %v9327_v5  ;;  %v9340_v5 = vpop.permute.xlu1 %9339 }
0x2f3f   : > { %v9247_v6 = vpop.f32.mrb[165].mxu1 }
0x2f40   : > { %v12995_v8 = vpop.f32.mrb[166].mxu1 }
0x2f41   : > { %v9329_v15 = vpack.c.bf16 %v12995_v8, %v12994_v3  ;;  %v9250_v16 = vpop.f32.mrb[167].mxu1  ;;  %11951 = vmatpush3.bf16.msra.mxu0 %v9319_v13  ;;  %v13637_v13 = vld [vmem:[%s15575_s0 + $0x4] ss:$12 sps:$4 sm:$0xff]  }
0x2f42   : > { %v9328_v22 = vpack.c.bf16 %v9250_v16, %v9247_v6  ;;  %13008 = vmatprep.subr.bf16.mxu0 %v15524_v31 }
0x2f44   : > { %9386 = vmatmul.mubr.bf16.vlgmr.msra.gmra.mrb[168].mxu0 %v11275_v52 }
0x2f45   : > { %13009 = vmatpush3.bf16.msra.mxu0 %v9328_v22  ;;  %13024 = vmatprep.mubr.msk.bf16.mxu0 %vm13824_vm0, %v15524_v31 }
0x2f46   : > { %v12998_v17 = vpop.f32.mrb[168].mxu1  ;;  %13010 = vmatprep.subr.bf16.mxu0 %v15524_v31 }
0x2f47   : > { %v9263_v18 = vpop.f32.mrb[169].mxu1 }
0x2f48   : > { %v12999_v19 = vpop.f32.mrb[170].mxu1 }
0x2f49   : > { %v9331_v21 = vpack.c.bf16 %v12999_v19, %v12998_v17  ;;  %v9266_v25 = vpop.f32.mrb[171].mxu1  ;;  %13011 = vmatpush3.bf16.msra.mxu0 %v9329_v15 }
0x2f4a   : > { %v9330_v63 = vpack.c.bf16 %v9266_v25, %v9263_v18  ;;  %13012 = vmatprep.subr.bf16.mxu0 %v15524_v31 }
0x2f4d   : > { %13013 = vmatpush3.bf16.msra.mxu0 %v9330_v63 }
0x2f4e   : > { %v13002_v0 = vpop.f32.mrb[172].mxu1  ;;  %13014 = vmatprep.subr.bf16.mxu0 %v15524_v31 }
0x2f4f   : > { %v9279_v37 = vpop.f32.mrb[173].mxu1 }
0x2f50   : > { %v13003_v35 = vpop.f32.mrb[174].mxu1 }
0x2f51   : > { %v9333_v12 = vpack.c.bf16 %v13003_v35, %v13002_v0  ;;  %v9282_v29 = vpop.f32.mrb[175].mxu1  ;;  %13015 = vmatpush3.bf16.msra.mxu0 %v9331_v21  ;;  %v13662_v0 = vld [vmem:[%s14023_s27 + $0x80] sm:$0xff]  }
0x2f52   : > { %v9332_v20 = vpack.c.bf16 %v9282_v29, %v9279_v37  ;;  %13016 = vmatprep.subr.bf16.mxu0 %v15524_v31  ;;  %v13664_v37 = vld [vmem:[%s14023_s27] sm:$0xff]   ;;  %v13665_v29 = vld [vmem:[%s14023_s27 + $0x88] sm:$0xff]  }
0x2f55   : > { %13017 = vmatpush3.bf16.msra.mxu0 %v9332_v20  ;;  %v13667_v20 = vld [vmem:[%s14023_s27 + $0x8] sm:$0xff]  }
0x2f56   : > { %v13006_v28 = vpop.f32.mrb[176].mxu1  ;;  %13018 = vmatprep.subr.bf16.mxu0 %v15524_v31 }
0x2f57   : > { %v9295_v2 = vpop.f32.mrb[177].mxu1 }
0x2f58   : > { %v13007_v41 = vpop.f32.mrb[178].mxu1 }
0x2f59   : > { %v9335_v42 = vpack.c.bf16 %v13007_v41, %v13006_v28  ;;  %v9298_v44 = vpop.f32.mrb[179].mxu1  ;;  %13019 = vmatpush3.bf16.msra.mxu0 %v9333_v12  ;;  %v13666_v12 = vld [vmem:[%s14023_s27 + $0x48] sm:$0xff]   ;;  %v13669_v28 = vld [vmem:[%s14023_s27 + $0x50] sm:$0xff]  }
0x2f5a   : > { %v9334_v45 = vpack.c.bf16 %v9298_v44, %v9295_v2  ;;  %13020 = vmatprep.subr.bf16.mxu0 %v15524_v31  ;;  %v13668_v2 = vld [vmem:[%s14023_s27 + $0x90] sm:$0xff]   ;;  %v13671_v44 = vld [vmem:[%s14023_s27 + $0x98] sm:$0xff]  }
0x2f5b   : > { %v13670_v41 = vld [vmem:[%s14023_s27 + $0x10] sm:$0xff]  }
0x2f5d   : > { %13021 = vmatpush3.bf16.msra.mxu0 %v9334_v45  ;;  %v13673_v45 = vld [vmem:[%s14023_s27 + $0x18] sm:$0xff]  }
0x2f5e   : > { %13022 = vmatprep.subr.bf16.mxu0 %v15524_v31 }
0x2f61   : > { %13023 = vmatpush3.bf16.msra.mxu0 %v9335_v42  ;;  %v13672_v42 = vld [vmem:[%s14023_s27 + $0x58] sm:$0xff]  }
0x2f62   : > { %9620 = vmatprep.subr.bf16.mxu0 %v13637_v13  ;;  %v13677_v13 = vld [vmem:[%s14023_s27 + $0xa8] sm:$0xff]  }
0x2f64   : > { %13025 = vmatmul.mubr.bf16.vlgmr.msra.gmra.mrb[172].mxu0 %v13629_v51  ;;  %v13675_v51 = vld [vmem:[%s14023_s27 + $0x60] sm:$0xff]  }
0x2f65   : > { %9652 = vmatprep.mubr.bf16.mxu0 %v15525_v24  ;;  %9621 = vmatpush1.bf16.msra.mxu0 %v13635_v48  ;;  %v13640_v24 = vld [vmem:[%s15575_s0 + $0x1c] ss:$12 sps:$4 sm:$0xff]   ;;  %v13676_v48 = vld [vmem:[%s14023_s27 + $0x20] sm:$0xff]  }
0x2f66   : > { %9622 = vmatprep.subr.bf16.mxu0 %v13640_v24  ;;  %v13681_v24 = vld [vmem:[%s14023_s27 + $0x70] sm:$0xff]  }
0x2f69   : > { %9623 = vmatpush1.bf16.msra.mxu0 %v13638_v54  ;;  %v13680_v54 = vld [vmem:[%s14023_s27 + $0xb0] sm:$0xff]  }
0x2f6a   : > { %9624 = vmatprep.subr.bf16.mxu0 %v13643_v55  ;;  %v13682_v55 = vld [vmem:[%s14023_s27 + $0x30] sm:$0xff]  }
0x2f6d   : > { %9625 = vmatpush1.bf16.msra.mxu0 %v13641_v56  ;;  %v13683_v56 = vld [vmem:[%s14023_s27 + $0xb8] sm:$0xff]  }
0x2f6e   : > { %9626 = vmatprep.subr.bf16.mxu0 %v13647_v59  ;;  %v9475_v59 = vld [vmem:[%s15577_s3] sm:$0x7]  ;;  %s15578_s3 = sshll.u32 %s15580_s23, 4 }
0x2f6f   : > { %v9488_v62 = vrot.slane %v9475_v59, %v15559_v38  ;;  %s1226_s0 = scalar_lea.vmem %s14033_s9, %s15578_s3 }
0x2f71   : > { %9627 = vmatpush1.bf16.msra.mxu0 %v13645_v39  ;;  %v13685_v39 = vld [vmem:[%s14023_s27 + $0x38] sm:$0xff]  }
0x2f72   : > { %9628 = vmatprep.subr.bf16.mxu0 %v13650_v60  ;;  %v9480_v60 = vrot.slane %v9475_v59, %v15560_v43 }
0x2f75   : > { %9629 = vmatpush1.bf16.msra.mxu0 %v13648_v9  ;;  %v9484_v9 = vrot.slane %v9475_v59, %v15561_v23 }
0x2f76   : > { %9630 = vmatprep.subr.bf16.mxu0 %v13653_v14 }
0x2f79   : > { %9631 = vmatpush1.bf16.msra.mxu0 %v13651_v58 }
0x2f7a   : > { %9632 = vmatprep.subr.bf16.mxu0 %v13657_v7 }
0x2f7d   : > { %9633 = vmatpush1.bf16.msra.mxu0 %v13655_v40 }
0x2f7e   : > { %9634 = vmatprep.subr.bf16.mxu0 %v13660_v27 }
0x2f81   : > { %9635 = vmatpush1.bf16.msra.mxu0 %v13658_v1 }
0x2f82   : > { %11976 = vmatprep.subr.bf16.mxu0 %v13663_v32 }
0x3017   : > { %v11952_v47 = vpop.f32.mrb[168].mxu0 }
0x3018   : > { %v11953_v34 = vpop.f32.mrb[169].mxu0 }
0x3019   : > { %v11954_v61 = vadd.f32 %v11953_v34, %v11952_v47  ;;  %v11955_v36 = vpop.f32.mrb[170].mxu0 }
0x301a   : > { %v11956_v33 = vpop.f32.mrb[171].mxu0 }
0x301b   : > { %v9388_v4 = vadd.f32 %v11954_v61, %v9340_v5 }
0x3037   : > { %v9427_v10 = vpop.f32.mrb[172].mxu0 }
0x3038   : > { %v9428_v3 = vadd.f32 %v9427_v10, %v9388_v4  ;;  %v13026_v6 = vpop.f32.mrb[173].mxu0  ;;  %v11302_v10 = vld [vmem:[%s14028_s4] ss:$0 sm:$0xff] }
0x3039   : > { %v9430_v8 = vpop.f32.mrb[174].mxu0 }
0x303a   : > { %v9434_v52 = vmul.f32 0.044715, %v9428_v3  ;;  %v13027_v15 = vpop.f32.mrb[175].mxu0  ;;  %v9433_v21 = vmul.f32 0.5, %v9428_v3 }
0x303c   : > { %v9435_v16 = vmul.f32 %v9434_v52, %v9428_v3 }
0x303e   : > { %v9436_v22 = vmul.f32 %v9435_v16, %v9428_v3 }
0x3040   : > { %v9437_v17 = vadd.f32 %v9436_v22, %v9428_v3 }
0x3042   : > { %v9438_v18 = vmul.f32 0.7978846, %v9437_v17 }
0x3044   : > { %13770 = vtanh.f32 %v9438_v18 }
0x304e   : > { %v13771_v19 = vpop.eup %13770 }
0x304f   : > { %v9440_v25 = vadd.f32 1.0, %v13771_v19 }
0x3051   : > { %v9441_v63 = vmul.f32 %v9440_v25, %v9433_v21 }
0x3053   : > { %v9442_v35 = vpack.c.bf16 %v9441_v63, %v9441_v63 }
0x3055   : > { %9653 = vmatmul.mubr.bf16.vlgmr.msra.gmra.mrb[176].mxu0 %v9442_v35  ;;  %13045 = vmatmul.mubr.bf16.vlgmr.msra.gmra.mrb[180].mxu1 %v9442_v35 }
0x3056   : > { %13049 = vmatpush3.bf16.msra.mxu1 %v13662_v0  ;;  %11977 = vmatpush3.bf16.msra.mxu0 %v13664_v37 }
0x3057   : > { %13050 = vmatprep.subr.bf16.mxu1 %v15524_v31  ;;  %11978 = vmatprep.subr.bf16.mxu0 %v13666_v12 }
0x3058   : > { %13064 = vmatprep.mubr.msk.bf16.mxu1 %vm13824_vm0, %v15524_v31 }
0x305a   : > { %13051 = vmatpush3.bf16.msra.mxu1 %v13665_v29  ;;  %11979 = vmatpush3.bf16.msra.mxu0 %v13667_v20  ;;  %v9998_v29 = vpop.permute.xlu1 %9997 }
0x305b   : > { %13052 = vmatprep.subr.bf16.mxu1 %v15524_v31  ;;  %11980 = vmatprep.subr.bf16.mxu0 %v13669_v28 }
0x305e   : > { %13053 = vmatpush3.bf16.msra.mxu1 %v13668_v2  ;;  %11981 = vmatpush3.bf16.msra.mxu0 %v13670_v41  ;;  %v10003_v20 = vpop.permute.xlu1 %10002 }
0x305f   : > { %13054 = vmatprep.subr.bf16.mxu1 %v15524_v31  ;;  %11982 = vmatprep.subr.bf16.mxu0 %v13672_v42 }
0x3062   : > { %13055 = vmatpush3.bf16.msra.mxu1 %v13671_v44  ;;  %11983 = vmatpush3.bf16.msra.mxu0 %v13673_v45  ;;  %v10016_v28 = vpop.permute.xlu1 %10015 }
0x3063   : > { %13056 = vmatprep.subr.bf16.mxu1 %v15524_v31  ;;  %11984 = vmatprep.subr.bf16.mxu0 %v13675_v51  ;;  %v11327_v51 = vld [vmem:[#allocation3] ss:$0 sm:$0xff] }
0x3066   : > { %13057 = vmatpush3.bf16.msra.mxu1 %v13674_v11  ;;  %11985 = vmatpush3.bf16.msra.mxu0 %v13676_v48  ;;  %v10020_v2 = vpop.permute.xlu1 %10019  ;;  %v11328_v11 = vld [vmem:[#allocation3 + $0x1] ss:$0 sm:$0xff]  ;;  %v10009_v48 = vmul.f32 %v11327_v51, %v9998_v29 }
0x3067   : > { %13058 = vmatprep.subr.bf16.mxu1 %v15524_v31  ;;  %11986 = vmatprep.subr.bf16.mxu0 %v13678_v53  ;;  %v10026_v53 = vmul.f32 %v11328_v11, %v10016_v28 }
0x3069   : > { %v10028_v46 = vsub.f32 1.0, %v10026_v53 }
0x306a   : > { %13059 = vmatpush3.bf16.msra.mxu1 %v13677_v13  ;;  %11987 = vmatpush3.bf16.msra.mxu0 %v13679_v30  ;;  %v10035_v41 = vpop.permute.xlu1 %10034  ;;  %v10010_v13 = vmul.f32 %v11327_v51, %v10003_v20  ;;  %v10027_v30 = vmul.f32 %v11328_v11, %v10020_v2 }
0x306b   : > { %13060 = vmatprep.subr.bf16.mxu1 %v15524_v31  ;;  %11988 = vmatprep.subr.bf16.mxu0 %v13681_v24 }
0x306e   : > { %13061 = vmatpush3.bf16.msra.mxu1 %v13680_v54  ;;  %11989 = vmatpush3.bf16.msra.mxu0 %v13682_v55  ;;  %v10039_v42 = vpop.permute.xlu1 %10038  ;;  %v11329_v54 = vld [vmem:[#allocation3 + $0x2] ss:$0 sm:$0xff]  ;;  %v10011_v55 = vsub.f32 1.0, %v10009_v48  ;;  %v13774_v48 = vld [vmem:[%s14957_s11] sm:$0xff] }
0x306f   : > { %13062 = vmatprep.subr.bf16.mxu1 %v15524_v31  ;;  %11990 = vmatprep.subr.bf16.mxu0 %v13684_v57  ;;  %v10045_v49 = vmul.f32 %v11329_v54, %v10035_v41  ;;  %v11330_v57 = vld [vmem:[#allocation3 + $0x3] ss:$0 sm:$0xff]  ;;  %v10046_v59 = vmul.f32 %v11329_v54, %v10039_v42 }
0x3072   : > { %13063 = vmatpush3.bf16.msra.mxu1 %v13683_v56  ;;  %11991 = vmatpush3.bf16.msra.mxu0 %v13685_v39  ;;  %v10054_v44 = vpop.permute.xlu1 %10053  ;;  %v10029_v56 = vsub.f32 1.0, %v10027_v30  ;;  %v10030_v39 = vmul.f32 %v10028_v46, %v10011_v55  ;;  %v13775_v55 = vld [vmem:[%s14957_s11 + $0x8] sm:$0xff] }
0x3073   : > { %13068 = vmatprep.subr.bf16.mxu0 %v15524_v31 }
0x3076   : > { %v10073_v45 = vpop.permute.xlu1 %10072 }
0x307a   : > { %v10077_v24 = vpop.permute.xlu1 %10076 }
0x3128   : > { %v9654_v14 = vpop.f32.mrb[176].mxu0  ;;  %v9695_v26 = vpop.f32.mrb[180].mxu1 }
0x3129   : > { %v9655_v58 = vadd.f32 %v9654_v14, %v9480_v60  ;;  %v9696_v7 = vadd.f32 %v9695_v26, %v9488_v62  ;;  %v9656_v40 = vpop.f32.mrb[177].mxu0  ;;  %v13046_v27 = vpop.f32.mrb[181].mxu1  ;;  %v10047_v62 = vsub.f32 1.0, %v10045_v49 }
0x312a   : > { %v9657_v1 = vadd.f32 %v9656_v40, %v9484_v9  ;;  %v9658_v32 = vpop.f32.mrb[178].mxu0  ;;  %v9698_v47 = vpop.f32.mrb[182].mxu1  ;;  %v10064_v9 = vmul.f32 %v11330_v57, %v10054_v44  ;;  %v10048_v40 = vsub.f32 1.0, %v10046_v59 }
0x312b   : > { %v9703_v34 = vpack.c.bf16 %v9696_v7, %v9696_v7  ;;  %v9659_v61 = vpop.f32.mrb[179].mxu0  ;;  %v13047_v36 = vpop.f32.mrb[183].mxu1  ;;  %v9701_v5 = vpack.c.bf16 %v9655_v58, %v9655_v58  ;;  %v11331_v58 = vld [vmem:[#allocation3 + $0x4] ss:$0 sm:$0xff]  ;;  %v10049_v7 = vmul.f32 %v10047_v62, %v10030_v39 }
0x312c   : > { %v9702_v33 = vpack.c.bf16 %v9657_v1, %v9657_v1  ;;  %v10096_v60 = vpop.permute.xlu1 %10095  ;;  %v10058_v26 = vpop.permute.xlu0 %10057  ;;  %v10066_v1 = vsub.f32 1.0, %v10064_v9  ;;  %v10083_v32 = vmul.f32 %v11331_v58, %v10073_v45  ;;  %v11332_v61 = vld [vmem:[#allocation3 + $0x5] ss:$0 sm:$0xff] }
0x312d   : > { %13065 = vmatmul.mubr.bf16.vlgmr.msra.gmra.mrb[184].mxu1 %v9703_v34  ;;  %v10065_v27 = vmul.f32 %v11330_v57, %v10058_v26 }
0x312e   : > { %9935 = vmatprep.mubr.bf16.mxu0 %v9702_v33  ;;  %v10068_v36 = vmul.f32 %v10066_v1, %v10049_v7 }
0x312f   : > { %9936 = vmatmul.mubr.bf16.vlgmr.msra.gmra.mrb[180].mxu0 %v9701_v5  ;;  %v10067_v33 = vsub.f32 1.0, %v10065_v27  ;;  %v10084_v5 = vmul.f32 %v11331_v58, %v10077_v24 }
0x3130   : > { %13070 = vmatprep.mubr.msk.bf16.mxu0 %vm13824_vm0, %v15524_v31  ;;  %v10111_v34 = vpop.permute.xlu1 %10110 }
0x3200   : > { %v9977_v38 = vpop.f32.mrb[184].mxu1 }
0x3201   : > { %v13066_v43 = vpop.f32.mrb[185].mxu1 }
0x3202   : > { %v11992_v23 = vpop.f32.mrb[180].mxu0  ;;  %v9980_v4 = vpop.f32.mrb[186].mxu1  ;;  %v10085_v43 = vsub.f32 1.0, %v10083_v32 }
0x3203   : > { %v11993_v3 = vpop.f32.mrb[181].mxu0  ;;  %v13067_v6 = vpop.f32.mrb[187].mxu1 }
0x3204   : > { %v11994_v8 = vadd.f32 %v11993_v3, %v11992_v23  ;;  %v11995_v52 = vpop.f32.mrb[182].mxu0  ;;  %v10087_v3 = vmul.f32 %v10085_v43, %v10068_v36  ;;  %v10086_v6 = vsub.f32 1.0, %v10084_v5 }
0x3205   : > { %v11996_v15 = vpop.f32.mrb[183].mxu0  ;;  %v10130_v52 = vpop.permute.xlu1 %10129 }
0x3206   : > { %v9938_v16 = vadd.f32 %v11994_v8, %v11302_v10  ;;  %v11333_v10 = vld [vmem:[#allocation3 + $0x6] ss:$0 sm:$0xff]  ;;  %v10103_v8 = vmul.f32 %v11332_v61, %v10096_v60 }
0x3208   : > { %v9978_v22 = vadd.f32 %v9977_v38, %v9938_v16  ;;  %v10092_v38 = vpop.permute.xlu0 %10091  ;;  %v10121_v16 = vmul.f32 %v11333_v10, %v10111_v34 }
0x3209   : > { %v10102_v23 = vmul.f32 %v11332_v61, %v10092_v38 }
0x320a   : > { %v9984_v17 = vmul.f32 0.044715, %v9978_v22  ;;  %v9983_v31 = vmul.f32 0.5, %v9978_v22 }
0x320b   : > { %v10104_v15 = vsub.f32 1.0, %v10102_v23 }
0x320c   : > { %v9985_v18 = vmul.f32 %v9984_v17, %v9978_v22  ;;  %v10115_v17 = vpop.permute.xlu0 %10114 }
0x320e   : > { %v9986_v19 = vmul.f32 %v9985_v18, %v9978_v22  ;;  %v11334_v18 = vld [vmem:[#allocation3 + $0x7] ss:$0 sm:$0xff] }
0x3210   : > { %v9987_v21 = vadd.f32 %v9986_v19, %v9978_v22  ;;  %v10106_v19 = vmul.f32 %v10104_v15, %v10087_v3 }
0x3212   : > { %v9988_v25 = vmul.f32 0.7978846, %v9987_v21  ;;  %v10105_v21 = vsub.f32 1.0, %v10103_v8 }
0x3214   : > { %13772 = vtanh.f32 %v9988_v25  ;;  %v10122_v25 = vmul.f32 %v11333_v10, %v10115_v17 }
0x321e   : > { %v13773_v63 = vpop.eup %13772 }
0x321f   : > { %v9990_v0 = vadd.f32 1.0, %v13773_v63  ;;  %v10123_v63 = vsub.f32 1.0, %v10121_v16 }
0x3221   : > { %v9991_v37 = vmul.f32 %v9990_v0, %v9983_v31  ;;  %v10140_v31 = vmul.f32 %v11334_v18, %v10130_v52 }
0x3223   : > { %v10147_v35 = vpack.c.bf16 %v9991_v37, %v9991_v37  ;;  %v10134_v37 = vpop.permute.xlu1 %10133  ;;  %v10142_v20 = vsub.f32 1.0, %v10140_v31 }
0x3224   : > { %v10141_v29 = vmul.f32 %v11334_v18, %v10134_v37 }
0x3225   : > { %v10152_v12 = vsel %vm1689_vm4, %v10147_v35, 0  ;;  %v10125_v35 = vmul.f32 %v10123_v63, %v10106_v19 }
0x3226   : > { %13069 = vmatpush3.bf16.msra.mxu0 %v10152_v12  ;;  %v10124_v12 = vsub.f32 1.0, %v10122_v25  ;;  %v10143_v41 = vsub.f32 1.0, %v10141_v29 }
0x3227   : > { %v10144_v2 = vmul.f32 %v10142_v20, %v10125_v35 }
0x3229   : > { %13071 = vmatmul.mubr.msk.bf16.vlgmr.msra.gmra.mrb[184].mxu0 %vm7528_vm5, %v10146_v50  ;;  %v10012_v50 = vsub.f32 1.0, %v10010_v13  ;;  %v10195_v53 = vmul.f32 %v13774_v48, %v10144_v2 }
0x322b   : > { %v10031_v14 = vmul.f32 %v10029_v56, %v10012_v50 }
0x322d   : > { %v10050_v47 = vmul.f32 %v10048_v40, %v10031_v14 }
0x322f   : > { %v10069_v4 = vmul.f32 %v10067_v33, %v10050_v47 }
0x3231   : > { %v10088_v22 = vmul.f32 %v10086_v6, %v10069_v4 }
0x3233   : > { %v10107_v0 = vmul.f32 %v10105_v21, %v10088_v22 }
0x3235   : > { %v10126_v28 = vmul.f32 %v10124_v12, %v10107_v0 }
0x3237   : > { %v10145_v51 = vmul.f32 %v10143_v41, %v10126_v28 }
0x3239   : > { %v10196_v46 = vmul.f32 %v13775_v55, %v10145_v51 }
0x32fc   : > { %v10188_v42 = vpop.f32.mrb[184].mxu0 }
0x32fd   : > { %v10197_v44 = vmul.f32 0.125, %v10188_v42  ;;  %v13072_v45 = vpop.f32.mrb[185].mxu0 }
0x32fe   : > { %v10191_v11 = vpop.f32.mrb[186].mxu0 }
0x32ff   : > { %v10199_v13 = vsub.f32 1.0, %v10197_v44  ;;  %v10198_v30 = vmul.f32 0.125, %v10191_v11  ;;  %v13073_v24 = vpop.f32.mrb[187].mxu0 }
0x3301   : > { %v10201_v54 = vadd.f32 %v10199_v13, %v10195_v53  ;;  %v10200_v49 = vsub.f32 1.0, %v10198_v30 }
0x3303   : > { %10203 = vst [vmem:[%s1226_s0] sm:$0xff] %v10201_v54  ;;  %v10202_v50 = vadd.f32 %v10200_v49, %v10196_v46 }
0x3305   : > { %10204 = vst [vmem:[%s1226_s0 + $0x8] sm:$0xff] %v10202_v50 }
0x3306 PF: > { %s90_s22 = sadd.s32 1, %s13782_s22  }
0x3307   : > { %p87_p4 = scmp.ge.s32.totalorder %s90_s22, 4  }
0x3309   :  { %89 = sbr.rel (!%p87_p4) target bundleno = 76 (0x4c), region = 308 }

</bundles_post_ra>
